<compile_context>
chip_gen: v7x
topology: tpu7x:2x2x1
jax: 0.10.0
libtpu: 0.0.40
codegen_flags: <defaults>
</compile_context>

<pallas_src>
import numpy as np
import jax
import jax.numpy as jnp
from jax import lax
from jax.experimental import pallas as pl
from jax.experimental.pallas import tpu as pltpu


# ----------------------------------------------------------------------------
# In-kernel helpers.  Activations are values of shape (C, P) with P = H*W in
# the lane dimension (lane-dense).
# ----------------------------------------------------------------------------
def _shift_lanes(x, s):
    """y[:, p] = x[:, p + s] with zero fill (s is a static Python int)."""
    if s == 0:
        return x
    C, P = x.shape
    z = jnp.zeros((C, abs(s)), x.dtype)
    if s > 0:
        return jnp.concatenate([x[:, s:], z], axis=1)
    return jnp.concatenate([z, x[:, :P + s]], axis=1)


def _conv3x3(parts, b_ref, mask, W, relu=True):
    """3x3 SAME conv in (C, P) layout as 9 MXU matmuls over shifted taps.

    parts: list of (x (Cin_i, P) value, w_ref (9, Cout, Cin_i) ref); the
           channel dims of the parts are implicitly concatenated (used for the
           decoder's concat(up, skip) without materializing the concat).
    mask:  (9, P) value, row t == 1.0 where tap t reads an in-bounds pixel.
    """
    acc = None
    for dh in range(3):
        for dw in range(3):
            t = dh * 3 + dw
            s = (dh - 1) * W + (dw - 1)
            mk = None if t == 4 else mask[t:t + 1, :]
            for xv, w_ref in parts:
                xs = _shift_lanes(xv, s)
                if mk is not None:
                    xs = xs * mk
                z = jnp.dot(w_ref[t], xs, preferred_element_type=jnp.float32)
                acc = z if acc is None else acc + z
    acc = acc + b_ref[...]
    return jnp.maximum(acc, 0.0) if relu else acc


def _maxpool2x2(x, d_ref, W):
    """2x2/2 max-pool: VPU window max + aligned 0/1 compaction matmul."""
    m = jnp.maximum(jnp.maximum(x, _shift_lanes(x, 1)),
                    jnp.maximum(_shift_lanes(x, W), _shift_lanes(x, W + 1)))
    return jnp.dot(m, d_ref[...], preferred_element_type=jnp.float32)


def _convT_up2x(x, t_ref, b_ref, e_ref, mask, W):
    """Polyphase ConvTranspose2d(k=3, s=2, p=1, op=1) in (C, P) layout.

    x: (Cin, Hs*Ws).  t_ref: (9, Cout, Cin), t_ref[kh*3+kw] = wt[:,:,kh,kw].T.
    e_ref: (4, Hs*Ws, 4*Hs*Ws) exact 0/1 parity-interleave matrices.
    Returns (Cout, 4*Hs*Ws) = the 2x-upsampled map (no activation).
    """
    def mm(a, b):
        return jnp.dot(a, b, preferred_element_type=jnp.float32)

    x1 = _shift_lanes(x, 1) * mask[5:6, :]        # x(m, n+1), mask n+1 < Ws
    xW = _shift_lanes(x, W) * mask[7:8, :]        # x(m+1, n), mask m+1 < Hs
    xW1 = _shift_lanes(x, W + 1) * mask[8:9, :]   # x(m+1, n+1)
    y00 = mm(t_ref[4], x)                                             # w[1,1]
    y01 = mm(t_ref[5], x) + mm(t_ref[3], x1)                          # w[1,2],w[1,0]
    y10 = mm(t_ref[7], x) + mm(t_ref[1], xW)                          # w[2,1],w[0,1]
    y11 = (mm(t_ref[8], x) + mm(t_ref[6], x1)                         # w[2,2],w[2,0]
           + mm(t_ref[2], xW) + mm(t_ref[0], xW1))                    # w[0,2],w[0,0]
    up = (mm(y00, e_ref[0]) + mm(y01, e_ref[1])
          + mm(y10, e_ref[2]) + mm(y11, e_ref[3]))
    return up + b_ref[...]


# ----------------------------------------------------------------------------
# Host-side constants (computed once, DMA'd to VMEM once per kernel launch).
# ----------------------------------------------------------------------------
def _tap_masks(H, W):
    """(9, H*W) 0/1 mask; row dh*3+dw valid where (h+dh-1, w+dw-1) in-bounds."""
    p = np.arange(H * W)
    h, w = p // W, p % W
    M = np.zeros((9, H * W), np.float32)
    for dh in range(3):
        for dw in range(3):
            ah, aw = dh - 1, dw - 1
            valid = ((h + ah >= 0) & (h + ah < H) & (w + aw >= 0) & (w + aw < W))
            M[dh * 3 + dw] = valid.astype(np.float32)
    return M


def _pool_matrix(H, W):
    """(H*W, Ho*Wo) 0/1 matrix selecting the (2i, 2j) anchors (exact in f32)."""
    Ho, Wo = H // 2, W // 2
    D = np.zeros((H * W, Ho * Wo), np.float32)
    q = np.arange(Ho * Wo)
    D[2 * (q // Wo) * W + 2 * (q % Wo), q] = 1.0
    return D


def _upsample_matrix(Hs, Ws):
    """(4, Hs*Ws, 4*Hs*Ws): parity (dr,dc) of the 2x map -> full-res lanes."""
    Ps = Hs * Ws
    E = np.zeros((4, Ps, 4 * Ps), np.float32)
    q = np.arange(Ps)
    r, s = q // Ws, q % Ws
    for k, (dr, dc) in enumerate(((0, 0), (0, 1), (1, 0), (1, 1))):
        E[k, q, (2 * r + dr) * (2 * Ws) + 2 * s + dc] = 1.0
    return E


def _w_conv(w_hwio):                  # (3,3,Cin,Cout) -> (9, Cout, Cin)
    cin, cout = w_hwio.shape[2], w_hwio.shape[3]
    return jnp.transpose(w_hwio, (0, 1, 3, 2)).reshape(9, cout, cin)


def _w_convT(wt):                     # torch (Cin,Cout,3,3) -> (9, Cout, Cin)
    cin, cout = wt.shape[0], wt.shape[1]
    return jnp.transpose(wt, (2, 3, 1, 0)).reshape(9, cout, cin)


def _b_col(b):                        # (C,) -> (C, 1)
    return jnp.reshape(b, (-1, 1))


# ----------------------------------------------------------------------------
# Fully-fused UNet forward (single pallas_call)
# ----------------------------------------------------------------------------
def unet_forward(params, x_nchw):
    N, Cin, H, W = x_nchw.shape
    num_classes = params["head"][0].shape[-1]

    # Input stays NCHW; (N, C, H, W) -> (N, C, H*W) is a free (metadata) view.
    inputs = [jnp.reshape(x_nchw, (N, Cin, H * W)).astype(jnp.float32)]
    in_specs = [pl.BlockSpec((1, Cin, H * W), lambda n: (n, 0, 0))]

    def add(a):
        a = jnp.asarray(a, jnp.float32)
        inputs.append(a)
        # Full-array blocks with constant index maps: fetched once, stay
        # resident in VMEM across the (parallel) batch grid.
        in_specs.append(pl.BlockSpec(a.shape, lambda n, _nd=a.ndim: (0,) * _nd))
        return len(inputs) - 1

    mask_cache = {}

    def mask_for(h, w):
        if (h, w) not in mask_cache:
            mask_cache[(h, w)] = add(_tap_masks(h, w))
        return mask_cache[(h, w)]

    plan_enc, plan_dec = [], []
    flops = 0
    hs, ws, cprev = H, W, Cin

    for (w1, b1, w2, b2) in params["enc"]:
        assert hs % 2 == 0 and ws % 2 == 0, "encoder levels require even H, W"
        C = w1.shape[-1]
        P, Po = hs * ws, (hs // 2) * (ws // 2)
        plan_enc.append(dict(
            W=ws, m=mask_for(hs, ws),
            w1=add(_w_conv(w1)), b1=add(_b_col(b1)),
            w2=add(_w_conv(w2)), b2=add(_b_col(b2)),
            D=add(_pool_matrix(hs, ws))))
        flops += 2 * 9 * P * (cprev * C + C * C) + 2 * P * Po * C
        cprev, hs, ws = C, hs // 2, ws // 2

    bw1, bb1, bw2, bb2 = params["bottleneck"]
    Cb = bw1.shape[-1]
    plan_bn = dict(W=ws, m=mask_for(hs, ws),
                   w1=add(_w_conv(bw1)), b1=add(_b_col(bb1)),
                   w2=add(_w_conv(bw2)), b2=add(_b_col(bb2)))
    flops += 2 * 9 * hs * ws * (cprev * Cb + Cb * Cb)
    cprev = Cb

    for (wt, bt, w1, b1, w2, b2) in params["dec"]:
        C = wt.shape[1]
        Ps, Pout = hs * ws, 4 * hs * ws
        plan_dec.append(dict(
            Ws=ws, Wo=2 * ws,
            ms=mask_for(hs, ws), mo=mask_for(2 * hs, 2 * ws),
            t=add(_w_convT(wt)), bt=add(_b_col(bt)),
            E=add(_upsample_matrix(hs, ws)),
            w1u=add(_w_conv(w1[:, :, :C, :])),     # channels [0:C]  act on up
            w1s=add(_w_conv(w1[:, :, C:, :])),     # channels [C:2C] act on skip
            b1=add(_b_col(b1)),
            w2=add(_w_conv(w2)), b2=add(_b_col(b2))))
        flops += 2 * 9 * Ps * cprev * C + 2 * 4 * Ps * Pout * C
        flops += 2 * 9 * Pout * (3 * C * C)
        cprev, hs, ws = C, 2 * hs, 2 * ws

    wh, bh = params["head"]
    plan_head = dict(W=ws, m=mask_for(hs, ws),
                     w=add(_w_conv(wh)), b=add(_b_col(bh)))
    flops += 2 * 9 * hs * ws * cprev * num_classes
    flops *= N
    assert (hs, ws) == (H, W)

    nbytes = 4 * (sum(int(np.prod(a.shape)) for a in inputs)
                  + N * num_classes * H * W)

    def kernel(*refs):
        out_ref = refs[-1]
        x = refs[0][0]                                    # (Cin, H*W)

        skips = []
        for lvl in plan_enc:
            mk = refs[lvl["m"]][...]
            h1 = _conv3x3([(x, refs[lvl["w1"]])], refs[lvl["b1"]], mk, lvl["W"])
            r = _conv3x3([(h1, refs[lvl["w2"]])], refs[lvl["b2"]], mk, lvl["W"])
            skips.append(r)
            x = _maxpool2x2(r, refs[lvl["D"]], lvl["W"])

        mk = refs[plan_bn["m"]][...]
        x = _conv3x3([(x, refs[plan_bn["w1"]])], refs[plan_bn["b1"]],
                     mk, plan_bn["W"])
        x = _conv3x3([(x, refs[plan_bn["w2"]])], refs[plan_bn["b2"]],
                     mk, plan_bn["W"])

        for lvl, skip in zip(plan_dec, reversed(skips)):
            ms = refs[lvl["ms"]][...]
            mo = refs[lvl["mo"]][...]
            up = _convT_up2x(x, refs[lvl["t"]], refs[lvl["bt"]],
                             refs[lvl["E"]], ms, lvl["Ws"])
            h1 = _conv3x3([(up, refs[lvl["w1u"]]), (skip, refs[lvl["w1s"]])],
                          refs[lvl["b1"]], mo, lvl["Wo"])
            x = _conv3x3([(h1, refs[lvl["w2"]])], refs[lvl["b2"]], mo, lvl["Wo"])

        mk = refs[plan_head["m"]][...]
        y = _conv3x3([(x, refs[plan_head["w"]])], refs[plan_head["b"]],
                     mk, plan_head["W"], relu=False)
        out_ref[0] = y.astype(out_ref.dtype)              # (num_classes, H*W)

    out = pl.pallas_call(
        kernel,
        out_shape=jax.ShapeDtypeStruct((N, num_classes, H * W), jnp.float32),
        grid=(N,),
        in_specs=in_specs,
        out_specs=pl.BlockSpec((1, num_classes, H * W), lambda n: (n, 0, 0)),
        compiler_params=pltpu.CompilerParams(dimension_semantics=("parallel",)),
        cost_estimate=pl.CostEstimate(flops=int(flops), transcendentals=0,
                                      bytes_accessed=int(nbytes)),
    )(*inputs)
    return jnp.reshape(out, (N, num_classes, H, W))       # free reshape


# ----------------------------------------------------------------------------
# Parameters (deterministic synthetic init, PyTorch module shapes)
# ----------------------------------------------------------------------------
def _conv_w(key, cin, cout):
    kw, kb = jax.random.split(key)
    scale = 1.0 / np.sqrt(9.0 * cin)
    w = jax.random.normal(kw, (3, 3, cin, cout), jnp.float32) * scale   # HWIO
    b = jax.random.normal(kb, (cout,), jnp.float32) * 0.01
    return w, b


def _convT_w(key, cin, cout):
    kw, kb = jax.random.split(key)
    scale = 1.0 / np.sqrt(9.0 * cin)
    w = jax.random.normal(kw, (cin, cout, 3, 3), jnp.float32) * scale   # torch
    b = jax.random.normal(kb, (cout,), jnp.float32) * 0.01
    return w, b


def init_unet_params(key, in_ch, num_classes, embed_dims):
    keys = iter(jax.random.split(key, 64))
    params = {"enc": [], "dec": []}
    n_levels = len(embed_dims) - 1
    for i in range(n_levels):
        cin = in_ch if i == 0 else embed_dims[i - 1]
        cout = embed_dims[i]
        params["enc"].append((*_conv_w(next(keys), cin, cout),
                              *_conv_w(next(keys), cout, cout)))
    params["bottleneck"] = (*_conv_w(next(keys), embed_dims[-2], embed_dims[-1]),
                            *_conv_w(next(keys), embed_dims[-1], embed_dims[-1]))
    rd = list(reversed(embed_dims))      # torch module reverses in place
    for i in range(n_levels):
        wt, bt = _convT_w(next(keys), rd[i], rd[i + 1])
        w1, b1 = _conv_w(next(keys), 2 * rd[i + 1], rd[i + 1])
        w2, b2 = _conv_w(next(keys), rd[i + 1], rd[i + 1])
        params["dec"].append((wt, bt, w1, b1, w2, b2))
    params["head"] = _conv_w(next(keys), rd[-1], num_classes)
    return params


# ----------------------------------------------------------------------------
# Pure-JAX reference (correctness check only)
# ----------------------------------------------------------------------------
def _ref_conv_same(x, w, b, relu):
    y = lax.conv_general_dilated(x, w, (1, 1), "SAME",
                                 dimension_numbers=("NHWC", "HWIO", "NHWC"))
    y = y + b
    return jnp.maximum(y, 0.0) if relu else y


def _ref_convT(x, wt, b):
    wconv = jnp.transpose(wt, (2, 3, 0, 1))[::-1, ::-1]
    y = lax.conv_general_dilated(x, wconv, (1, 1), [(1, 2), (1, 2)],
                                 lhs_dilation=(2, 2),
                                 dimension_numbers=("NHWC", "HWIO", "NHWC"))
    return y + b


def _ref_pool(x):
    return lax.reduce_window(x, -jnp.inf, lax.max,
                             (1, 2, 2, 1), (1, 2, 2, 1), "VALID")


def unet_reference(params, x_nchw):
    x = jnp.transpose(x_nchw, (0, 2, 3, 1))
    residuals = []
    for (w1, b1, w2, b2) in params["enc"]:
        x = _ref_conv_same(x, w1, b1, True)
        x = _ref_conv_same(x, w2, b2, True)
        residuals.append(x)
        x = _ref_pool(x)
    w1, b1, w2, b2 = params["bottleneck"]
    x = _ref_conv_same(x, w1, b1, True)
    x = _ref_conv_same(x, w2, b2, True)
    residuals.reverse()
    for i, (wt, bt, w1, b1, w2, b2) in enumerate(params["dec"]):
        x = _ref_convT(x, wt, bt)
        x = jnp.concatenate([x, residuals[i]], axis=-1)
        x = _ref_conv_same(x, w1, b1, True)
        x = _ref_conv_same(x, w2, b2, True)
    wh, bh = params["head"]
    x = _ref_conv_same(x, wh, bh, False)
    return jnp.transpose(x, (0, 3, 1, 2))


# ----------------------------------------------------------------------------
if __name__ == "__main__":
    in_ch, num_classes = 4, 3
    embed_dims = [8, 16, 32]
    N, H, W = 2, 16, 16

    key = jax.random.PRNGKey(0)
    kx, kp = jax.random.split(key)
    x = jax.random.normal(kx, (N, in_ch, H, W), jnp.float32)   # NCHW like torch
    params = init_unet_params(kp, in_ch, num_classes, embed_dims)

    out = jax.block_until_ready(jax.jit(unet_forward)(params, x))
    ref = jax.block_until_ready(unet_reference(params, x))

    assert out.shape == (N, num_classes, H, W), out.shape
    np.testing.assert_allclose(np.asarray(out), np.asarray(ref),
                               rtol=2e-4, atol=2e-4)
    print("KERNEL_OK")
</pallas_src>

<mosaic_0001>
module attributes {stable_mosaic.version = 11 : i64} {
  func.func @kernel(%arg0: i32, %arg1: memref<1x4x256xf32, #tpu.memory_space<vmem>>, %arg2: memref<9x256xf32, #tpu.memory_space<vmem>>, %arg3: memref<9x8x4xf32, #tpu.memory_space<vmem>>, %arg4: memref<8x1xf32, #tpu.memory_space<vmem>>, %arg5: memref<9x8x8xf32, #tpu.memory_space<vmem>>, %arg6: memref<8x1xf32, #tpu.memory_space<vmem>>, %arg7: memref<256x64xf32, #tpu.memory_space<vmem>>, %arg8: memref<9x64xf32, #tpu.memory_space<vmem>>, %arg9: memref<9x16x8xf32, #tpu.memory_space<vmem>>, %arg10: memref<16x1xf32, #tpu.memory_space<vmem>>, %arg11: memref<9x16x16xf32, #tpu.memory_space<vmem>>, %arg12: memref<16x1xf32, #tpu.memory_space<vmem>>, %arg13: memref<64x16xf32, #tpu.memory_space<vmem>>, %arg14: memref<9x16xf32, #tpu.memory_space<vmem>>, %arg15: memref<9x32x16xf32, #tpu.memory_space<vmem>>, %arg16: memref<32x1xf32, #tpu.memory_space<vmem>>, %arg17: memref<9x32x32xf32, #tpu.memory_space<vmem>>, %arg18: memref<32x1xf32, #tpu.memory_space<vmem>>, %arg19: memref<9x16x32xf32, #tpu.memory_space<vmem>>, %arg20: memref<16x1xf32, #tpu.memory_space<vmem>>, %arg21: memref<4x16x64xf32, #tpu.memory_space<vmem>>, %arg22: memref<9x16x16xf32, #tpu.memory_space<vmem>>, %arg23: memref<9x16x16xf32, #tpu.memory_space<vmem>>, %arg24: memref<16x1xf32, #tpu.memory_space<vmem>>, %arg25: memref<9x16x16xf32, #tpu.memory_space<vmem>>, %arg26: memref<16x1xf32, #tpu.memory_space<vmem>>, %arg27: memref<9x8x16xf32, #tpu.memory_space<vmem>>, %arg28: memref<8x1xf32, #tpu.memory_space<vmem>>, %arg29: memref<4x64x256xf32, #tpu.memory_space<vmem>>, %arg30: memref<9x8x8xf32, #tpu.memory_space<vmem>>, %arg31: memref<9x8x8xf32, #tpu.memory_space<vmem>>, %arg32: memref<8x1xf32, #tpu.memory_space<vmem>>, %arg33: memref<9x8x8xf32, #tpu.memory_space<vmem>>, %arg34: memref<8x1xf32, #tpu.memory_space<vmem>>, %arg35: memref<9x3x8xf32, #tpu.memory_space<vmem>>, %arg36: memref<3x1xf32, #tpu.memory_space<vmem>>, %arg37: memref<1x3x256xf32, #tpu.memory_space<vmem>>) attributes {dimension_semantics = [#tpu.dimension_semantics<parallel>], iteration_bounds = array<i64: 2>, scalar_prefetch = 0 : i64, scratch_operands = 0 : i64, tpu.core_type = #tpu.core_type<tc>, window_params = [{transform_indices = @transform_0, window_bounds = array<i64: 1, 4, 256>}, {pipeline_mode = #tpu.pipeline_mode<synchronous>, transform_indices = @transform_1, window_bounds = array<i64: 9, 256>}, {pipeline_mode = #tpu.pipeline_mode<synchronous>, transform_indices = @transform_2, window_bounds = array<i64: 9, 8, 4>}, {pipeline_mode = #tpu.pipeline_mode<synchronous>, transform_indices = @transform_3, window_bounds = array<i64: 8, 1>}, {pipeline_mode = #tpu.pipeline_mode<synchronous>, transform_indices = @transform_4, window_bounds = array<i64: 9, 8, 8>}, {pipeline_mode = #tpu.pipeline_mode<synchronous>, transform_indices = @transform_5, window_bounds = array<i64: 8, 1>}, {pipeline_mode = #tpu.pipeline_mode<synchronous>, transform_indices = @transform_6, window_bounds = array<i64: 256, 64>}, {pipeline_mode = #tpu.pipeline_mode<synchronous>, transform_indices = @transform_7, window_bounds = array<i64: 9, 64>}, {pipeline_mode = #tpu.pipeline_mode<synchronous>, transform_indices = @transform_8, window_bounds = array<i64: 9, 16, 8>}, {pipeline_mode = #tpu.pipeline_mode<synchronous>, transform_indices = @transform_9, window_bounds = array<i64: 16, 1>}, {pipeline_mode = #tpu.pipeline_mode<synchronous>, transform_indices = @transform_10, window_bounds = array<i64: 9, 16, 16>}, {pipeline_mode = #tpu.pipeline_mode<synchronous>, transform_indices = @transform_11, window_bounds = array<i64: 16, 1>}, {pipeline_mode = #tpu.pipeline_mode<synchronous>, transform_indices = @transform_12, window_bounds = array<i64: 64, 16>}, {pipeline_mode = #tpu.pipeline_mode<synchronous>, transform_indices = @transform_13, window_bounds = array<i64: 9, 16>}, {pipeline_mode = #tpu.pipeline_mode<synchronous>, transform_indices = @transform_14, window_bounds = array<i64: 9, 32, 16>}, {pipeline_mode = #tpu.pipeline_mode<synchronous>, transform_indices = @transform_15, window_bounds = array<i64: 32, 1>}, {pipeline_mode = #tpu.pipeline_mode<synchronous>, transform_indices = @transform_16, window_bounds = array<i64: 9, 32, 32>}, {pipeline_mode = #tpu.pipeline_mode<synchronous>, transform_indices = @transform_17, window_bounds = array<i64: 32, 1>}, {pipeline_mode = #tpu.pipeline_mode<synchronous>, transform_indices = @transform_18, window_bounds = array<i64: 9, 16, 32>}, {pipeline_mode = #tpu.pipeline_mode<synchronous>, transform_indices = @transform_19, window_bounds = array<i64: 16, 1>}, {pipeline_mode = #tpu.pipeline_mode<synchronous>, transform_indices = @transform_20, window_bounds = array<i64: 4, 16, 64>}, {pipeline_mode = #tpu.pipeline_mode<synchronous>, transform_indices = @transform_21, window_bounds = array<i64: 9, 16, 16>}, {pipeline_mode = #tpu.pipeline_mode<synchronous>, transform_indices = @transform_22, window_bounds = array<i64: 9, 16, 16>}, {pipeline_mode = #tpu.pipeline_mode<synchronous>, transform_indices = @transform_23, window_bounds = array<i64: 16, 1>}, {pipeline_mode = #tpu.pipeline_mode<synchronous>, transform_indices = @transform_24, window_bounds = array<i64: 9, 16, 16>}, {pipeline_mode = #tpu.pipeline_mode<synchronous>, transform_indices = @transform_25, window_bounds = array<i64: 16, 1>}, {pipeline_mode = #tpu.pipeline_mode<synchronous>, transform_indices = @transform_26, window_bounds = array<i64: 9, 8, 16>}, {pipeline_mode = #tpu.pipeline_mode<synchronous>, transform_indices = @transform_27, window_bounds = array<i64: 8, 1>}, {pipeline_mode = #tpu.pipeline_mode<synchronous>, transform_indices = @transform_28, window_bounds = array<i64: 4, 64, 256>}, {pipeline_mode = #tpu.pipeline_mode<synchronous>, transform_indices = @transform_29, window_bounds = array<i64: 9, 8, 8>}, {pipeline_mode = #tpu.pipeline_mode<synchronous>, transform_indices = @transform_30, window_bounds = array<i64: 9, 8, 8>}, {pipeline_mode = #tpu.pipeline_mode<synchronous>, transform_indices = @transform_31, window_bounds = array<i64: 8, 1>}, {pipeline_mode = #tpu.pipeline_mode<synchronous>, transform_indices = @transform_32, window_bounds = array<i64: 9, 8, 8>}, {pipeline_mode = #tpu.pipeline_mode<synchronous>, transform_indices = @transform_33, window_bounds = array<i64: 8, 1>}, {pipeline_mode = #tpu.pipeline_mode<synchronous>, transform_indices = @transform_34, window_bounds = array<i64: 9, 3, 8>}, {pipeline_mode = #tpu.pipeline_mode<synchronous>, transform_indices = @transform_35, window_bounds = array<i64: 3, 1>}, {transform_indices = @transform_36, window_bounds = array<i64: 1, 3, 256>}]} {
    %c0 = arith.constant 0 : index
    %c0_0 = arith.constant 0 : index
    %c0_1 = arith.constant 0 : index
    %0 = vector.load %arg1[%c0, %c0_0, %c0_1] : memref<1x4x256xf32, #tpu.memory_space<vmem>>, vector<1x4x256xf32>
    %1 = vector.shape_cast %0 : vector<1x4x256xf32> to vector<4x256xf32>
    %c0_2 = arith.constant 0 : index
    %c0_3 = arith.constant 0 : index
    %2 = vector.load %arg2[%c0_2, %c0_3] : memref<9x256xf32, #tpu.memory_space<vmem>>, vector<9x256xf32>
    %3 = vector.extract_strided_slice %2 {offsets = [0, 0], sizes = [1, 256], strides = [1, 1]} : vector<9x256xf32> to vector<1x256xf32>
    %cst = arith.constant 0.000000e+00 : f32
    %4 = vector.broadcast %cst : f32 to vector<4x17xf32>
    %5 = vector.extract_strided_slice %1 {offsets = [0, 0], sizes = [4, 239], strides = [1, 1]} : vector<4x256xf32> to vector<4x239xf32>
    %6 = tpu.concatenate %4, %5 in 1 : vector<4x17xf32>, vector<4x239xf32> -> vector<4x256xf32>
    %7 = vector.broadcast %3 : vector<1x256xf32> to vector<4x256xf32>
    %8 = arith.mulf %6, %7 : vector<4x256xf32>
    %c0_4 = arith.constant 0 : index
    %c0_5 = arith.constant 0 : index
    %c0_6 = arith.constant 0 : index
    %9 = vector.load %arg3[%c0_4, %c0_5, %c0_6] : memref<9x8x4xf32, #tpu.memory_space<vmem>>, vector<1x8x4xf32>
    %10 = vector.shape_cast %9 : vector<1x8x4xf32> to vector<8x4xf32>
    %cst_7 = arith.constant dense<0.000000e+00> : vector<8x256xf32>
    %11 = tpu.matmul %10, %8, %cst_7 {dimension_numbers = #tpu.dot_dimension_numbers<[1], [0], [0], [1], [0, 0, 1, 1], [], []>} : vector<8x4xf32>, vector<4x256xf32>, vector<8x256xf32> -> vector<8x256xf32>
    %12 = vector.extract_strided_slice %2 {offsets = [1, 0], sizes = [1, 256], strides = [1, 1]} : vector<9x256xf32> to vector<1x256xf32>
    %cst_8 = arith.constant 0.000000e+00 : f32
    %13 = vector.broadcast %cst_8 : f32 to vector<4x16xf32>
    %14 = vector.extract_strided_slice %1 {offsets = [0, 0], sizes = [4, 240], strides = [1, 1]} : vector<4x256xf32> to vector<4x240xf32>
    %15 = tpu.concatenate %13, %14 in 1 : vector<4x16xf32>, vector<4x240xf32> -> vector<4x256xf32>
    %16 = vector.broadcast %12 : vector<1x256xf32> to vector<4x256xf32>
    %17 = arith.mulf %15, %16 : vector<4x256xf32>
    %c1 = arith.constant 1 : index
    %c0_9 = arith.constant 0 : index
    %c0_10 = arith.constant 0 : index
    %18 = vector.load %arg3[%c1, %c0_9, %c0_10] : memref<9x8x4xf32, #tpu.memory_space<vmem>>, vector<1x8x4xf32>
    %19 = vector.shape_cast %18 : vector<1x8x4xf32> to vector<8x4xf32>
    %cst_11 = arith.constant dense<0.000000e+00> : vector<8x256xf32>
    %20 = tpu.matmul %19, %17, %cst_11 {dimension_numbers = #tpu.dot_dimension_numbers<[1], [0], [0], [1], [0, 0, 1, 1], [], []>} : vector<8x4xf32>, vector<4x256xf32>, vector<8x256xf32> -> vector<8x256xf32>
    %21 = arith.addf %11, %20 : vector<8x256xf32>
    %22 = vector.extract_strided_slice %2 {offsets = [2, 0], sizes = [1, 256], strides = [1, 1]} : vector<9x256xf32> to vector<1x256xf32>
    %cst_12 = arith.constant 0.000000e+00 : f32
    %23 = vector.broadcast %cst_12 : f32 to vector<4x15xf32>
    %24 = vector.extract_strided_slice %1 {offsets = [0, 0], sizes = [4, 241], strides = [1, 1]} : vector<4x256xf32> to vector<4x241xf32>
    %25 = tpu.concatenate %23, %24 in 1 : vector<4x15xf32>, vector<4x241xf32> -> vector<4x256xf32>
    %26 = vector.broadcast %22 : vector<1x256xf32> to vector<4x256xf32>
    %27 = arith.mulf %25, %26 : vector<4x256xf32>
    %c2 = arith.constant 2 : index
    %c0_13 = arith.constant 0 : index
    %c0_14 = arith.constant 0 : index
    %28 = vector.load %arg3[%c2, %c0_13, %c0_14] : memref<9x8x4xf32, #tpu.memory_space<vmem>>, vector<1x8x4xf32>
    %29 = vector.shape_cast %28 : vector<1x8x4xf32> to vector<8x4xf32>
    %cst_15 = arith.constant dense<0.000000e+00> : vector<8x256xf32>
    %30 = tpu.matmul %29, %27, %cst_15 {dimension_numbers = #tpu.dot_dimension_numbers<[1], [0], [0], [1], [0, 0, 1, 1], [], []>} : vector<8x4xf32>, vector<4x256xf32>, vector<8x256xf32> -> vector<8x256xf32>
    %31 = arith.addf %21, %30 : vector<8x256xf32>
    %32 = vector.extract_strided_slice %2 {offsets = [3, 0], sizes = [1, 256], strides = [1, 1]} : vector<9x256xf32> to vector<1x256xf32>
    %cst_16 = arith.constant 0.000000e+00 : f32
    %33 = vector.broadcast %cst_16 : f32 to vector<4x1xf32>
    %34 = vector.extract_strided_slice %1 {offsets = [0, 0], sizes = [4, 255], strides = [1, 1]} : vector<4x256xf32> to vector<4x255xf32>
    %35 = tpu.concatenate %33, %34 in 1 : vector<4x1xf32>, vector<4x255xf32> -> vector<4x256xf32>
    %36 = vector.broadcast %32 : vector<1x256xf32> to vector<4x256xf32>
    %37 = arith.mulf %35, %36 : vector<4x256xf32>
    %c3 = arith.constant 3 : index
    %c0_17 = arith.constant 0 : index
    %c0_18 = arith.constant 0 : index
    %38 = vector.load %arg3[%c3, %c0_17, %c0_18] : memref<9x8x4xf32, #tpu.memory_space<vmem>>, vector<1x8x4xf32>
    %39 = vector.shape_cast %38 : vector<1x8x4xf32> to vector<8x4xf32>
    %cst_19 = arith.constant dense<0.000000e+00> : vector<8x256xf32>
    %40 = tpu.matmul %39, %37, %cst_19 {dimension_numbers = #tpu.dot_dimension_numbers<[1], [0], [0], [1], [0, 0, 1, 1], [], []>} : vector<8x4xf32>, vector<4x256xf32>, vector<8x256xf32> -> vector<8x256xf32>
    %41 = arith.addf %31, %40 : vector<8x256xf32>
    %c4 = arith.constant 4 : index
    %c0_20 = arith.constant 0 : index
    %c0_21 = arith.constant 0 : index
    %42 = vector.load %arg3[%c4, %c0_20, %c0_21] : memref<9x8x4xf32, #tpu.memory_space<vmem>>, vector<1x8x4xf32>
    %43 = vector.shape_cast %42 : vector<1x8x4xf32> to vector<8x4xf32>
    %cst_22 = arith.constant dense<0.000000e+00> : vector<8x256xf32>
    %44 = tpu.matmul %43, %1, %cst_22 {dimension_numbers = #tpu.dot_dimension_numbers<[1], [0], [0], [1], [0, 0, 1, 1], [], []>} : vector<8x4xf32>, vector<4x256xf32>, vector<8x256xf32> -> vector<8x256xf32>
    %45 = arith.addf %41, %44 : vector<8x256xf32>
    %46 = vector.extract_strided_slice %2 {offsets = [5, 0], sizes = [1, 256], strides = [1, 1]} : vector<9x256xf32> to vector<1x256xf32>
    %cst_23 = arith.constant 0.000000e+00 : f32
    %47 = vector.broadcast %cst_23 : f32 to vector<4x1xf32>
    %48 = vector.extract_strided_slice %1 {offsets = [0, 1], sizes = [4, 255], strides = [1, 1]} : vector<4x256xf32> to vector<4x255xf32>
    %49 = tpu.concatenate %48, %47 in 1 : vector<4x255xf32>, vector<4x1xf32> -> vector<4x256xf32>
    %50 = vector.broadcast %46 : vector<1x256xf32> to vector<4x256xf32>
    %51 = arith.mulf %49, %50 : vector<4x256xf32>
    %c5 = arith.constant 5 : index
    %c0_24 = arith.constant 0 : index
    %c0_25 = arith.constant 0 : index
    %52 = vector.load %arg3[%c5, %c0_24, %c0_25] : memref<9x8x4xf32, #tpu.memory_space<vmem>>, vector<1x8x4xf32>
    %53 = vector.shape_cast %52 : vector<1x8x4xf32> to vector<8x4xf32>
    %cst_26 = arith.constant dense<0.000000e+00> : vector<8x256xf32>
    %54 = tpu.matmul %53, %51, %cst_26 {dimension_numbers = #tpu.dot_dimension_numbers<[1], [0], [0], [1], [0, 0, 1, 1], [], []>} : vector<8x4xf32>, vector<4x256xf32>, vector<8x256xf32> -> vector<8x256xf32>
    %55 = arith.addf %45, %54 : vector<8x256xf32>
    %56 = vector.extract_strided_slice %2 {offsets = [6, 0], sizes = [1, 256], strides = [1, 1]} : vector<9x256xf32> to vector<1x256xf32>
    %cst_27 = arith.constant 0.000000e+00 : f32
    %57 = vector.broadcast %cst_27 : f32 to vector<4x15xf32>
    %58 = vector.extract_strided_slice %1 {offsets = [0, 15], sizes = [4, 241], strides = [1, 1]} : vector<4x256xf32> to vector<4x241xf32>
    %59 = tpu.concatenate %58, %57 in 1 : vector<4x241xf32>, vector<4x15xf32> -> vector<4x256xf32>
    %60 = vector.broadcast %56 : vector<1x256xf32> to vector<4x256xf32>
    %61 = arith.mulf %59, %60 : vector<4x256xf32>
    %c6 = arith.constant 6 : index
    %c0_28 = arith.constant 0 : index
    %c0_29 = arith.constant 0 : index
    %62 = vector.load %arg3[%c6, %c0_28, %c0_29] : memref<9x8x4xf32, #tpu.memory_space<vmem>>, vector<1x8x4xf32>
    %63 = vector.shape_cast %62 : vector<1x8x4xf32> to vector<8x4xf32>
    %cst_30 = arith.constant dense<0.000000e+00> : vector<8x256xf32>
    %64 = tpu.matmul %63, %61, %cst_30 {dimension_numbers = #tpu.dot_dimension_numbers<[1], [0], [0], [1], [0, 0, 1, 1], [], []>} : vector<8x4xf32>, vector<4x256xf32>, vector<8x256xf32> -> vector<8x256xf32>
    %65 = arith.addf %55, %64 : vector<8x256xf32>
    %66 = vector.extract_strided_slice %2 {offsets = [7, 0], sizes = [1, 256], strides = [1, 1]} : vector<9x256xf32> to vector<1x256xf32>
    %cst_31 = arith.constant 0.000000e+00 : f32
    %67 = vector.broadcast %cst_31 : f32 to vector<4x16xf32>
    %68 = vector.extract_strided_slice %1 {offsets = [0, 16], sizes = [4, 240], strides = [1, 1]} : vector<4x256xf32> to vector<4x240xf32>
    %69 = tpu.concatenate %68, %67 in 1 : vector<4x240xf32>, vector<4x16xf32> -> vector<4x256xf32>
    %70 = vector.broadcast %66 : vector<1x256xf32> to vector<4x256xf32>
    %71 = arith.mulf %69, %70 : vector<4x256xf32>
    %c7 = arith.constant 7 : index
    %c0_32 = arith.constant 0 : index
    %c0_33 = arith.constant 0 : index
    %72 = vector.load %arg3[%c7, %c0_32, %c0_33] : memref<9x8x4xf32, #tpu.memory_space<vmem>>, vector<1x8x4xf32>
    %73 = vector.shape_cast %72 : vector<1x8x4xf32> to vector<8x4xf32>
    %cst_34 = arith.constant dense<0.000000e+00> : vector<8x256xf32>
    %74 = tpu.matmul %73, %71, %cst_34 {dimension_numbers = #tpu.dot_dimension_numbers<[1], [0], [0], [1], [0, 0, 1, 1], [], []>} : vector<8x4xf32>, vector<4x256xf32>, vector<8x256xf32> -> vector<8x256xf32>
    %75 = arith.addf %65, %74 : vector<8x256xf32>
    %76 = vector.extract_strided_slice %2 {offsets = [8, 0], sizes = [1, 256], strides = [1, 1]} : vector<9x256xf32> to vector<1x256xf32>
    %cst_35 = arith.constant 0.000000e+00 : f32
    %77 = vector.broadcast %cst_35 : f32 to vector<4x17xf32>
    %78 = vector.extract_strided_slice %1 {offsets = [0, 17], sizes = [4, 239], strides = [1, 1]} : vector<4x256xf32> to vector<4x239xf32>
    %79 = tpu.concatenate %78, %77 in 1 : vector<4x239xf32>, vector<4x17xf32> -> vector<4x256xf32>
    %80 = vector.broadcast %76 : vector<1x256xf32> to vector<4x256xf32>
    %81 = arith.mulf %79, %80 : vector<4x256xf32>
    %c8 = arith.constant 8 : index
    %c0_36 = arith.constant 0 : index
    %c0_37 = arith.constant 0 : index
    %82 = vector.load %arg3[%c8, %c0_36, %c0_37] : memref<9x8x4xf32, #tpu.memory_space<vmem>>, vector<1x8x4xf32>
    %83 = vector.shape_cast %82 : vector<1x8x4xf32> to vector<8x4xf32>
    %cst_38 = arith.constant dense<0.000000e+00> : vector<8x256xf32>
    %84 = tpu.matmul %83, %81, %cst_38 {dimension_numbers = #tpu.dot_dimension_numbers<[1], [0], [0], [1], [0, 0, 1, 1], [], []>} : vector<8x4xf32>, vector<4x256xf32>, vector<8x256xf32> -> vector<8x256xf32>
    %85 = arith.addf %75, %84 : vector<8x256xf32>
    %c0_39 = arith.constant 0 : index
    %c0_40 = arith.constant 0 : index
    %86 = vector.load %arg4[%c0_39, %c0_40] : memref<8x1xf32, #tpu.memory_space<vmem>>, vector<8x1xf32>
    %87 = vector.broadcast %86 : vector<8x1xf32> to vector<8x256xf32>
    %88 = arith.addf %85, %87 : vector<8x256xf32>
    %cst_41 = arith.constant 0.000000e+00 : f32
    %89 = vector.broadcast %cst_41 : f32 to vector<8x256xf32>
    %90 = arith.maximumf %88, %89 : vector<8x256xf32>
    %91 = vector.extract_strided_slice %2 {offsets = [0, 0], sizes = [1, 256], strides = [1, 1]} : vector<9x256xf32> to vector<1x256xf32>
    %cst_42 = arith.constant 0.000000e+00 : f32
    %92 = vector.broadcast %cst_42 : f32 to vector<8x17xf32>
    %93 = vector.extract_strided_slice %90 {offsets = [0, 0], sizes = [8, 239], strides = [1, 1]} : vector<8x256xf32> to vector<8x239xf32>
    %94 = tpu.concatenate %92, %93 in 1 : vector<8x17xf32>, vector<8x239xf32> -> vector<8x256xf32>
    %95 = vector.broadcast %91 : vector<1x256xf32> to vector<8x256xf32>
    %96 = arith.mulf %94, %95 : vector<8x256xf32>
    %c0_43 = arith.constant 0 : index
    %c0_44 = arith.constant 0 : index
    %c0_45 = arith.constant 0 : index
    %97 = vector.load %arg5[%c0_43, %c0_44, %c0_45] : memref<9x8x8xf32, #tpu.memory_space<vmem>>, vector<1x8x8xf32>
    %98 = vector.shape_cast %97 : vector<1x8x8xf32> to vector<8x8xf32>
    %cst_46 = arith.constant dense<0.000000e+00> : vector<8x256xf32>
    %99 = tpu.matmul %98, %96, %cst_46 {dimension_numbers = #tpu.dot_dimension_numbers<[1], [0], [0], [1], [0, 0, 1, 1], [], []>} : vector<8x8xf32>, vector<8x256xf32>, vector<8x256xf32> -> vector<8x256xf32>
    %100 = vector.extract_strided_slice %2 {offsets = [1, 0], sizes = [1, 256], strides = [1, 1]} : vector<9x256xf32> to vector<1x256xf32>
    %cst_47 = arith.constant 0.000000e+00 : f32
    %101 = vector.broadcast %cst_47 : f32 to vector<8x16xf32>
    %102 = vector.extract_strided_slice %90 {offsets = [0, 0], sizes = [8, 240], strides = [1, 1]} : vector<8x256xf32> to vector<8x240xf32>
    %103 = tpu.concatenate %101, %102 in 1 : vector<8x16xf32>, vector<8x240xf32> -> vector<8x256xf32>
    %104 = vector.broadcast %100 : vector<1x256xf32> to vector<8x256xf32>
    %105 = arith.mulf %103, %104 : vector<8x256xf32>
    %c1_48 = arith.constant 1 : index
    %c0_49 = arith.constant 0 : index
    %c0_50 = arith.constant 0 : index
    %106 = vector.load %arg5[%c1_48, %c0_49, %c0_50] : memref<9x8x8xf32, #tpu.memory_space<vmem>>, vector<1x8x8xf32>
    %107 = vector.shape_cast %106 : vector<1x8x8xf32> to vector<8x8xf32>
    %cst_51 = arith.constant dense<0.000000e+00> : vector<8x256xf32>
    %108 = tpu.matmul %107, %105, %cst_51 {dimension_numbers = #tpu.dot_dimension_numbers<[1], [0], [0], [1], [0, 0, 1, 1], [], []>} : vector<8x8xf32>, vector<8x256xf32>, vector<8x256xf32> -> vector<8x256xf32>
    %109 = arith.addf %99, %108 : vector<8x256xf32>
    %110 = vector.extract_strided_slice %2 {offsets = [2, 0], sizes = [1, 256], strides = [1, 1]} : vector<9x256xf32> to vector<1x256xf32>
    %cst_52 = arith.constant 0.000000e+00 : f32
    %111 = vector.broadcast %cst_52 : f32 to vector<8x15xf32>
    %112 = vector.extract_strided_slice %90 {offsets = [0, 0], sizes = [8, 241], strides = [1, 1]} : vector<8x256xf32> to vector<8x241xf32>
    %113 = tpu.concatenate %111, %112 in 1 : vector<8x15xf32>, vector<8x241xf32> -> vector<8x256xf32>
    %114 = vector.broadcast %110 : vector<1x256xf32> to vector<8x256xf32>
    %115 = arith.mulf %113, %114 : vector<8x256xf32>
    %c2_53 = arith.constant 2 : index
    %c0_54 = arith.constant 0 : index
    %c0_55 = arith.constant 0 : index
    %116 = vector.load %arg5[%c2_53, %c0_54, %c0_55] : memref<9x8x8xf32, #tpu.memory_space<vmem>>, vector<1x8x8xf32>
    %117 = vector.shape_cast %116 : vector<1x8x8xf32> to vector<8x8xf32>
    %cst_56 = arith.constant dense<0.000000e+00> : vector<8x256xf32>
    %118 = tpu.matmul %117, %115, %cst_56 {dimension_numbers = #tpu.dot_dimension_numbers<[1], [0], [0], [1], [0, 0, 1, 1], [], []>} : vector<8x8xf32>, vector<8x256xf32>, vector<8x256xf32> -> vector<8x256xf32>
    %119 = arith.addf %109, %118 : vector<8x256xf32>
    %120 = vector.extract_strided_slice %2 {offsets = [3, 0], sizes = [1, 256], strides = [1, 1]} : vector<9x256xf32> to vector<1x256xf32>
    %cst_57 = arith.constant 0.000000e+00 : f32
    %121 = vector.broadcast %cst_57 : f32 to vector<8x1xf32>
    %122 = vector.extract_strided_slice %90 {offsets = [0, 0], sizes = [8, 255], strides = [1, 1]} : vector<8x256xf32> to vector<8x255xf32>
    %123 = tpu.concatenate %121, %122 in 1 : vector<8x1xf32>, vector<8x255xf32> -> vector<8x256xf32>
    %124 = vector.broadcast %120 : vector<1x256xf32> to vector<8x256xf32>
    %125 = arith.mulf %123, %124 : vector<8x256xf32>
    %c3_58 = arith.constant 3 : index
    %c0_59 = arith.constant 0 : index
    %c0_60 = arith.constant 0 : index
    %126 = vector.load %arg5[%c3_58, %c0_59, %c0_60] : memref<9x8x8xf32, #tpu.memory_space<vmem>>, vector<1x8x8xf32>
    %127 = vector.shape_cast %126 : vector<1x8x8xf32> to vector<8x8xf32>
    %cst_61 = arith.constant dense<0.000000e+00> : vector<8x256xf32>
    %128 = tpu.matmul %127, %125, %cst_61 {dimension_numbers = #tpu.dot_dimension_numbers<[1], [0], [0], [1], [0, 0, 1, 1], [], []>} : vector<8x8xf32>, vector<8x256xf32>, vector<8x256xf32> -> vector<8x256xf32>
    %129 = arith.addf %119, %128 : vector<8x256xf32>
    %c4_62 = arith.constant 4 : index
    %c0_63 = arith.constant 0 : index
    %c0_64 = arith.constant 0 : index
    %130 = vector.load %arg5[%c4_62, %c0_63, %c0_64] : memref<9x8x8xf32, #tpu.memory_space<vmem>>, vector<1x8x8xf32>
    %131 = vector.shape_cast %130 : vector<1x8x8xf32> to vector<8x8xf32>
    %cst_65 = arith.constant dense<0.000000e+00> : vector<8x256xf32>
    %132 = tpu.matmul %131, %90, %cst_65 {dimension_numbers = #tpu.dot_dimension_numbers<[1], [0], [0], [1], [0, 0, 1, 1], [], []>} : vector<8x8xf32>, vector<8x256xf32>, vector<8x256xf32> -> vector<8x256xf32>
    %133 = arith.addf %129, %132 : vector<8x256xf32>
    %134 = vector.extract_strided_slice %2 {offsets = [5, 0], sizes = [1, 256], strides = [1, 1]} : vector<9x256xf32> to vector<1x256xf32>
    %cst_66 = arith.constant 0.000000e+00 : f32
    %135 = vector.broadcast %cst_66 : f32 to vector<8x1xf32>
    %136 = vector.extract_strided_slice %90 {offsets = [0, 1], sizes = [8, 255], strides = [1, 1]} : vector<8x256xf32> to vector<8x255xf32>
    %137 = tpu.concatenate %136, %135 in 1 : vector<8x255xf32>, vector<8x1xf32> -> vector<8x256xf32>
    %138 = vector.broadcast %134 : vector<1x256xf32> to vector<8x256xf32>
    %139 = arith.mulf %137, %138 : vector<8x256xf32>
    %c5_67 = arith.constant 5 : index
    %c0_68 = arith.constant 0 : index
    %c0_69 = arith.constant 0 : index
    %140 = vector.load %arg5[%c5_67, %c0_68, %c0_69] : memref<9x8x8xf32, #tpu.memory_space<vmem>>, vector<1x8x8xf32>
    %141 = vector.shape_cast %140 : vector<1x8x8xf32> to vector<8x8xf32>
    %cst_70 = arith.constant dense<0.000000e+00> : vector<8x256xf32>
    %142 = tpu.matmul %141, %139, %cst_70 {dimension_numbers = #tpu.dot_dimension_numbers<[1], [0], [0], [1], [0, 0, 1, 1], [], []>} : vector<8x8xf32>, vector<8x256xf32>, vector<8x256xf32> -> vector<8x256xf32>
    %143 = arith.addf %133, %142 : vector<8x256xf32>
    %144 = vector.extract_strided_slice %2 {offsets = [6, 0], sizes = [1, 256], strides = [1, 1]} : vector<9x256xf32> to vector<1x256xf32>
    %cst_71 = arith.constant 0.000000e+00 : f32
    %145 = vector.broadcast %cst_71 : f32 to vector<8x15xf32>
    %146 = vector.extract_strided_slice %90 {offsets = [0, 15], sizes = [8, 241], strides = [1, 1]} : vector<8x256xf32> to vector<8x241xf32>
    %147 = tpu.concatenate %146, %145 in 1 : vector<8x241xf32>, vector<8x15xf32> -> vector<8x256xf32>
    %148 = vector.broadcast %144 : vector<1x256xf32> to vector<8x256xf32>
    %149 = arith.mulf %147, %148 : vector<8x256xf32>
    %c6_72 = arith.constant 6 : index
    %c0_73 = arith.constant 0 : index
    %c0_74 = arith.constant 0 : index
    %150 = vector.load %arg5[%c6_72, %c0_73, %c0_74] : memref<9x8x8xf32, #tpu.memory_space<vmem>>, vector<1x8x8xf32>
    %151 = vector.shape_cast %150 : vector<1x8x8xf32> to vector<8x8xf32>
    %cst_75 = arith.constant dense<0.000000e+00> : vector<8x256xf32>
    %152 = tpu.matmul %151, %149, %cst_75 {dimension_numbers = #tpu.dot_dimension_numbers<[1], [0], [0], [1], [0, 0, 1, 1], [], []>} : vector<8x8xf32>, vector<8x256xf32>, vector<8x256xf32> -> vector<8x256xf32>
    %153 = arith.addf %143, %152 : vector<8x256xf32>
    %154 = vector.extract_strided_slice %2 {offsets = [7, 0], sizes = [1, 256], strides = [1, 1]} : vector<9x256xf32> to vector<1x256xf32>
    %cst_76 = arith.constant 0.000000e+00 : f32
    %155 = vector.broadcast %cst_76 : f32 to vector<8x16xf32>
    %156 = vector.extract_strided_slice %90 {offsets = [0, 16], sizes = [8, 240], strides = [1, 1]} : vector<8x256xf32> to vector<8x240xf32>
    %157 = tpu.concatenate %156, %155 in 1 : vector<8x240xf32>, vector<8x16xf32> -> vector<8x256xf32>
    %158 = vector.broadcast %154 : vector<1x256xf32> to vector<8x256xf32>
    %159 = arith.mulf %157, %158 : vector<8x256xf32>
    %c7_77 = arith.constant 7 : index
    %c0_78 = arith.constant 0 : index
    %c0_79 = arith.constant 0 : index
    %160 = vector.load %arg5[%c7_77, %c0_78, %c0_79] : memref<9x8x8xf32, #tpu.memory_space<vmem>>, vector<1x8x8xf32>
    %161 = vector.shape_cast %160 : vector<1x8x8xf32> to vector<8x8xf32>
    %cst_80 = arith.constant dense<0.000000e+00> : vector<8x256xf32>
    %162 = tpu.matmul %161, %159, %cst_80 {dimension_numbers = #tpu.dot_dimension_numbers<[1], [0], [0], [1], [0, 0, 1, 1], [], []>} : vector<8x8xf32>, vector<8x256xf32>, vector<8x256xf32> -> vector<8x256xf32>
    %163 = arith.addf %153, %162 : vector<8x256xf32>
    %164 = vector.extract_strided_slice %2 {offsets = [8, 0], sizes = [1, 256], strides = [1, 1]} : vector<9x256xf32> to vector<1x256xf32>
    %cst_81 = arith.constant 0.000000e+00 : f32
    %165 = vector.broadcast %cst_81 : f32 to vector<8x17xf32>
    %166 = vector.extract_strided_slice %90 {offsets = [0, 17], sizes = [8, 239], strides = [1, 1]} : vector<8x256xf32> to vector<8x239xf32>
    %167 = tpu.concatenate %166, %165 in 1 : vector<8x239xf32>, vector<8x17xf32> -> vector<8x256xf32>
    %168 = vector.broadcast %164 : vector<1x256xf32> to vector<8x256xf32>
    %169 = arith.mulf %167, %168 : vector<8x256xf32>
    %c8_82 = arith.constant 8 : index
    %c0_83 = arith.constant 0 : index
    %c0_84 = arith.constant 0 : index
    %170 = vector.load %arg5[%c8_82, %c0_83, %c0_84] : memref<9x8x8xf32, #tpu.memory_space<vmem>>, vector<1x8x8xf32>
    %171 = vector.shape_cast %170 : vector<1x8x8xf32> to vector<8x8xf32>
    %cst_85 = arith.constant dense<0.000000e+00> : vector<8x256xf32>
    %172 = tpu.matmul %171, %169, %cst_85 {dimension_numbers = #tpu.dot_dimension_numbers<[1], [0], [0], [1], [0, 0, 1, 1], [], []>} : vector<8x8xf32>, vector<8x256xf32>, vector<8x256xf32> -> vector<8x256xf32>
    %173 = arith.addf %163, %172 : vector<8x256xf32>
    %c0_86 = arith.constant 0 : index
    %c0_87 = arith.constant 0 : index
    %174 = vector.load %arg6[%c0_86, %c0_87] : memref<8x1xf32, #tpu.memory_space<vmem>>, vector<8x1xf32>
    %175 = vector.broadcast %174 : vector<8x1xf32> to vector<8x256xf32>
    %176 = arith.addf %173, %175 : vector<8x256xf32>
    %cst_88 = arith.constant 0.000000e+00 : f32
    %177 = vector.broadcast %cst_88 : f32 to vector<8x256xf32>
    %178 = arith.maximumf %176, %177 : vector<8x256xf32>
    %cst_89 = arith.constant 0.000000e+00 : f32
    %179 = vector.broadcast %cst_89 : f32 to vector<8x1xf32>
    %180 = vector.extract_strided_slice %178 {offsets = [0, 1], sizes = [8, 255], strides = [1, 1]} : vector<8x256xf32> to vector<8x255xf32>
    %181 = tpu.concatenate %180, %179 in 1 : vector<8x255xf32>, vector<8x1xf32> -> vector<8x256xf32>
    %182 = arith.maximumf %178, %181 : vector<8x256xf32>
    %cst_90 = arith.constant 0.000000e+00 : f32
    %183 = vector.broadcast %cst_90 : f32 to vector<8x16xf32>
    %184 = vector.extract_strided_slice %178 {offsets = [0, 16], sizes = [8, 240], strides = [1, 1]} : vector<8x256xf32> to vector<8x240xf32>
    %185 = tpu.concatenate %184, %183 in 1 : vector<8x240xf32>, vector<8x16xf32> -> vector<8x256xf32>
    %cst_91 = arith.constant 0.000000e+00 : f32
    %186 = vector.broadcast %cst_91 : f32 to vector<8x17xf32>
    %187 = vector.extract_strided_slice %178 {offsets = [0, 17], sizes = [8, 239], strides = [1, 1]} : vector<8x256xf32> to vector<8x239xf32>
    %188 = tpu.concatenate %187, %186 in 1 : vector<8x239xf32>, vector<8x17xf32> -> vector<8x256xf32>
    %189 = arith.maximumf %185, %188 : vector<8x256xf32>
    %190 = arith.maximumf %182, %189 : vector<8x256xf32>
    %c0_92 = arith.constant 0 : index
    %c0_93 = arith.constant 0 : index
    %191 = vector.load %arg7[%c0_92, %c0_93] : memref<256x64xf32, #tpu.memory_space<vmem>>, vector<256x64xf32>
    %cst_94 = arith.constant dense<0.000000e+00> : vector<8x64xf32>
    %192 = tpu.matmul %190, %191, %cst_94 {dimension_numbers = #tpu.dot_dimension_numbers<[1], [0], [0], [1], [0, 0, 1, 1], [], []>} : vector<8x256xf32>, vector<256x64xf32>, vector<8x64xf32> -> vector<8x64xf32>
    %c0_95 = arith.constant 0 : index
    %c0_96 = arith.constant 0 : index
    %193 = vector.load %arg8[%c0_95, %c0_96] : memref<9x64xf32, #tpu.memory_space<vmem>>, vector<9x64xf32>
    %194 = vector.extract_strided_slice %193 {offsets = [0, 0], sizes = [1, 64], strides = [1, 1]} : vector<9x64xf32> to vector<1x64xf32>
    %cst_97 = arith.constant 0.000000e+00 : f32
    %195 = vector.broadcast %cst_97 : f32 to vector<8x9xf32>
    %196 = vector.extract_strided_slice %192 {offsets = [0, 0], sizes = [8, 55], strides = [1, 1]} : vector<8x64xf32> to vector<8x55xf32>
    %197 = tpu.concatenate %195, %196 in 1 : vector<8x9xf32>, vector<8x55xf32> -> vector<8x64xf32>
    %198 = vector.broadcast %194 : vector<1x64xf32> to vector<8x64xf32>
    %199 = arith.mulf %197, %198 : vector<8x64xf32>
    %c0_98 = arith.constant 0 : index
    %c0_99 = arith.constant 0 : index
    %c0_100 = arith.constant 0 : index
    %200 = vector.load %arg9[%c0_98, %c0_99, %c0_100] : memref<9x16x8xf32, #tpu.memory_space<vmem>>, vector<1x16x8xf32>
    %201 = vector.shape_cast %200 : vector<1x16x8xf32> to vector<16x8xf32>
    %cst_101 = arith.constant dense<0.000000e+00> : vector<16x64xf32>
    %202 = tpu.matmul %201, %199, %cst_101 {dimension_numbers = #tpu.dot_dimension_numbers<[1], [0], [0], [1], [0, 0, 1, 1], [], []>} : vector<16x8xf32>, vector<8x64xf32>, vector<16x64xf32> -> vector<16x64xf32>
    %203 = vector.extract_strided_slice %193 {offsets = [1, 0], sizes = [1, 64], strides = [1, 1]} : vector<9x64xf32> to vector<1x64xf32>
    %cst_102 = arith.constant 0.000000e+00 : f32
    %204 = vector.broadcast %cst_102 : f32 to vector<8x8xf32>
    %205 = vector.extract_strided_slice %192 {offsets = [0, 0], sizes = [8, 56], strides = [1, 1]} : vector<8x64xf32> to vector<8x56xf32>
    %206 = tpu.concatenate %204, %205 in 1 : vector<8x8xf32>, vector<8x56xf32> -> vector<8x64xf32>
    %207 = vector.broadcast %203 : vector<1x64xf32> to vector<8x64xf32>
    %208 = arith.mulf %206, %207 : vector<8x64xf32>
    %c1_103 = arith.constant 1 : index
    %c0_104 = arith.constant 0 : index
    %c0_105 = arith.constant 0 : index
    %209 = vector.load %arg9[%c1_103, %c0_104, %c0_105] : memref<9x16x8xf32, #tpu.memory_space<vmem>>, vector<1x16x8xf32>
    %210 = vector.shape_cast %209 : vector<1x16x8xf32> to vector<16x8xf32>
    %cst_106 = arith.constant dense<0.000000e+00> : vector<16x64xf32>
    %211 = tpu.matmul %210, %208, %cst_106 {dimension_numbers = #tpu.dot_dimension_numbers<[1], [0], [0], [1], [0, 0, 1, 1], [], []>} : vector<16x8xf32>, vector<8x64xf32>, vector<16x64xf32> -> vector<16x64xf32>
    %212 = arith.addf %202, %211 : vector<16x64xf32>
    %213 = vector.extract_strided_slice %193 {offsets = [2, 0], sizes = [1, 64], strides = [1, 1]} : vector<9x64xf32> to vector<1x64xf32>
    %cst_107 = arith.constant 0.000000e+00 : f32
    %214 = vector.broadcast %cst_107 : f32 to vector<8x7xf32>
    %215 = vector.extract_strided_slice %192 {offsets = [0, 0], sizes = [8, 57], strides = [1, 1]} : vector<8x64xf32> to vector<8x57xf32>
    %216 = tpu.concatenate %214, %215 in 1 : vector<8x7xf32>, vector<8x57xf32> -> vector<8x64xf32>
    %217 = vector.broadcast %213 : vector<1x64xf32> to vector<8x64xf32>
    %218 = arith.mulf %216, %217 : vector<8x64xf32>
    %c2_108 = arith.constant 2 : index
    %c0_109 = arith.constant 0 : index
    %c0_110 = arith.constant 0 : index
    %219 = vector.load %arg9[%c2_108, %c0_109, %c0_110] : memref<9x16x8xf32, #tpu.memory_space<vmem>>, vector<1x16x8xf32>
    %220 = vector.shape_cast %219 : vector<1x16x8xf32> to vector<16x8xf32>
    %cst_111 = arith.constant dense<0.000000e+00> : vector<16x64xf32>
    %221 = tpu.matmul %220, %218, %cst_111 {dimension_numbers = #tpu.dot_dimension_numbers<[1], [0], [0], [1], [0, 0, 1, 1], [], []>} : vector<16x8xf32>, vector<8x64xf32>, vector<16x64xf32> -> vector<16x64xf32>
    %222 = arith.addf %212, %221 : vector<16x64xf32>
    %223 = vector.extract_strided_slice %193 {offsets = [3, 0], sizes = [1, 64], strides = [1, 1]} : vector<9x64xf32> to vector<1x64xf32>
    %cst_112 = arith.constant 0.000000e+00 : f32
    %224 = vector.broadcast %cst_112 : f32 to vector<8x1xf32>
    %225 = vector.extract_strided_slice %192 {offsets = [0, 0], sizes = [8, 63], strides = [1, 1]} : vector<8x64xf32> to vector<8x63xf32>
    %226 = tpu.concatenate %224, %225 in 1 : vector<8x1xf32>, vector<8x63xf32> -> vector<8x64xf32>
    %227 = vector.broadcast %223 : vector<1x64xf32> to vector<8x64xf32>
    %228 = arith.mulf %226, %227 : vector<8x64xf32>
    %c3_113 = arith.constant 3 : index
    %c0_114 = arith.constant 0 : index
    %c0_115 = arith.constant 0 : index
    %229 = vector.load %arg9[%c3_113, %c0_114, %c0_115] : memref<9x16x8xf32, #tpu.memory_space<vmem>>, vector<1x16x8xf32>
    %230 = vector.shape_cast %229 : vector<1x16x8xf32> to vector<16x8xf32>
    %cst_116 = arith.constant dense<0.000000e+00> : vector<16x64xf32>
    %231 = tpu.matmul %230, %228, %cst_116 {dimension_numbers = #tpu.dot_dimension_numbers<[1], [0], [0], [1], [0, 0, 1, 1], [], []>} : vector<16x8xf32>, vector<8x64xf32>, vector<16x64xf32> -> vector<16x64xf32>
    %232 = arith.addf %222, %231 : vector<16x64xf32>
    %c4_117 = arith.constant 4 : index
    %c0_118 = arith.constant 0 : index
    %c0_119 = arith.constant 0 : index
    %233 = vector.load %arg9[%c4_117, %c0_118, %c0_119] : memref<9x16x8xf32, #tpu.memory_space<vmem>>, vector<1x16x8xf32>
    %234 = vector.shape_cast %233 : vector<1x16x8xf32> to vector<16x8xf32>
    %cst_120 = arith.constant dense<0.000000e+00> : vector<16x64xf32>
    %235 = tpu.matmul %234, %192, %cst_120 {dimension_numbers = #tpu.dot_dimension_numbers<[1], [0], [0], [1], [0, 0, 1, 1], [], []>} : vector<16x8xf32>, vector<8x64xf32>, vector<16x64xf32> -> vector<16x64xf32>
    %236 = arith.addf %232, %235 : vector<16x64xf32>
    %237 = vector.extract_strided_slice %193 {offsets = [5, 0], sizes = [1, 64], strides = [1, 1]} : vector<9x64xf32> to vector<1x64xf32>
    %cst_121 = arith.constant 0.000000e+00 : f32
    %238 = vector.broadcast %cst_121 : f32 to vector<8x1xf32>
    %239 = vector.extract_strided_slice %192 {offsets = [0, 1], sizes = [8, 63], strides = [1, 1]} : vector<8x64xf32> to vector<8x63xf32>
    %240 = tpu.concatenate %239, %238 in 1 : vector<8x63xf32>, vector<8x1xf32> -> vector<8x64xf32>
    %241 = vector.broadcast %237 : vector<1x64xf32> to vector<8x64xf32>
    %242 = arith.mulf %240, %241 : vector<8x64xf32>
    %c5_122 = arith.constant 5 : index
    %c0_123 = arith.constant 0 : index
    %c0_124 = arith.constant 0 : index
    %243 = vector.load %arg9[%c5_122, %c0_123, %c0_124] : memref<9x16x8xf32, #tpu.memory_space<vmem>>, vector<1x16x8xf32>
    %244 = vector.shape_cast %243 : vector<1x16x8xf32> to vector<16x8xf32>
    %cst_125 = arith.constant dense<0.000000e+00> : vector<16x64xf32>
    %245 = tpu.matmul %244, %242, %cst_125 {dimension_numbers = #tpu.dot_dimension_numbers<[1], [0], [0], [1], [0, 0, 1, 1], [], []>} : vector<16x8xf32>, vector<8x64xf32>, vector<16x64xf32> -> vector<16x64xf32>
    %246 = arith.addf %236, %245 : vector<16x64xf32>
    %247 = vector.extract_strided_slice %193 {offsets = [6, 0], sizes = [1, 64], strides = [1, 1]} : vector<9x64xf32> to vector<1x64xf32>
    %cst_126 = arith.constant 0.000000e+00 : f32
    %248 = vector.broadcast %cst_126 : f32 to vector<8x7xf32>
    %249 = vector.extract_strided_slice %192 {offsets = [0, 7], sizes = [8, 57], strides = [1, 1]} : vector<8x64xf32> to vector<8x57xf32>
    %250 = tpu.concatenate %249, %248 in 1 : vector<8x57xf32>, vector<8x7xf32> -> vector<8x64xf32>
    %251 = vector.broadcast %247 : vector<1x64xf32> to vector<8x64xf32>
    %252 = arith.mulf %250, %251 : vector<8x64xf32>
    %c6_127 = arith.constant 6 : index
    %c0_128 = arith.constant 0 : index
    %c0_129 = arith.constant 0 : index
    %253 = vector.load %arg9[%c6_127, %c0_128, %c0_129] : memref<9x16x8xf32, #tpu.memory_space<vmem>>, vector<1x16x8xf32>
    %254 = vector.shape_cast %253 : vector<1x16x8xf32> to vector<16x8xf32>
    %cst_130 = arith.constant dense<0.000000e+00> : vector<16x64xf32>
    %255 = tpu.matmul %254, %252, %cst_130 {dimension_numbers = #tpu.dot_dimension_numbers<[1], [0], [0], [1], [0, 0, 1, 1], [], []>} : vector<16x8xf32>, vector<8x64xf32>, vector<16x64xf32> -> vector<16x64xf32>
    %256 = arith.addf %246, %255 : vector<16x64xf32>
    %257 = vector.extract_strided_slice %193 {offsets = [7, 0], sizes = [1, 64], strides = [1, 1]} : vector<9x64xf32> to vector<1x64xf32>
    %cst_131 = arith.constant 0.000000e+00 : f32
    %258 = vector.broadcast %cst_131 : f32 to vector<8x8xf32>
    %259 = vector.extract_strided_slice %192 {offsets = [0, 8], sizes = [8, 56], strides = [1, 1]} : vector<8x64xf32> to vector<8x56xf32>
    %260 = tpu.concatenate %259, %258 in 1 : vector<8x56xf32>, vector<8x8xf32> -> vector<8x64xf32>
    %261 = vector.broadcast %257 : vector<1x64xf32> to vector<8x64xf32>
    %262 = arith.mulf %260, %261 : vector<8x64xf32>
    %c7_132 = arith.constant 7 : index
    %c0_133 = arith.constant 0 : index
    %c0_134 = arith.constant 0 : index
    %263 = vector.load %arg9[%c7_132, %c0_133, %c0_134] : memref<9x16x8xf32, #tpu.memory_space<vmem>>, vector<1x16x8xf32>
    %264 = vector.shape_cast %263 : vector<1x16x8xf32> to vector<16x8xf32>
    %cst_135 = arith.constant dense<0.000000e+00> : vector<16x64xf32>
    %265 = tpu.matmul %264, %262, %cst_135 {dimension_numbers = #tpu.dot_dimension_numbers<[1], [0], [0], [1], [0, 0, 1, 1], [], []>} : vector<16x8xf32>, vector<8x64xf32>, vector<16x64xf32> -> vector<16x64xf32>
    %266 = arith.addf %256, %265 : vector<16x64xf32>
    %267 = vector.extract_strided_slice %193 {offsets = [8, 0], sizes = [1, 64], strides = [1, 1]} : vector<9x64xf32> to vector<1x64xf32>
    %cst_136 = arith.constant 0.000000e+00 : f32
    %268 = vector.broadcast %cst_136 : f32 to vector<8x9xf32>
    %269 = vector.extract_strided_slice %192 {offsets = [0, 9], sizes = [8, 55], strides = [1, 1]} : vector<8x64xf32> to vector<8x55xf32>
    %270 = tpu.concatenate %269, %268 in 1 : vector<8x55xf32>, vector<8x9xf32> -> vector<8x64xf32>
    %271 = vector.broadcast %267 : vector<1x64xf32> to vector<8x64xf32>
    %272 = arith.mulf %270, %271 : vector<8x64xf32>
    %c8_137 = arith.constant 8 : index
    %c0_138 = arith.constant 0 : index
    %c0_139 = arith.constant 0 : index
    %273 = vector.load %arg9[%c8_137, %c0_138, %c0_139] : memref<9x16x8xf32, #tpu.memory_space<vmem>>, vector<1x16x8xf32>
    %274 = vector.shape_cast %273 : vector<1x16x8xf32> to vector<16x8xf32>
    %cst_140 = arith.constant dense<0.000000e+00> : vector<16x64xf32>
    %275 = tpu.matmul %274, %272, %cst_140 {dimension_numbers = #tpu.dot_dimension_numbers<[1], [0], [0], [1], [0, 0, 1, 1], [], []>} : vector<16x8xf32>, vector<8x64xf32>, vector<16x64xf32> -> vector<16x64xf32>
    %276 = arith.addf %266, %275 : vector<16x64xf32>
    %c0_141 = arith.constant 0 : index
    %c0_142 = arith.constant 0 : index
    %277 = vector.load %arg10[%c0_141, %c0_142] : memref<16x1xf32, #tpu.memory_space<vmem>>, vector<16x1xf32>
    %278 = vector.broadcast %277 : vector<16x1xf32> to vector<16x64xf32>
    %279 = arith.addf %276, %278 : vector<16x64xf32>
    %cst_143 = arith.constant 0.000000e+00 : f32
    %280 = vector.broadcast %cst_143 : f32 to vector<16x64xf32>
    %281 = arith.maximumf %279, %280 : vector<16x64xf32>
    %282 = vector.extract_strided_slice %193 {offsets = [0, 0], sizes = [1, 64], strides = [1, 1]} : vector<9x64xf32> to vector<1x64xf32>
    %cst_144 = arith.constant 0.000000e+00 : f32
    %283 = vector.broadcast %cst_144 : f32 to vector<16x9xf32>
    %284 = vector.extract_strided_slice %281 {offsets = [0, 0], sizes = [16, 55], strides = [1, 1]} : vector<16x64xf32> to vector<16x55xf32>
    %285 = tpu.concatenate %283, %284 in 1 : vector<16x9xf32>, vector<16x55xf32> -> vector<16x64xf32>
    %286 = vector.broadcast %282 : vector<1x64xf32> to vector<16x64xf32>
    %287 = arith.mulf %285, %286 : vector<16x64xf32>
    %c0_145 = arith.constant 0 : index
    %c0_146 = arith.constant 0 : index
    %c0_147 = arith.constant 0 : index
    %288 = vector.load %arg11[%c0_145, %c0_146, %c0_147] : memref<9x16x16xf32, #tpu.memory_space<vmem>>, vector<1x16x16xf32>
    %289 = vector.shape_cast %288 : vector<1x16x16xf32> to vector<16x16xf32>
    %cst_148 = arith.constant dense<0.000000e+00> : vector<16x64xf32>
    %290 = tpu.matmul %289, %287, %cst_148 {dimension_numbers = #tpu.dot_dimension_numbers<[1], [0], [0], [1], [0, 0, 1, 1], [], []>} : vector<16x16xf32>, vector<16x64xf32>, vector<16x64xf32> -> vector<16x64xf32>
    %291 = vector.extract_strided_slice %193 {offsets = [1, 0], sizes = [1, 64], strides = [1, 1]} : vector<9x64xf32> to vector<1x64xf32>
    %cst_149 = arith.constant 0.000000e+00 : f32
    %292 = vector.broadcast %cst_149 : f32 to vector<16x8xf32>
    %293 = vector.extract_strided_slice %281 {offsets = [0, 0], sizes = [16, 56], strides = [1, 1]} : vector<16x64xf32> to vector<16x56xf32>
    %294 = tpu.concatenate %292, %293 in 1 : vector<16x8xf32>, vector<16x56xf32> -> vector<16x64xf32>
    %295 = vector.broadcast %291 : vector<1x64xf32> to vector<16x64xf32>
    %296 = arith.mulf %294, %295 : vector<16x64xf32>
    %c1_150 = arith.constant 1 : index
    %c0_151 = arith.constant 0 : index
    %c0_152 = arith.constant 0 : index
    %297 = vector.load %arg11[%c1_150, %c0_151, %c0_152] : memref<9x16x16xf32, #tpu.memory_space<vmem>>, vector<1x16x16xf32>
    %298 = vector.shape_cast %297 : vector<1x16x16xf32> to vector<16x16xf32>
    %cst_153 = arith.constant dense<0.000000e+00> : vector<16x64xf32>
    %299 = tpu.matmul %298, %296, %cst_153 {dimension_numbers = #tpu.dot_dimension_numbers<[1], [0], [0], [1], [0, 0, 1, 1], [], []>} : vector<16x16xf32>, vector<16x64xf32>, vector<16x64xf32> -> vector<16x64xf32>
    %300 = arith.addf %290, %299 : vector<16x64xf32>
    %301 = vector.extract_strided_slice %193 {offsets = [2, 0], sizes = [1, 64], strides = [1, 1]} : vector<9x64xf32> to vector<1x64xf32>
    %cst_154 = arith.constant 0.000000e+00 : f32
    %302 = vector.broadcast %cst_154 : f32 to vector<16x7xf32>
    %303 = vector.extract_strided_slice %281 {offsets = [0, 0], sizes = [16, 57], strides = [1, 1]} : vector<16x64xf32> to vector<16x57xf32>
    %304 = tpu.concatenate %302, %303 in 1 : vector<16x7xf32>, vector<16x57xf32> -> vector<16x64xf32>
    %305 = vector.broadcast %301 : vector<1x64xf32> to vector<16x64xf32>
    %306 = arith.mulf %304, %305 : vector<16x64xf32>
    %c2_155 = arith.constant 2 : index
    %c0_156 = arith.constant 0 : index
    %c0_157 = arith.constant 0 : index
    %307 = vector.load %arg11[%c2_155, %c0_156, %c0_157] : memref<9x16x16xf32, #tpu.memory_space<vmem>>, vector<1x16x16xf32>
    %308 = vector.shape_cast %307 : vector<1x16x16xf32> to vector<16x16xf32>
    %cst_158 = arith.constant dense<0.000000e+00> : vector<16x64xf32>
    %309 = tpu.matmul %308, %306, %cst_158 {dimension_numbers = #tpu.dot_dimension_numbers<[1], [0], [0], [1], [0, 0, 1, 1], [], []>} : vector<16x16xf32>, vector<16x64xf32>, vector<16x64xf32> -> vector<16x64xf32>
    %310 = arith.addf %300, %309 : vector<16x64xf32>
    %311 = vector.extract_strided_slice %193 {offsets = [3, 0], sizes = [1, 64], strides = [1, 1]} : vector<9x64xf32> to vector<1x64xf32>
    %cst_159 = arith.constant 0.000000e+00 : f32
    %312 = vector.broadcast %cst_159 : f32 to vector<16x1xf32>
    %313 = vector.extract_strided_slice %281 {offsets = [0, 0], sizes = [16, 63], strides = [1, 1]} : vector<16x64xf32> to vector<16x63xf32>
    %314 = tpu.concatenate %312, %313 in 1 : vector<16x1xf32>, vector<16x63xf32> -> vector<16x64xf32>
    %315 = vector.broadcast %311 : vector<1x64xf32> to vector<16x64xf32>
    %316 = arith.mulf %314, %315 : vector<16x64xf32>
    %c3_160 = arith.constant 3 : index
    %c0_161 = arith.constant 0 : index
    %c0_162 = arith.constant 0 : index
    %317 = vector.load %arg11[%c3_160, %c0_161, %c0_162] : memref<9x16x16xf32, #tpu.memory_space<vmem>>, vector<1x16x16xf32>
    %318 = vector.shape_cast %317 : vector<1x16x16xf32> to vector<16x16xf32>
    %cst_163 = arith.constant dense<0.000000e+00> : vector<16x64xf32>
    %319 = tpu.matmul %318, %316, %cst_163 {dimension_numbers = #tpu.dot_dimension_numbers<[1], [0], [0], [1], [0, 0, 1, 1], [], []>} : vector<16x16xf32>, vector<16x64xf32>, vector<16x64xf32> -> vector<16x64xf32>
    %320 = arith.addf %310, %319 : vector<16x64xf32>
    %c4_164 = arith.constant 4 : index
    %c0_165 = arith.constant 0 : index
    %c0_166 = arith.constant 0 : index
    %321 = vector.load %arg11[%c4_164, %c0_165, %c0_166] : memref<9x16x16xf32, #tpu.memory_space<vmem>>, vector<1x16x16xf32>
    %322 = vector.shape_cast %321 : vector<1x16x16xf32> to vector<16x16xf32>
    %cst_167 = arith.constant dense<0.000000e+00> : vector<16x64xf32>
    %323 = tpu.matmul %322, %281, %cst_167 {dimension_numbers = #tpu.dot_dimension_numbers<[1], [0], [0], [1], [0, 0, 1, 1], [], []>} : vector<16x16xf32>, vector<16x64xf32>, vector<16x64xf32> -> vector<16x64xf32>
    %324 = arith.addf %320, %323 : vector<16x64xf32>
    %325 = vector.extract_strided_slice %193 {offsets = [5, 0], sizes = [1, 64], strides = [1, 1]} : vector<9x64xf32> to vector<1x64xf32>
    %cst_168 = arith.constant 0.000000e+00 : f32
    %326 = vector.broadcast %cst_168 : f32 to vector<16x1xf32>
    %327 = vector.extract_strided_slice %281 {offsets = [0, 1], sizes = [16, 63], strides = [1, 1]} : vector<16x64xf32> to vector<16x63xf32>
    %328 = tpu.concatenate %327, %326 in 1 : vector<16x63xf32>, vector<16x1xf32> -> vector<16x64xf32>
    %329 = vector.broadcast %325 : vector<1x64xf32> to vector<16x64xf32>
    %330 = arith.mulf %328, %329 : vector<16x64xf32>
    %c5_169 = arith.constant 5 : index
    %c0_170 = arith.constant 0 : index
    %c0_171 = arith.constant 0 : index
    %331 = vector.load %arg11[%c5_169, %c0_170, %c0_171] : memref<9x16x16xf32, #tpu.memory_space<vmem>>, vector<1x16x16xf32>
    %332 = vector.shape_cast %331 : vector<1x16x16xf32> to vector<16x16xf32>
    %cst_172 = arith.constant dense<0.000000e+00> : vector<16x64xf32>
    %333 = tpu.matmul %332, %330, %cst_172 {dimension_numbers = #tpu.dot_dimension_numbers<[1], [0], [0], [1], [0, 0, 1, 1], [], []>} : vector<16x16xf32>, vector<16x64xf32>, vector<16x64xf32> -> vector<16x64xf32>
    %334 = arith.addf %324, %333 : vector<16x64xf32>
    %335 = vector.extract_strided_slice %193 {offsets = [6, 0], sizes = [1, 64], strides = [1, 1]} : vector<9x64xf32> to vector<1x64xf32>
    %cst_173 = arith.constant 0.000000e+00 : f32
    %336 = vector.broadcast %cst_173 : f32 to vector<16x7xf32>
    %337 = vector.extract_strided_slice %281 {offsets = [0, 7], sizes = [16, 57], strides = [1, 1]} : vector<16x64xf32> to vector<16x57xf32>
    %338 = tpu.concatenate %337, %336 in 1 : vector<16x57xf32>, vector<16x7xf32> -> vector<16x64xf32>
    %339 = vector.broadcast %335 : vector<1x64xf32> to vector<16x64xf32>
    %340 = arith.mulf %338, %339 : vector<16x64xf32>
    %c6_174 = arith.constant 6 : index
    %c0_175 = arith.constant 0 : index
    %c0_176 = arith.constant 0 : index
    %341 = vector.load %arg11[%c6_174, %c0_175, %c0_176] : memref<9x16x16xf32, #tpu.memory_space<vmem>>, vector<1x16x16xf32>
    %342 = vector.shape_cast %341 : vector<1x16x16xf32> to vector<16x16xf32>
    %cst_177 = arith.constant dense<0.000000e+00> : vector<16x64xf32>
    %343 = tpu.matmul %342, %340, %cst_177 {dimension_numbers = #tpu.dot_dimension_numbers<[1], [0], [0], [1], [0, 0, 1, 1], [], []>} : vector<16x16xf32>, vector<16x64xf32>, vector<16x64xf32> -> vector<16x64xf32>
    %344 = arith.addf %334, %343 : vector<16x64xf32>
    %345 = vector.extract_strided_slice %193 {offsets = [7, 0], sizes = [1, 64], strides = [1, 1]} : vector<9x64xf32> to vector<1x64xf32>
    %cst_178 = arith.constant 0.000000e+00 : f32
    %346 = vector.broadcast %cst_178 : f32 to vector<16x8xf32>
    %347 = vector.extract_strided_slice %281 {offsets = [0, 8], sizes = [16, 56], strides = [1, 1]} : vector<16x64xf32> to vector<16x56xf32>
    %348 = tpu.concatenate %347, %346 in 1 : vector<16x56xf32>, vector<16x8xf32> -> vector<16x64xf32>
    %349 = vector.broadcast %345 : vector<1x64xf32> to vector<16x64xf32>
    %350 = arith.mulf %348, %349 : vector<16x64xf32>
    %c7_179 = arith.constant 7 : index
    %c0_180 = arith.constant 0 : index
    %c0_181 = arith.constant 0 : index
    %351 = vector.load %arg11[%c7_179, %c0_180, %c0_181] : memref<9x16x16xf32, #tpu.memory_space<vmem>>, vector<1x16x16xf32>
    %352 = vector.shape_cast %351 : vector<1x16x16xf32> to vector<16x16xf32>
    %cst_182 = arith.constant dense<0.000000e+00> : vector<16x64xf32>
    %353 = tpu.matmul %352, %350, %cst_182 {dimension_numbers = #tpu.dot_dimension_numbers<[1], [0], [0], [1], [0, 0, 1, 1], [], []>} : vector<16x16xf32>, vector<16x64xf32>, vector<16x64xf32> -> vector<16x64xf32>
    %354 = arith.addf %344, %353 : vector<16x64xf32>
    %355 = vector.extract_strided_slice %193 {offsets = [8, 0], sizes = [1, 64], strides = [1, 1]} : vector<9x64xf32> to vector<1x64xf32>
    %cst_183 = arith.constant 0.000000e+00 : f32
    %356 = vector.broadcast %cst_183 : f32 to vector<16x9xf32>
    %357 = vector.extract_strided_slice %281 {offsets = [0, 9], sizes = [16, 55], strides = [1, 1]} : vector<16x64xf32> to vector<16x55xf32>
    %358 = tpu.concatenate %357, %356 in 1 : vector<16x55xf32>, vector<16x9xf32> -> vector<16x64xf32>
    %359 = vector.broadcast %355 : vector<1x64xf32> to vector<16x64xf32>
    %360 = arith.mulf %358, %359 : vector<16x64xf32>
    %c8_184 = arith.constant 8 : index
    %c0_185 = arith.constant 0 : index
    %c0_186 = arith.constant 0 : index
    %361 = vector.load %arg11[%c8_184, %c0_185, %c0_186] : memref<9x16x16xf32, #tpu.memory_space<vmem>>, vector<1x16x16xf32>
    %362 = vector.shape_cast %361 : vector<1x16x16xf32> to vector<16x16xf32>
    %cst_187 = arith.constant dense<0.000000e+00> : vector<16x64xf32>
    %363 = tpu.matmul %362, %360, %cst_187 {dimension_numbers = #tpu.dot_dimension_numbers<[1], [0], [0], [1], [0, 0, 1, 1], [], []>} : vector<16x16xf32>, vector<16x64xf32>, vector<16x64xf32> -> vector<16x64xf32>
    %364 = arith.addf %354, %363 : vector<16x64xf32>
    %c0_188 = arith.constant 0 : index
    %c0_189 = arith.constant 0 : index
    %365 = vector.load %arg12[%c0_188, %c0_189] : memref<16x1xf32, #tpu.memory_space<vmem>>, vector<16x1xf32>
    %366 = vector.broadcast %365 : vector<16x1xf32> to vector<16x64xf32>
    %367 = arith.addf %364, %366 : vector<16x64xf32>
    %cst_190 = arith.constant 0.000000e+00 : f32
    %368 = vector.broadcast %cst_190 : f32 to vector<16x64xf32>
    %369 = arith.maximumf %367, %368 : vector<16x64xf32>
    %cst_191 = arith.constant 0.000000e+00 : f32
    %370 = vector.broadcast %cst_191 : f32 to vector<16x1xf32>
    %371 = vector.extract_strided_slice %369 {offsets = [0, 1], sizes = [16, 63], strides = [1, 1]} : vector<16x64xf32> to vector<16x63xf32>
    %372 = tpu.concatenate %371, %370 in 1 : vector<16x63xf32>, vector<16x1xf32> -> vector<16x64xf32>
    %373 = arith.maximumf %369, %372 : vector<16x64xf32>
    %cst_192 = arith.constant 0.000000e+00 : f32
    %374 = vector.broadcast %cst_192 : f32 to vector<16x8xf32>
    %375 = vector.extract_strided_slice %369 {offsets = [0, 8], sizes = [16, 56], strides = [1, 1]} : vector<16x64xf32> to vector<16x56xf32>
    %376 = tpu.concatenate %375, %374 in 1 : vector<16x56xf32>, vector<16x8xf32> -> vector<16x64xf32>
    %cst_193 = arith.constant 0.000000e+00 : f32
    %377 = vector.broadcast %cst_193 : f32 to vector<16x9xf32>
    %378 = vector.extract_strided_slice %369 {offsets = [0, 9], sizes = [16, 55], strides = [1, 1]} : vector<16x64xf32> to vector<16x55xf32>
    %379 = tpu.concatenate %378, %377 in 1 : vector<16x55xf32>, vector<16x9xf32> -> vector<16x64xf32>
    %380 = arith.maximumf %376, %379 : vector<16x64xf32>
    %381 = arith.maximumf %373, %380 : vector<16x64xf32>
    %c0_194 = arith.constant 0 : index
    %c0_195 = arith.constant 0 : index
    %382 = vector.load %arg13[%c0_194, %c0_195] : memref<64x16xf32, #tpu.memory_space<vmem>>, vector<64x16xf32>
    %cst_196 = arith.constant dense<0.000000e+00> : vector<16x16xf32>
    %383 = tpu.matmul %381, %382, %cst_196 {dimension_numbers = #tpu.dot_dimension_numbers<[1], [0], [0], [1], [0, 0, 1, 1], [], []>} : vector<16x64xf32>, vector<64x16xf32>, vector<16x16xf32> -> vector<16x16xf32>
    %c0_197 = arith.constant 0 : index
    %c0_198 = arith.constant 0 : index
    %384 = vector.load %arg14[%c0_197, %c0_198] : memref<9x16xf32, #tpu.memory_space<vmem>>, vector<9x16xf32>
    %385 = vector.extract_strided_slice %384 {offsets = [0, 0], sizes = [1, 16], strides = [1, 1]} : vector<9x16xf32> to vector<1x16xf32>
    %cst_199 = arith.constant 0.000000e+00 : f32
    %386 = vector.broadcast %cst_199 : f32 to vector<16x5xf32>
    %387 = vector.extract_strided_slice %383 {offsets = [0, 0], sizes = [16, 11], strides = [1, 1]} : vector<16x16xf32> to vector<16x11xf32>
    %388 = tpu.concatenate %386, %387 in 1 : vector<16x5xf32>, vector<16x11xf32> -> vector<16x16xf32>
    %389 = vector.broadcast %385 : vector<1x16xf32> to vector<16x16xf32>
    %390 = arith.mulf %388, %389 : vector<16x16xf32>
    %c0_200 = arith.constant 0 : index
    %c0_201 = arith.constant 0 : index
    %c0_202 = arith.constant 0 : index
    %391 = vector.load %arg15[%c0_200, %c0_201, %c0_202] : memref<9x32x16xf32, #tpu.memory_space<vmem>>, vector<1x32x16xf32>
    %392 = vector.shape_cast %391 : vector<1x32x16xf32> to vector<32x16xf32>
    %cst_203 = arith.constant dense<0.000000e+00> : vector<32x16xf32>
    %393 = tpu.matmul %392, %390, %cst_203 {dimension_numbers = #tpu.dot_dimension_numbers<[1], [0], [0], [1], [0, 0, 1, 1], [], []>} : vector<32x16xf32>, vector<16x16xf32>, vector<32x16xf32> -> vector<32x16xf32>
    %394 = vector.extract_strided_slice %384 {offsets = [1, 0], sizes = [1, 16], strides = [1, 1]} : vector<9x16xf32> to vector<1x16xf32>
    %cst_204 = arith.constant 0.000000e+00 : f32
    %395 = vector.broadcast %cst_204 : f32 to vector<16x4xf32>
    %396 = vector.extract_strided_slice %383 {offsets = [0, 0], sizes = [16, 12], strides = [1, 1]} : vector<16x16xf32> to vector<16x12xf32>
    %397 = tpu.concatenate %395, %396 in 1 : vector<16x4xf32>, vector<16x12xf32> -> vector<16x16xf32>
    %398 = vector.broadcast %394 : vector<1x16xf32> to vector<16x16xf32>
    %399 = arith.mulf %397, %398 : vector<16x16xf32>
    %c1_205 = arith.constant 1 : index
    %c0_206 = arith.constant 0 : index
    %c0_207 = arith.constant 0 : index
    %400 = vector.load %arg15[%c1_205, %c0_206, %c0_207] : memref<9x32x16xf32, #tpu.memory_space<vmem>>, vector<1x32x16xf32>
    %401 = vector.shape_cast %400 : vector<1x32x16xf32> to vector<32x16xf32>
    %cst_208 = arith.constant dense<0.000000e+00> : vector<32x16xf32>
    %402 = tpu.matmul %401, %399, %cst_208 {dimension_numbers = #tpu.dot_dimension_numbers<[1], [0], [0], [1], [0, 0, 1, 1], [], []>} : vector<32x16xf32>, vector<16x16xf32>, vector<32x16xf32> -> vector<32x16xf32>
    %403 = arith.addf %393, %402 : vector<32x16xf32>
    %404 = vector.extract_strided_slice %384 {offsets = [2, 0], sizes = [1, 16], strides = [1, 1]} : vector<9x16xf32> to vector<1x16xf32>
    %cst_209 = arith.constant 0.000000e+00 : f32
    %405 = vector.broadcast %cst_209 : f32 to vector<16x3xf32>
    %406 = vector.extract_strided_slice %383 {offsets = [0, 0], sizes = [16, 13], strides = [1, 1]} : vector<16x16xf32> to vector<16x13xf32>
    %407 = tpu.concatenate %405, %406 in 1 : vector<16x3xf32>, vector<16x13xf32> -> vector<16x16xf32>
    %408 = vector.broadcast %404 : vector<1x16xf32> to vector<16x16xf32>
    %409 = arith.mulf %407, %408 : vector<16x16xf32>
    %c2_210 = arith.constant 2 : index
    %c0_211 = arith.constant 0 : index
    %c0_212 = arith.constant 0 : index
    %410 = vector.load %arg15[%c2_210, %c0_211, %c0_212] : memref<9x32x16xf32, #tpu.memory_space<vmem>>, vector<1x32x16xf32>
    %411 = vector.shape_cast %410 : vector<1x32x16xf32> to vector<32x16xf32>
    %cst_213 = arith.constant dense<0.000000e+00> : vector<32x16xf32>
    %412 = tpu.matmul %411, %409, %cst_213 {dimension_numbers = #tpu.dot_dimension_numbers<[1], [0], [0], [1], [0, 0, 1, 1], [], []>} : vector<32x16xf32>, vector<16x16xf32>, vector<32x16xf32> -> vector<32x16xf32>
    %413 = arith.addf %403, %412 : vector<32x16xf32>
    %414 = vector.extract_strided_slice %384 {offsets = [3, 0], sizes = [1, 16], strides = [1, 1]} : vector<9x16xf32> to vector<1x16xf32>
    %cst_214 = arith.constant 0.000000e+00 : f32
    %415 = vector.broadcast %cst_214 : f32 to vector<16x1xf32>
    %416 = vector.extract_strided_slice %383 {offsets = [0, 0], sizes = [16, 15], strides = [1, 1]} : vector<16x16xf32> to vector<16x15xf32>
    %417 = tpu.concatenate %415, %416 in 1 : vector<16x1xf32>, vector<16x15xf32> -> vector<16x16xf32>
    %418 = vector.broadcast %414 : vector<1x16xf32> to vector<16x16xf32>
    %419 = arith.mulf %417, %418 : vector<16x16xf32>
    %c3_215 = arith.constant 3 : index
    %c0_216 = arith.constant 0 : index
    %c0_217 = arith.constant 0 : index
    %420 = vector.load %arg15[%c3_215, %c0_216, %c0_217] : memref<9x32x16xf32, #tpu.memory_space<vmem>>, vector<1x32x16xf32>
    %421 = vector.shape_cast %420 : vector<1x32x16xf32> to vector<32x16xf32>
    %cst_218 = arith.constant dense<0.000000e+00> : vector<32x16xf32>
    %422 = tpu.matmul %421, %419, %cst_218 {dimension_numbers = #tpu.dot_dimension_numbers<[1], [0], [0], [1], [0, 0, 1, 1], [], []>} : vector<32x16xf32>, vector<16x16xf32>, vector<32x16xf32> -> vector<32x16xf32>
    %423 = arith.addf %413, %422 : vector<32x16xf32>
    %c4_219 = arith.constant 4 : index
    %c0_220 = arith.constant 0 : index
    %c0_221 = arith.constant 0 : index
    %424 = vector.load %arg15[%c4_219, %c0_220, %c0_221] : memref<9x32x16xf32, #tpu.memory_space<vmem>>, vector<1x32x16xf32>
    %425 = vector.shape_cast %424 : vector<1x32x16xf32> to vector<32x16xf32>
    %cst_222 = arith.constant dense<0.000000e+00> : vector<32x16xf32>
    %426 = tpu.matmul %425, %383, %cst_222 {dimension_numbers = #tpu.dot_dimension_numbers<[1], [0], [0], [1], [0, 0, 1, 1], [], []>} : vector<32x16xf32>, vector<16x16xf32>, vector<32x16xf32> -> vector<32x16xf32>
    %427 = arith.addf %423, %426 : vector<32x16xf32>
    %428 = vector.extract_strided_slice %384 {offsets = [5, 0], sizes = [1, 16], strides = [1, 1]} : vector<9x16xf32> to vector<1x16xf32>
    %cst_223 = arith.constant 0.000000e+00 : f32
    %429 = vector.broadcast %cst_223 : f32 to vector<16x1xf32>
    %430 = vector.extract_strided_slice %383 {offsets = [0, 1], sizes = [16, 15], strides = [1, 1]} : vector<16x16xf32> to vector<16x15xf32>
    %431 = tpu.concatenate %430, %429 in 1 : vector<16x15xf32>, vector<16x1xf32> -> vector<16x16xf32>
    %432 = vector.broadcast %428 : vector<1x16xf32> to vector<16x16xf32>
    %433 = arith.mulf %431, %432 : vector<16x16xf32>
    %c5_224 = arith.constant 5 : index
    %c0_225 = arith.constant 0 : index
    %c0_226 = arith.constant 0 : index
    %434 = vector.load %arg15[%c5_224, %c0_225, %c0_226] : memref<9x32x16xf32, #tpu.memory_space<vmem>>, vector<1x32x16xf32>
    %435 = vector.shape_cast %434 : vector<1x32x16xf32> to vector<32x16xf32>
    %cst_227 = arith.constant dense<0.000000e+00> : vector<32x16xf32>
    %436 = tpu.matmul %435, %433, %cst_227 {dimension_numbers = #tpu.dot_dimension_numbers<[1], [0], [0], [1], [0, 0, 1, 1], [], []>} : vector<32x16xf32>, vector<16x16xf32>, vector<32x16xf32> -> vector<32x16xf32>
    %437 = arith.addf %427, %436 : vector<32x16xf32>
    %438 = vector.extract_strided_slice %384 {offsets = [6, 0], sizes = [1, 16], strides = [1, 1]} : vector<9x16xf32> to vector<1x16xf32>
    %cst_228 = arith.constant 0.000000e+00 : f32
    %439 = vector.broadcast %cst_228 : f32 to vector<16x3xf32>
    %440 = vector.extract_strided_slice %383 {offsets = [0, 3], sizes = [16, 13], strides = [1, 1]} : vector<16x16xf32> to vector<16x13xf32>
    %441 = tpu.concatenate %440, %439 in 1 : vector<16x13xf32>, vector<16x3xf32> -> vector<16x16xf32>
    %442 = vector.broadcast %438 : vector<1x16xf32> to vector<16x16xf32>
    %443 = arith.mulf %441, %442 : vector<16x16xf32>
    %c6_229 = arith.constant 6 : index
    %c0_230 = arith.constant 0 : index
    %c0_231 = arith.constant 0 : index
    %444 = vector.load %arg15[%c6_229, %c0_230, %c0_231] : memref<9x32x16xf32, #tpu.memory_space<vmem>>, vector<1x32x16xf32>
    %445 = vector.shape_cast %444 : vector<1x32x16xf32> to vector<32x16xf32>
    %cst_232 = arith.constant dense<0.000000e+00> : vector<32x16xf32>
    %446 = tpu.matmul %445, %443, %cst_232 {dimension_numbers = #tpu.dot_dimension_numbers<[1], [0], [0], [1], [0, 0, 1, 1], [], []>} : vector<32x16xf32>, vector<16x16xf32>, vector<32x16xf32> -> vector<32x16xf32>
    %447 = arith.addf %437, %446 : vector<32x16xf32>
    %448 = vector.extract_strided_slice %384 {offsets = [7, 0], sizes = [1, 16], strides = [1, 1]} : vector<9x16xf32> to vector<1x16xf32>
    %cst_233 = arith.constant 0.000000e+00 : f32
    %449 = vector.broadcast %cst_233 : f32 to vector<16x4xf32>
    %450 = vector.extract_strided_slice %383 {offsets = [0, 4], sizes = [16, 12], strides = [1, 1]} : vector<16x16xf32> to vector<16x12xf32>
    %451 = tpu.concatenate %450, %449 in 1 : vector<16x12xf32>, vector<16x4xf32> -> vector<16x16xf32>
    %452 = vector.broadcast %448 : vector<1x16xf32> to vector<16x16xf32>
    %453 = arith.mulf %451, %452 : vector<16x16xf32>
    %c7_234 = arith.constant 7 : index
    %c0_235 = arith.constant 0 : index
    %c0_236 = arith.constant 0 : index
    %454 = vector.load %arg15[%c7_234, %c0_235, %c0_236] : memref<9x32x16xf32, #tpu.memory_space<vmem>>, vector<1x32x16xf32>
    %455 = vector.shape_cast %454 : vector<1x32x16xf32> to vector<32x16xf32>
    %cst_237 = arith.constant dense<0.000000e+00> : vector<32x16xf32>
    %456 = tpu.matmul %455, %453, %cst_237 {dimension_numbers = #tpu.dot_dimension_numbers<[1], [0], [0], [1], [0, 0, 1, 1], [], []>} : vector<32x16xf32>, vector<16x16xf32>, vector<32x16xf32> -> vector<32x16xf32>
    %457 = arith.addf %447, %456 : vector<32x16xf32>
    %458 = vector.extract_strided_slice %384 {offsets = [8, 0], sizes = [1, 16], strides = [1, 1]} : vector<9x16xf32> to vector<1x16xf32>
    %cst_238 = arith.constant 0.000000e+00 : f32
    %459 = vector.broadcast %cst_238 : f32 to vector<16x5xf32>
    %460 = vector.extract_strided_slice %383 {offsets = [0, 5], sizes = [16, 11], strides = [1, 1]} : vector<16x16xf32> to vector<16x11xf32>
    %461 = tpu.concatenate %460, %459 in 1 : vector<16x11xf32>, vector<16x5xf32> -> vector<16x16xf32>
    %462 = vector.broadcast %458 : vector<1x16xf32> to vector<16x16xf32>
    %463 = arith.mulf %461, %462 : vector<16x16xf32>
    %c8_239 = arith.constant 8 : index
    %c0_240 = arith.constant 0 : index
    %c0_241 = arith.constant 0 : index
    %464 = vector.load %arg15[%c8_239, %c0_240, %c0_241] : memref<9x32x16xf32, #tpu.memory_space<vmem>>, vector<1x32x16xf32>
    %465 = vector.shape_cast %464 : vector<1x32x16xf32> to vector<32x16xf32>
    %cst_242 = arith.constant dense<0.000000e+00> : vector<32x16xf32>
    %466 = tpu.matmul %465, %463, %cst_242 {dimension_numbers = #tpu.dot_dimension_numbers<[1], [0], [0], [1], [0, 0, 1, 1], [], []>} : vector<32x16xf32>, vector<16x16xf32>, vector<32x16xf32> -> vector<32x16xf32>
    %467 = arith.addf %457, %466 : vector<32x16xf32>
    %c0_243 = arith.constant 0 : index
    %c0_244 = arith.constant 0 : index
    %468 = vector.load %arg16[%c0_243, %c0_244] : memref<32x1xf32, #tpu.memory_space<vmem>>, vector<32x1xf32>
    %469 = vector.broadcast %468 : vector<32x1xf32> to vector<32x16xf32>
    %470 = arith.addf %467, %469 : vector<32x16xf32>
    %cst_245 = arith.constant 0.000000e+00 : f32
    %471 = vector.broadcast %cst_245 : f32 to vector<32x16xf32>
    %472 = arith.maximumf %470, %471 : vector<32x16xf32>
    %473 = vector.extract_strided_slice %384 {offsets = [0, 0], sizes = [1, 16], strides = [1, 1]} : vector<9x16xf32> to vector<1x16xf32>
    %cst_246 = arith.constant 0.000000e+00 : f32
    %474 = vector.broadcast %cst_246 : f32 to vector<32x5xf32>
    %475 = vector.extract_strided_slice %472 {offsets = [0, 0], sizes = [32, 11], strides = [1, 1]} : vector<32x16xf32> to vector<32x11xf32>
    %476 = tpu.concatenate %474, %475 in 1 : vector<32x5xf32>, vector<32x11xf32> -> vector<32x16xf32>
    %477 = vector.broadcast %473 : vector<1x16xf32> to vector<32x16xf32>
    %478 = arith.mulf %476, %477 : vector<32x16xf32>
    %c0_247 = arith.constant 0 : index
    %c0_248 = arith.constant 0 : index
    %c0_249 = arith.constant 0 : index
    %479 = vector.load %arg17[%c0_247, %c0_248, %c0_249] : memref<9x32x32xf32, #tpu.memory_space<vmem>>, vector<1x32x32xf32>
    %480 = vector.shape_cast %479 : vector<1x32x32xf32> to vector<32x32xf32>
    %cst_250 = arith.constant dense<0.000000e+00> : vector<32x16xf32>
    %481 = tpu.matmul %480, %478, %cst_250 {dimension_numbers = #tpu.dot_dimension_numbers<[1], [0], [0], [1], [0, 0, 1, 1], [], []>} : vector<32x32xf32>, vector<32x16xf32>, vector<32x16xf32> -> vector<32x16xf32>
    %482 = vector.extract_strided_slice %384 {offsets = [1, 0], sizes = [1, 16], strides = [1, 1]} : vector<9x16xf32> to vector<1x16xf32>
    %cst_251 = arith.constant 0.000000e+00 : f32
    %483 = vector.broadcast %cst_251 : f32 to vector<32x4xf32>
    %484 = vector.extract_strided_slice %472 {offsets = [0, 0], sizes = [32, 12], strides = [1, 1]} : vector<32x16xf32> to vector<32x12xf32>
    %485 = tpu.concatenate %483, %484 in 1 : vector<32x4xf32>, vector<32x12xf32> -> vector<32x16xf32>
    %486 = vector.broadcast %482 : vector<1x16xf32> to vector<32x16xf32>
    %487 = arith.mulf %485, %486 : vector<32x16xf32>
    %c1_252 = arith.constant 1 : index
    %c0_253 = arith.constant 0 : index
    %c0_254 = arith.constant 0 : index
    %488 = vector.load %arg17[%c1_252, %c0_253, %c0_254] : memref<9x32x32xf32, #tpu.memory_space<vmem>>, vector<1x32x32xf32>
    %489 = vector.shape_cast %488 : vector<1x32x32xf32> to vector<32x32xf32>
    %cst_255 = arith.constant dense<0.000000e+00> : vector<32x16xf32>
    %490 = tpu.matmul %489, %487, %cst_255 {dimension_numbers = #tpu.dot_dimension_numbers<[1], [0], [0], [1], [0, 0, 1, 1], [], []>} : vector<32x32xf32>, vector<32x16xf32>, vector<32x16xf32> -> vector<32x16xf32>
    %491 = arith.addf %481, %490 : vector<32x16xf32>
    %492 = vector.extract_strided_slice %384 {offsets = [2, 0], sizes = [1, 16], strides = [1, 1]} : vector<9x16xf32> to vector<1x16xf32>
    %cst_256 = arith.constant 0.000000e+00 : f32
    %493 = vector.broadcast %cst_256 : f32 to vector<32x3xf32>
    %494 = vector.extract_strided_slice %472 {offsets = [0, 0], sizes = [32, 13], strides = [1, 1]} : vector<32x16xf32> to vector<32x13xf32>
    %495 = tpu.concatenate %493, %494 in 1 : vector<32x3xf32>, vector<32x13xf32> -> vector<32x16xf32>
    %496 = vector.broadcast %492 : vector<1x16xf32> to vector<32x16xf32>
    %497 = arith.mulf %495, %496 : vector<32x16xf32>
    %c2_257 = arith.constant 2 : index
    %c0_258 = arith.constant 0 : index
    %c0_259 = arith.constant 0 : index
    %498 = vector.load %arg17[%c2_257, %c0_258, %c0_259] : memref<9x32x32xf32, #tpu.memory_space<vmem>>, vector<1x32x32xf32>
    %499 = vector.shape_cast %498 : vector<1x32x32xf32> to vector<32x32xf32>
    %cst_260 = arith.constant dense<0.000000e+00> : vector<32x16xf32>
    %500 = tpu.matmul %499, %497, %cst_260 {dimension_numbers = #tpu.dot_dimension_numbers<[1], [0], [0], [1], [0, 0, 1, 1], [], []>} : vector<32x32xf32>, vector<32x16xf32>, vector<32x16xf32> -> vector<32x16xf32>
    %501 = arith.addf %491, %500 : vector<32x16xf32>
    %502 = vector.extract_strided_slice %384 {offsets = [3, 0], sizes = [1, 16], strides = [1, 1]} : vector<9x16xf32> to vector<1x16xf32>
    %cst_261 = arith.constant 0.000000e+00 : f32
    %503 = vector.broadcast %cst_261 : f32 to vector<32x1xf32>
    %504 = vector.extract_strided_slice %472 {offsets = [0, 0], sizes = [32, 15], strides = [1, 1]} : vector<32x16xf32> to vector<32x15xf32>
    %505 = tpu.concatenate %503, %504 in 1 : vector<32x1xf32>, vector<32x15xf32> -> vector<32x16xf32>
    %506 = vector.broadcast %502 : vector<1x16xf32> to vector<32x16xf32>
    %507 = arith.mulf %505, %506 : vector<32x16xf32>
    %c3_262 = arith.constant 3 : index
    %c0_263 = arith.constant 0 : index
    %c0_264 = arith.constant 0 : index
    %508 = vector.load %arg17[%c3_262, %c0_263, %c0_264] : memref<9x32x32xf32, #tpu.memory_space<vmem>>, vector<1x32x32xf32>
    %509 = vector.shape_cast %508 : vector<1x32x32xf32> to vector<32x32xf32>
    %cst_265 = arith.constant dense<0.000000e+00> : vector<32x16xf32>
    %510 = tpu.matmul %509, %507, %cst_265 {dimension_numbers = #tpu.dot_dimension_numbers<[1], [0], [0], [1], [0, 0, 1, 1], [], []>} : vector<32x32xf32>, vector<32x16xf32>, vector<32x16xf32> -> vector<32x16xf32>
    %511 = arith.addf %501, %510 : vector<32x16xf32>
    %c4_266 = arith.constant 4 : index
    %c0_267 = arith.constant 0 : index
    %c0_268 = arith.constant 0 : index
    %512 = vector.load %arg17[%c4_266, %c0_267, %c0_268] : memref<9x32x32xf32, #tpu.memory_space<vmem>>, vector<1x32x32xf32>
    %513 = vector.shape_cast %512 : vector<1x32x32xf32> to vector<32x32xf32>
    %cst_269 = arith.constant dense<0.000000e+00> : vector<32x16xf32>
    %514 = tpu.matmul %513, %472, %cst_269 {dimension_numbers = #tpu.dot_dimension_numbers<[1], [0], [0], [1], [0, 0, 1, 1], [], []>} : vector<32x32xf32>, vector<32x16xf32>, vector<32x16xf32> -> vector<32x16xf32>
    %515 = arith.addf %511, %514 : vector<32x16xf32>
    %516 = vector.extract_strided_slice %384 {offsets = [5, 0], sizes = [1, 16], strides = [1, 1]} : vector<9x16xf32> to vector<1x16xf32>
    %cst_270 = arith.constant 0.000000e+00 : f32
    %517 = vector.broadcast %cst_270 : f32 to vector<32x1xf32>
    %518 = vector.extract_strided_slice %472 {offsets = [0, 1], sizes = [32, 15], strides = [1, 1]} : vector<32x16xf32> to vector<32x15xf32>
    %519 = tpu.concatenate %518, %517 in 1 : vector<32x15xf32>, vector<32x1xf32> -> vector<32x16xf32>
    %520 = vector.broadcast %516 : vector<1x16xf32> to vector<32x16xf32>
    %521 = arith.mulf %519, %520 : vector<32x16xf32>
    %c5_271 = arith.constant 5 : index
    %c0_272 = arith.constant 0 : index
    %c0_273 = arith.constant 0 : index
    %522 = vector.load %arg17[%c5_271, %c0_272, %c0_273] : memref<9x32x32xf32, #tpu.memory_space<vmem>>, vector<1x32x32xf32>
    %523 = vector.shape_cast %522 : vector<1x32x32xf32> to vector<32x32xf32>
    %cst_274 = arith.constant dense<0.000000e+00> : vector<32x16xf32>
    %524 = tpu.matmul %523, %521, %cst_274 {dimension_numbers = #tpu.dot_dimension_numbers<[1], [0], [0], [1], [0, 0, 1, 1], [], []>} : vector<32x32xf32>, vector<32x16xf32>, vector<32x16xf32> -> vector<32x16xf32>
    %525 = arith.addf %515, %524 : vector<32x16xf32>
    %526 = vector.extract_strided_slice %384 {offsets = [6, 0], sizes = [1, 16], strides = [1, 1]} : vector<9x16xf32> to vector<1x16xf32>
    %cst_275 = arith.constant 0.000000e+00 : f32
    %527 = vector.broadcast %cst_275 : f32 to vector<32x3xf32>
    %528 = vector.extract_strided_slice %472 {offsets = [0, 3], sizes = [32, 13], strides = [1, 1]} : vector<32x16xf32> to vector<32x13xf32>
    %529 = tpu.concatenate %528, %527 in 1 : vector<32x13xf32>, vector<32x3xf32> -> vector<32x16xf32>
    %530 = vector.broadcast %526 : vector<1x16xf32> to vector<32x16xf32>
    %531 = arith.mulf %529, %530 : vector<32x16xf32>
    %c6_276 = arith.constant 6 : index
    %c0_277 = arith.constant 0 : index
    %c0_278 = arith.constant 0 : index
    %532 = vector.load %arg17[%c6_276, %c0_277, %c0_278] : memref<9x32x32xf32, #tpu.memory_space<vmem>>, vector<1x32x32xf32>
    %533 = vector.shape_cast %532 : vector<1x32x32xf32> to vector<32x32xf32>
    %cst_279 = arith.constant dense<0.000000e+00> : vector<32x16xf32>
    %534 = tpu.matmul %533, %531, %cst_279 {dimension_numbers = #tpu.dot_dimension_numbers<[1], [0], [0], [1], [0, 0, 1, 1], [], []>} : vector<32x32xf32>, vector<32x16xf32>, vector<32x16xf32> -> vector<32x16xf32>
    %535 = arith.addf %525, %534 : vector<32x16xf32>
    %536 = vector.extract_strided_slice %384 {offsets = [7, 0], sizes = [1, 16], strides = [1, 1]} : vector<9x16xf32> to vector<1x16xf32>
    %cst_280 = arith.constant 0.000000e+00 : f32
    %537 = vector.broadcast %cst_280 : f32 to vector<32x4xf32>
    %538 = vector.extract_strided_slice %472 {offsets = [0, 4], sizes = [32, 12], strides = [1, 1]} : vector<32x16xf32> to vector<32x12xf32>
    %539 = tpu.concatenate %538, %537 in 1 : vector<32x12xf32>, vector<32x4xf32> -> vector<32x16xf32>
    %540 = vector.broadcast %536 : vector<1x16xf32> to vector<32x16xf32>
    %541 = arith.mulf %539, %540 : vector<32x16xf32>
    %c7_281 = arith.constant 7 : index
    %c0_282 = arith.constant 0 : index
    %c0_283 = arith.constant 0 : index
    %542 = vector.load %arg17[%c7_281, %c0_282, %c0_283] : memref<9x32x32xf32, #tpu.memory_space<vmem>>, vector<1x32x32xf32>
    %543 = vector.shape_cast %542 : vector<1x32x32xf32> to vector<32x32xf32>
    %cst_284 = arith.constant dense<0.000000e+00> : vector<32x16xf32>
    %544 = tpu.matmul %543, %541, %cst_284 {dimension_numbers = #tpu.dot_dimension_numbers<[1], [0], [0], [1], [0, 0, 1, 1], [], []>} : vector<32x32xf32>, vector<32x16xf32>, vector<32x16xf32> -> vector<32x16xf32>
    %545 = arith.addf %535, %544 : vector<32x16xf32>
    %546 = vector.extract_strided_slice %384 {offsets = [8, 0], sizes = [1, 16], strides = [1, 1]} : vector<9x16xf32> to vector<1x16xf32>
    %cst_285 = arith.constant 0.000000e+00 : f32
    %547 = vector.broadcast %cst_285 : f32 to vector<32x5xf32>
    %548 = vector.extract_strided_slice %472 {offsets = [0, 5], sizes = [32, 11], strides = [1, 1]} : vector<32x16xf32> to vector<32x11xf32>
    %549 = tpu.concatenate %548, %547 in 1 : vector<32x11xf32>, vector<32x5xf32> -> vector<32x16xf32>
    %550 = vector.broadcast %546 : vector<1x16xf32> to vector<32x16xf32>
    %551 = arith.mulf %549, %550 : vector<32x16xf32>
    %c8_286 = arith.constant 8 : index
    %c0_287 = arith.constant 0 : index
    %c0_288 = arith.constant 0 : index
    %552 = vector.load %arg17[%c8_286, %c0_287, %c0_288] : memref<9x32x32xf32, #tpu.memory_space<vmem>>, vector<1x32x32xf32>
    %553 = vector.shape_cast %552 : vector<1x32x32xf32> to vector<32x32xf32>
    %cst_289 = arith.constant dense<0.000000e+00> : vector<32x16xf32>
    %554 = tpu.matmul %553, %551, %cst_289 {dimension_numbers = #tpu.dot_dimension_numbers<[1], [0], [0], [1], [0, 0, 1, 1], [], []>} : vector<32x32xf32>, vector<32x16xf32>, vector<32x16xf32> -> vector<32x16xf32>
    %555 = arith.addf %545, %554 : vector<32x16xf32>
    %c0_290 = arith.constant 0 : index
    %c0_291 = arith.constant 0 : index
    %556 = vector.load %arg18[%c0_290, %c0_291] : memref<32x1xf32, #tpu.memory_space<vmem>>, vector<32x1xf32>
    %557 = vector.broadcast %556 : vector<32x1xf32> to vector<32x16xf32>
    %558 = arith.addf %555, %557 : vector<32x16xf32>
    %cst_292 = arith.constant 0.000000e+00 : f32
    %559 = vector.broadcast %cst_292 : f32 to vector<32x16xf32>
    %560 = arith.maximumf %558, %559 : vector<32x16xf32>
    %c0_293 = arith.constant 0 : index
    %c0_294 = arith.constant 0 : index
    %561 = vector.load %arg14[%c0_293, %c0_294] : memref<9x16xf32, #tpu.memory_space<vmem>>, vector<9x16xf32>
    %c0_295 = arith.constant 0 : index
    %c0_296 = arith.constant 0 : index
    %562 = vector.load %arg8[%c0_295, %c0_296] : memref<9x64xf32, #tpu.memory_space<vmem>>, vector<9x64xf32>
    %cst_297 = arith.constant 0.000000e+00 : f32
    %563 = vector.broadcast %cst_297 : f32 to vector<32x1xf32>
    %564 = vector.extract_strided_slice %560 {offsets = [0, 1], sizes = [32, 15], strides = [1, 1]} : vector<32x16xf32> to vector<32x15xf32>
    %565 = tpu.concatenate %564, %563 in 1 : vector<32x15xf32>, vector<32x1xf32> -> vector<32x16xf32>
    %566 = vector.extract_strided_slice %561 {offsets = [5, 0], sizes = [1, 16], strides = [1, 1]} : vector<9x16xf32> to vector<1x16xf32>
    %567 = vector.broadcast %566 : vector<1x16xf32> to vector<32x16xf32>
    %568 = arith.mulf %565, %567 : vector<32x16xf32>
    %cst_298 = arith.constant 0.000000e+00 : f32
    %569 = vector.broadcast %cst_298 : f32 to vector<32x4xf32>
    %570 = vector.extract_strided_slice %560 {offsets = [0, 4], sizes = [32, 12], strides = [1, 1]} : vector<32x16xf32> to vector<32x12xf32>
    %571 = tpu.concatenate %570, %569 in 1 : vector<32x12xf32>, vector<32x4xf32> -> vector<32x16xf32>
    %572 = vector.extract_strided_slice %561 {offsets = [7, 0], sizes = [1, 16], strides = [1, 1]} : vector<9x16xf32> to vector<1x16xf32>
    %573 = vector.broadcast %572 : vector<1x16xf32> to vector<32x16xf32>
    %574 = arith.mulf %571, %573 : vector<32x16xf32>
    %cst_299 = arith.constant 0.000000e+00 : f32
    %575 = vector.broadcast %cst_299 : f32 to vector<32x5xf32>
    %576 = vector.extract_strided_slice %560 {offsets = [0, 5], sizes = [32, 11], strides = [1, 1]} : vector<32x16xf32> to vector<32x11xf32>
    %577 = tpu.concatenate %576, %575 in 1 : vector<32x11xf32>, vector<32x5xf32> -> vector<32x16xf32>
    %578 = vector.extract_strided_slice %561 {offsets = [8, 0], sizes = [1, 16], strides = [1, 1]} : vector<9x16xf32> to vector<1x16xf32>
    %579 = vector.broadcast %578 : vector<1x16xf32> to vector<32x16xf32>
    %580 = arith.mulf %577, %579 : vector<32x16xf32>
    %c4_300 = arith.constant 4 : index
    %c0_301 = arith.constant 0 : index
    %c0_302 = arith.constant 0 : index
    %581 = vector.load %arg19[%c4_300, %c0_301, %c0_302] : memref<9x16x32xf32, #tpu.memory_space<vmem>>, vector<1x16x32xf32>
    %582 = vector.shape_cast %581 : vector<1x16x32xf32> to vector<16x32xf32>
    %cst_303 = arith.constant dense<0.000000e+00> : vector<16x16xf32>
    %583 = tpu.matmul %582, %560, %cst_303 {dimension_numbers = #tpu.dot_dimension_numbers<[1], [0], [0], [1], [0, 0, 1, 1], [], []>} : vector<16x32xf32>, vector<32x16xf32>, vector<16x16xf32> -> vector<16x16xf32>
    %c5_304 = arith.constant 5 : index
    %c0_305 = arith.constant 0 : index
    %c0_306 = arith.constant 0 : index
    %584 = vector.load %arg19[%c5_304, %c0_305, %c0_306] : memref<9x16x32xf32, #tpu.memory_space<vmem>>, vector<1x16x32xf32>
    %585 = vector.shape_cast %584 : vector<1x16x32xf32> to vector<16x32xf32>
    %cst_307 = arith.constant dense<0.000000e+00> : vector<16x16xf32>
    %586 = tpu.matmul %585, %560, %cst_307 {dimension_numbers = #tpu.dot_dimension_numbers<[1], [0], [0], [1], [0, 0, 1, 1], [], []>} : vector<16x32xf32>, vector<32x16xf32>, vector<16x16xf32> -> vector<16x16xf32>
    %c3_308 = arith.constant 3 : index
    %c0_309 = arith.constant 0 : index
    %c0_310 = arith.constant 0 : index
    %587 = vector.load %arg19[%c3_308, %c0_309, %c0_310] : memref<9x16x32xf32, #tpu.memory_space<vmem>>, vector<1x16x32xf32>
    %588 = vector.shape_cast %587 : vector<1x16x32xf32> to vector<16x32xf32>
    %cst_311 = arith.constant dense<0.000000e+00> : vector<16x16xf32>
    %589 = tpu.matmul %588, %568, %cst_311 {dimension_numbers = #tpu.dot_dimension_numbers<[1], [0], [0], [1], [0, 0, 1, 1], [], []>} : vector<16x32xf32>, vector<32x16xf32>, vector<16x16xf32> -> vector<16x16xf32>
    %590 = arith.addf %586, %589 : vector<16x16xf32>
    %c7_312 = arith.constant 7 : index
    %c0_313 = arith.constant 0 : index
    %c0_314 = arith.constant 0 : index
    %591 = vector.load %arg19[%c7_312, %c0_313, %c0_314] : memref<9x16x32xf32, #tpu.memory_space<vmem>>, vector<1x16x32xf32>
    %592 = vector.shape_cast %591 : vector<1x16x32xf32> to vector<16x32xf32>
    %cst_315 = arith.constant dense<0.000000e+00> : vector<16x16xf32>
    %593 = tpu.matmul %592, %560, %cst_315 {dimension_numbers = #tpu.dot_dimension_numbers<[1], [0], [0], [1], [0, 0, 1, 1], [], []>} : vector<16x32xf32>, vector<32x16xf32>, vector<16x16xf32> -> vector<16x16xf32>
    %c1_316 = arith.constant 1 : index
    %c0_317 = arith.constant 0 : index
    %c0_318 = arith.constant 0 : index
    %594 = vector.load %arg19[%c1_316, %c0_317, %c0_318] : memref<9x16x32xf32, #tpu.memory_space<vmem>>, vector<1x16x32xf32>
    %595 = vector.shape_cast %594 : vector<1x16x32xf32> to vector<16x32xf32>
    %cst_319 = arith.constant dense<0.000000e+00> : vector<16x16xf32>
    %596 = tpu.matmul %595, %574, %cst_319 {dimension_numbers = #tpu.dot_dimension_numbers<[1], [0], [0], [1], [0, 0, 1, 1], [], []>} : vector<16x32xf32>, vector<32x16xf32>, vector<16x16xf32> -> vector<16x16xf32>
    %597 = arith.addf %593, %596 : vector<16x16xf32>
    %c8_320 = arith.constant 8 : index
    %c0_321 = arith.constant 0 : index
    %c0_322 = arith.constant 0 : index
    %598 = vector.load %arg19[%c8_320, %c0_321, %c0_322] : memref<9x16x32xf32, #tpu.memory_space<vmem>>, vector<1x16x32xf32>
    %599 = vector.shape_cast %598 : vector<1x16x32xf32> to vector<16x32xf32>
    %cst_323 = arith.constant dense<0.000000e+00> : vector<16x16xf32>
    %600 = tpu.matmul %599, %560, %cst_323 {dimension_numbers = #tpu.dot_dimension_numbers<[1], [0], [0], [1], [0, 0, 1, 1], [], []>} : vector<16x32xf32>, vector<32x16xf32>, vector<16x16xf32> -> vector<16x16xf32>
    %c6_324 = arith.constant 6 : index
    %c0_325 = arith.constant 0 : index
    %c0_326 = arith.constant 0 : index
    %601 = vector.load %arg19[%c6_324, %c0_325, %c0_326] : memref<9x16x32xf32, #tpu.memory_space<vmem>>, vector<1x16x32xf32>
    %602 = vector.shape_cast %601 : vector<1x16x32xf32> to vector<16x32xf32>
    %cst_327 = arith.constant dense<0.000000e+00> : vector<16x16xf32>
    %603 = tpu.matmul %602, %568, %cst_327 {dimension_numbers = #tpu.dot_dimension_numbers<[1], [0], [0], [1], [0, 0, 1, 1], [], []>} : vector<16x32xf32>, vector<32x16xf32>, vector<16x16xf32> -> vector<16x16xf32>
    %604 = arith.addf %600, %603 : vector<16x16xf32>
    %c2_328 = arith.constant 2 : index
    %c0_329 = arith.constant 0 : index
    %c0_330 = arith.constant 0 : index
    %605 = vector.load %arg19[%c2_328, %c0_329, %c0_330] : memref<9x16x32xf32, #tpu.memory_space<vmem>>, vector<1x16x32xf32>
    %606 = vector.shape_cast %605 : vector<1x16x32xf32> to vector<16x32xf32>
    %cst_331 = arith.constant dense<0.000000e+00> : vector<16x16xf32>
    %607 = tpu.matmul %606, %574, %cst_331 {dimension_numbers = #tpu.dot_dimension_numbers<[1], [0], [0], [1], [0, 0, 1, 1], [], []>} : vector<16x32xf32>, vector<32x16xf32>, vector<16x16xf32> -> vector<16x16xf32>
    %608 = arith.addf %604, %607 : vector<16x16xf32>
    %c0_332 = arith.constant 0 : index
    %c0_333 = arith.constant 0 : index
    %c0_334 = arith.constant 0 : index
    %609 = vector.load %arg19[%c0_332, %c0_333, %c0_334] : memref<9x16x32xf32, #tpu.memory_space<vmem>>, vector<1x16x32xf32>
    %610 = vector.shape_cast %609 : vector<1x16x32xf32> to vector<16x32xf32>
    %cst_335 = arith.constant dense<0.000000e+00> : vector<16x16xf32>
    %611 = tpu.matmul %610, %580, %cst_335 {dimension_numbers = #tpu.dot_dimension_numbers<[1], [0], [0], [1], [0, 0, 1, 1], [], []>} : vector<16x32xf32>, vector<32x16xf32>, vector<16x16xf32> -> vector<16x16xf32>
    %612 = arith.addf %608, %611 : vector<16x16xf32>
    %c0_336 = arith.constant 0 : index
    %c0_337 = arith.constant 0 : index
    %c0_338 = arith.constant 0 : index
    %613 = vector.load %arg21[%c0_336, %c0_337, %c0_338] : memref<4x16x64xf32, #tpu.memory_space<vmem>>, vector<1x16x64xf32>
    %614 = vector.shape_cast %613 : vector<1x16x64xf32> to vector<16x64xf32>
    %cst_339 = arith.constant dense<0.000000e+00> : vector<16x64xf32>
    %615 = tpu.matmul %583, %614, %cst_339 {dimension_numbers = #tpu.dot_dimension_numbers<[1], [0], [0], [1], [0, 0, 1, 1], [], []>} : vector<16x16xf32>, vector<16x64xf32>, vector<16x64xf32> -> vector<16x64xf32>
    %c1_340 = arith.constant 1 : index
    %c0_341 = arith.constant 0 : index
    %c0_342 = arith.constant 0 : index
    %616 = vector.load %arg21[%c1_340, %c0_341, %c0_342] : memref<4x16x64xf32, #tpu.memory_space<vmem>>, vector<1x16x64xf32>
    %617 = vector.shape_cast %616 : vector<1x16x64xf32> to vector<16x64xf32>
    %cst_343 = arith.constant dense<0.000000e+00> : vector<16x64xf32>
    %618 = tpu.matmul %590, %617, %cst_343 {dimension_numbers = #tpu.dot_dimension_numbers<[1], [0], [0], [1], [0, 0, 1, 1], [], []>} : vector<16x16xf32>, vector<16x64xf32>, vector<16x64xf32> -> vector<16x64xf32>
    %619 = arith.addf %615, %618 : vector<16x64xf32>
    %c2_344 = arith.constant 2 : index
    %c0_345 = arith.constant 0 : index
    %c0_346 = arith.constant 0 : index
    %620 = vector.load %arg21[%c2_344, %c0_345, %c0_346] : memref<4x16x64xf32, #tpu.memory_space<vmem>>, vector<1x16x64xf32>
    %621 = vector.shape_cast %620 : vector<1x16x64xf32> to vector<16x64xf32>
    %cst_347 = arith.constant dense<0.000000e+00> : vector<16x64xf32>
    %622 = tpu.matmul %597, %621, %cst_347 {dimension_numbers = #tpu.dot_dimension_numbers<[1], [0], [0], [1], [0, 0, 1, 1], [], []>} : vector<16x16xf32>, vector<16x64xf32>, vector<16x64xf32> -> vector<16x64xf32>
    %623 = arith.addf %619, %622 : vector<16x64xf32>
    %c3_348 = arith.constant 3 : index
    %c0_349 = arith.constant 0 : index
    %c0_350 = arith.constant 0 : index
    %624 = vector.load %arg21[%c3_348, %c0_349, %c0_350] : memref<4x16x64xf32, #tpu.memory_space<vmem>>, vector<1x16x64xf32>
    %625 = vector.shape_cast %624 : vector<1x16x64xf32> to vector<16x64xf32>
    %cst_351 = arith.constant dense<0.000000e+00> : vector<16x64xf32>
    %626 = tpu.matmul %612, %625, %cst_351 {dimension_numbers = #tpu.dot_dimension_numbers<[1], [0], [0], [1], [0, 0, 1, 1], [], []>} : vector<16x16xf32>, vector<16x64xf32>, vector<16x64xf32> -> vector<16x64xf32>
    %627 = arith.addf %623, %626 : vector<16x64xf32>
    %c0_352 = arith.constant 0 : index
    %c0_353 = arith.constant 0 : index
    %628 = vector.load %arg20[%c0_352, %c0_353] : memref<16x1xf32, #tpu.memory_space<vmem>>, vector<16x1xf32>
    %629 = vector.broadcast %628 : vector<16x1xf32> to vector<16x64xf32>
    %630 = arith.addf %627, %629 : vector<16x64xf32>
    %631 = vector.extract_strided_slice %562 {offsets = [0, 0], sizes = [1, 64], strides = [1, 1]} : vector<9x64xf32> to vector<1x64xf32>
    %cst_354 = arith.constant 0.000000e+00 : f32
    %632 = vector.broadcast %cst_354 : f32 to vector<16x9xf32>
    %633 = vector.extract_strided_slice %630 {offsets = [0, 0], sizes = [16, 55], strides = [1, 1]} : vector<16x64xf32> to vector<16x55xf32>
    %634 = tpu.concatenate %632, %633 in 1 : vector<16x9xf32>, vector<16x55xf32> -> vector<16x64xf32>
    %635 = vector.broadcast %631 : vector<1x64xf32> to vector<16x64xf32>
    %636 = arith.mulf %634, %635 : vector<16x64xf32>
    %c0_355 = arith.constant 0 : index
    %c0_356 = arith.constant 0 : index
    %c0_357 = arith.constant 0 : index
    %637 = vector.load %arg22[%c0_355, %c0_356, %c0_357] : memref<9x16x16xf32, #tpu.memory_space<vmem>>, vector<1x16x16xf32>
    %638 = vector.shape_cast %637 : vector<1x16x16xf32> to vector<16x16xf32>
    %cst_358 = arith.constant dense<0.000000e+00> : vector<16x64xf32>
    %639 = tpu.matmul %638, %636, %cst_358 {dimension_numbers = #tpu.dot_dimension_numbers<[1], [0], [0], [1], [0, 0, 1, 1], [], []>} : vector<16x16xf32>, vector<16x64xf32>, vector<16x64xf32> -> vector<16x64xf32>
    %cst_359 = arith.constant 0.000000e+00 : f32
    %640 = vector.broadcast %cst_359 : f32 to vector<16x9xf32>
    %641 = vector.extract_strided_slice %369 {offsets = [0, 0], sizes = [16, 55], strides = [1, 1]} : vector<16x64xf32> to vector<16x55xf32>
    %642 = tpu.concatenate %640, %641 in 1 : vector<16x9xf32>, vector<16x55xf32> -> vector<16x64xf32>
    %643 = vector.broadcast %631 : vector<1x64xf32> to vector<16x64xf32>
    %644 = arith.mulf %642, %643 : vector<16x64xf32>
    %c0_360 = arith.constant 0 : index
    %c0_361 = arith.constant 0 : index
    %c0_362 = arith.constant 0 : index
    %645 = vector.load %arg23[%c0_360, %c0_361, %c0_362] : memref<9x16x16xf32, #tpu.memory_space<vmem>>, vector<1x16x16xf32>
    %646 = vector.shape_cast %645 : vector<1x16x16xf32> to vector<16x16xf32>
    %cst_363 = arith.constant dense<0.000000e+00> : vector<16x64xf32>
    %647 = tpu.matmul %646, %644, %cst_363 {dimension_numbers = #tpu.dot_dimension_numbers<[1], [0], [0], [1], [0, 0, 1, 1], [], []>} : vector<16x16xf32>, vector<16x64xf32>, vector<16x64xf32> -> vector<16x64xf32>
    %648 = arith.addf %639, %647 : vector<16x64xf32>
    %649 = vector.extract_strided_slice %562 {offsets = [1, 0], sizes = [1, 64], strides = [1, 1]} : vector<9x64xf32> to vector<1x64xf32>
    %cst_364 = arith.constant 0.000000e+00 : f32
    %650 = vector.broadcast %cst_364 : f32 to vector<16x8xf32>
    %651 = vector.extract_strided_slice %630 {offsets = [0, 0], sizes = [16, 56], strides = [1, 1]} : vector<16x64xf32> to vector<16x56xf32>
    %652 = tpu.concatenate %650, %651 in 1 : vector<16x8xf32>, vector<16x56xf32> -> vector<16x64xf32>
    %653 = vector.broadcast %649 : vector<1x64xf32> to vector<16x64xf32>
    %654 = arith.mulf %652, %653 : vector<16x64xf32>
    %c1_365 = arith.constant 1 : index
    %c0_366 = arith.constant 0 : index
    %c0_367 = arith.constant 0 : index
    %655 = vector.load %arg22[%c1_365, %c0_366, %c0_367] : memref<9x16x16xf32, #tpu.memory_space<vmem>>, vector<1x16x16xf32>
    %656 = vector.shape_cast %655 : vector<1x16x16xf32> to vector<16x16xf32>
    %cst_368 = arith.constant dense<0.000000e+00> : vector<16x64xf32>
    %657 = tpu.matmul %656, %654, %cst_368 {dimension_numbers = #tpu.dot_dimension_numbers<[1], [0], [0], [1], [0, 0, 1, 1], [], []>} : vector<16x16xf32>, vector<16x64xf32>, vector<16x64xf32> -> vector<16x64xf32>
    %658 = arith.addf %648, %657 : vector<16x64xf32>
    %cst_369 = arith.constant 0.000000e+00 : f32
    %659 = vector.broadcast %cst_369 : f32 to vector<16x8xf32>
    %660 = vector.extract_strided_slice %369 {offsets = [0, 0], sizes = [16, 56], strides = [1, 1]} : vector<16x64xf32> to vector<16x56xf32>
    %661 = tpu.concatenate %659, %660 in 1 : vector<16x8xf32>, vector<16x56xf32> -> vector<16x64xf32>
    %662 = vector.broadcast %649 : vector<1x64xf32> to vector<16x64xf32>
    %663 = arith.mulf %661, %662 : vector<16x64xf32>
    %c1_370 = arith.constant 1 : index
    %c0_371 = arith.constant 0 : index
    %c0_372 = arith.constant 0 : index
    %664 = vector.load %arg23[%c1_370, %c0_371, %c0_372] : memref<9x16x16xf32, #tpu.memory_space<vmem>>, vector<1x16x16xf32>
    %665 = vector.shape_cast %664 : vector<1x16x16xf32> to vector<16x16xf32>
    %cst_373 = arith.constant dense<0.000000e+00> : vector<16x64xf32>
    %666 = tpu.matmul %665, %663, %cst_373 {dimension_numbers = #tpu.dot_dimension_numbers<[1], [0], [0], [1], [0, 0, 1, 1], [], []>} : vector<16x16xf32>, vector<16x64xf32>, vector<16x64xf32> -> vector<16x64xf32>
    %667 = arith.addf %658, %666 : vector<16x64xf32>
    %668 = vector.extract_strided_slice %562 {offsets = [2, 0], sizes = [1, 64], strides = [1, 1]} : vector<9x64xf32> to vector<1x64xf32>
    %cst_374 = arith.constant 0.000000e+00 : f32
    %669 = vector.broadcast %cst_374 : f32 to vector<16x7xf32>
    %670 = vector.extract_strided_slice %630 {offsets = [0, 0], sizes = [16, 57], strides = [1, 1]} : vector<16x64xf32> to vector<16x57xf32>
    %671 = tpu.concatenate %669, %670 in 1 : vector<16x7xf32>, vector<16x57xf32> -> vector<16x64xf32>
    %672 = vector.broadcast %668 : vector<1x64xf32> to vector<16x64xf32>
    %673 = arith.mulf %671, %672 : vector<16x64xf32>
    %c2_375 = arith.constant 2 : index
    %c0_376 = arith.constant 0 : index
    %c0_377 = arith.constant 0 : index
    %674 = vector.load %arg22[%c2_375, %c0_376, %c0_377] : memref<9x16x16xf32, #tpu.memory_space<vmem>>, vector<1x16x16xf32>
    %675 = vector.shape_cast %674 : vector<1x16x16xf32> to vector<16x16xf32>
    %cst_378 = arith.constant dense<0.000000e+00> : vector<16x64xf32>
    %676 = tpu.matmul %675, %673, %cst_378 {dimension_numbers = #tpu.dot_dimension_numbers<[1], [0], [0], [1], [0, 0, 1, 1], [], []>} : vector<16x16xf32>, vector<16x64xf32>, vector<16x64xf32> -> vector<16x64xf32>
    %677 = arith.addf %667, %676 : vector<16x64xf32>
    %cst_379 = arith.constant 0.000000e+00 : f32
    %678 = vector.broadcast %cst_379 : f32 to vector<16x7xf32>
    %679 = vector.extract_strided_slice %369 {offsets = [0, 0], sizes = [16, 57], strides = [1, 1]} : vector<16x64xf32> to vector<16x57xf32>
    %680 = tpu.concatenate %678, %679 in 1 : vector<16x7xf32>, vector<16x57xf32> -> vector<16x64xf32>
    %681 = vector.broadcast %668 : vector<1x64xf32> to vector<16x64xf32>
    %682 = arith.mulf %680, %681 : vector<16x64xf32>
    %c2_380 = arith.constant 2 : index
    %c0_381 = arith.constant 0 : index
    %c0_382 = arith.constant 0 : index
    %683 = vector.load %arg23[%c2_380, %c0_381, %c0_382] : memref<9x16x16xf32, #tpu.memory_space<vmem>>, vector<1x16x16xf32>
    %684 = vector.shape_cast %683 : vector<1x16x16xf32> to vector<16x16xf32>
    %cst_383 = arith.constant dense<0.000000e+00> : vector<16x64xf32>
    %685 = tpu.matmul %684, %682, %cst_383 {dimension_numbers = #tpu.dot_dimension_numbers<[1], [0], [0], [1], [0, 0, 1, 1], [], []>} : vector<16x16xf32>, vector<16x64xf32>, vector<16x64xf32> -> vector<16x64xf32>
    %686 = arith.addf %677, %685 : vector<16x64xf32>
    %687 = vector.extract_strided_slice %562 {offsets = [3, 0], sizes = [1, 64], strides = [1, 1]} : vector<9x64xf32> to vector<1x64xf32>
    %cst_384 = arith.constant 0.000000e+00 : f32
    %688 = vector.broadcast %cst_384 : f32 to vector<16x1xf32>
    %689 = vector.extract_strided_slice %630 {offsets = [0, 0], sizes = [16, 63], strides = [1, 1]} : vector<16x64xf32> to vector<16x63xf32>
    %690 = tpu.concatenate %688, %689 in 1 : vector<16x1xf32>, vector<16x63xf32> -> vector<16x64xf32>
    %691 = vector.broadcast %687 : vector<1x64xf32> to vector<16x64xf32>
    %692 = arith.mulf %690, %691 : vector<16x64xf32>
    %c3_385 = arith.constant 3 : index
    %c0_386 = arith.constant 0 : index
    %c0_387 = arith.constant 0 : index
    %693 = vector.load %arg22[%c3_385, %c0_386, %c0_387] : memref<9x16x16xf32, #tpu.memory_space<vmem>>, vector<1x16x16xf32>
    %694 = vector.shape_cast %693 : vector<1x16x16xf32> to vector<16x16xf32>
    %cst_388 = arith.constant dense<0.000000e+00> : vector<16x64xf32>
    %695 = tpu.matmul %694, %692, %cst_388 {dimension_numbers = #tpu.dot_dimension_numbers<[1], [0], [0], [1], [0, 0, 1, 1], [], []>} : vector<16x16xf32>, vector<16x64xf32>, vector<16x64xf32> -> vector<16x64xf32>
    %696 = arith.addf %686, %695 : vector<16x64xf32>
    %cst_389 = arith.constant 0.000000e+00 : f32
    %697 = vector.broadcast %cst_389 : f32 to vector<16x1xf32>
    %698 = vector.extract_strided_slice %369 {offsets = [0, 0], sizes = [16, 63], strides = [1, 1]} : vector<16x64xf32> to vector<16x63xf32>
    %699 = tpu.concatenate %697, %698 in 1 : vector<16x1xf32>, vector<16x63xf32> -> vector<16x64xf32>
    %700 = vector.broadcast %687 : vector<1x64xf32> to vector<16x64xf32>
    %701 = arith.mulf %699, %700 : vector<16x64xf32>
    %c3_390 = arith.constant 3 : index
    %c0_391 = arith.constant 0 : index
    %c0_392 = arith.constant 0 : index
    %702 = vector.load %arg23[%c3_390, %c0_391, %c0_392] : memref<9x16x16xf32, #tpu.memory_space<vmem>>, vector<1x16x16xf32>
    %703 = vector.shape_cast %702 : vector<1x16x16xf32> to vector<16x16xf32>
    %cst_393 = arith.constant dense<0.000000e+00> : vector<16x64xf32>
    %704 = tpu.matmul %703, %701, %cst_393 {dimension_numbers = #tpu.dot_dimension_numbers<[1], [0], [0], [1], [0, 0, 1, 1], [], []>} : vector<16x16xf32>, vector<16x64xf32>, vector<16x64xf32> -> vector<16x64xf32>
    %705 = arith.addf %696, %704 : vector<16x64xf32>
    %c4_394 = arith.constant 4 : index
    %c0_395 = arith.constant 0 : index
    %c0_396 = arith.constant 0 : index
    %706 = vector.load %arg22[%c4_394, %c0_395, %c0_396] : memref<9x16x16xf32, #tpu.memory_space<vmem>>, vector<1x16x16xf32>
    %707 = vector.shape_cast %706 : vector<1x16x16xf32> to vector<16x16xf32>
    %cst_397 = arith.constant dense<0.000000e+00> : vector<16x64xf32>
    %708 = tpu.matmul %707, %630, %cst_397 {dimension_numbers = #tpu.dot_dimension_numbers<[1], [0], [0], [1], [0, 0, 1, 1], [], []>} : vector<16x16xf32>, vector<16x64xf32>, vector<16x64xf32> -> vector<16x64xf32>
    %709 = arith.addf %705, %708 : vector<16x64xf32>
    %c4_398 = arith.constant 4 : index
    %c0_399 = arith.constant 0 : index
    %c0_400 = arith.constant 0 : index
    %710 = vector.load %arg23[%c4_398, %c0_399, %c0_400] : memref<9x16x16xf32, #tpu.memory_space<vmem>>, vector<1x16x16xf32>
    %711 = vector.shape_cast %710 : vector<1x16x16xf32> to vector<16x16xf32>
    %cst_401 = arith.constant dense<0.000000e+00> : vector<16x64xf32>
    %712 = tpu.matmul %711, %369, %cst_401 {dimension_numbers = #tpu.dot_dimension_numbers<[1], [0], [0], [1], [0, 0, 1, 1], [], []>} : vector<16x16xf32>, vector<16x64xf32>, vector<16x64xf32> -> vector<16x64xf32>
    %713 = arith.addf %709, %712 : vector<16x64xf32>
    %714 = vector.extract_strided_slice %562 {offsets = [5, 0], sizes = [1, 64], strides = [1, 1]} : vector<9x64xf32> to vector<1x64xf32>
    %cst_402 = arith.constant 0.000000e+00 : f32
    %715 = vector.broadcast %cst_402 : f32 to vector<16x1xf32>
    %716 = vector.extract_strided_slice %630 {offsets = [0, 1], sizes = [16, 63], strides = [1, 1]} : vector<16x64xf32> to vector<16x63xf32>
    %717 = tpu.concatenate %716, %715 in 1 : vector<16x63xf32>, vector<16x1xf32> -> vector<16x64xf32>
    %718 = vector.broadcast %714 : vector<1x64xf32> to vector<16x64xf32>
    %719 = arith.mulf %717, %718 : vector<16x64xf32>
    %c5_403 = arith.constant 5 : index
    %c0_404 = arith.constant 0 : index
    %c0_405 = arith.constant 0 : index
    %720 = vector.load %arg22[%c5_403, %c0_404, %c0_405] : memref<9x16x16xf32, #tpu.memory_space<vmem>>, vector<1x16x16xf32>
    %721 = vector.shape_cast %720 : vector<1x16x16xf32> to vector<16x16xf32>
    %cst_406 = arith.constant dense<0.000000e+00> : vector<16x64xf32>
    %722 = tpu.matmul %721, %719, %cst_406 {dimension_numbers = #tpu.dot_dimension_numbers<[1], [0], [0], [1], [0, 0, 1, 1], [], []>} : vector<16x16xf32>, vector<16x64xf32>, vector<16x64xf32> -> vector<16x64xf32>
    %723 = arith.addf %713, %722 : vector<16x64xf32>
    %cst_407 = arith.constant 0.000000e+00 : f32
    %724 = vector.broadcast %cst_407 : f32 to vector<16x1xf32>
    %725 = vector.extract_strided_slice %369 {offsets = [0, 1], sizes = [16, 63], strides = [1, 1]} : vector<16x64xf32> to vector<16x63xf32>
    %726 = tpu.concatenate %725, %724 in 1 : vector<16x63xf32>, vector<16x1xf32> -> vector<16x64xf32>
    %727 = vector.broadcast %714 : vector<1x64xf32> to vector<16x64xf32>
    %728 = arith.mulf %726, %727 : vector<16x64xf32>
    %c5_408 = arith.constant 5 : index
    %c0_409 = arith.constant 0 : index
    %c0_410 = arith.constant 0 : index
    %729 = vector.load %arg23[%c5_408, %c0_409, %c0_410] : memref<9x16x16xf32, #tpu.memory_space<vmem>>, vector<1x16x16xf32>
    %730 = vector.shape_cast %729 : vector<1x16x16xf32> to vector<16x16xf32>
    %cst_411 = arith.constant dense<0.000000e+00> : vector<16x64xf32>
    %731 = tpu.matmul %730, %728, %cst_411 {dimension_numbers = #tpu.dot_dimension_numbers<[1], [0], [0], [1], [0, 0, 1, 1], [], []>} : vector<16x16xf32>, vector<16x64xf32>, vector<16x64xf32> -> vector<16x64xf32>
    %732 = arith.addf %723, %731 : vector<16x64xf32>
    %733 = vector.extract_strided_slice %562 {offsets = [6, 0], sizes = [1, 64], strides = [1, 1]} : vector<9x64xf32> to vector<1x64xf32>
    %cst_412 = arith.constant 0.000000e+00 : f32
    %734 = vector.broadcast %cst_412 : f32 to vector<16x7xf32>
    %735 = vector.extract_strided_slice %630 {offsets = [0, 7], sizes = [16, 57], strides = [1, 1]} : vector<16x64xf32> to vector<16x57xf32>
    %736 = tpu.concatenate %735, %734 in 1 : vector<16x57xf32>, vector<16x7xf32> -> vector<16x64xf32>
    %737 = vector.broadcast %733 : vector<1x64xf32> to vector<16x64xf32>
    %738 = arith.mulf %736, %737 : vector<16x64xf32>
    %c6_413 = arith.constant 6 : index
    %c0_414 = arith.constant 0 : index
    %c0_415 = arith.constant 0 : index
    %739 = vector.load %arg22[%c6_413, %c0_414, %c0_415] : memref<9x16x16xf32, #tpu.memory_space<vmem>>, vector<1x16x16xf32>
    %740 = vector.shape_cast %739 : vector<1x16x16xf32> to vector<16x16xf32>
    %cst_416 = arith.constant dense<0.000000e+00> : vector<16x64xf32>
    %741 = tpu.matmul %740, %738, %cst_416 {dimension_numbers = #tpu.dot_dimension_numbers<[1], [0], [0], [1], [0, 0, 1, 1], [], []>} : vector<16x16xf32>, vector<16x64xf32>, vector<16x64xf32> -> vector<16x64xf32>
    %742 = arith.addf %732, %741 : vector<16x64xf32>
    %cst_417 = arith.constant 0.000000e+00 : f32
    %743 = vector.broadcast %cst_417 : f32 to vector<16x7xf32>
    %744 = vector.extract_strided_slice %369 {offsets = [0, 7], sizes = [16, 57], strides = [1, 1]} : vector<16x64xf32> to vector<16x57xf32>
    %745 = tpu.concatenate %744, %743 in 1 : vector<16x57xf32>, vector<16x7xf32> -> vector<16x64xf32>
    %746 = vector.broadcast %733 : vector<1x64xf32> to vector<16x64xf32>
    %747 = arith.mulf %745, %746 : vector<16x64xf32>
    %c6_418 = arith.constant 6 : index
    %c0_419 = arith.constant 0 : index
    %c0_420 = arith.constant 0 : index
    %748 = vector.load %arg23[%c6_418, %c0_419, %c0_420] : memref<9x16x16xf32, #tpu.memory_space<vmem>>, vector<1x16x16xf32>
    %749 = vector.shape_cast %748 : vector<1x16x16xf32> to vector<16x16xf32>
    %cst_421 = arith.constant dense<0.000000e+00> : vector<16x64xf32>
    %750 = tpu.matmul %749, %747, %cst_421 {dimension_numbers = #tpu.dot_dimension_numbers<[1], [0], [0], [1], [0, 0, 1, 1], [], []>} : vector<16x16xf32>, vector<16x64xf32>, vector<16x64xf32> -> vector<16x64xf32>
    %751 = arith.addf %742, %750 : vector<16x64xf32>
    %752 = vector.extract_strided_slice %562 {offsets = [7, 0], sizes = [1, 64], strides = [1, 1]} : vector<9x64xf32> to vector<1x64xf32>
    %cst_422 = arith.constant 0.000000e+00 : f32
    %753 = vector.broadcast %cst_422 : f32 to vector<16x8xf32>
    %754 = vector.extract_strided_slice %630 {offsets = [0, 8], sizes = [16, 56], strides = [1, 1]} : vector<16x64xf32> to vector<16x56xf32>
    %755 = tpu.concatenate %754, %753 in 1 : vector<16x56xf32>, vector<16x8xf32> -> vector<16x64xf32>
    %756 = vector.broadcast %752 : vector<1x64xf32> to vector<16x64xf32>
    %757 = arith.mulf %755, %756 : vector<16x64xf32>
    %c7_423 = arith.constant 7 : index
    %c0_424 = arith.constant 0 : index
    %c0_425 = arith.constant 0 : index
    %758 = vector.load %arg22[%c7_423, %c0_424, %c0_425] : memref<9x16x16xf32, #tpu.memory_space<vmem>>, vector<1x16x16xf32>
    %759 = vector.shape_cast %758 : vector<1x16x16xf32> to vector<16x16xf32>
    %cst_426 = arith.constant dense<0.000000e+00> : vector<16x64xf32>
    %760 = tpu.matmul %759, %757, %cst_426 {dimension_numbers = #tpu.dot_dimension_numbers<[1], [0], [0], [1], [0, 0, 1, 1], [], []>} : vector<16x16xf32>, vector<16x64xf32>, vector<16x64xf32> -> vector<16x64xf32>
    %761 = arith.addf %751, %760 : vector<16x64xf32>
    %cst_427 = arith.constant 0.000000e+00 : f32
    %762 = vector.broadcast %cst_427 : f32 to vector<16x8xf32>
    %763 = vector.extract_strided_slice %369 {offsets = [0, 8], sizes = [16, 56], strides = [1, 1]} : vector<16x64xf32> to vector<16x56xf32>
    %764 = tpu.concatenate %763, %762 in 1 : vector<16x56xf32>, vector<16x8xf32> -> vector<16x64xf32>
    %765 = vector.broadcast %752 : vector<1x64xf32> to vector<16x64xf32>
    %766 = arith.mulf %764, %765 : vector<16x64xf32>
    %c7_428 = arith.constant 7 : index
    %c0_429 = arith.constant 0 : index
    %c0_430 = arith.constant 0 : index
    %767 = vector.load %arg23[%c7_428, %c0_429, %c0_430] : memref<9x16x16xf32, #tpu.memory_space<vmem>>, vector<1x16x16xf32>
    %768 = vector.shape_cast %767 : vector<1x16x16xf32> to vector<16x16xf32>
    %cst_431 = arith.constant dense<0.000000e+00> : vector<16x64xf32>
    %769 = tpu.matmul %768, %766, %cst_431 {dimension_numbers = #tpu.dot_dimension_numbers<[1], [0], [0], [1], [0, 0, 1, 1], [], []>} : vector<16x16xf32>, vector<16x64xf32>, vector<16x64xf32> -> vector<16x64xf32>
    %770 = arith.addf %761, %769 : vector<16x64xf32>
    %771 = vector.extract_strided_slice %562 {offsets = [8, 0], sizes = [1, 64], strides = [1, 1]} : vector<9x64xf32> to vector<1x64xf32>
    %cst_432 = arith.constant 0.000000e+00 : f32
    %772 = vector.broadcast %cst_432 : f32 to vector<16x9xf32>
    %773 = vector.extract_strided_slice %630 {offsets = [0, 9], sizes = [16, 55], strides = [1, 1]} : vector<16x64xf32> to vector<16x55xf32>
    %774 = tpu.concatenate %773, %772 in 1 : vector<16x55xf32>, vector<16x9xf32> -> vector<16x64xf32>
    %775 = vector.broadcast %771 : vector<1x64xf32> to vector<16x64xf32>
    %776 = arith.mulf %774, %775 : vector<16x64xf32>
    %c8_433 = arith.constant 8 : index
    %c0_434 = arith.constant 0 : index
    %c0_435 = arith.constant 0 : index
    %777 = vector.load %arg22[%c8_433, %c0_434, %c0_435] : memref<9x16x16xf32, #tpu.memory_space<vmem>>, vector<1x16x16xf32>
    %778 = vector.shape_cast %777 : vector<1x16x16xf32> to vector<16x16xf32>
    %cst_436 = arith.constant dense<0.000000e+00> : vector<16x64xf32>
    %779 = tpu.matmul %778, %776, %cst_436 {dimension_numbers = #tpu.dot_dimension_numbers<[1], [0], [0], [1], [0, 0, 1, 1], [], []>} : vector<16x16xf32>, vector<16x64xf32>, vector<16x64xf32> -> vector<16x64xf32>
    %780 = arith.addf %770, %779 : vector<16x64xf32>
    %cst_437 = arith.constant 0.000000e+00 : f32
    %781 = vector.broadcast %cst_437 : f32 to vector<16x9xf32>
    %782 = vector.extract_strided_slice %369 {offsets = [0, 9], sizes = [16, 55], strides = [1, 1]} : vector<16x64xf32> to vector<16x55xf32>
    %783 = tpu.concatenate %782, %781 in 1 : vector<16x55xf32>, vector<16x9xf32> -> vector<16x64xf32>
    %784 = vector.broadcast %771 : vector<1x64xf32> to vector<16x64xf32>
    %785 = arith.mulf %783, %784 : vector<16x64xf32>
    %c8_438 = arith.constant 8 : index
    %c0_439 = arith.constant 0 : index
    %c0_440 = arith.constant 0 : index
    %786 = vector.load %arg23[%c8_438, %c0_439, %c0_440] : memref<9x16x16xf32, #tpu.memory_space<vmem>>, vector<1x16x16xf32>
    %787 = vector.shape_cast %786 : vector<1x16x16xf32> to vector<16x16xf32>
    %cst_441 = arith.constant dense<0.000000e+00> : vector<16x64xf32>
    %788 = tpu.matmul %787, %785, %cst_441 {dimension_numbers = #tpu.dot_dimension_numbers<[1], [0], [0], [1], [0, 0, 1, 1], [], []>} : vector<16x16xf32>, vector<16x64xf32>, vector<16x64xf32> -> vector<16x64xf32>
    %789 = arith.addf %780, %788 : vector<16x64xf32>
    %c0_442 = arith.constant 0 : index
    %c0_443 = arith.constant 0 : index
    %790 = vector.load %arg24[%c0_442, %c0_443] : memref<16x1xf32, #tpu.memory_space<vmem>>, vector<16x1xf32>
    %791 = vector.broadcast %790 : vector<16x1xf32> to vector<16x64xf32>
    %792 = arith.addf %789, %791 : vector<16x64xf32>
    %cst_444 = arith.constant 0.000000e+00 : f32
    %793 = vector.broadcast %cst_444 : f32 to vector<16x64xf32>
    %794 = arith.maximumf %792, %793 : vector<16x64xf32>
    %795 = vector.extract_strided_slice %562 {offsets = [0, 0], sizes = [1, 64], strides = [1, 1]} : vector<9x64xf32> to vector<1x64xf32>
    %cst_445 = arith.constant 0.000000e+00 : f32
    %796 = vector.broadcast %cst_445 : f32 to vector<16x9xf32>
    %797 = vector.extract_strided_slice %794 {offsets = [0, 0], sizes = [16, 55], strides = [1, 1]} : vector<16x64xf32> to vector<16x55xf32>
    %798 = tpu.concatenate %796, %797 in 1 : vector<16x9xf32>, vector<16x55xf32> -> vector<16x64xf32>
    %799 = vector.broadcast %795 : vector<1x64xf32> to vector<16x64xf32>
    %800 = arith.mulf %798, %799 : vector<16x64xf32>
    %c0_446 = arith.constant 0 : index
    %c0_447 = arith.constant 0 : index
    %c0_448 = arith.constant 0 : index
    %801 = vector.load %arg25[%c0_446, %c0_447, %c0_448] : memref<9x16x16xf32, #tpu.memory_space<vmem>>, vector<1x16x16xf32>
    %802 = vector.shape_cast %801 : vector<1x16x16xf32> to vector<16x16xf32>
    %cst_449 = arith.constant dense<0.000000e+00> : vector<16x64xf32>
    %803 = tpu.matmul %802, %800, %cst_449 {dimension_numbers = #tpu.dot_dimension_numbers<[1], [0], [0], [1], [0, 0, 1, 1], [], []>} : vector<16x16xf32>, vector<16x64xf32>, vector<16x64xf32> -> vector<16x64xf32>
    %804 = vector.extract_strided_slice %562 {offsets = [1, 0], sizes = [1, 64], strides = [1, 1]} : vector<9x64xf32> to vector<1x64xf32>
    %cst_450 = arith.constant 0.000000e+00 : f32
    %805 = vector.broadcast %cst_450 : f32 to vector<16x8xf32>
    %806 = vector.extract_strided_slice %794 {offsets = [0, 0], sizes = [16, 56], strides = [1, 1]} : vector<16x64xf32> to vector<16x56xf32>
    %807 = tpu.concatenate %805, %806 in 1 : vector<16x8xf32>, vector<16x56xf32> -> vector<16x64xf32>
    %808 = vector.broadcast %804 : vector<1x64xf32> to vector<16x64xf32>
    %809 = arith.mulf %807, %808 : vector<16x64xf32>
    %c1_451 = arith.constant 1 : index
    %c0_452 = arith.constant 0 : index
    %c0_453 = arith.constant 0 : index
    %810 = vector.load %arg25[%c1_451, %c0_452, %c0_453] : memref<9x16x16xf32, #tpu.memory_space<vmem>>, vector<1x16x16xf32>
    %811 = vector.shape_cast %810 : vector<1x16x16xf32> to vector<16x16xf32>
    %cst_454 = arith.constant dense<0.000000e+00> : vector<16x64xf32>
    %812 = tpu.matmul %811, %809, %cst_454 {dimension_numbers = #tpu.dot_dimension_numbers<[1], [0], [0], [1], [0, 0, 1, 1], [], []>} : vector<16x16xf32>, vector<16x64xf32>, vector<16x64xf32> -> vector<16x64xf32>
    %813 = arith.addf %803, %812 : vector<16x64xf32>
    %814 = vector.extract_strided_slice %562 {offsets = [2, 0], sizes = [1, 64], strides = [1, 1]} : vector<9x64xf32> to vector<1x64xf32>
    %cst_455 = arith.constant 0.000000e+00 : f32
    %815 = vector.broadcast %cst_455 : f32 to vector<16x7xf32>
    %816 = vector.extract_strided_slice %794 {offsets = [0, 0], sizes = [16, 57], strides = [1, 1]} : vector<16x64xf32> to vector<16x57xf32>
    %817 = tpu.concatenate %815, %816 in 1 : vector<16x7xf32>, vector<16x57xf32> -> vector<16x64xf32>
    %818 = vector.broadcast %814 : vector<1x64xf32> to vector<16x64xf32>
    %819 = arith.mulf %817, %818 : vector<16x64xf32>
    %c2_456 = arith.constant 2 : index
    %c0_457 = arith.constant 0 : index
    %c0_458 = arith.constant 0 : index
    %820 = vector.load %arg25[%c2_456, %c0_457, %c0_458] : memref<9x16x16xf32, #tpu.memory_space<vmem>>, vector<1x16x16xf32>
    %821 = vector.shape_cast %820 : vector<1x16x16xf32> to vector<16x16xf32>
    %cst_459 = arith.constant dense<0.000000e+00> : vector<16x64xf32>
    %822 = tpu.matmul %821, %819, %cst_459 {dimension_numbers = #tpu.dot_dimension_numbers<[1], [0], [0], [1], [0, 0, 1, 1], [], []>} : vector<16x16xf32>, vector<16x64xf32>, vector<16x64xf32> -> vector<16x64xf32>
    %823 = arith.addf %813, %822 : vector<16x64xf32>
    %824 = vector.extract_strided_slice %562 {offsets = [3, 0], sizes = [1, 64], strides = [1, 1]} : vector<9x64xf32> to vector<1x64xf32>
    %cst_460 = arith.constant 0.000000e+00 : f32
    %825 = vector.broadcast %cst_460 : f32 to vector<16x1xf32>
    %826 = vector.extract_strided_slice %794 {offsets = [0, 0], sizes = [16, 63], strides = [1, 1]} : vector<16x64xf32> to vector<16x63xf32>
    %827 = tpu.concatenate %825, %826 in 1 : vector<16x1xf32>, vector<16x63xf32> -> vector<16x64xf32>
    %828 = vector.broadcast %824 : vector<1x64xf32> to vector<16x64xf32>
    %829 = arith.mulf %827, %828 : vector<16x64xf32>
    %c3_461 = arith.constant 3 : index
    %c0_462 = arith.constant 0 : index
    %c0_463 = arith.constant 0 : index
    %830 = vector.load %arg25[%c3_461, %c0_462, %c0_463] : memref<9x16x16xf32, #tpu.memory_space<vmem>>, vector<1x16x16xf32>
    %831 = vector.shape_cast %830 : vector<1x16x16xf32> to vector<16x16xf32>
    %cst_464 = arith.constant dense<0.000000e+00> : vector<16x64xf32>
    %832 = tpu.matmul %831, %829, %cst_464 {dimension_numbers = #tpu.dot_dimension_numbers<[1], [0], [0], [1], [0, 0, 1, 1], [], []>} : vector<16x16xf32>, vector<16x64xf32>, vector<16x64xf32> -> vector<16x64xf32>
    %833 = arith.addf %823, %832 : vector<16x64xf32>
    %c4_465 = arith.constant 4 : index
    %c0_466 = arith.constant 0 : index
    %c0_467 = arith.constant 0 : index
    %834 = vector.load %arg25[%c4_465, %c0_466, %c0_467] : memref<9x16x16xf32, #tpu.memory_space<vmem>>, vector<1x16x16xf32>
    %835 = vector.shape_cast %834 : vector<1x16x16xf32> to vector<16x16xf32>
    %cst_468 = arith.constant dense<0.000000e+00> : vector<16x64xf32>
    %836 = tpu.matmul %835, %794, %cst_468 {dimension_numbers = #tpu.dot_dimension_numbers<[1], [0], [0], [1], [0, 0, 1, 1], [], []>} : vector<16x16xf32>, vector<16x64xf32>, vector<16x64xf32> -> vector<16x64xf32>
    %837 = arith.addf %833, %836 : vector<16x64xf32>
    %838 = vector.extract_strided_slice %562 {offsets = [5, 0], sizes = [1, 64], strides = [1, 1]} : vector<9x64xf32> to vector<1x64xf32>
    %cst_469 = arith.constant 0.000000e+00 : f32
    %839 = vector.broadcast %cst_469 : f32 to vector<16x1xf32>
    %840 = vector.extract_strided_slice %794 {offsets = [0, 1], sizes = [16, 63], strides = [1, 1]} : vector<16x64xf32> to vector<16x63xf32>
    %841 = tpu.concatenate %840, %839 in 1 : vector<16x63xf32>, vector<16x1xf32> -> vector<16x64xf32>
    %842 = vector.broadcast %838 : vector<1x64xf32> to vector<16x64xf32>
    %843 = arith.mulf %841, %842 : vector<16x64xf32>
    %c5_470 = arith.constant 5 : index
    %c0_471 = arith.constant 0 : index
    %c0_472 = arith.constant 0 : index
    %844 = vector.load %arg25[%c5_470, %c0_471, %c0_472] : memref<9x16x16xf32, #tpu.memory_space<vmem>>, vector<1x16x16xf32>
    %845 = vector.shape_cast %844 : vector<1x16x16xf32> to vector<16x16xf32>
    %cst_473 = arith.constant dense<0.000000e+00> : vector<16x64xf32>
    %846 = tpu.matmul %845, %843, %cst_473 {dimension_numbers = #tpu.dot_dimension_numbers<[1], [0], [0], [1], [0, 0, 1, 1], [], []>} : vector<16x16xf32>, vector<16x64xf32>, vector<16x64xf32> -> vector<16x64xf32>
    %847 = arith.addf %837, %846 : vector<16x64xf32>
    %848 = vector.extract_strided_slice %562 {offsets = [6, 0], sizes = [1, 64], strides = [1, 1]} : vector<9x64xf32> to vector<1x64xf32>
    %cst_474 = arith.constant 0.000000e+00 : f32
    %849 = vector.broadcast %cst_474 : f32 to vector<16x7xf32>
    %850 = vector.extract_strided_slice %794 {offsets = [0, 7], sizes = [16, 57], strides = [1, 1]} : vector<16x64xf32> to vector<16x57xf32>
    %851 = tpu.concatenate %850, %849 in 1 : vector<16x57xf32>, vector<16x7xf32> -> vector<16x64xf32>
    %852 = vector.broadcast %848 : vector<1x64xf32> to vector<16x64xf32>
    %853 = arith.mulf %851, %852 : vector<16x64xf32>
    %c6_475 = arith.constant 6 : index
    %c0_476 = arith.constant 0 : index
    %c0_477 = arith.constant 0 : index
    %854 = vector.load %arg25[%c6_475, %c0_476, %c0_477] : memref<9x16x16xf32, #tpu.memory_space<vmem>>, vector<1x16x16xf32>
    %855 = vector.shape_cast %854 : vector<1x16x16xf32> to vector<16x16xf32>
    %cst_478 = arith.constant dense<0.000000e+00> : vector<16x64xf32>
    %856 = tpu.matmul %855, %853, %cst_478 {dimension_numbers = #tpu.dot_dimension_numbers<[1], [0], [0], [1], [0, 0, 1, 1], [], []>} : vector<16x16xf32>, vector<16x64xf32>, vector<16x64xf32> -> vector<16x64xf32>
    %857 = arith.addf %847, %856 : vector<16x64xf32>
    %858 = vector.extract_strided_slice %562 {offsets = [7, 0], sizes = [1, 64], strides = [1, 1]} : vector<9x64xf32> to vector<1x64xf32>
    %cst_479 = arith.constant 0.000000e+00 : f32
    %859 = vector.broadcast %cst_479 : f32 to vector<16x8xf32>
    %860 = vector.extract_strided_slice %794 {offsets = [0, 8], sizes = [16, 56], strides = [1, 1]} : vector<16x64xf32> to vector<16x56xf32>
    %861 = tpu.concatenate %860, %859 in 1 : vector<16x56xf32>, vector<16x8xf32> -> vector<16x64xf32>
    %862 = vector.broadcast %858 : vector<1x64xf32> to vector<16x64xf32>
    %863 = arith.mulf %861, %862 : vector<16x64xf32>
    %c7_480 = arith.constant 7 : index
    %c0_481 = arith.constant 0 : index
    %c0_482 = arith.constant 0 : index
    %864 = vector.load %arg25[%c7_480, %c0_481, %c0_482] : memref<9x16x16xf32, #tpu.memory_space<vmem>>, vector<1x16x16xf32>
    %865 = vector.shape_cast %864 : vector<1x16x16xf32> to vector<16x16xf32>
    %cst_483 = arith.constant dense<0.000000e+00> : vector<16x64xf32>
    %866 = tpu.matmul %865, %863, %cst_483 {dimension_numbers = #tpu.dot_dimension_numbers<[1], [0], [0], [1], [0, 0, 1, 1], [], []>} : vector<16x16xf32>, vector<16x64xf32>, vector<16x64xf32> -> vector<16x64xf32>
    %867 = arith.addf %857, %866 : vector<16x64xf32>
    %868 = vector.extract_strided_slice %562 {offsets = [8, 0], sizes = [1, 64], strides = [1, 1]} : vector<9x64xf32> to vector<1x64xf32>
    %cst_484 = arith.constant 0.000000e+00 : f32
    %869 = vector.broadcast %cst_484 : f32 to vector<16x9xf32>
    %870 = vector.extract_strided_slice %794 {offsets = [0, 9], sizes = [16, 55], strides = [1, 1]} : vector<16x64xf32> to vector<16x55xf32>
    %871 = tpu.concatenate %870, %869 in 1 : vector<16x55xf32>, vector<16x9xf32> -> vector<16x64xf32>
    %872 = vector.broadcast %868 : vector<1x64xf32> to vector<16x64xf32>
    %873 = arith.mulf %871, %872 : vector<16x64xf32>
    %c8_485 = arith.constant 8 : index
    %c0_486 = arith.constant 0 : index
    %c0_487 = arith.constant 0 : index
    %874 = vector.load %arg25[%c8_485, %c0_486, %c0_487] : memref<9x16x16xf32, #tpu.memory_space<vmem>>, vector<1x16x16xf32>
    %875 = vector.shape_cast %874 : vector<1x16x16xf32> to vector<16x16xf32>
    %cst_488 = arith.constant dense<0.000000e+00> : vector<16x64xf32>
    %876 = tpu.matmul %875, %873, %cst_488 {dimension_numbers = #tpu.dot_dimension_numbers<[1], [0], [0], [1], [0, 0, 1, 1], [], []>} : vector<16x16xf32>, vector<16x64xf32>, vector<16x64xf32> -> vector<16x64xf32>
    %877 = arith.addf %867, %876 : vector<16x64xf32>
    %c0_489 = arith.constant 0 : index
    %c0_490 = arith.constant 0 : index
    %878 = vector.load %arg26[%c0_489, %c0_490] : memref<16x1xf32, #tpu.memory_space<vmem>>, vector<16x1xf32>
    %879 = vector.broadcast %878 : vector<16x1xf32> to vector<16x64xf32>
    %880 = arith.addf %877, %879 : vector<16x64xf32>
    %cst_491 = arith.constant 0.000000e+00 : f32
    %881 = vector.broadcast %cst_491 : f32 to vector<16x64xf32>
    %882 = arith.maximumf %880, %881 : vector<16x64xf32>
    %c0_492 = arith.constant 0 : index
    %c0_493 = arith.constant 0 : index
    %883 = vector.load %arg8[%c0_492, %c0_493] : memref<9x64xf32, #tpu.memory_space<vmem>>, vector<9x64xf32>
    %c0_494 = arith.constant 0 : index
    %c0_495 = arith.constant 0 : index
    %884 = vector.load %arg2[%c0_494, %c0_495] : memref<9x256xf32, #tpu.memory_space<vmem>>, vector<9x256xf32>
    %cst_496 = arith.constant 0.000000e+00 : f32
    %885 = vector.broadcast %cst_496 : f32 to vector<16x1xf32>
    %886 = vector.extract_strided_slice %882 {offsets = [0, 1], sizes = [16, 63], strides = [1, 1]} : vector<16x64xf32> to vector<16x63xf32>
    %887 = tpu.concatenate %886, %885 in 1 : vector<16x63xf32>, vector<16x1xf32> -> vector<16x64xf32>
    %888 = vector.extract_strided_slice %883 {offsets = [5, 0], sizes = [1, 64], strides = [1, 1]} : vector<9x64xf32> to vector<1x64xf32>
    %889 = vector.broadcast %888 : vector<1x64xf32> to vector<16x64xf32>
    %890 = arith.mulf %887, %889 : vector<16x64xf32>
    %cst_497 = arith.constant 0.000000e+00 : f32
    %891 = vector.broadcast %cst_497 : f32 to vector<16x8xf32>
    %892 = vector.extract_strided_slice %882 {offsets = [0, 8], sizes = [16, 56], strides = [1, 1]} : vector<16x64xf32> to vector<16x56xf32>
    %893 = tpu.concatenate %892, %891 in 1 : vector<16x56xf32>, vector<16x8xf32> -> vector<16x64xf32>
    %894 = vector.extract_strided_slice %883 {offsets = [7, 0], sizes = [1, 64], strides = [1, 1]} : vector<9x64xf32> to vector<1x64xf32>
    %895 = vector.broadcast %894 : vector<1x64xf32> to vector<16x64xf32>
    %896 = arith.mulf %893, %895 : vector<16x64xf32>
    %cst_498 = arith.constant 0.000000e+00 : f32
    %897 = vector.broadcast %cst_498 : f32 to vector<16x9xf32>
    %898 = vector.extract_strided_slice %882 {offsets = [0, 9], sizes = [16, 55], strides = [1, 1]} : vector<16x64xf32> to vector<16x55xf32>
    %899 = tpu.concatenate %898, %897 in 1 : vector<16x55xf32>, vector<16x9xf32> -> vector<16x64xf32>
    %900 = vector.extract_strided_slice %883 {offsets = [8, 0], sizes = [1, 64], strides = [1, 1]} : vector<9x64xf32> to vector<1x64xf32>
    %901 = vector.broadcast %900 : vector<1x64xf32> to vector<16x64xf32>
    %902 = arith.mulf %899, %901 : vector<16x64xf32>
    %c4_499 = arith.constant 4 : index
    %c0_500 = arith.constant 0 : index
    %c0_501 = arith.constant 0 : index
    %903 = vector.load %arg27[%c4_499, %c0_500, %c0_501] : memref<9x8x16xf32, #tpu.memory_space<vmem>>, vector<1x8x16xf32>
    %904 = vector.shape_cast %903 : vector<1x8x16xf32> to vector<8x16xf32>
    %cst_502 = arith.constant dense<0.000000e+00> : vector<8x64xf32>
    %905 = tpu.matmul %904, %882, %cst_502 {dimension_numbers = #tpu.dot_dimension_numbers<[1], [0], [0], [1], [0, 0, 1, 1], [], []>} : vector<8x16xf32>, vector<16x64xf32>, vector<8x64xf32> -> vector<8x64xf32>
    %c5_503 = arith.constant 5 : index
    %c0_504 = arith.constant 0 : index
    %c0_505 = arith.constant 0 : index
    %906 = vector.load %arg27[%c5_503, %c0_504, %c0_505] : memref<9x8x16xf32, #tpu.memory_space<vmem>>, vector<1x8x16xf32>
    %907 = vector.shape_cast %906 : vector<1x8x16xf32> to vector<8x16xf32>
    %cst_506 = arith.constant dense<0.000000e+00> : vector<8x64xf32>
    %908 = tpu.matmul %907, %882, %cst_506 {dimension_numbers = #tpu.dot_dimension_numbers<[1], [0], [0], [1], [0, 0, 1, 1], [], []>} : vector<8x16xf32>, vector<16x64xf32>, vector<8x64xf32> -> vector<8x64xf32>
    %c3_507 = arith.constant 3 : index
    %c0_508 = arith.constant 0 : index
    %c0_509 = arith.constant 0 : index
    %909 = vector.load %arg27[%c3_507, %c0_508, %c0_509] : memref<9x8x16xf32, #tpu.memory_space<vmem>>, vector<1x8x16xf32>
    %910 = vector.shape_cast %909 : vector<1x8x16xf32> to vector<8x16xf32>
    %cst_510 = arith.constant dense<0.000000e+00> : vector<8x64xf32>
    %911 = tpu.matmul %910, %890, %cst_510 {dimension_numbers = #tpu.dot_dimension_numbers<[1], [0], [0], [1], [0, 0, 1, 1], [], []>} : vector<8x16xf32>, vector<16x64xf32>, vector<8x64xf32> -> vector<8x64xf32>
    %912 = arith.addf %908, %911 : vector<8x64xf32>
    %c7_511 = arith.constant 7 : index
    %c0_512 = arith.constant 0 : index
    %c0_513 = arith.constant 0 : index
    %913 = vector.load %arg27[%c7_511, %c0_512, %c0_513] : memref<9x8x16xf32, #tpu.memory_space<vmem>>, vector<1x8x16xf32>
    %914 = vector.shape_cast %913 : vector<1x8x16xf32> to vector<8x16xf32>
    %cst_514 = arith.constant dense<0.000000e+00> : vector<8x64xf32>
    %915 = tpu.matmul %914, %882, %cst_514 {dimension_numbers = #tpu.dot_dimension_numbers<[1], [0], [0], [1], [0, 0, 1, 1], [], []>} : vector<8x16xf32>, vector<16x64xf32>, vector<8x64xf32> -> vector<8x64xf32>
    %c1_515 = arith.constant 1 : index
    %c0_516 = arith.constant 0 : index
    %c0_517 = arith.constant 0 : index
    %916 = vector.load %arg27[%c1_515, %c0_516, %c0_517] : memref<9x8x16xf32, #tpu.memory_space<vmem>>, vector<1x8x16xf32>
    %917 = vector.shape_cast %916 : vector<1x8x16xf32> to vector<8x16xf32>
    %cst_518 = arith.constant dense<0.000000e+00> : vector<8x64xf32>
    %918 = tpu.matmul %917, %896, %cst_518 {dimension_numbers = #tpu.dot_dimension_numbers<[1], [0], [0], [1], [0, 0, 1, 1], [], []>} : vector<8x16xf32>, vector<16x64xf32>, vector<8x64xf32> -> vector<8x64xf32>
    %919 = arith.addf %915, %918 : vector<8x64xf32>
    %c8_519 = arith.constant 8 : index
    %c0_520 = arith.constant 0 : index
    %c0_521 = arith.constant 0 : index
    %920 = vector.load %arg27[%c8_519, %c0_520, %c0_521] : memref<9x8x16xf32, #tpu.memory_space<vmem>>, vector<1x8x16xf32>
    %921 = vector.shape_cast %920 : vector<1x8x16xf32> to vector<8x16xf32>
    %cst_522 = arith.constant dense<0.000000e+00> : vector<8x64xf32>
    %922 = tpu.matmul %921, %882, %cst_522 {dimension_numbers = #tpu.dot_dimension_numbers<[1], [0], [0], [1], [0, 0, 1, 1], [], []>} : vector<8x16xf32>, vector<16x64xf32>, vector<8x64xf32> -> vector<8x64xf32>
    %c6_523 = arith.constant 6 : index
    %c0_524 = arith.constant 0 : index
    %c0_525 = arith.constant 0 : index
    %923 = vector.load %arg27[%c6_523, %c0_524, %c0_525] : memref<9x8x16xf32, #tpu.memory_space<vmem>>, vector<1x8x16xf32>
    %924 = vector.shape_cast %923 : vector<1x8x16xf32> to vector<8x16xf32>
    %cst_526 = arith.constant dense<0.000000e+00> : vector<8x64xf32>
    %925 = tpu.matmul %924, %890, %cst_526 {dimension_numbers = #tpu.dot_dimension_numbers<[1], [0], [0], [1], [0, 0, 1, 1], [], []>} : vector<8x16xf32>, vector<16x64xf32>, vector<8x64xf32> -> vector<8x64xf32>
    %926 = arith.addf %922, %925 : vector<8x64xf32>
    %c2_527 = arith.constant 2 : index
    %c0_528 = arith.constant 0 : index
    %c0_529 = arith.constant 0 : index
    %927 = vector.load %arg27[%c2_527, %c0_528, %c0_529] : memref<9x8x16xf32, #tpu.memory_space<vmem>>, vector<1x8x16xf32>
    %928 = vector.shape_cast %927 : vector<1x8x16xf32> to vector<8x16xf32>
    %cst_530 = arith.constant dense<0.000000e+00> : vector<8x64xf32>
    %929 = tpu.matmul %928, %896, %cst_530 {dimension_numbers = #tpu.dot_dimension_numbers<[1], [0], [0], [1], [0, 0, 1, 1], [], []>} : vector<8x16xf32>, vector<16x64xf32>, vector<8x64xf32> -> vector<8x64xf32>
    %930 = arith.addf %926, %929 : vector<8x64xf32>
    %c0_531 = arith.constant 0 : index
    %c0_532 = arith.constant 0 : index
    %c0_533 = arith.constant 0 : index
    %931 = vector.load %arg27[%c0_531, %c0_532, %c0_533] : memref<9x8x16xf32, #tpu.memory_space<vmem>>, vector<1x8x16xf32>
    %932 = vector.shape_cast %931 : vector<1x8x16xf32> to vector<8x16xf32>
    %cst_534 = arith.constant dense<0.000000e+00> : vector<8x64xf32>
    %933 = tpu.matmul %932, %902, %cst_534 {dimension_numbers = #tpu.dot_dimension_numbers<[1], [0], [0], [1], [0, 0, 1, 1], [], []>} : vector<8x16xf32>, vector<16x64xf32>, vector<8x64xf32> -> vector<8x64xf32>
    %934 = arith.addf %930, %933 : vector<8x64xf32>
    %c0_535 = arith.constant 0 : index
    %c0_536 = arith.constant 0 : index
    %c0_537 = arith.constant 0 : index
    %935 = vector.load %arg29[%c0_535, %c0_536, %c0_537] : memref<4x64x256xf32, #tpu.memory_space<vmem>>, vector<1x64x256xf32>
    %936 = vector.shape_cast %935 : vector<1x64x256xf32> to vector<64x256xf32>
    %cst_538 = arith.constant dense<0.000000e+00> : vector<8x256xf32>
    %937 = tpu.matmul %905, %936, %cst_538 {dimension_numbers = #tpu.dot_dimension_numbers<[1], [0], [0], [1], [0, 0, 1, 1], [], []>} : vector<8x64xf32>, vector<64x256xf32>, vector<8x256xf32> -> vector<8x256xf32>
    %c1_539 = arith.constant 1 : index
    %c0_540 = arith.constant 0 : index
    %c0_541 = arith.constant 0 : index
    %938 = vector.load %arg29[%c1_539, %c0_540, %c0_541] : memref<4x64x256xf32, #tpu.memory_space<vmem>>, vector<1x64x256xf32>
    %939 = vector.shape_cast %938 : vector<1x64x256xf32> to vector<64x256xf32>
    %cst_542 = arith.constant dense<0.000000e+00> : vector<8x256xf32>
    %940 = tpu.matmul %912, %939, %cst_542 {dimension_numbers = #tpu.dot_dimension_numbers<[1], [0], [0], [1], [0, 0, 1, 1], [], []>} : vector<8x64xf32>, vector<64x256xf32>, vector<8x256xf32> -> vector<8x256xf32>
    %941 = arith.addf %937, %940 : vector<8x256xf32>
    %c2_543 = arith.constant 2 : index
    %c0_544 = arith.constant 0 : index
    %c0_545 = arith.constant 0 : index
    %942 = vector.load %arg29[%c2_543, %c0_544, %c0_545] : memref<4x64x256xf32, #tpu.memory_space<vmem>>, vector<1x64x256xf32>
    %943 = vector.shape_cast %942 : vector<1x64x256xf32> to vector<64x256xf32>
    %cst_546 = arith.constant dense<0.000000e+00> : vector<8x256xf32>
    %944 = tpu.matmul %919, %943, %cst_546 {dimension_numbers = #tpu.dot_dimension_numbers<[1], [0], [0], [1], [0, 0, 1, 1], [], []>} : vector<8x64xf32>, vector<64x256xf32>, vector<8x256xf32> -> vector<8x256xf32>
    %945 = arith.addf %941, %944 : vector<8x256xf32>
    %c3_547 = arith.constant 3 : index
    %c0_548 = arith.constant 0 : index
    %c0_549 = arith.constant 0 : index
    %946 = vector.load %arg29[%c3_547, %c0_548, %c0_549] : memref<4x64x256xf32, #tpu.memory_space<vmem>>, vector<1x64x256xf32>
    %947 = vector.shape_cast %946 : vector<1x64x256xf32> to vector<64x256xf32>
    %cst_550 = arith.constant dense<0.000000e+00> : vector<8x256xf32>
    %948 = tpu.matmul %934, %947, %cst_550 {dimension_numbers = #tpu.dot_dimension_numbers<[1], [0], [0], [1], [0, 0, 1, 1], [], []>} : vector<8x64xf32>, vector<64x256xf32>, vector<8x256xf32> -> vector<8x256xf32>
    %949 = arith.addf %945, %948 : vector<8x256xf32>
    %c0_551 = arith.constant 0 : index
    %c0_552 = arith.constant 0 : index
    %950 = vector.load %arg28[%c0_551, %c0_552] : memref<8x1xf32, #tpu.memory_space<vmem>>, vector<8x1xf32>
    %951 = vector.broadcast %950 : vector<8x1xf32> to vector<8x256xf32>
    %952 = arith.addf %949, %951 : vector<8x256xf32>
    %953 = vector.extract_strided_slice %884 {offsets = [0, 0], sizes = [1, 256], strides = [1, 1]} : vector<9x256xf32> to vector<1x256xf32>
    %cst_553 = arith.constant 0.000000e+00 : f32
    %954 = vector.broadcast %cst_553 : f32 to vector<8x17xf32>
    %955 = vector.extract_strided_slice %952 {offsets = [0, 0], sizes = [8, 239], strides = [1, 1]} : vector<8x256xf32> to vector<8x239xf32>
    %956 = tpu.concatenate %954, %955 in 1 : vector<8x17xf32>, vector<8x239xf32> -> vector<8x256xf32>
    %957 = vector.broadcast %953 : vector<1x256xf32> to vector<8x256xf32>
    %958 = arith.mulf %956, %957 : vector<8x256xf32>
    %c0_554 = arith.constant 0 : index
    %c0_555 = arith.constant 0 : index
    %c0_556 = arith.constant 0 : index
    %959 = vector.load %arg30[%c0_554, %c0_555, %c0_556] : memref<9x8x8xf32, #tpu.memory_space<vmem>>, vector<1x8x8xf32>
    %960 = vector.shape_cast %959 : vector<1x8x8xf32> to vector<8x8xf32>
    %cst_557 = arith.constant dense<0.000000e+00> : vector<8x256xf32>
    %961 = tpu.matmul %960, %958, %cst_557 {dimension_numbers = #tpu.dot_dimension_numbers<[1], [0], [0], [1], [0, 0, 1, 1], [], []>} : vector<8x8xf32>, vector<8x256xf32>, vector<8x256xf32> -> vector<8x256xf32>
    %cst_558 = arith.constant 0.000000e+00 : f32
    %962 = vector.broadcast %cst_558 : f32 to vector<8x17xf32>
    %963 = vector.extract_strided_slice %178 {offsets = [0, 0], sizes = [8, 239], strides = [1, 1]} : vector<8x256xf32> to vector<8x239xf32>
    %964 = tpu.concatenate %962, %963 in 1 : vector<8x17xf32>, vector<8x239xf32> -> vector<8x256xf32>
    %965 = vector.broadcast %953 : vector<1x256xf32> to vector<8x256xf32>
    %966 = arith.mulf %964, %965 : vector<8x256xf32>
    %c0_559 = arith.constant 0 : index
    %c0_560 = arith.constant 0 : index
    %c0_561 = arith.constant 0 : index
    %967 = vector.load %arg31[%c0_559, %c0_560, %c0_561] : memref<9x8x8xf32, #tpu.memory_space<vmem>>, vector<1x8x8xf32>
    %968 = vector.shape_cast %967 : vector<1x8x8xf32> to vector<8x8xf32>
    %cst_562 = arith.constant dense<0.000000e+00> : vector<8x256xf32>
    %969 = tpu.matmul %968, %966, %cst_562 {dimension_numbers = #tpu.dot_dimension_numbers<[1], [0], [0], [1], [0, 0, 1, 1], [], []>} : vector<8x8xf32>, vector<8x256xf32>, vector<8x256xf32> -> vector<8x256xf32>
    %970 = arith.addf %961, %969 : vector<8x256xf32>
    %971 = vector.extract_strided_slice %884 {offsets = [1, 0], sizes = [1, 256], strides = [1, 1]} : vector<9x256xf32> to vector<1x256xf32>
    %cst_563 = arith.constant 0.000000e+00 : f32
    %972 = vector.broadcast %cst_563 : f32 to vector<8x16xf32>
    %973 = vector.extract_strided_slice %952 {offsets = [0, 0], sizes = [8, 240], strides = [1, 1]} : vector<8x256xf32> to vector<8x240xf32>
    %974 = tpu.concatenate %972, %973 in 1 : vector<8x16xf32>, vector<8x240xf32> -> vector<8x256xf32>
    %975 = vector.broadcast %971 : vector<1x256xf32> to vector<8x256xf32>
    %976 = arith.mulf %974, %975 : vector<8x256xf32>
    %c1_564 = arith.constant 1 : index
    %c0_565 = arith.constant 0 : index
    %c0_566 = arith.constant 0 : index
    %977 = vector.load %arg30[%c1_564, %c0_565, %c0_566] : memref<9x8x8xf32, #tpu.memory_space<vmem>>, vector<1x8x8xf32>
    %978 = vector.shape_cast %977 : vector<1x8x8xf32> to vector<8x8xf32>
    %cst_567 = arith.constant dense<0.000000e+00> : vector<8x256xf32>
    %979 = tpu.matmul %978, %976, %cst_567 {dimension_numbers = #tpu.dot_dimension_numbers<[1], [0], [0], [1], [0, 0, 1, 1], [], []>} : vector<8x8xf32>, vector<8x256xf32>, vector<8x256xf32> -> vector<8x256xf32>
    %980 = arith.addf %970, %979 : vector<8x256xf32>
    %cst_568 = arith.constant 0.000000e+00 : f32
    %981 = vector.broadcast %cst_568 : f32 to vector<8x16xf32>
    %982 = vector.extract_strided_slice %178 {offsets = [0, 0], sizes = [8, 240], strides = [1, 1]} : vector<8x256xf32> to vector<8x240xf32>
    %983 = tpu.concatenate %981, %982 in 1 : vector<8x16xf32>, vector<8x240xf32> -> vector<8x256xf32>
    %984 = vector.broadcast %971 : vector<1x256xf32> to vector<8x256xf32>
    %985 = arith.mulf %983, %984 : vector<8x256xf32>
    %c1_569 = arith.constant 1 : index
    %c0_570 = arith.constant 0 : index
    %c0_571 = arith.constant 0 : index
    %986 = vector.load %arg31[%c1_569, %c0_570, %c0_571] : memref<9x8x8xf32, #tpu.memory_space<vmem>>, vector<1x8x8xf32>
    %987 = vector.shape_cast %986 : vector<1x8x8xf32> to vector<8x8xf32>
    %cst_572 = arith.constant dense<0.000000e+00> : vector<8x256xf32>
    %988 = tpu.matmul %987, %985, %cst_572 {dimension_numbers = #tpu.dot_dimension_numbers<[1], [0], [0], [1], [0, 0, 1, 1], [], []>} : vector<8x8xf32>, vector<8x256xf32>, vector<8x256xf32> -> vector<8x256xf32>
    %989 = arith.addf %980, %988 : vector<8x256xf32>
    %990 = vector.extract_strided_slice %884 {offsets = [2, 0], sizes = [1, 256], strides = [1, 1]} : vector<9x256xf32> to vector<1x256xf32>
    %cst_573 = arith.constant 0.000000e+00 : f32
    %991 = vector.broadcast %cst_573 : f32 to vector<8x15xf32>
    %992 = vector.extract_strided_slice %952 {offsets = [0, 0], sizes = [8, 241], strides = [1, 1]} : vector<8x256xf32> to vector<8x241xf32>
    %993 = tpu.concatenate %991, %992 in 1 : vector<8x15xf32>, vector<8x241xf32> -> vector<8x256xf32>
    %994 = vector.broadcast %990 : vector<1x256xf32> to vector<8x256xf32>
    %995 = arith.mulf %993, %994 : vector<8x256xf32>
    %c2_574 = arith.constant 2 : index
    %c0_575 = arith.constant 0 : index
    %c0_576 = arith.constant 0 : index
    %996 = vector.load %arg30[%c2_574, %c0_575, %c0_576] : memref<9x8x8xf32, #tpu.memory_space<vmem>>, vector<1x8x8xf32>
    %997 = vector.shape_cast %996 : vector<1x8x8xf32> to vector<8x8xf32>
    %cst_577 = arith.constant dense<0.000000e+00> : vector<8x256xf32>
    %998 = tpu.matmul %997, %995, %cst_577 {dimension_numbers = #tpu.dot_dimension_numbers<[1], [0], [0], [1], [0, 0, 1, 1], [], []>} : vector<8x8xf32>, vector<8x256xf32>, vector<8x256xf32> -> vector<8x256xf32>
    %999 = arith.addf %989, %998 : vector<8x256xf32>
    %cst_578 = arith.constant 0.000000e+00 : f32
    %1000 = vector.broadcast %cst_578 : f32 to vector<8x15xf32>
    %1001 = vector.extract_strided_slice %178 {offsets = [0, 0], sizes = [8, 241], strides = [1, 1]} : vector<8x256xf32> to vector<8x241xf32>
    %1002 = tpu.concatenate %1000, %1001 in 1 : vector<8x15xf32>, vector<8x241xf32> -> vector<8x256xf32>
    %1003 = vector.broadcast %990 : vector<1x256xf32> to vector<8x256xf32>
    %1004 = arith.mulf %1002, %1003 : vector<8x256xf32>
    %c2_579 = arith.constant 2 : index
    %c0_580 = arith.constant 0 : index
    %c0_581 = arith.constant 0 : index
    %1005 = vector.load %arg31[%c2_579, %c0_580, %c0_581] : memref<9x8x8xf32, #tpu.memory_space<vmem>>, vector<1x8x8xf32>
    %1006 = vector.shape_cast %1005 : vector<1x8x8xf32> to vector<8x8xf32>
    %cst_582 = arith.constant dense<0.000000e+00> : vector<8x256xf32>
    %1007 = tpu.matmul %1006, %1004, %cst_582 {dimension_numbers = #tpu.dot_dimension_numbers<[1], [0], [0], [1], [0, 0, 1, 1], [], []>} : vector<8x8xf32>, vector<8x256xf32>, vector<8x256xf32> -> vector<8x256xf32>
    %1008 = arith.addf %999, %1007 : vector<8x256xf32>
    %1009 = vector.extract_strided_slice %884 {offsets = [3, 0], sizes = [1, 256], strides = [1, 1]} : vector<9x256xf32> to vector<1x256xf32>
    %cst_583 = arith.constant 0.000000e+00 : f32
    %1010 = vector.broadcast %cst_583 : f32 to vector<8x1xf32>
    %1011 = vector.extract_strided_slice %952 {offsets = [0, 0], sizes = [8, 255], strides = [1, 1]} : vector<8x256xf32> to vector<8x255xf32>
    %1012 = tpu.concatenate %1010, %1011 in 1 : vector<8x1xf32>, vector<8x255xf32> -> vector<8x256xf32>
    %1013 = vector.broadcast %1009 : vector<1x256xf32> to vector<8x256xf32>
    %1014 = arith.mulf %1012, %1013 : vector<8x256xf32>
    %c3_584 = arith.constant 3 : index
    %c0_585 = arith.constant 0 : index
    %c0_586 = arith.constant 0 : index
    %1015 = vector.load %arg30[%c3_584, %c0_585, %c0_586] : memref<9x8x8xf32, #tpu.memory_space<vmem>>, vector<1x8x8xf32>
    %1016 = vector.shape_cast %1015 : vector<1x8x8xf32> to vector<8x8xf32>
    %cst_587 = arith.constant dense<0.000000e+00> : vector<8x256xf32>
    %1017 = tpu.matmul %1016, %1014, %cst_587 {dimension_numbers = #tpu.dot_dimension_numbers<[1], [0], [0], [1], [0, 0, 1, 1], [], []>} : vector<8x8xf32>, vector<8x256xf32>, vector<8x256xf32> -> vector<8x256xf32>
    %1018 = arith.addf %1008, %1017 : vector<8x256xf32>
    %cst_588 = arith.constant 0.000000e+00 : f32
    %1019 = vector.broadcast %cst_588 : f32 to vector<8x1xf32>
    %1020 = vector.extract_strided_slice %178 {offsets = [0, 0], sizes = [8, 255], strides = [1, 1]} : vector<8x256xf32> to vector<8x255xf32>
    %1021 = tpu.concatenate %1019, %1020 in 1 : vector<8x1xf32>, vector<8x255xf32> -> vector<8x256xf32>
    %1022 = vector.broadcast %1009 : vector<1x256xf32> to vector<8x256xf32>
    %1023 = arith.mulf %1021, %1022 : vector<8x256xf32>
    %c3_589 = arith.constant 3 : index
    %c0_590 = arith.constant 0 : index
    %c0_591 = arith.constant 0 : index
    %1024 = vector.load %arg31[%c3_589, %c0_590, %c0_591] : memref<9x8x8xf32, #tpu.memory_space<vmem>>, vector<1x8x8xf32>
    %1025 = vector.shape_cast %1024 : vector<1x8x8xf32> to vector<8x8xf32>
    %cst_592 = arith.constant dense<0.000000e+00> : vector<8x256xf32>
    %1026 = tpu.matmul %1025, %1023, %cst_592 {dimension_numbers = #tpu.dot_dimension_numbers<[1], [0], [0], [1], [0, 0, 1, 1], [], []>} : vector<8x8xf32>, vector<8x256xf32>, vector<8x256xf32> -> vector<8x256xf32>
    %1027 = arith.addf %1018, %1026 : vector<8x256xf32>
    %c4_593 = arith.constant 4 : index
    %c0_594 = arith.constant 0 : index
    %c0_595 = arith.constant 0 : index
    %1028 = vector.load %arg30[%c4_593, %c0_594, %c0_595] : memref<9x8x8xf32, #tpu.memory_space<vmem>>, vector<1x8x8xf32>
    %1029 = vector.shape_cast %1028 : vector<1x8x8xf32> to vector<8x8xf32>
    %cst_596 = arith.constant dense<0.000000e+00> : vector<8x256xf32>
    %1030 = tpu.matmul %1029, %952, %cst_596 {dimension_numbers = #tpu.dot_dimension_numbers<[1], [0], [0], [1], [0, 0, 1, 1], [], []>} : vector<8x8xf32>, vector<8x256xf32>, vector<8x256xf32> -> vector<8x256xf32>
    %1031 = arith.addf %1027, %1030 : vector<8x256xf32>
    %c4_597 = arith.constant 4 : index
    %c0_598 = arith.constant 0 : index
    %c0_599 = arith.constant 0 : index
    %1032 = vector.load %arg31[%c4_597, %c0_598, %c0_599] : memref<9x8x8xf32, #tpu.memory_space<vmem>>, vector<1x8x8xf32>
    %1033 = vector.shape_cast %1032 : vector<1x8x8xf32> to vector<8x8xf32>
    %cst_600 = arith.constant dense<0.000000e+00> : vector<8x256xf32>
    %1034 = tpu.matmul %1033, %178, %cst_600 {dimension_numbers = #tpu.dot_dimension_numbers<[1], [0], [0], [1], [0, 0, 1, 1], [], []>} : vector<8x8xf32>, vector<8x256xf32>, vector<8x256xf32> -> vector<8x256xf32>
    %1035 = arith.addf %1031, %1034 : vector<8x256xf32>
    %1036 = vector.extract_strided_slice %884 {offsets = [5, 0], sizes = [1, 256], strides = [1, 1]} : vector<9x256xf32> to vector<1x256xf32>
    %cst_601 = arith.constant 0.000000e+00 : f32
    %1037 = vector.broadcast %cst_601 : f32 to vector<8x1xf32>
    %1038 = vector.extract_strided_slice %952 {offsets = [0, 1], sizes = [8, 255], strides = [1, 1]} : vector<8x256xf32> to vector<8x255xf32>
    %1039 = tpu.concatenate %1038, %1037 in 1 : vector<8x255xf32>, vector<8x1xf32> -> vector<8x256xf32>
    %1040 = vector.broadcast %1036 : vector<1x256xf32> to vector<8x256xf32>
    %1041 = arith.mulf %1039, %1040 : vector<8x256xf32>
    %c5_602 = arith.constant 5 : index
    %c0_603 = arith.constant 0 : index
    %c0_604 = arith.constant 0 : index
    %1042 = vector.load %arg30[%c5_602, %c0_603, %c0_604] : memref<9x8x8xf32, #tpu.memory_space<vmem>>, vector<1x8x8xf32>
    %1043 = vector.shape_cast %1042 : vector<1x8x8xf32> to vector<8x8xf32>
    %cst_605 = arith.constant dense<0.000000e+00> : vector<8x256xf32>
    %1044 = tpu.matmul %1043, %1041, %cst_605 {dimension_numbers = #tpu.dot_dimension_numbers<[1], [0], [0], [1], [0, 0, 1, 1], [], []>} : vector<8x8xf32>, vector<8x256xf32>, vector<8x256xf32> -> vector<8x256xf32>
    %1045 = arith.addf %1035, %1044 : vector<8x256xf32>
    %cst_606 = arith.constant 0.000000e+00 : f32
    %1046 = vector.broadcast %cst_606 : f32 to vector<8x1xf32>
    %1047 = vector.extract_strided_slice %178 {offsets = [0, 1], sizes = [8, 255], strides = [1, 1]} : vector<8x256xf32> to vector<8x255xf32>
    %1048 = tpu.concatenate %1047, %1046 in 1 : vector<8x255xf32>, vector<8x1xf32> -> vector<8x256xf32>
    %1049 = vector.broadcast %1036 : vector<1x256xf32> to vector<8x256xf32>
    %1050 = arith.mulf %1048, %1049 : vector<8x256xf32>
    %c5_607 = arith.constant 5 : index
    %c0_608 = arith.constant 0 : index
    %c0_609 = arith.constant 0 : index
    %1051 = vector.load %arg31[%c5_607, %c0_608, %c0_609] : memref<9x8x8xf32, #tpu.memory_space<vmem>>, vector<1x8x8xf32>
    %1052 = vector.shape_cast %1051 : vector<1x8x8xf32> to vector<8x8xf32>
    %cst_610 = arith.constant dense<0.000000e+00> : vector<8x256xf32>
    %1053 = tpu.matmul %1052, %1050, %cst_610 {dimension_numbers = #tpu.dot_dimension_numbers<[1], [0], [0], [1], [0, 0, 1, 1], [], []>} : vector<8x8xf32>, vector<8x256xf32>, vector<8x256xf32> -> vector<8x256xf32>
    %1054 = arith.addf %1045, %1053 : vector<8x256xf32>
    %1055 = vector.extract_strided_slice %884 {offsets = [6, 0], sizes = [1, 256], strides = [1, 1]} : vector<9x256xf32> to vector<1x256xf32>
    %cst_611 = arith.constant 0.000000e+00 : f32
    %1056 = vector.broadcast %cst_611 : f32 to vector<8x15xf32>
    %1057 = vector.extract_strided_slice %952 {offsets = [0, 15], sizes = [8, 241], strides = [1, 1]} : vector<8x256xf32> to vector<8x241xf32>
    %1058 = tpu.concatenate %1057, %1056 in 1 : vector<8x241xf32>, vector<8x15xf32> -> vector<8x256xf32>
    %1059 = vector.broadcast %1055 : vector<1x256xf32> to vector<8x256xf32>
    %1060 = arith.mulf %1058, %1059 : vector<8x256xf32>
    %c6_612 = arith.constant 6 : index
    %c0_613 = arith.constant 0 : index
    %c0_614 = arith.constant 0 : index
    %1061 = vector.load %arg30[%c6_612, %c0_613, %c0_614] : memref<9x8x8xf32, #tpu.memory_space<vmem>>, vector<1x8x8xf32>
    %1062 = vector.shape_cast %1061 : vector<1x8x8xf32> to vector<8x8xf32>
    %cst_615 = arith.constant dense<0.000000e+00> : vector<8x256xf32>
    %1063 = tpu.matmul %1062, %1060, %cst_615 {dimension_numbers = #tpu.dot_dimension_numbers<[1], [0], [0], [1], [0, 0, 1, 1], [], []>} : vector<8x8xf32>, vector<8x256xf32>, vector<8x256xf32> -> vector<8x256xf32>
    %1064 = arith.addf %1054, %1063 : vector<8x256xf32>
    %cst_616 = arith.constant 0.000000e+00 : f32
    %1065 = vector.broadcast %cst_616 : f32 to vector<8x15xf32>
    %1066 = vector.extract_strided_slice %178 {offsets = [0, 15], sizes = [8, 241], strides = [1, 1]} : vector<8x256xf32> to vector<8x241xf32>
    %1067 = tpu.concatenate %1066, %1065 in 1 : vector<8x241xf32>, vector<8x15xf32> -> vector<8x256xf32>
    %1068 = vector.broadcast %1055 : vector<1x256xf32> to vector<8x256xf32>
    %1069 = arith.mulf %1067, %1068 : vector<8x256xf32>
    %c6_617 = arith.constant 6 : index
    %c0_618 = arith.constant 0 : index
    %c0_619 = arith.constant 0 : index
    %1070 = vector.load %arg31[%c6_617, %c0_618, %c0_619] : memref<9x8x8xf32, #tpu.memory_space<vmem>>, vector<1x8x8xf32>
    %1071 = vector.shape_cast %1070 : vector<1x8x8xf32> to vector<8x8xf32>
    %cst_620 = arith.constant dense<0.000000e+00> : vector<8x256xf32>
    %1072 = tpu.matmul %1071, %1069, %cst_620 {dimension_numbers = #tpu.dot_dimension_numbers<[1], [0], [0], [1], [0, 0, 1, 1], [], []>} : vector<8x8xf32>, vector<8x256xf32>, vector<8x256xf32> -> vector<8x256xf32>
    %1073 = arith.addf %1064, %1072 : vector<8x256xf32>
    %1074 = vector.extract_strided_slice %884 {offsets = [7, 0], sizes = [1, 256], strides = [1, 1]} : vector<9x256xf32> to vector<1x256xf32>
    %cst_621 = arith.constant 0.000000e+00 : f32
    %1075 = vector.broadcast %cst_621 : f32 to vector<8x16xf32>
    %1076 = vector.extract_strided_slice %952 {offsets = [0, 16], sizes = [8, 240], strides = [1, 1]} : vector<8x256xf32> to vector<8x240xf32>
    %1077 = tpu.concatenate %1076, %1075 in 1 : vector<8x240xf32>, vector<8x16xf32> -> vector<8x256xf32>
    %1078 = vector.broadcast %1074 : vector<1x256xf32> to vector<8x256xf32>
    %1079 = arith.mulf %1077, %1078 : vector<8x256xf32>
    %c7_622 = arith.constant 7 : index
    %c0_623 = arith.constant 0 : index
    %c0_624 = arith.constant 0 : index
    %1080 = vector.load %arg30[%c7_622, %c0_623, %c0_624] : memref<9x8x8xf32, #tpu.memory_space<vmem>>, vector<1x8x8xf32>
    %1081 = vector.shape_cast %1080 : vector<1x8x8xf32> to vector<8x8xf32>
    %cst_625 = arith.constant dense<0.000000e+00> : vector<8x256xf32>
    %1082 = tpu.matmul %1081, %1079, %cst_625 {dimension_numbers = #tpu.dot_dimension_numbers<[1], [0], [0], [1], [0, 0, 1, 1], [], []>} : vector<8x8xf32>, vector<8x256xf32>, vector<8x256xf32> -> vector<8x256xf32>
    %1083 = arith.addf %1073, %1082 : vector<8x256xf32>
    %cst_626 = arith.constant 0.000000e+00 : f32
    %1084 = vector.broadcast %cst_626 : f32 to vector<8x16xf32>
    %1085 = vector.extract_strided_slice %178 {offsets = [0, 16], sizes = [8, 240], strides = [1, 1]} : vector<8x256xf32> to vector<8x240xf32>
    %1086 = tpu.concatenate %1085, %1084 in 1 : vector<8x240xf32>, vector<8x16xf32> -> vector<8x256xf32>
    %1087 = vector.broadcast %1074 : vector<1x256xf32> to vector<8x256xf32>
    %1088 = arith.mulf %1086, %1087 : vector<8x256xf32>
    %c7_627 = arith.constant 7 : index
    %c0_628 = arith.constant 0 : index
    %c0_629 = arith.constant 0 : index
    %1089 = vector.load %arg31[%c7_627, %c0_628, %c0_629] : memref<9x8x8xf32, #tpu.memory_space<vmem>>, vector<1x8x8xf32>
    %1090 = vector.shape_cast %1089 : vector<1x8x8xf32> to vector<8x8xf32>
    %cst_630 = arith.constant dense<0.000000e+00> : vector<8x256xf32>
    %1091 = tpu.matmul %1090, %1088, %cst_630 {dimension_numbers = #tpu.dot_dimension_numbers<[1], [0], [0], [1], [0, 0, 1, 1], [], []>} : vector<8x8xf32>, vector<8x256xf32>, vector<8x256xf32> -> vector<8x256xf32>
    %1092 = arith.addf %1083, %1091 : vector<8x256xf32>
    %1093 = vector.extract_strided_slice %884 {offsets = [8, 0], sizes = [1, 256], strides = [1, 1]} : vector<9x256xf32> to vector<1x256xf32>
    %cst_631 = arith.constant 0.000000e+00 : f32
    %1094 = vector.broadcast %cst_631 : f32 to vector<8x17xf32>
    %1095 = vector.extract_strided_slice %952 {offsets = [0, 17], sizes = [8, 239], strides = [1, 1]} : vector<8x256xf32> to vector<8x239xf32>
    %1096 = tpu.concatenate %1095, %1094 in 1 : vector<8x239xf32>, vector<8x17xf32> -> vector<8x256xf32>
    %1097 = vector.broadcast %1093 : vector<1x256xf32> to vector<8x256xf32>
    %1098 = arith.mulf %1096, %1097 : vector<8x256xf32>
    %c8_632 = arith.constant 8 : index
    %c0_633 = arith.constant 0 : index
    %c0_634 = arith.constant 0 : index
    %1099 = vector.load %arg30[%c8_632, %c0_633, %c0_634] : memref<9x8x8xf32, #tpu.memory_space<vmem>>, vector<1x8x8xf32>
    %1100 = vector.shape_cast %1099 : vector<1x8x8xf32> to vector<8x8xf32>
    %cst_635 = arith.constant dense<0.000000e+00> : vector<8x256xf32>
    %1101 = tpu.matmul %1100, %1098, %cst_635 {dimension_numbers = #tpu.dot_dimension_numbers<[1], [0], [0], [1], [0, 0, 1, 1], [], []>} : vector<8x8xf32>, vector<8x256xf32>, vector<8x256xf32> -> vector<8x256xf32>
    %1102 = arith.addf %1092, %1101 : vector<8x256xf32>
    %cst_636 = arith.constant 0.000000e+00 : f32
    %1103 = vector.broadcast %cst_636 : f32 to vector<8x17xf32>
    %1104 = vector.extract_strided_slice %178 {offsets = [0, 17], sizes = [8, 239], strides = [1, 1]} : vector<8x256xf32> to vector<8x239xf32>
    %1105 = tpu.concatenate %1104, %1103 in 1 : vector<8x239xf32>, vector<8x17xf32> -> vector<8x256xf32>
    %1106 = vector.broadcast %1093 : vector<1x256xf32> to vector<8x256xf32>
    %1107 = arith.mulf %1105, %1106 : vector<8x256xf32>
    %c8_637 = arith.constant 8 : index
    %c0_638 = arith.constant 0 : index
    %c0_639 = arith.constant 0 : index
    %1108 = vector.load %arg31[%c8_637, %c0_638, %c0_639] : memref<9x8x8xf32, #tpu.memory_space<vmem>>, vector<1x8x8xf32>
    %1109 = vector.shape_cast %1108 : vector<1x8x8xf32> to vector<8x8xf32>
    %cst_640 = arith.constant dense<0.000000e+00> : vector<8x256xf32>
    %1110 = tpu.matmul %1109, %1107, %cst_640 {dimension_numbers = #tpu.dot_dimension_numbers<[1], [0], [0], [1], [0, 0, 1, 1], [], []>} : vector<8x8xf32>, vector<8x256xf32>, vector<8x256xf32> -> vector<8x256xf32>
    %1111 = arith.addf %1102, %1110 : vector<8x256xf32>
    %c0_641 = arith.constant 0 : index
    %c0_642 = arith.constant 0 : index
    %1112 = vector.load %arg32[%c0_641, %c0_642] : memref<8x1xf32, #tpu.memory_space<vmem>>, vector<8x1xf32>
    %1113 = vector.broadcast %1112 : vector<8x1xf32> to vector<8x256xf32>
    %1114 = arith.addf %1111, %1113 : vector<8x256xf32>
    %cst_643 = arith.constant 0.000000e+00 : f32
    %1115 = vector.broadcast %cst_643 : f32 to vector<8x256xf32>
    %1116 = arith.maximumf %1114, %1115 : vector<8x256xf32>
    %1117 = vector.extract_strided_slice %884 {offsets = [0, 0], sizes = [1, 256], strides = [1, 1]} : vector<9x256xf32> to vector<1x256xf32>
    %cst_644 = arith.constant 0.000000e+00 : f32
    %1118 = vector.broadcast %cst_644 : f32 to vector<8x17xf32>
    %1119 = vector.extract_strided_slice %1116 {offsets = [0, 0], sizes = [8, 239], strides = [1, 1]} : vector<8x256xf32> to vector<8x239xf32>
    %1120 = tpu.concatenate %1118, %1119 in 1 : vector<8x17xf32>, vector<8x239xf32> -> vector<8x256xf32>
    %1121 = vector.broadcast %1117 : vector<1x256xf32> to vector<8x256xf32>
    %1122 = arith.mulf %1120, %1121 : vector<8x256xf32>
    %c0_645 = arith.constant 0 : index
    %c0_646 = arith.constant 0 : index
    %c0_647 = arith.constant 0 : index
    %1123 = vector.load %arg33[%c0_645, %c0_646, %c0_647] : memref<9x8x8xf32, #tpu.memory_space<vmem>>, vector<1x8x8xf32>
    %1124 = vector.shape_cast %1123 : vector<1x8x8xf32> to vector<8x8xf32>
    %cst_648 = arith.constant dense<0.000000e+00> : vector<8x256xf32>
    %1125 = tpu.matmul %1124, %1122, %cst_648 {dimension_numbers = #tpu.dot_dimension_numbers<[1], [0], [0], [1], [0, 0, 1, 1], [], []>} : vector<8x8xf32>, vector<8x256xf32>, vector<8x256xf32> -> vector<8x256xf32>
    %1126 = vector.extract_strided_slice %884 {offsets = [1, 0], sizes = [1, 256], strides = [1, 1]} : vector<9x256xf32> to vector<1x256xf32>
    %cst_649 = arith.constant 0.000000e+00 : f32
    %1127 = vector.broadcast %cst_649 : f32 to vector<8x16xf32>
    %1128 = vector.extract_strided_slice %1116 {offsets = [0, 0], sizes = [8, 240], strides = [1, 1]} : vector<8x256xf32> to vector<8x240xf32>
    %1129 = tpu.concatenate %1127, %1128 in 1 : vector<8x16xf32>, vector<8x240xf32> -> vector<8x256xf32>
    %1130 = vector.broadcast %1126 : vector<1x256xf32> to vector<8x256xf32>
    %1131 = arith.mulf %1129, %1130 : vector<8x256xf32>
    %c1_650 = arith.constant 1 : index
    %c0_651 = arith.constant 0 : index
    %c0_652 = arith.constant 0 : index
    %1132 = vector.load %arg33[%c1_650, %c0_651, %c0_652] : memref<9x8x8xf32, #tpu.memory_space<vmem>>, vector<1x8x8xf32>
    %1133 = vector.shape_cast %1132 : vector<1x8x8xf32> to vector<8x8xf32>
    %cst_653 = arith.constant dense<0.000000e+00> : vector<8x256xf32>
    %1134 = tpu.matmul %1133, %1131, %cst_653 {dimension_numbers = #tpu.dot_dimension_numbers<[1], [0], [0], [1], [0, 0, 1, 1], [], []>} : vector<8x8xf32>, vector<8x256xf32>, vector<8x256xf32> -> vector<8x256xf32>
    %1135 = arith.addf %1125, %1134 : vector<8x256xf32>
    %1136 = vector.extract_strided_slice %884 {offsets = [2, 0], sizes = [1, 256], strides = [1, 1]} : vector<9x256xf32> to vector<1x256xf32>
    %cst_654 = arith.constant 0.000000e+00 : f32
    %1137 = vector.broadcast %cst_654 : f32 to vector<8x15xf32>
    %1138 = vector.extract_strided_slice %1116 {offsets = [0, 0], sizes = [8, 241], strides = [1, 1]} : vector<8x256xf32> to vector<8x241xf32>
    %1139 = tpu.concatenate %1137, %1138 in 1 : vector<8x15xf32>, vector<8x241xf32> -> vector<8x256xf32>
    %1140 = vector.broadcast %1136 : vector<1x256xf32> to vector<8x256xf32>
    %1141 = arith.mulf %1139, %1140 : vector<8x256xf32>
    %c2_655 = arith.constant 2 : index
    %c0_656 = arith.constant 0 : index
    %c0_657 = arith.constant 0 : index
    %1142 = vector.load %arg33[%c2_655, %c0_656, %c0_657] : memref<9x8x8xf32, #tpu.memory_space<vmem>>, vector<1x8x8xf32>
    %1143 = vector.shape_cast %1142 : vector<1x8x8xf32> to vector<8x8xf32>
    %cst_658 = arith.constant dense<0.000000e+00> : vector<8x256xf32>
    %1144 = tpu.matmul %1143, %1141, %cst_658 {dimension_numbers = #tpu.dot_dimension_numbers<[1], [0], [0], [1], [0, 0, 1, 1], [], []>} : vector<8x8xf32>, vector<8x256xf32>, vector<8x256xf32> -> vector<8x256xf32>
    %1145 = arith.addf %1135, %1144 : vector<8x256xf32>
    %1146 = vector.extract_strided_slice %884 {offsets = [3, 0], sizes = [1, 256], strides = [1, 1]} : vector<9x256xf32> to vector<1x256xf32>
    %cst_659 = arith.constant 0.000000e+00 : f32
    %1147 = vector.broadcast %cst_659 : f32 to vector<8x1xf32>
    %1148 = vector.extract_strided_slice %1116 {offsets = [0, 0], sizes = [8, 255], strides = [1, 1]} : vector<8x256xf32> to vector<8x255xf32>
    %1149 = tpu.concatenate %1147, %1148 in 1 : vector<8x1xf32>, vector<8x255xf32> -> vector<8x256xf32>
    %1150 = vector.broadcast %1146 : vector<1x256xf32> to vector<8x256xf32>
    %1151 = arith.mulf %1149, %1150 : vector<8x256xf32>
    %c3_660 = arith.constant 3 : index
    %c0_661 = arith.constant 0 : index
    %c0_662 = arith.constant 0 : index
    %1152 = vector.load %arg33[%c3_660, %c0_661, %c0_662] : memref<9x8x8xf32, #tpu.memory_space<vmem>>, vector<1x8x8xf32>
    %1153 = vector.shape_cast %1152 : vector<1x8x8xf32> to vector<8x8xf32>
    %cst_663 = arith.constant dense<0.000000e+00> : vector<8x256xf32>
    %1154 = tpu.matmul %1153, %1151, %cst_663 {dimension_numbers = #tpu.dot_dimension_numbers<[1], [0], [0], [1], [0, 0, 1, 1], [], []>} : vector<8x8xf32>, vector<8x256xf32>, vector<8x256xf32> -> vector<8x256xf32>
    %1155 = arith.addf %1145, %1154 : vector<8x256xf32>
    %c4_664 = arith.constant 4 : index
    %c0_665 = arith.constant 0 : index
    %c0_666 = arith.constant 0 : index
    %1156 = vector.load %arg33[%c4_664, %c0_665, %c0_666] : memref<9x8x8xf32, #tpu.memory_space<vmem>>, vector<1x8x8xf32>
    %1157 = vector.shape_cast %1156 : vector<1x8x8xf32> to vector<8x8xf32>
    %cst_667 = arith.constant dense<0.000000e+00> : vector<8x256xf32>
    %1158 = tpu.matmul %1157, %1116, %cst_667 {dimension_numbers = #tpu.dot_dimension_numbers<[1], [0], [0], [1], [0, 0, 1, 1], [], []>} : vector<8x8xf32>, vector<8x256xf32>, vector<8x256xf32> -> vector<8x256xf32>
    %1159 = arith.addf %1155, %1158 : vector<8x256xf32>
    %1160 = vector.extract_strided_slice %884 {offsets = [5, 0], sizes = [1, 256], strides = [1, 1]} : vector<9x256xf32> to vector<1x256xf32>
    %cst_668 = arith.constant 0.000000e+00 : f32
    %1161 = vector.broadcast %cst_668 : f32 to vector<8x1xf32>
    %1162 = vector.extract_strided_slice %1116 {offsets = [0, 1], sizes = [8, 255], strides = [1, 1]} : vector<8x256xf32> to vector<8x255xf32>
    %1163 = tpu.concatenate %1162, %1161 in 1 : vector<8x255xf32>, vector<8x1xf32> -> vector<8x256xf32>
    %1164 = vector.broadcast %1160 : vector<1x256xf32> to vector<8x256xf32>
    %1165 = arith.mulf %1163, %1164 : vector<8x256xf32>
    %c5_669 = arith.constant 5 : index
    %c0_670 = arith.constant 0 : index
    %c0_671 = arith.constant 0 : index
    %1166 = vector.load %arg33[%c5_669, %c0_670, %c0_671] : memref<9x8x8xf32, #tpu.memory_space<vmem>>, vector<1x8x8xf32>
    %1167 = vector.shape_cast %1166 : vector<1x8x8xf32> to vector<8x8xf32>
    %cst_672 = arith.constant dense<0.000000e+00> : vector<8x256xf32>
    %1168 = tpu.matmul %1167, %1165, %cst_672 {dimension_numbers = #tpu.dot_dimension_numbers<[1], [0], [0], [1], [0, 0, 1, 1], [], []>} : vector<8x8xf32>, vector<8x256xf32>, vector<8x256xf32> -> vector<8x256xf32>
    %1169 = arith.addf %1159, %1168 : vector<8x256xf32>
    %1170 = vector.extract_strided_slice %884 {offsets = [6, 0], sizes = [1, 256], strides = [1, 1]} : vector<9x256xf32> to vector<1x256xf32>
    %cst_673 = arith.constant 0.000000e+00 : f32
    %1171 = vector.broadcast %cst_673 : f32 to vector<8x15xf32>
    %1172 = vector.extract_strided_slice %1116 {offsets = [0, 15], sizes = [8, 241], strides = [1, 1]} : vector<8x256xf32> to vector<8x241xf32>
    %1173 = tpu.concatenate %1172, %1171 in 1 : vector<8x241xf32>, vector<8x15xf32> -> vector<8x256xf32>
    %1174 = vector.broadcast %1170 : vector<1x256xf32> to vector<8x256xf32>
    %1175 = arith.mulf %1173, %1174 : vector<8x256xf32>
    %c6_674 = arith.constant 6 : index
    %c0_675 = arith.constant 0 : index
    %c0_676 = arith.constant 0 : index
    %1176 = vector.load %arg33[%c6_674, %c0_675, %c0_676] : memref<9x8x8xf32, #tpu.memory_space<vmem>>, vector<1x8x8xf32>
    %1177 = vector.shape_cast %1176 : vector<1x8x8xf32> to vector<8x8xf32>
    %cst_677 = arith.constant dense<0.000000e+00> : vector<8x256xf32>
    %1178 = tpu.matmul %1177, %1175, %cst_677 {dimension_numbers = #tpu.dot_dimension_numbers<[1], [0], [0], [1], [0, 0, 1, 1], [], []>} : vector<8x8xf32>, vector<8x256xf32>, vector<8x256xf32> -> vector<8x256xf32>
    %1179 = arith.addf %1169, %1178 : vector<8x256xf32>
    %1180 = vector.extract_strided_slice %884 {offsets = [7, 0], sizes = [1, 256], strides = [1, 1]} : vector<9x256xf32> to vector<1x256xf32>
    %cst_678 = arith.constant 0.000000e+00 : f32
    %1181 = vector.broadcast %cst_678 : f32 to vector<8x16xf32>
    %1182 = vector.extract_strided_slice %1116 {offsets = [0, 16], sizes = [8, 240], strides = [1, 1]} : vector<8x256xf32> to vector<8x240xf32>
    %1183 = tpu.concatenate %1182, %1181 in 1 : vector<8x240xf32>, vector<8x16xf32> -> vector<8x256xf32>
    %1184 = vector.broadcast %1180 : vector<1x256xf32> to vector<8x256xf32>
    %1185 = arith.mulf %1183, %1184 : vector<8x256xf32>
    %c7_679 = arith.constant 7 : index
    %c0_680 = arith.constant 0 : index
    %c0_681 = arith.constant 0 : index
    %1186 = vector.load %arg33[%c7_679, %c0_680, %c0_681] : memref<9x8x8xf32, #tpu.memory_space<vmem>>, vector<1x8x8xf32>
    %1187 = vector.shape_cast %1186 : vector<1x8x8xf32> to vector<8x8xf32>
    %cst_682 = arith.constant dense<0.000000e+00> : vector<8x256xf32>
    %1188 = tpu.matmul %1187, %1185, %cst_682 {dimension_numbers = #tpu.dot_dimension_numbers<[1], [0], [0], [1], [0, 0, 1, 1], [], []>} : vector<8x8xf32>, vector<8x256xf32>, vector<8x256xf32> -> vector<8x256xf32>
    %1189 = arith.addf %1179, %1188 : vector<8x256xf32>
    %1190 = vector.extract_strided_slice %884 {offsets = [8, 0], sizes = [1, 256], strides = [1, 1]} : vector<9x256xf32> to vector<1x256xf32>
    %cst_683 = arith.constant 0.000000e+00 : f32
    %1191 = vector.broadcast %cst_683 : f32 to vector<8x17xf32>
    %1192 = vector.extract_strided_slice %1116 {offsets = [0, 17], sizes = [8, 239], strides = [1, 1]} : vector<8x256xf32> to vector<8x239xf32>
    %1193 = tpu.concatenate %1192, %1191 in 1 : vector<8x239xf32>, vector<8x17xf32> -> vector<8x256xf32>
    %1194 = vector.broadcast %1190 : vector<1x256xf32> to vector<8x256xf32>
    %1195 = arith.mulf %1193, %1194 : vector<8x256xf32>
    %c8_684 = arith.constant 8 : index
    %c0_685 = arith.constant 0 : index
    %c0_686 = arith.constant 0 : index
    %1196 = vector.load %arg33[%c8_684, %c0_685, %c0_686] : memref<9x8x8xf32, #tpu.memory_space<vmem>>, vector<1x8x8xf32>
    %1197 = vector.shape_cast %1196 : vector<1x8x8xf32> to vector<8x8xf32>
    %cst_687 = arith.constant dense<0.000000e+00> : vector<8x256xf32>
    %1198 = tpu.matmul %1197, %1195, %cst_687 {dimension_numbers = #tpu.dot_dimension_numbers<[1], [0], [0], [1], [0, 0, 1, 1], [], []>} : vector<8x8xf32>, vector<8x256xf32>, vector<8x256xf32> -> vector<8x256xf32>
    %1199 = arith.addf %1189, %1198 : vector<8x256xf32>
    %c0_688 = arith.constant 0 : index
    %c0_689 = arith.constant 0 : index
    %1200 = vector.load %arg34[%c0_688, %c0_689] : memref<8x1xf32, #tpu.memory_space<vmem>>, vector<8x1xf32>
    %1201 = vector.broadcast %1200 : vector<8x1xf32> to vector<8x256xf32>
    %1202 = arith.addf %1199, %1201 : vector<8x256xf32>
    %cst_690 = arith.constant 0.000000e+00 : f32
    %1203 = vector.broadcast %cst_690 : f32 to vector<8x256xf32>
    %1204 = arith.maximumf %1202, %1203 : vector<8x256xf32>
    %c0_691 = arith.constant 0 : index
    %c0_692 = arith.constant 0 : index
    %1205 = vector.load %arg2[%c0_691, %c0_692] : memref<9x256xf32, #tpu.memory_space<vmem>>, vector<9x256xf32>
    %1206 = vector.extract_strided_slice %1205 {offsets = [0, 0], sizes = [1, 256], strides = [1, 1]} : vector<9x256xf32> to vector<1x256xf32>
    %cst_693 = arith.constant 0.000000e+00 : f32
    %1207 = vector.broadcast %cst_693 : f32 to vector<8x17xf32>
    %1208 = vector.extract_strided_slice %1204 {offsets = [0, 0], sizes = [8, 239], strides = [1, 1]} : vector<8x256xf32> to vector<8x239xf32>
    %1209 = tpu.concatenate %1207, %1208 in 1 : vector<8x17xf32>, vector<8x239xf32> -> vector<8x256xf32>
    %1210 = vector.broadcast %1206 : vector<1x256xf32> to vector<8x256xf32>
    %1211 = arith.mulf %1209, %1210 : vector<8x256xf32>
    %c0_694 = arith.constant 0 : index
    %c0_695 = arith.constant 0 : index
    %c0_696 = arith.constant 0 : index
    %1212 = vector.load %arg35[%c0_694, %c0_695, %c0_696] : memref<9x3x8xf32, #tpu.memory_space<vmem>>, vector<1x3x8xf32>
    %1213 = vector.shape_cast %1212 : vector<1x3x8xf32> to vector<3x8xf32>
    %cst_697 = arith.constant dense<0.000000e+00> : vector<3x256xf32>
    %1214 = tpu.matmul %1213, %1211, %cst_697 {dimension_numbers = #tpu.dot_dimension_numbers<[1], [0], [0], [1], [0, 0, 1, 1], [], []>} : vector<3x8xf32>, vector<8x256xf32>, vector<3x256xf32> -> vector<3x256xf32>
    %1215 = vector.extract_strided_slice %1205 {offsets = [1, 0], sizes = [1, 256], strides = [1, 1]} : vector<9x256xf32> to vector<1x256xf32>
    %cst_698 = arith.constant 0.000000e+00 : f32
    %1216 = vector.broadcast %cst_698 : f32 to vector<8x16xf32>
    %1217 = vector.extract_strided_slice %1204 {offsets = [0, 0], sizes = [8, 240], strides = [1, 1]} : vector<8x256xf32> to vector<8x240xf32>
    %1218 = tpu.concatenate %1216, %1217 in 1 : vector<8x16xf32>, vector<8x240xf32> -> vector<8x256xf32>
    %1219 = vector.broadcast %1215 : vector<1x256xf32> to vector<8x256xf32>
    %1220 = arith.mulf %1218, %1219 : vector<8x256xf32>
    %c1_699 = arith.constant 1 : index
    %c0_700 = arith.constant 0 : index
    %c0_701 = arith.constant 0 : index
    %1221 = vector.load %arg35[%c1_699, %c0_700, %c0_701] : memref<9x3x8xf32, #tpu.memory_space<vmem>>, vector<1x3x8xf32>
    %1222 = vector.shape_cast %1221 : vector<1x3x8xf32> to vector<3x8xf32>
    %cst_702 = arith.constant dense<0.000000e+00> : vector<3x256xf32>
    %1223 = tpu.matmul %1222, %1220, %cst_702 {dimension_numbers = #tpu.dot_dimension_numbers<[1], [0], [0], [1], [0, 0, 1, 1], [], []>} : vector<3x8xf32>, vector<8x256xf32>, vector<3x256xf32> -> vector<3x256xf32>
    %1224 = arith.addf %1214, %1223 : vector<3x256xf32>
    %1225 = vector.extract_strided_slice %1205 {offsets = [2, 0], sizes = [1, 256], strides = [1, 1]} : vector<9x256xf32> to vector<1x256xf32>
    %cst_703 = arith.constant 0.000000e+00 : f32
    %1226 = vector.broadcast %cst_703 : f32 to vector<8x15xf32>
    %1227 = vector.extract_strided_slice %1204 {offsets = [0, 0], sizes = [8, 241], strides = [1, 1]} : vector<8x256xf32> to vector<8x241xf32>
    %1228 = tpu.concatenate %1226, %1227 in 1 : vector<8x15xf32>, vector<8x241xf32> -> vector<8x256xf32>
    %1229 = vector.broadcast %1225 : vector<1x256xf32> to vector<8x256xf32>
    %1230 = arith.mulf %1228, %1229 : vector<8x256xf32>
    %c2_704 = arith.constant 2 : index
    %c0_705 = arith.constant 0 : index
    %c0_706 = arith.constant 0 : index
    %1231 = vector.load %arg35[%c2_704, %c0_705, %c0_706] : memref<9x3x8xf32, #tpu.memory_space<vmem>>, vector<1x3x8xf32>
    %1232 = vector.shape_cast %1231 : vector<1x3x8xf32> to vector<3x8xf32>
    %cst_707 = arith.constant dense<0.000000e+00> : vector<3x256xf32>
    %1233 = tpu.matmul %1232, %1230, %cst_707 {dimension_numbers = #tpu.dot_dimension_numbers<[1], [0], [0], [1], [0, 0, 1, 1], [], []>} : vector<3x8xf32>, vector<8x256xf32>, vector<3x256xf32> -> vector<3x256xf32>
    %1234 = arith.addf %1224, %1233 : vector<3x256xf32>
    %1235 = vector.extract_strided_slice %1205 {offsets = [3, 0], sizes = [1, 256], strides = [1, 1]} : vector<9x256xf32> to vector<1x256xf32>
    %cst_708 = arith.constant 0.000000e+00 : f32
    %1236 = vector.broadcast %cst_708 : f32 to vector<8x1xf32>
    %1237 = vector.extract_strided_slice %1204 {offsets = [0, 0], sizes = [8, 255], strides = [1, 1]} : vector<8x256xf32> to vector<8x255xf32>
    %1238 = tpu.concatenate %1236, %1237 in 1 : vector<8x1xf32>, vector<8x255xf32> -> vector<8x256xf32>
    %1239 = vector.broadcast %1235 : vector<1x256xf32> to vector<8x256xf32>
    %1240 = arith.mulf %1238, %1239 : vector<8x256xf32>
    %c3_709 = arith.constant 3 : index
    %c0_710 = arith.constant 0 : index
    %c0_711 = arith.constant 0 : index
    %1241 = vector.load %arg35[%c3_709, %c0_710, %c0_711] : memref<9x3x8xf32, #tpu.memory_space<vmem>>, vector<1x3x8xf32>
    %1242 = vector.shape_cast %1241 : vector<1x3x8xf32> to vector<3x8xf32>
    %cst_712 = arith.constant dense<0.000000e+00> : vector<3x256xf32>
    %1243 = tpu.matmul %1242, %1240, %cst_712 {dimension_numbers = #tpu.dot_dimension_numbers<[1], [0], [0], [1], [0, 0, 1, 1], [], []>} : vector<3x8xf32>, vector<8x256xf32>, vector<3x256xf32> -> vector<3x256xf32>
    %1244 = arith.addf %1234, %1243 : vector<3x256xf32>
    %c4_713 = arith.constant 4 : index
    %c0_714 = arith.constant 0 : index
    %c0_715 = arith.constant 0 : index
    %1245 = vector.load %arg35[%c4_713, %c0_714, %c0_715] : memref<9x3x8xf32, #tpu.memory_space<vmem>>, vector<1x3x8xf32>
    %1246 = vector.shape_cast %1245 : vector<1x3x8xf32> to vector<3x8xf32>
    %cst_716 = arith.constant dense<0.000000e+00> : vector<3x256xf32>
    %1247 = tpu.matmul %1246, %1204, %cst_716 {dimension_numbers = #tpu.dot_dimension_numbers<[1], [0], [0], [1], [0, 0, 1, 1], [], []>} : vector<3x8xf32>, vector<8x256xf32>, vector<3x256xf32> -> vector<3x256xf32>
    %1248 = arith.addf %1244, %1247 : vector<3x256xf32>
    %1249 = vector.extract_strided_slice %1205 {offsets = [5, 0], sizes = [1, 256], strides = [1, 1]} : vector<9x256xf32> to vector<1x256xf32>
    %cst_717 = arith.constant 0.000000e+00 : f32
    %1250 = vector.broadcast %cst_717 : f32 to vector<8x1xf32>
    %1251 = vector.extract_strided_slice %1204 {offsets = [0, 1], sizes = [8, 255], strides = [1, 1]} : vector<8x256xf32> to vector<8x255xf32>
    %1252 = tpu.concatenate %1251, %1250 in 1 : vector<8x255xf32>, vector<8x1xf32> -> vector<8x256xf32>
    %1253 = vector.broadcast %1249 : vector<1x256xf32> to vector<8x256xf32>
    %1254 = arith.mulf %1252, %1253 : vector<8x256xf32>
    %c5_718 = arith.constant 5 : index
    %c0_719 = arith.constant 0 : index
    %c0_720 = arith.constant 0 : index
    %1255 = vector.load %arg35[%c5_718, %c0_719, %c0_720] : memref<9x3x8xf32, #tpu.memory_space<vmem>>, vector<1x3x8xf32>
    %1256 = vector.shape_cast %1255 : vector<1x3x8xf32> to vector<3x8xf32>
    %cst_721 = arith.constant dense<0.000000e+00> : vector<3x256xf32>
    %1257 = tpu.matmul %1256, %1254, %cst_721 {dimension_numbers = #tpu.dot_dimension_numbers<[1], [0], [0], [1], [0, 0, 1, 1], [], []>} : vector<3x8xf32>, vector<8x256xf32>, vector<3x256xf32> -> vector<3x256xf32>
    %1258 = arith.addf %1248, %1257 : vector<3x256xf32>
    %1259 = vector.extract_strided_slice %1205 {offsets = [6, 0], sizes = [1, 256], strides = [1, 1]} : vector<9x256xf32> to vector<1x256xf32>
    %cst_722 = arith.constant 0.000000e+00 : f32
    %1260 = vector.broadcast %cst_722 : f32 to vector<8x15xf32>
    %1261 = vector.extract_strided_slice %1204 {offsets = [0, 15], sizes = [8, 241], strides = [1, 1]} : vector<8x256xf32> to vector<8x241xf32>
    %1262 = tpu.concatenate %1261, %1260 in 1 : vector<8x241xf32>, vector<8x15xf32> -> vector<8x256xf32>
    %1263 = vector.broadcast %1259 : vector<1x256xf32> to vector<8x256xf32>
    %1264 = arith.mulf %1262, %1263 : vector<8x256xf32>
    %c6_723 = arith.constant 6 : index
    %c0_724 = arith.constant 0 : index
    %c0_725 = arith.constant 0 : index
    %1265 = vector.load %arg35[%c6_723, %c0_724, %c0_725] : memref<9x3x8xf32, #tpu.memory_space<vmem>>, vector<1x3x8xf32>
    %1266 = vector.shape_cast %1265 : vector<1x3x8xf32> to vector<3x8xf32>
    %cst_726 = arith.constant dense<0.000000e+00> : vector<3x256xf32>
    %1267 = tpu.matmul %1266, %1264, %cst_726 {dimension_numbers = #tpu.dot_dimension_numbers<[1], [0], [0], [1], [0, 0, 1, 1], [], []>} : vector<3x8xf32>, vector<8x256xf32>, vector<3x256xf32> -> vector<3x256xf32>
    %1268 = arith.addf %1258, %1267 : vector<3x256xf32>
    %1269 = vector.extract_strided_slice %1205 {offsets = [7, 0], sizes = [1, 256], strides = [1, 1]} : vector<9x256xf32> to vector<1x256xf32>
    %cst_727 = arith.constant 0.000000e+00 : f32
    %1270 = vector.broadcast %cst_727 : f32 to vector<8x16xf32>
    %1271 = vector.extract_strided_slice %1204 {offsets = [0, 16], sizes = [8, 240], strides = [1, 1]} : vector<8x256xf32> to vector<8x240xf32>
    %1272 = tpu.concatenate %1271, %1270 in 1 : vector<8x240xf32>, vector<8x16xf32> -> vector<8x256xf32>
    %1273 = vector.broadcast %1269 : vector<1x256xf32> to vector<8x256xf32>
    %1274 = arith.mulf %1272, %1273 : vector<8x256xf32>
    %c7_728 = arith.constant 7 : index
    %c0_729 = arith.constant 0 : index
    %c0_730 = arith.constant 0 : index
    %1275 = vector.load %arg35[%c7_728, %c0_729, %c0_730] : memref<9x3x8xf32, #tpu.memory_space<vmem>>, vector<1x3x8xf32>
    %1276 = vector.shape_cast %1275 : vector<1x3x8xf32> to vector<3x8xf32>
    %cst_731 = arith.constant dense<0.000000e+00> : vector<3x256xf32>
    %1277 = tpu.matmul %1276, %1274, %cst_731 {dimension_numbers = #tpu.dot_dimension_numbers<[1], [0], [0], [1], [0, 0, 1, 1], [], []>} : vector<3x8xf32>, vector<8x256xf32>, vector<3x256xf32> -> vector<3x256xf32>
    %1278 = arith.addf %1268, %1277 : vector<3x256xf32>
    %1279 = vector.extract_strided_slice %1205 {offsets = [8, 0], sizes = [1, 256], strides = [1, 1]} : vector<9x256xf32> to vector<1x256xf32>
    %cst_732 = arith.constant 0.000000e+00 : f32
    %1280 = vector.broadcast %cst_732 : f32 to vector<8x17xf32>
    %1281 = vector.extract_strided_slice %1204 {offsets = [0, 17], sizes = [8, 239], strides = [1, 1]} : vector<8x256xf32> to vector<8x239xf32>
    %1282 = tpu.concatenate %1281, %1280 in 1 : vector<8x239xf32>, vector<8x17xf32> -> vector<8x256xf32>
    %1283 = vector.broadcast %1279 : vector<1x256xf32> to vector<8x256xf32>
    %1284 = arith.mulf %1282, %1283 : vector<8x256xf32>
    %c8_733 = arith.constant 8 : index
    %c0_734 = arith.constant 0 : index
    %c0_735 = arith.constant 0 : index
    %1285 = vector.load %arg35[%c8_733, %c0_734, %c0_735] : memref<9x3x8xf32, #tpu.memory_space<vmem>>, vector<1x3x8xf32>
    %1286 = vector.shape_cast %1285 : vector<1x3x8xf32> to vector<3x8xf32>
    %cst_736 = arith.constant dense<0.000000e+00> : vector<3x256xf32>
    %1287 = tpu.matmul %1286, %1284, %cst_736 {dimension_numbers = #tpu.dot_dimension_numbers<[1], [0], [0], [1], [0, 0, 1, 1], [], []>} : vector<3x8xf32>, vector<8x256xf32>, vector<3x256xf32> -> vector<3x256xf32>
    %1288 = arith.addf %1278, %1287 : vector<3x256xf32>
    %c0_737 = arith.constant 0 : index
    %c0_738 = arith.constant 0 : index
    %1289 = vector.load %arg36[%c0_737, %c0_738] : memref<3x1xf32, #tpu.memory_space<vmem>>, vector<3x1xf32>
    %1290 = vector.broadcast %1289 : vector<3x1xf32> to vector<3x256xf32>
    %1291 = arith.addf %1288, %1290 : vector<3x256xf32>
    %c0_739 = arith.constant 0 : index
    %c0_740 = arith.constant 0 : index
    %c0_741 = arith.constant 0 : index
    %1292 = vector.load %arg37[%c0_739, %c0_740, %c0_741] : memref<1x3x256xf32, #tpu.memory_space<vmem>>, vector<1x3x256xf32>
    %1293 = vector.shape_cast %1292 : vector<1x3x256xf32> to vector<3x256xf32>
    %1294 = vector.shape_cast %1291 : vector<3x256xf32> to vector<1x3x256xf32>
    tpu.vector_store %arg37[%c0_739, %c0_740, %c0_741], %1294 {strides = array<i32>} : memref<1x3x256xf32, #tpu.memory_space<vmem>>, vector<1x3x256xf32>,
    return
  }
  func.func @transform_0(%arg0: i32) -> (i32, i32, i32) {
    %c0_i32 = arith.constant 0 : i32
    %c0_i32_0 = arith.constant 0 : i32
    %c0_i32_1 = arith.constant 0 : i32
    return %arg0, %c0_i32, %c0_i32_0 : i32, i32, i32
  }
  func.func @transform_1(%arg0: i32) -> (i32, i32) {
    %c0_i32 = arith.constant 0 : i32
    %c0_i32_0 = arith.constant 0 : i32
    %c0_i32_1 = arith.constant 0 : i32
    return %c0_i32, %c0_i32_0 : i32, i32
  }
  func.func @transform_2(%arg0: i32) -> (i32, i32, i32) {
    %c0_i32 = arith.constant 0 : i32
    %c0_i32_0 = arith.constant 0 : i32
    %c0_i32_1 = arith.constant 0 : i32
    %c0_i32_2 = arith.constant 0 : i32
    return %c0_i32, %c0_i32_0, %c0_i32_1 : i32, i32, i32
  }
  func.func @transform_3(%arg0: i32) -> (i32, i32) {
    %c0_i32 = arith.constant 0 : i32
    %c0_i32_0 = arith.constant 0 : i32
    %c0_i32_1 = arith.constant 0 : i32
    return %c0_i32, %c0_i32_0 : i32, i32
  }
  func.func @transform_4(%arg0: i32) -> (i32, i32, i32) {
    %c0_i32 = arith.constant 0 : i32
    %c0_i32_0 = arith.constant 0 : i32
    %c0_i32_1 = arith.constant 0 : i32
    %c0_i32_2 = arith.constant 0 : i32
    return %c0_i32, %c0_i32_0, %c0_i32_1 : i32, i32, i32
  }
  func.func @transform_5(%arg0: i32) -> (i32, i32) {
    %c0_i32 = arith.constant 0 : i32
    %c0_i32_0 = arith.constant 0 : i32
    %c0_i32_1 = arith.constant 0 : i32
    return %c0_i32, %c0_i32_0 : i32, i32
  }
  func.func @transform_6(%arg0: i32) -> (i32, i32) {
    %c0_i32 = arith.constant 0 : i32
    %c0_i32_0 = arith.constant 0 : i32
    %c0_i32_1 = arith.constant 0 : i32
    return %c0_i32, %c0_i32_0 : i32, i32
  }
  func.func @transform_7(%arg0: i32) -> (i32, i32) {
    %c0_i32 = arith.constant 0 : i32
    %c0_i32_0 = arith.constant 0 : i32
    %c0_i32_1 = arith.constant 0 : i32
    return %c0_i32, %c0_i32_0 : i32, i32
  }
  func.func @transform_8(%arg0: i32) -> (i32, i32, i32) {
    %c0_i32 = arith.constant 0 : i32
    %c0_i32_0 = arith.constant 0 : i32
    %c0_i32_1 = arith.constant 0 : i32
    %c0_i32_2 = arith.constant 0 : i32
    return %c0_i32, %c0_i32_0, %c0_i32_1 : i32, i32, i32
  }
  func.func @transform_9(%arg0: i32) -> (i32, i32) {
    %c0_i32 = arith.constant 0 : i32
    %c0_i32_0 = arith.constant 0 : i32
    %c0_i32_1 = arith.constant 0 : i32
    return %c0_i32, %c0_i32_0 : i32, i32
  }
  func.func @transform_10(%arg0: i32) -> (i32, i32, i32) {
    %c0_i32 = arith.constant 0 : i32
    %c0_i32_0 = arith.constant 0 : i32
    %c0_i32_1 = arith.constant 0 : i32
    %c0_i32_2 = arith.constant 0 : i32
    return %c0_i32, %c0_i32_0, %c0_i32_1 : i32, i32, i32
  }
  func.func @transform_11(%arg0: i32) -> (i32, i32) {
    %c0_i32 = arith.constant 0 : i32
    %c0_i32_0 = arith.constant 0 : i32
    %c0_i32_1 = arith.constant 0 : i32
    return %c0_i32, %c0_i32_0 : i32, i32
  }
  func.func @transform_12(%arg0: i32) -> (i32, i32) {
    %c0_i32 = arith.constant 0 : i32
    %c0_i32_0 = arith.constant 0 : i32
    %c0_i32_1 = arith.constant 0 : i32
    return %c0_i32, %c0_i32_0 : i32, i32
  }
  func.func @transform_13(%arg0: i32) -> (i32, i32) {
    %c0_i32 = arith.constant 0 : i32
    %c0_i32_0 = arith.constant 0 : i32
    %c0_i32_1 = arith.constant 0 : i32
    return %c0_i32, %c0_i32_0 : i32, i32
  }
  func.func @transform_14(%arg0: i32) -> (i32, i32, i32) {
    %c0_i32 = arith.constant 0 : i32
    %c0_i32_0 = arith.constant 0 : i32
    %c0_i32_1 = arith.constant 0 : i32
    %c0_i32_2 = arith.constant 0 : i32
    return %c0_i32, %c0_i32_0, %c0_i32_1 : i32, i32, i32
  }
  func.func @transform_15(%arg0: i32) -> (i32, i32) {
    %c0_i32 = arith.constant 0 : i32
    %c0_i32_0 = arith.constant 0 : i32
    %c0_i32_1 = arith.constant 0 : i32
    return %c0_i32, %c0_i32_0 : i32, i32
  }
  func.func @transform_16(%arg0: i32) -> (i32, i32, i32) {
    %c0_i32 = arith.constant 0 : i32
    %c0_i32_0 = arith.constant 0 : i32
    %c0_i32_1 = arith.constant 0 : i32
    %c0_i32_2 = arith.constant 0 : i32
    return %c0_i32, %c0_i32_0, %c0_i32_1 : i32, i32, i32
  }
  func.func @transform_17(%arg0: i32) -> (i32, i32) {
    %c0_i32 = arith.constant 0 : i32
    %c0_i32_0 = arith.constant 0 : i32
    %c0_i32_1 = arith.constant 0 : i32
    return %c0_i32, %c0_i32_0 : i32, i32
  }
  func.func @transform_18(%arg0: i32) -> (i32, i32, i32) {
    %c0_i32 = arith.constant 0 : i32
    %c0_i32_0 = arith.constant 0 : i32
    %c0_i32_1 = arith.constant 0 : i32
    %c0_i32_2 = arith.constant 0 : i32
    return %c0_i32, %c0_i32_0, %c0_i32_1 : i32, i32, i32
  }
  func.func @transform_19(%arg0: i32) -> (i32, i32) {
    %c0_i32 = arith.constant 0 : i32
    %c0_i32_0 = arith.constant 0 : i32
    %c0_i32_1 = arith.constant 0 : i32
    return %c0_i32, %c0_i32_0 : i32, i32
  }
  func.func @transform_20(%arg0: i32) -> (i32, i32, i32) {
    %c0_i32 = arith.constant 0 : i32
    %c0_i32_0 = arith.constant 0 : i32
    %c0_i32_1 = arith.constant 0 : i32
    %c0_i32_2 = arith.constant 0 : i32
    return %c0_i32, %c0_i32_0, %c0_i32_1 : i32, i32, i32
  }
  func.func @transform_21(%arg0: i32) -> (i32, i32, i32) {
    %c0_i32 = arith.constant 0 : i32
    %c0_i32_0 = arith.constant 0 : i32
    %c0_i32_1 = arith.constant 0 : i32
    %c0_i32_2 = arith.constant 0 : i32
    return %c0_i32, %c0_i32_0, %c0_i32_1 : i32, i32, i32
  }
  func.func @transform_22(%arg0: i32) -> (i32, i32, i32) {
    %c0_i32 = arith.constant 0 : i32
    %c0_i32_0 = arith.constant 0 : i32
    %c0_i32_1 = arith.constant 0 : i32
    %c0_i32_2 = arith.constant 0 : i32
    return %c0_i32, %c0_i32_0, %c0_i32_1 : i32, i32, i32
  }
  func.func @transform_23(%arg0: i32) -> (i32, i32) {
    %c0_i32 = arith.constant 0 : i32
    %c0_i32_0 = arith.constant 0 : i32
    %c0_i32_1 = arith.constant 0 : i32
    return %c0_i32, %c0_i32_0 : i32, i32
  }
  func.func @transform_24(%arg0: i32) -> (i32, i32, i32) {
    %c0_i32 = arith.constant 0 : i32
    %c0_i32_0 = arith.constant 0 : i32
    %c0_i32_1 = arith.constant 0 : i32
    %c0_i32_2 = arith.constant 0 : i32
    return %c0_i32, %c0_i32_0, %c0_i32_1 : i32, i32, i32
  }
  func.func @transform_25(%arg0: i32) -> (i32, i32) {
    %c0_i32 = arith.constant 0 : i32
    %c0_i32_0 = arith.constant 0 : i32
    %c0_i32_1 = arith.constant 0 : i32
    return %c0_i32, %c0_i32_0 : i32, i32
  }
  func.func @transform_26(%arg0: i32) -> (i32, i32, i32) {
    %c0_i32 = arith.constant 0 : i32
    %c0_i32_0 = arith.constant 0 : i32
    %c0_i32_1 = arith.constant 0 : i32
    %c0_i32_2 = arith.constant 0 : i32
    return %c0_i32, %c0_i32_0, %c0_i32_1 : i32, i32, i32
  }
  func.func @transform_27(%arg0: i32) -> (i32, i32) {
    %c0_i32 = arith.constant 0 : i32
    %c0_i32_0 = arith.constant 0 : i32
    %c0_i32_1 = arith.constant 0 : i32
    return %c0_i32, %c0_i32_0 : i32, i32
  }
  func.func @transform_28(%arg0: i32) -> (i32, i32, i32) {
    %c0_i32 = arith.constant 0 : i32
    %c0_i32_0 = arith.constant 0 : i32
    %c0_i32_1 = arith.constant 0 : i32
    %c0_i32_2 = arith.constant 0 : i32
    return %c0_i32, %c0_i32_0, %c0_i32_1 : i32, i32, i32
  }
  func.func @transform_29(%arg0: i32) -> (i32, i32, i32) {
    %c0_i32 = arith.constant 0 : i32
    %c0_i32_0 = arith.constant 0 : i32
    %c0_i32_1 = arith.constant 0 : i32
    %c0_i32_2 = arith.constant 0 : i32
    return %c0_i32, %c0_i32_0, %c0_i32_1 : i32, i32, i32
  }
  func.func @transform_30(%arg0: i32) -> (i32, i32, i32) {
    %c0_i32 = arith.constant 0 : i32
    %c0_i32_0 = arith.constant 0 : i32
    %c0_i32_1 = arith.constant 0 : i32
    %c0_i32_2 = arith.constant 0 : i32
    return %c0_i32, %c0_i32_0, %c0_i32_1 : i32, i32, i32
  }
  func.func @transform_31(%arg0: i32) -> (i32, i32) {
    %c0_i32 = arith.constant 0 : i32
    %c0_i32_0 = arith.constant 0 : i32
    %c0_i32_1 = arith.constant 0 : i32
    return %c0_i32, %c0_i32_0 : i32, i32
  }
  func.func @transform_32(%arg0: i32) -> (i32, i32, i32) {
    %c0_i32 = arith.constant 0 : i32
    %c0_i32_0 = arith.constant 0 : i32
    %c0_i32_1 = arith.constant 0 : i32
    %c0_i32_2 = arith.constant 0 : i32
    return %c0_i32, %c0_i32_0, %c0_i32_1 : i32, i32, i32
  }
  func.func @transform_33(%arg0: i32) -> (i32, i32) {
    %c0_i32 = arith.constant 0 : i32
    %c0_i32_0 = arith.constant 0 : i32
    %c0_i32_1 = arith.constant 0 : i32
    return %c0_i32, %c0_i32_0 : i32, i32
  }
  func.func @transform_34(%arg0: i32) -> (i32, i32, i32) {
    %c0_i32 = arith.constant 0 : i32
    %c0_i32_0 = arith.constant 0 : i32
    %c0_i32_1 = arith.constant 0 : i32
    %c0_i32_2 = arith.constant 0 : i32
    return %c0_i32, %c0_i32_0, %c0_i32_1 : i32, i32, i32
  }
  func.func @transform_35(%arg0: i32) -> (i32, i32) {
    %c0_i32 = arith.constant 0 : i32
    %c0_i32_0 = arith.constant 0 : i32
    %c0_i32_1 = arith.constant 0 : i32
    return %c0_i32, %c0_i32_0 : i32, i32
  }
  func.func @transform_36(%arg0: i32) -> (i32, i32, i32) {
    %c0_i32 = arith.constant 0 : i32
    %c0_i32_0 = arith.constant 0 : i32
    %c0_i32_1 = arith.constant 0 : i32
    return %arg0, %c0_i32, %c0_i32_0 : i32, i32, i32
  }
}

</mosaic_0001>

<bundles_post_ra>
// kernel: unet_forward.1
= control target key start
LH: loop header
LB: loop body
LE: loop exit
PB: predicated region body
PF: predicated region fallthrough
CT: control target
= control target key end

     0   :  { %s17638_s6 = smov 1   ;;  %s17639_s10 = smov 2   ;;  %s19752_s0 = inlined_call_operand.smem [shape: u32[37], index: -1, kind: input, shape index: {}] }
   0x1   :  { %s17706_s5 = sld [smem:[%s19752_s0]]   ;;  %s17640_s14 = smov 3  }
   0x2   :  { %s17711_s9 = sld [smem:[%s19752_s0 + %s17638_s6]]   ;;  %s17641_s18 = smov 4  }
   0x3   :  { %s17716_s13 = sld [smem:[%s19752_s0 + %s17639_s10]]   ;;  %s17642_s22 = smov 5  }
   0x4   :  { %s17721_s17 = sld [smem:[%s19752_s0 + %s17640_s14]]   ;;  %s17643_s26 = smov 6  }
   0x5   :  { %s17726_s21 = sld [smem:[%s19752_s0 + %s17641_s18]]   ;;  %s17644_s30 = smov 7  }
   0x6   :  { %s17731_s25 = sld [smem:[%s19752_s0 + %s17642_s22]]   ;;  %s17645_s4 = smov 8  }
   0x7   :  { %19822 = sst [smem:[#allocation2_spill]] %s17706_s5  ;;  %s17646_s10 = smov 9  }
   0x8   :  { %s17736_s29 = sld [smem:[%s19752_s0 + %s17643_s26]]   ;;  %s17647_s15 = smov 10  }
   0x9   :  { %19823 = sst [smem:[#allocation3_spill]] %s17716_s13  ;;  %s17648_s20 = smov 11  }
   0xa   :  { %s17741_s3 = sld [smem:[%s19752_s0 + %s17644_s30]]   ;;  %s17649_s26 = smov 12  }
   0xb   :  { %s17746_s8 = sld [smem:[%s19752_s0 + %s17645_s4]]   ;;  %s17650_s1 = smov 13  }
   0xc   :  { %s17751_s14 = sld [smem:[%s19752_s0 + %s17646_s10]]   ;;  %s17651_s7 = smov 14  }
   0xd   :  { %s17756_s19 = sld [smem:[%s19752_s0 + %s17647_s15]]   ;;  %s17652_s15 = smov 15  }
   0xe   :  { %s17761_s24 = sld [smem:[%s19752_s0 + %s17648_s20]]   ;;  %s17653_s22 = smov 16  }
   0xf   :  { %s17766_s30 = sld [smem:[%s19752_s0 + %s17649_s26]]   ;;  %s17654_s28 = smov 17  }
  0x10   :  { %19824 = sst [smem:[#allocation4_spill]] %s17741_s3 }
  0x11   :  { %19825 = sst [smem:[#allocation5_spill]] %s17746_s8 }
  0x12   :  { %s17771_s6 = sld [smem:[%s19752_s0 + %s17650_s1]]  }
  0x13   :  { %s17776_s12 = sld [smem:[%s19752_s0 + %s17651_s7]]   ;;  %s17655_s7 = smov 18  }
  0x14   :  { %s17781_s20 = sld [smem:[%s19752_s0 + %s17652_s15]]   ;;  %s17656_s15 = smov 19  }
  0x15   :  { %s17786_s27 = sld [smem:[%s19752_s0 + %s17653_s22]]   ;;  %s17657_s22 = smov 20  }
  0x16   :  { %s17791_s4 = sld [smem:[%s19752_s0 + %s17654_s28]]   ;;  %s17658_s28 = smov 21  }
  0x18   :  { %19826 = sst [smem:[#allocation6_spill]] %s17771_s6 }
  0x19   :  { %19827 = sst [smem:[#allocation7_spill]] %s17776_s12 }
  0x1a   :  { %19828 = sst [smem:[#allocation8_spill]] %s17781_s20 }
  0x1b   :  { %19829 = sst [smem:[#allocation9_spill]] %s17786_s27 }
  0x1c   :  { %19830 = sst [smem:[#allocation10_spill]] %s17791_s4 }
  0x1d   :  { %s17796_s6 = sld [smem:[%s19752_s0 + %s17655_s7]]   ;;  %s17659_s7 = smov 22  }
  0x1e   :  { %s17801_s20 = sld [smem:[%s19752_s0 + %s17656_s15]]   ;;  %s17660_s15 = smov 23  }
  0x1f   :  { %s17806_s27 = sld [smem:[%s19752_s0 + %s17657_s22]]   ;;  %s17661_s22 = smov 24  }
  0x20   :  { %s17811_s4 = sld [smem:[%s19752_s0 + %s17658_s28]]   ;;  %s17662_s28 = smov 25  }
  0x23   :  { %19831 = sst [smem:[#allocation11_spill]] %s17796_s6 }
  0x24   :  { %19832 = sst [smem:[#allocation12_spill]] %s17801_s20 }
  0x25   :  { %19833 = sst [smem:[#allocation13_spill]] %s17806_s27 }
  0x26   :  { %19834 = sst [smem:[#allocation14_spill]] %s17811_s4 }
  0x27   :  { %s17816_s6 = sld [smem:[%s19752_s0 + %s17659_s7]]   ;;  %s17663_s7 = smov 26  }
  0x28   :  { %s17821_s20 = sld [smem:[%s19752_s0 + %s17660_s15]]   ;;  %s17664_s15 = smov 27  }
  0x29   :  { %s17826_s27 = sld [smem:[%s19752_s0 + %s17661_s22]]   ;;  %s17665_s22 = smov 28  }
  0x2a   :  { %s17831_s4 = sld [smem:[%s19752_s0 + %s17662_s28]]   ;;  %s17666_s28 = smov 29  }
  0x2d   :  { %19835 = sst [smem:[#allocation15_spill]] %s17816_s6 }
  0x2e   :  { %19836 = sst [smem:[#allocation16_spill]] %s17821_s20 }
  0x2f   :  { %19837 = sst [smem:[#allocation17_spill]] %s17826_s27 }
  0x30   :  { %19838 = sst [smem:[#allocation18_spill]] %s17831_s4 }
  0x31   :  { %s17836_s6 = sld [smem:[%s19752_s0 + %s17663_s7]]   ;;  %s17667_s7 = smov 30  }
  0x32   :  { %s17841_s20 = sld [smem:[%s19752_s0 + %s17664_s15]]   ;;  %s17668_s15 = smov 31  }
  0x33   :  { %s17846_s27 = sld [smem:[%s19752_s0 + %s17665_s22]]   ;;  %s17669_s22 = smov 32  }
  0x34   :  { %s17851_s4 = sld [smem:[%s19752_s0 + %s17666_s28]]   ;;  %s17670_s28 = smov 33  }
  0x37   :  { %19839 = sst [smem:[#allocation19_spill]] %s17836_s6 }
  0x38   :  { %19840 = sst [smem:[#allocation20_spill]] %s17841_s20 }
  0x39   :  { %19841 = sst [smem:[#allocation21_spill]] %s17846_s27 }
  0x3a   :  { %19842 = sst [smem:[#allocation22_spill]] %s17851_s4 }
  0x3b   :  { %s17856_s6 = sld [smem:[%s19752_s0 + %s17667_s7]]   ;;  %s17671_s7 = smov 34  }
  0x3c   :  { %s17861_s20 = sld [smem:[%s19752_s0 + %s17668_s15]]   ;;  %s17672_s15 = smov 35  }
  0x3d   :  { %s17866_s27 = sld [smem:[%s19752_s0 + %s17669_s22]]   ;;  %s17673_s22 = smov 36  }
  0x3e   :  { %s17871_s4 = sld [smem:[%s19752_s0 + %s17670_s28]]   ;;  %s17888_s28 = smov 0  }
  0x41   :  { %19843 = sst [smem:[#allocation23_spill]] %s17856_s6 }
  0x42   :  { %19844 = sst [smem:[#allocation24_spill]] %s17861_s20 }
  0x43   :  { %19845 = sst [smem:[#allocation25_spill]] %s17866_s27 }
  0x44   :  { %s17876_s6 = sld [smem:[%s19752_s0 + %s17671_s7]]  }
  0x45   :  { %s17881_s20 = sld [smem:[%s19752_s0 + %s17672_s15]]  }
  0x46   :  { %s17886_s27 = sld [smem:[%s19752_s0 + %s17673_s22]]  }
  0x47 LB: > { %s19846_s13 = sld [smem:[#allocation3_spill]]  ;;  %s19847_s3 = sld [smem:[#allocation4_spill]]  ;;  %s17636_s28 = sphi %s17888_s28, %s83_s28  }
  0x48   : > { %s19848_s12 = sld [smem:[#allocation7_spill]]  ;;  %s19849_s8 = sld [smem:[#allocation5_spill]] }
  0x49   : > { %s15078_s1 = sadd.s32 4294967295, %s17636_s28   ;;  %p15082_p0 = scmp.ge.s32.totalorder %s17636_s28, 1 }
  0x4a   : > { %p999_p1 = scmp.lt.s32.totalorder %s17636_s28, 3 }
  0x4c   : > { %p1000_p2 = pnand %p15082_p0, %p999_p1 }
  0x4e   : > { %1003 = sbr.rel (%p1000_p2) target bundleno = 6545 (0x1991), region = 164 }
  0x55   : > { %p1089_p3 = scmp.lt.s32.totalorder %s15078_s1, 1  ;;  %s19850_s5 = sld [smem:[#allocation2_spill]]  ;;  %v19801_v0 = vmov 0.0   ;;  %v2009_v3 = vld [vmem:[%s17721_s17] sm:$0xff]  ;;  %v17683_v4 = vmov 0   ;;  %v1115_v5 = vlaneseq  ;;  %v17949_v8 = vld [vmem:[%s17711_s9 + $0x8] sm:$0xff] }
  0x56   : > { %1222 = vmatprep.mubr.f32.mxu0 %v19801_v0  ;;  %2112 = vmatprep.mubr.f32.mxu1 %v19801_v0  ;;  %s19780_s7 = smov 16   ;;  %s19782_s10 = smov 17   ;;  %v17955_v11 = vld [vmem:[%s17711_s9] sm:$0xff]  ;;  %vm1130_vm0 = vcmask 130048   ;;  %vm19798_vm1 = vcmask 138240   ;;  %vm1151_vm2 = vcmask 1043456  }
  0x57   : > { %s19930_s1 = smov (!%p1089_p3, %s15078_s1), 1  ;;  %s19778_s11 = smov 15   ;;  %17624 = vset.pattern.permute.xlu0 %v17683_v4  ;;  %17625 = vset.pattern.permute.xlu1 %v17683_v4  ;;  %v17943_v6 = vshrl.u32 %v1115_v5, 7  ;;  %vm1313_vm3 = vcmask 121856   ;;  %v15087_v29 = vld [vmem:[%s19846_s13 + $0x8] sm:$0xff]  ;;  %vm1147_vm4 = vcmask 31744  }
  0x58   : > { %s19770_s0 = sshll.u32 %s19930_s1, 3  ;;  %s19807_s15 = smov 1   ;;  %vm1416_vm5 = vcmask 7168   ;;  %v1125_v41 = vld [vmem:[%s19846_s13] sm:$0xff]  ;;  %v15094_v46 = vld [vmem:[%s19846_s13 + $0x10] sm:$0xff]  ;;  %vm19796_vm6 = vcmask 1039360  }
  0x59   : > { %s19805_s16 = smov 127   ;;  %s19775_s18 = smov 113   ;;  %v17946_v7 = vsub.s32 0, %v17943_v6  ;;  %v17952_v9 = vsub.s32 1, %v17943_v6  ;;  %v17966_v15 = vsub.s32 2, %v17943_v6  ;;  %v17991_v32 = vsub.s32 3, %v17943_v6 }
  0x5a   : > { %s19773_s22 = smov 112   ;;  %s19771_s23 = smov 111   ;;  %v18026_v48 = vsub.s32 5, %v17943_v6  ;;  %v15098_v52 = vld [vmem:[%s19846_s13 + $0x18] sm:$0xff]  ;;  %v18041_v54 = vsub.s32 6, %v17943_v6  ;;  %vm19795_vm7 = vcmask 924672  }
  0x5b   : > { %s1093_s2 = scalar_lea.vmem %s19850_s5, %s19770_s0  ;;  %v17959_v13 = vrot.slane %v17949_v8, %v17946_v7  ;;  %v17963_v14 = vrot.slane %v17949_v8, %v17952_v9  ;;  %v17970_v16 = vrot.slane %v17955_v11, %v17946_v7  ;;  %v17974_v17 = vrot.slane %v17955_v11, %v17952_v9  ;;  %v15102_v61 = vld [vmem:[%s19846_s13 + $0x20] sm:$0xff]  ;;  %s19799_s26 = smov 9  }
  0x5c   : > { %v17904_v1 = vld [vmem:[%s1093_s2] sm:$0xff]  ;;  %v17984_v26 = vrot.slane %v17949_v8, %v17966_v15  ;;  %v18002_v35 = vrot.slane %v17955_v11, %v17966_v15  ;;  %v18008_v38 = vrot.slane %v17949_v8, %v17991_v32  ;;  %v18019_v44 = vrot.slane %v17955_v11, %v17991_v32  ;;  %s19792_s2 = smov 8   ;;  %s19790_s0 = smov 7  }
  0x5d   : > { %1126 = vrot.lane.b32.xlu0 %v17904_v1, %s19780_s7  ;;  %1106 = vrot.lane.b32.xlu1 %v17904_v1, %s19782_s10  ;;  %v17912_v2 = vcombine.high %v17904_v1, %v17904_v1  ;;  %v18035_v50 = vrot.slane %v17949_v8, %v18026_v48  ;;  %v18049_v57 = vrot.slane %v17955_v11, %v18026_v48  ;;  %vm19794_vm8 = vcmask 916480   ;;  %s19864_s5 = sld [smem:[#allocation16_spill]] }
  0x5e   : > { %v18055_v59 = vrot.slane %v17949_v8, %v18041_v54  ;;  %v18069_v4 = vrot.slane %v17955_v11, %v18041_v54  ;;  %vm19777_vm9 = vcmask 908288   ;;  %vm2044_vm10 = vcmask 64512  }
  0x5f   : > { %vm2949_vm11 = vcmask 72704   ;;  %vm3135_vm12 = vcmask 56320   ;;  %vm3412_vm13 = vcmask 515072   ;;  %vm3508_vm14 = vcmask 465920  }
  0x60   : > { %vm3604_vm15 = vcmask 457728  }
  0x61   : > { %1128 = vrot.lane.b32.xlu0 %v17912_v2, %s19780_s7  ;;  %1108 = vrot.lane.b32.xlu1 %v17912_v2, %s19782_s10 }
  0x65   : > { %1311 = vrot.lane.b32.xlu1 %v17912_v2, %s19778_s11  ;;  %1309 = vrot.lane.b32.xlu0 %v17904_v1, %s19778_s11 }
  0x69   : > { %1414 = vrot.lane.b32.xlu1 %v17912_v2, %s19807_s15  ;;  %1412 = vrot.lane.b32.xlu0 %v17904_v1, %s19807_s15 }
  0x6d   : > { %1599 = vrot.lane.b32.xlu0 %v17912_v2, %s19805_s16  ;;  %1597 = vrot.lane.b32.xlu1 %v17904_v1, %s19805_s16 }
  0x71   : > { %1702 = vrot.lane.b32.xlu0 %v17912_v2, %s19775_s18  ;;  %1700 = vrot.lane.b32.xlu1 %v17904_v1, %s19775_s18 }
  0x75   : > { %1805 = vrot.lane.b32.xlu0 %v17912_v2, %s19773_s22  ;;  %1803 = vrot.lane.b32.xlu1 %v17904_v1, %s19773_s22 }
  0x79   : > { %1908 = vrot.lane.b32.xlu0 %v17912_v2, %s19771_s23  ;;  %1906 = vrot.lane.b32.xlu1 %v17904_v1, %s19771_s23 }
  0x7d   : > { %2012 = vperm.xlu0 %17624, %v2009_v3  }
  0xcf   : > { %v1127_v10 = vpop.permute.xlu0 %1126  ;;  %v1107_v12 = vpop.permute.xlu1 %1106 }
  0xd0   : > { %v1134_v18 = vsel %vm1130_vm0, 0.0, %v1127_v10  ;;  %v1114_v19 = vsel %vm19798_vm1, 0.0, %v1107_v12 }
  0xd1   : > { %v1123_v27 = vmul.f32 %v17970_v16, %v1114_v19  ;;  %v1143_v28 = vmul.f32 %v17974_v17, %v1134_v18 }
  0xd3   : > { %v1129_v20 = vpop.permute.xlu0 %1128  ;;  %v1109_v21 = vpop.permute.xlu1 %1108 }
  0xd4   : > { %v1131_v22 = vsel %vm1130_vm0, %v1127_v10, %v1129_v20  ;;  %v1111_v23 = vsel %vm19798_vm1, %v1107_v12, %v1109_v21  ;;  %v15106_v12 = vld [vmem:[%s19846_s13 + $0x28] sm:$0xff] }
  0xd5   : > { %v1124_v24 = vmul.f32 %v17959_v13, %v1111_v23  ;;  %v1144_v25 = vmul.f32 %v17963_v14, %v1131_v22  ;;  %v18091_v23 = vld [vmem:[%s17711_s9 + $0x18] ss:$0 sm:$0xff] }
  0xd7   : > { %15088 = vmatprep.subr.msk.mxu0 %vm1151_vm2, %v1144_v25  ;;  %v1312_v30 = vpop.permute.xlu1 %1311  ;;  %v1310_v31 = vpop.permute.xlu0 %1309  ;;  %v15110_v25 = vld [vmem:[%s19846_s13 + $0x30] sm:$0xff] }
  0xd8   : > { %15089 = vmatpush1.msk.msra.mxu0 %vm1151_vm2, %v1143_v28  ;;  %v1314_v33 = vsel %vm1313_vm3, %v1310_v31, %v1312_v30  ;;  %v1317_v36 = vsel %vm1313_vm3, 0.0, %v1310_v31  ;;  %v15114_v31 = vld [vmem:[%s19846_s13 + $0x38] sm:$0xff] }
  0xd9   : > { %15090 = vmatmul.mubr.msk.f32.vlgmr.msra.gmra.mrb[0].mxu0 %vm1147_vm4, %v15087_v29  ;;  %15091 = vmatprep.subr.msk.mxu0 %vm1151_vm2, %v1124_v24  ;;  %v1327_v34 = vmul.f32 %v17984_v26, %v1314_v33  ;;  %v1326_v42 = vmul.f32 %v18002_v35, %v1317_v36 }
  0xda   : > { %15092 = vmatpush1.msk.msra.mxu0 %vm1151_vm2, %v1123_v27  ;;  %1302 = vmatprep.mubr.f32.mxu0 %v19801_v0 }
  0xdb   : > { %15095 = vmatprep.subr.msk.mxu0 %vm1151_vm2, %v1327_v34  ;;  %v1415_v37 = vpop.permute.xlu1 %1414  ;;  %v1413_v39 = vpop.permute.xlu0 %1412  ;;  %v15120_v34 = vld [vmem:[%s19846_s13 + $0x40] sm:$0xff]  ;;  %s19896_s13 = smov 111  }
  0xdc   : > { %v1417_v40 = vsel %vm1416_vm5, %v1413_v39, %v1415_v37  ;;  %v1420_v45 = vsel %vm1416_vm5, 0.0, %v1413_v39 }
  0xdd   : > { %v1430_v43 = vmul.f32 %v18008_v38, %v1417_v40  ;;  %v1429_v47 = vmul.f32 %v18019_v44, %v1420_v45  ;;  %v2799_v45 = vld [vmem:[%s17731_s25] sm:$0xff] }
  0xdf   : > { %v1600_v49 = vpop.permute.xlu0 %1599  ;;  %v1598_v55 = vpop.permute.xlu1 %1597 }
  0xe0   : > { %v1605_v51 = vsel %vm19796_vm6, %v1600_v49, 0.0  ;;  %v1602_v58 = vsel %vm19796_vm6, %v1598_v55, %v1600_v49 }
  0xe1   : > { %15093 = vmatmul.mubr.msk.f32.vlgmr.msra.gmra.mrb[0].mxu0 %vm1147_vm4, %v1125_v41  ;;  %v1615_v53 = vmul.f32 %v18035_v50, %v1605_v51  ;;  %v1614_v62 = vmul.f32 %v18049_v57, %v1602_v58 }
  0xe2   : > { %15096 = vmatpush1.msk.msra.mxu0 %vm1151_vm2, %v1326_v42  ;;  %1403 = vmatprep.mubr.f32.mxu0 %v19801_v0 }
  0xe3   : > { %15099 = vmatprep.subr.msk.mxu0 %vm1151_vm2, %v1430_v43  ;;  %v1703_v56 = vpop.permute.xlu0 %1702 }
  0xe4   : > { %v1708_v60 = vsel %vm19795_vm7, %v1703_v56, 0.0 }
  0xe5   : > { %v1718_v63 = vmul.f32 %v18055_v59, %v1708_v60 }
  0xe7   : > { %v1806_v3 = vpop.permute.xlu0 %1805 }
  0xe8   : > { %v1811_v10 = vsel %vm19794_vm8, %v1806_v3, 0.0 }
  0xe9   : > { %15097 = vmatmul.mubr.msk.f32.vlgmr.msra.gmra.mrb[0].mxu0 %vm1147_vm4, %v15094_v46 }
  0xea   : > { %15100 = vmatpush1.msk.msra.mxu0 %vm1151_vm2, %v1429_v47  ;;  %1506 = vmatprep.mubr.f32.mxu0 %v19801_v0 }
  0xeb   : > { %15103 = vmatprep.subr.msk.mxu0 %vm1151_vm2, %v17912_v2  ;;  %v1701_v2 = vpop.permute.xlu1 %1700  ;;  %v1909_v21 = vpop.permute.xlu0 %1908 }
  0xec   : > { %v1705_v5 = vsel %vm19795_vm7, %v1701_v2, %v1703_v56  ;;  %v1914_v24 = vsel %vm19777_vm9, %v1909_v21, 0.0  ;;  %v15124_v56 = vld [vmem:[%s17726_s21 + $0x8] sm:$0xff] }
  0xed   : > { %v1717_v18 = vmul.f32 %v18069_v4, %v1705_v5  ;;  %v1924_v28 = vmul.f32 %v18091_v23, %v1914_v24 }
  0xef   : > { %v1804_v20 = vpop.permute.xlu1 %1803 }
  0xf0   : > { %v1808_v22 = vsel %vm19794_vm8, %v1804_v20, %v1806_v3 }
  0xf1   : > { %15101 = vmatmul.mubr.msk.f32.vlgmr.msra.gmra.mrb[0].mxu0 %vm1147_vm4, %v15098_v52 }
  0xf2   : > { %15104 = vmatpush1.msk.msra.mxu0 %vm1151_vm2, %v17904_v1  ;;  %1588 = vmatprep.mubr.f32.mxu0 %v19801_v0  ;;  %v18062_v1 = vsub.s32 7, %v17943_v6 }
  0xf3   : > { %15107 = vmatprep.subr.msk.mxu0 %vm1151_vm2, %v1615_v53  ;;  %v1907_v29 = vpop.permute.xlu1 %1906 }
  0xf4   : > { %v18075_v6 = vrot.slane %v17949_v8, %v18062_v1  ;;  %v18086_v8 = vrot.slane %v17955_v11, %v18062_v1  ;;  %v18101_v11 = vld [vmem:[%s17711_s9 + $0x10] ss:$0 sm:$0xff]  ;;  %v1911_v30 = vsel %vm19777_vm9, %v1907_v29, %v1909_v21 }
  0xf5   : > { %v1923_v33 = vmul.f32 %v18101_v11, %v1911_v30 }
  0xf6   : > { %v1821_v19 = vmul.f32 %v18075_v6, %v1811_v10  ;;  %v1820_v27 = vmul.f32 %v18086_v8, %v1808_v22 }
  0xf9   : > { %15105 = vmatmul.mubr.msk.f32.vlgmr.msra.gmra.mrb[0].mxu0 %vm1147_vm4, %v15102_v61 }
  0xfa   : > { %15108 = vmatpush1.msk.msra.mxu0 %vm1151_vm2, %v1614_v62  ;;  %1691 = vmatprep.mubr.f32.mxu0 %v19801_v0 }
  0xfb   : > { %15111 = vmatprep.subr.msk.mxu0 %vm1151_vm2, %v1718_v63 }
  0xfc   : > { %v2013_v36 = vpop.permute.xlu0 %2012 }
 0x101   : > { %15109 = vmatmul.mubr.msk.f32.vlgmr.msra.gmra.mrb[0].mxu0 %vm1147_vm4, %v15106_v12 }
 0x102   : > { %15112 = vmatpush1.msk.msra.mxu0 %vm1151_vm2, %v1717_v18  ;;  %1794 = vmatprep.mubr.f32.mxu0 %v19801_v0  ;;  %v2031_v18 = vld [vmem:[%s17726_s21] sm:$0xff] }
 0x103   : > { %15115 = vmatprep.subr.msk.mxu0 %vm1151_vm2, %v1821_v19 }
 0x109   : > { %15113 = vmatmul.mubr.msk.f32.vlgmr.msra.gmra.mrb[0].mxu0 %vm1147_vm4, %v15110_v25 }
 0x10a   : > { %15116 = vmatpush1.msk.msra.mxu0 %vm1151_vm2, %v1820_v27  ;;  %1897 = vmatprep.mubr.f32.mxu0 %v19801_v0  ;;  %v15127_v27 = vld [vmem:[%s17726_s21 + $0x10] sm:$0xff] }
 0x10b   : > { %15121 = vmatprep.subr.msk.mxu0 %vm1151_vm2, %v1924_v28 }
 0x111   : > { %15117 = vmatmul.mubr.msk.f32.vlgmr.msra.gmra.mrb[0].mxu0 %vm1147_vm4, %v15114_v31  ;;  %v15129_v31 = vld [vmem:[%s17726_s21 + $0x18] sm:$0xff] }
 0x112   : > { %15122 = vmatpush1.msk.msra.mxu0 %vm1151_vm2, %v1923_v33  ;;  %2000 = vmatprep.mubr.f32.mxu0 %v19801_v0  ;;  %vm19803_vm2 = vcmask 449536  }
 0x119   : > { %15123 = vmatmul.mubr.msk.f32.vlgmr.msra.gmra.mrb[0].mxu0 %vm1147_vm4, %v15120_v34 }
 0x1ec   : > { %v2002_v37 = vpop.f32.mrb[0].mxu0 }
 0x1ed   : > { %v2015_v39 = vadd.f32 %v2013_v36, %v2002_v37  ;;  %v2004_v40 = vpop.f32.mrb[1].mxu0 }
 0x1ee   : > { %v2016_v42 = vadd.f32 %v2013_v36, %v2004_v40  ;;  %v15131_v40 = vld [vmem:[%s17726_s21 + $0x20] sm:$0xff] }
 0x1ef   : > { %v18112_v41 = vmax.f32 %v2015_v39, 0.0 }
 0x1f0   : > { %v2018_v43 = vmax.f32 %v2016_v42, 0.0 }
 0x1f1   : > { %2021 = vrot.lane.b32.xlu0 %v18112_v41, %s19782_s10  ;;  %2032 = vrot.lane.b32.xlu1 %v18112_v41, %s19780_s7 }
 0x1f5   : > { %2193 = vrot.lane.b32.xlu0 %v18112_v41, %s19778_s11  ;;  %2034 = vrot.lane.b32.xlu1 %v2018_v43, %s19780_s7  ;;  %s17691_s7 = smov 3  }
 0x1f9   : > { %2281 = vrot.lane.b32.xlu0 %v18112_v41, %s19807_s15  ;;  %2023 = vrot.lane.b32.xlu1 %v2018_v43, %s19782_s10  ;;  %s19852_s10 = sld [smem:[#allocation8_spill]] }
 0x1fd   : > { %2449 = vrot.lane.b32.xlu0 %v2018_v43, %s19805_s16  ;;  %2195 = vrot.lane.b32.xlu1 %v2018_v43, %s19778_s11  ;;  %s17690_s11 = smov 5  }
 0x201   : > { %2537 = vrot.lane.b32.xlu0 %v2018_v43, %s19775_s18  ;;  %2283 = vrot.lane.b32.xlu1 %v2018_v43, %s19807_s15 }
 0x205   : > { %2625 = vrot.lane.b32.xlu0 %v2018_v43, %s19773_s22  ;;  %2447 = vrot.lane.b32.xlu1 %v18112_v41, %s19805_s16 }
 0x209   : > { %2713 = vrot.lane.b32.xlu0 %v2018_v43, %s19771_s23  ;;  %2535 = vrot.lane.b32.xlu1 %v18112_v41, %s19775_s18  ;;  %s19786_s18 = smov 120  }
 0x20d   : > { %2802 = vperm.xlu0 %17624, %v2799_v45   ;;  %2623 = vrot.lane.b32.xlu1 %v18112_v41, %s19773_s22 }
 0x211   : > { %2711 = vrot.lane.b32.xlu1 %v18112_v41, %s19771_s23 }
 0x263   : > { %v2033_v46 = vpop.permute.xlu1 %2032  ;;  %v2022_v47 = vpop.permute.xlu0 %2021 }
 0x264   : > { %v2039_v51 = vsel %vm1130_vm0, 0.0, %v2033_v46  ;;  %v2028_v58 = vsel %vm19798_vm1, 0.0, %v2022_v47 }
 0x265   : > { %v2040_v55 = vmul.f32 %v2039_v51, %v17974_v17  ;;  %v2029_v2 = vmul.f32 %v2028_v58, %v17970_v16 }
 0x267   : > { %v2035_v49 = vpop.permute.xlu1 %2034  ;;  %v2194_v62 = vpop.permute.xlu0 %2193 }
 0x268   : > { %v2036_v52 = vsel %vm1130_vm0, %v2033_v46, %v2035_v49  ;;  %v2200_v10 = vsel %vm1313_vm3, 0.0, %v2194_v62  ;;  %v15133_v49 = vld [vmem:[%s17726_s21 + $0x28] sm:$0xff] }
 0x269   : > { %v2041_v53 = vmul.f32 %v2036_v52, %v17963_v14  ;;  %v2201_v21 = vmul.f32 %v2200_v10, %v18002_v35  ;;  %v2857_v10 = vld [vmem:[%s17736_s29 + $0x80] sm:$0xff] }
 0x26b   : > { %2048 = vmatprep.subr.mxu1 %v2041_v53  ;;  %v2024_v60 = vpop.permute.xlu1 %2023  ;;  %v2282_v19 = vpop.permute.xlu0 %2281 }
 0x26c   : > { %v2025_v61 = vsel %vm19798_vm1, %v2022_v47, %v2024_v60  ;;  %2049 = vmatpush1.msra.mxu1 %v2040_v55  ;;  %v2288_v25 = vsel %vm1416_vm5, 0.0, %v2282_v19  ;;  %v15135_v60 = vld [vmem:[%s17726_s21 + $0x30] sm:$0xff]  ;;  %vm5749_vm1 = vcmask 89088  }
 0x26d   : > { %v2030_v63 = vmul.f32 %v2025_v61, %v17959_v13  ;;  %15125 = vmatmul.mubr.msk.f32.vlgmr.msra.gmra.mrb[0].mxu1 %vm2044_vm10, %v15124_v56  ;;  %v2289_v28 = vmul.f32 %v2288_v25, %v18019_v44  ;;  %v2843_v25 = vld [vmem:[%s17736_s29 + $0x10] sm:$0xff] }
 0x26e   : > { %2186 = vmatprep.mubr.f32.mxu1 %v19801_v0 }
 0x26f   : > { %2122 = vmatprep.subr.mxu1 %v2030_v63  ;;  %v2196_v3 = vpop.permute.xlu1 %2195  ;;  %v2450_v29 = vpop.permute.xlu0 %2449 }
 0x270   : > { %v2197_v5 = vsel %vm1313_vm3, %v2194_v62, %v2196_v3  ;;  %2123 = vmatpush1.msra.mxu1 %v2029_v2  ;;  %v2454_v30 = vsel %vm19796_vm6, %v2450_v29, 0.0  ;;  %v15137_v3 = vld [vmem:[%s17726_s21 + $0x38] sm:$0xff] }
 0x271   : > { %v2202_v12 = vmul.f32 %v2197_v5, %v17984_v26  ;;  %v2456_v33 = vmul.f32 %v2454_v30, %v18035_v50 }
 0x273   : > { %2208 = vmatprep.subr.mxu1 %v2202_v12  ;;  %v2284_v20 = vpop.permute.xlu1 %2283  ;;  %v2538_v36 = vpop.permute.xlu0 %2537  ;;  %v2858_v12 = vld [vmem:[%s17736_s29 + $0x88] sm:$0xff] }
 0x274   : > { %v2285_v22 = vsel %vm1416_vm5, %v2282_v19, %v2284_v20  ;;  %v2542_v39 = vsel %vm19795_vm7, %v2538_v36, 0.0  ;;  %v16801_v19 = vpack.c.bf16 %v2858_v12, %v2857_v10  ;;  %v2842_v20 = vld [vmem:[%s17736_s29 + $0x8] sm:$0xff] }
 0x275   : > { %v2290_v24 = vmul.f32 %v2285_v22, %v18008_v38  ;;  %15126 = vmatmul.mubr.msk.f32.vlgmr.msra.gmra.mrb[0].mxu1 %vm2044_vm10, %v2031_v18  ;;  %v2841_v18 = vld [vmem:[%s17736_s29] sm:$0xff] }
 0x276   : > { %2209 = vmatpush1.msra.mxu1 %v2201_v21  ;;  %2272 = vmatprep.mubr.f32.mxu1 %v19801_v0  ;;  %v2860_v21 = vld [vmem:[%s17736_s29 + $0x98] sm:$0xff]  ;;  %v16803_v22 = vpack.c.bf16 %v2842_v20, %v2841_v18  ;;  %v2871_v18 = vld [vmem:[%s17736_s29 + $0xf0] sm:$0xff] }
 0x277   : > { %2296 = vmatprep.subr.mxu1 %v2290_v24  ;;  %v2448_v34 = vpop.permute.xlu1 %2447  ;;  %16802 = vmatprep.subr.bf16.mxu0 %v16801_v19  ;;  %v2872_v19 = vld [vmem:[%s17736_s29 + $0xf8] sm:$0xff] }
 0x278   : > { %v2451_v37 = vsel %vm19796_vm6, %v2448_v34, %v2450_v29  ;;  %v2862_v29 = vld [vmem:[%s17736_s29 + $0xa8] sm:$0xff]  ;;  %16804 = vmatpush3.bf16.msra.mxu0 %v16803_v22  ;;  %v2855_v22 = vld [vmem:[%s17736_s29 + $0x70] sm:$0xff] }
 0x279   : > { %v2455_v42 = vmul.f32 %v2451_v37, %v18049_v57  ;;  %v2846_v34 = vld [vmem:[%s17736_s29 + $0x28] sm:$0xff]  ;;  %v2864_v37 = vld [vmem:[%s17736_s29 + $0xb8] sm:$0xff] }
 0x27b   : > { %v2536_v45 = vpop.permute.xlu1 %2535 }
 0x27c   : > { %v2539_v46 = vsel %vm19795_vm7, %v2536_v45, %v2538_v36  ;;  %v2863_v36 = vld [vmem:[%s17736_s29 + $0xb0] sm:$0xff]  ;;  %v2865_v45 = vld [vmem:[%s17736_s29 + $0xc0] sm:$0xff]  ;;  %vm5040_vm7 = vcmask 23552  }
 0x27d   : > { %15128 = vmatmul.mubr.msk.f32.vlgmr.msra.gmra.mrb[0].mxu1 %vm2044_vm10, %v15127_v27  ;;  %v2543_v51 = vmul.f32 %v2539_v46, %v18069_v4  ;;  %v2844_v27 = vld [vmem:[%s17736_s29 + $0x18] sm:$0xff] }
 0x27e   : > { %2297 = vmatpush1.msra.mxu1 %v2289_v28  ;;  %2360 = vmatprep.mubr.f32.mxu1 %v19801_v0  ;;  %v2861_v28 = vld [vmem:[%s17736_s29 + $0xa0] sm:$0xff]  ;;  %v16807_v30 = vpack.c.bf16 %v2844_v27, %v2843_v25 }
 0x27f   : > { %2374 = vmatprep.subr.mxu1 %v2018_v43  ;;  %v2544_v43 = vmul.f32 %v2542_v39, %v18055_v59  ;;  %v2624_v53 = vpop.permute.xlu1 %2623 }
 0x283   : > { %v2712_v63 = vpop.permute.xlu1 %2711 }
 0x285   : > { %15130 = vmatmul.mubr.msk.f32.vlgmr.msra.gmra.mrb[0].mxu1 %vm2044_vm10, %v15129_v31  ;;  %v16809_v31 = vpack.c.bf16 %v2862_v29, %v2861_v28 }
 0x286   : > { %2375 = vmatpush1.msra.mxu1 %v18112_v41  ;;  %2438 = vmatprep.mubr.f32.mxu1 %v19801_v0  ;;  %v2626_v41 = vpop.permute.xlu0 %2625 }
 0x287   : > { %2462 = vmatprep.subr.mxu1 %v2456_v33  ;;  %v2630_v47 = vsel %vm19794_vm8, %v2626_v41, 0.0  ;;  %v2627_v56 = vsel %vm19794_vm8, %v2624_v53, %v2626_v41  ;;  %v2845_v33 = vld [vmem:[%s17736_s29 + $0x20] sm:$0xff]  ;;  %v2866_v41 = vld [vmem:[%s17736_s29 + $0xc8] sm:$0xff]  ;;  %v2867_v53 = vld [vmem:[%s17736_s29 + $0xd0] sm:$0xff] }
 0x288   : > { %v2632_v52 = vmul.f32 %v2630_v47, %v18075_v6  ;;  %v2631_v61 = vmul.f32 %v2627_v56, %v18086_v8  ;;  %v16811_v39 = vpack.c.bf16 %v2846_v34, %v2845_v33  ;;  %v16817_v47 = vpack.c.bf16 %v2866_v41, %v2865_v45 }
 0x28a   : > { %v2714_v55 = vpop.permute.xlu0 %2713 }
 0x28b   : > { %v2718_v58 = vsel %vm19777_vm9, %v2714_v55, 0.0  ;;  %v2715_v2 = vsel %vm19777_vm9, %v2712_v63, %v2714_v55  ;;  %v2868_v55 = vld [vmem:[%s17736_s29 + $0xd8] sm:$0xff]  ;;  %v2870_v63 = vld [vmem:[%s17736_s29 + $0xe8] sm:$0xff] }
 0x28c   : > { %v2720_v62 = vmul.f32 %v18091_v23, %v2718_v58  ;;  %v2719_v5 = vmul.f32 %v18101_v11, %v2715_v2  ;;  %v15139_v23 = vld [vmem:[%s17726_s21 + $0x40] sm:$0xff]  ;;  %v2859_v11 = vld [vmem:[%s17736_s29 + $0x90] sm:$0xff]  ;;  %v16821_v56 = vpack.c.bf16 %v2868_v55, %v2867_v53 }
 0x28d   : > { %15132 = vmatmul.mubr.msk.f32.vlgmr.msra.gmra.mrb[0].mxu1 %vm2044_vm10, %v15131_v40  ;;  %v16805_v24 = vpack.c.bf16 %v2860_v21, %v2859_v11  ;;  %v16813_v40 = vpack.c.bf16 %v2864_v37, %v2863_v36  ;;  %v2851_v58 = vld [vmem:[%s17736_s29 + $0x50] sm:$0xff]  ;;  %v16829_v21 = vpack.c.bf16 %v2872_v19, %v2871_v18 }
 0x28e   : > { %2463 = vmatpush1.msra.mxu1 %v2455_v42  ;;  %2526 = vmatprep.mubr.f32.mxu1 %v19801_v0  ;;  %v2847_v42 = vld [vmem:[%s17736_s29 + $0x30] sm:$0xff]  ;;  %v2803_v10 = vpop.permute.xlu0 %2802 }
 0x28f   : > { %2550 = vmatprep.subr.mxu1 %v2544_v43  ;;  %16806 = vmatprep.subr.bf16.mxu0 %v16805_v24  ;;  %v2848_v43 = vld [vmem:[%s17736_s29 + $0x38] sm:$0xff]  ;;  %v15141_v55 = vld [vmem:[%s19849_s8 + $0x10] sm:$0xff] }
 0x290   : > { %16808 = vmatpush3.bf16.msra.mxu0 %v16807_v30  ;;  %v16815_v46 = vpack.c.bf16 %v2848_v43, %v2847_v42  ;;  %v2856_v24 = vld [vmem:[%s17736_s29 + $0x78] sm:$0xff] }
 0x291   : > { %16810 = vmatprep.subr.bf16.mxu0 %v16809_v31  ;;  %v16831_v27 = vpack.c.bf16 %v2856_v24, %v2855_v22  ;;  %v2956_v22 = vld [vmem:[%s19849_s8] sm:$0xff] }
 0x294   : > { %16812 = vmatpush3.bf16.msra.mxu0 %v16811_v39 }
 0x295   : > { %15134 = vmatmul.mubr.msk.f32.vlgmr.msra.gmra.mrb[0].mxu1 %vm2044_vm10, %v15133_v49  ;;  %16814 = vmatprep.subr.bf16.mxu0 %v16813_v40  ;;  %v2849_v49 = vld [vmem:[%s17736_s29 + $0x40] sm:$0xff] }
 0x296   : > { %2551 = vmatpush1.msra.mxu1 %v2543_v51  ;;  %2614 = vmatprep.mubr.f32.mxu1 %v19801_v0  ;;  %v2850_v51 = vld [vmem:[%s17736_s29 + $0x48] sm:$0xff] }
 0x297   : > { %2638 = vmatprep.subr.mxu1 %v2632_v52  ;;  %v16819_v52 = vpack.c.bf16 %v2850_v51, %v2849_v49 }
 0x298   : > { %16816 = vmatpush3.bf16.msra.mxu0 %v16815_v46 }
 0x299   : > { %16818 = vmatprep.subr.bf16.mxu0 %v16817_v47 }
 0x29c   : > { %16820 = vmatpush3.bf16.msra.mxu0 %v16819_v52 }
 0x29d   : > { %15136 = vmatmul.mubr.msk.f32.vlgmr.msra.gmra.mrb[0].mxu1 %vm2044_vm10, %v15135_v60  ;;  %v2852_v60 = vld [vmem:[%s17736_s29 + $0x58] sm:$0xff]  ;;  %16822 = vmatprep.subr.bf16.mxu0 %v16821_v56 }
 0x29e   : > { %2639 = vmatpush1.msra.mxu1 %v2631_v61  ;;  %2702 = vmatprep.mubr.f32.mxu1 %v19801_v0  ;;  %v16823_v61 = vpack.c.bf16 %v2852_v60, %v2851_v58 }
 0x29f   : > { %2726 = vmatprep.subr.mxu1 %v2720_v62  ;;  %v2869_v62 = vld [vmem:[%s17736_s29 + $0xe0] sm:$0xff] }
 0x2a0   : > { %16824 = vmatpush3.bf16.msra.mxu0 %v16823_v61  ;;  %v16825_v2 = vpack.c.bf16 %v2870_v63, %v2869_v62  ;;  %v3794_v61 = vld [vmem:[%s17751_s14 + $0x8] sm:$0xff]  ;;  %v3793_v62 = vld [vmem:[%s17751_s14] sm:$0xff] }
 0x2a1   : > { %v18295_v63 = vld [vmem:[%s19847_s3] sm:$0xff] }
 0x2a2   : > { %16826 = vmatprep.subr.bf16.mxu0 %v16825_v2  ;;  %v18299_v2 = vrot.slane %v18295_v63, %v17952_v9  ;;  %v18309_v18 = vrot.slane %v18295_v63, %v17966_v15 }
 0x2a5   : > { %15138 = vmatmul.mubr.msk.f32.vlgmr.msra.gmra.mrb[0].mxu1 %vm2044_vm10, %v15137_v3  ;;  %v2853_v3 = vld [vmem:[%s17736_s29 + $0x60] sm:$0xff] }
 0x2a6   : > { %2727 = vmatpush1.msra.mxu1 %v2719_v5  ;;  %2790 = vmatprep.mubr.f32.mxu1 %v19801_v0  ;;  %v2854_v5 = vld [vmem:[%s17736_s29 + $0x68] sm:$0xff] }
 0x2ad   : > { %15140 = vmatmul.mubr.msk.f32.vlgmr.msra.gmra.mrb[0].mxu1 %vm2044_vm10, %v15139_v23  ;;  %v16827_v23 = vpack.c.bf16 %v2854_v5, %v2853_v3  ;;  %v18303_v3 = vrot.slane %v18295_v63, %v17946_v7 }
 0x2ae   : > { %16081 = vmatprep.mubr.msk.f32.mxu1 %vm2044_vm10, %v15141_v55 }
 0x2af   : > { %16828 = vmatpush3.bf16.msra.mxu0 %v16827_v23 }
 0x2b0   : > { %16830 = vmatprep.subr.bf16.mxu0 %v16829_v21 }
 0x2b3   : > { %16832 = vmatpush3.bf16.msra.mxu0 %v16831_v27 }
 0x380   : > { %v2792_v12 = vpop.f32.mrb[0].mxu1 }
 0x381   : > { %v2805_v20 = vadd.f32 %v2803_v10, %v2792_v12  ;;  %v2794_v11 = vpop.f32.mrb[1].mxu1 }
 0x382   : > { %v2806_v25 = vadd.f32 %v2803_v10, %v2794_v11 }
 0x383   : > { %v18230_v28 = vmax.f32 %v2805_v20, 0.0  ;;  %v15142_v20 = vld [vmem:[%s19849_s8 + $0x18] sm:$0xff] }
 0x384   : > { %v18232_v29 = vmax.f32 %v2806_v25, 0.0 }
 0x385   : > { %2811 = vrot.lane.b32.xlu0 %v18230_v28, %s19805_s16 }
 0x386   : > { %2813 = vrot.lane.b32.xlu1 %v18232_v29, %s19805_s16 }
 0x389   : > { %2823 = vrot.lane.b32.xlu0 %v18232_v29, %s19773_s22 }
 0x38a   : > { %2831 = vrot.lane.b32.xlu1 %v18232_v29, %s19771_s23 }
 0x38d   : > { %2829 = vrot.lane.b32.xlu0 %v18230_v28, %s19771_s23  ;;  %s19788_s23 = smov 121  }
 0x38e   : > { %2821 = vrot.lane.b32.xlu1 %v18230_v28, %s19773_s22  ;;  %s19784_s22 = smov 119  }
 0x3f7   : > { %v2812_v30 = vpop.permute.xlu0 %2811 }
 0x3f8   : > { %v2814_v31 = vpop.permute.xlu1 %2813 }
 0x3f9   : > { %v18247_v33 = vsel %vm19796_vm6, %v2814_v31, 0.0  ;;  %v18260_v43 = vsel %vm19796_vm6, %v2812_v30, %v2814_v31  ;;  %v18321_v30 = vrot.slane %v18295_v63, %v17991_v32  ;;  %vm5507_vm6 = vcmask 105472  }
 0x3fa   : > { %v2820_v40 = vmax.f32 %v18232_v29, %v18247_v33  ;;  %v2819_v51 = vmax.f32 %v18230_v28, %v18260_v43 }
 0x3fb   : > { %v2824_v34 = vpop.permute.xlu0 %2823 }
 0x3fc   : > { %v18250_v36 = vsel %vm19794_vm8, %v2824_v34, 0.0  ;;  %v2832_v37 = vpop.permute.xlu1 %2831 }
 0x3fd   : > { %v18253_v39 = vsel %vm19777_vm9, %v2832_v37, 0.0 }
 0x3fe   : > { %v2838_v42 = vmax.f32 %v18250_v36, %v18253_v39 }
 0x3ff   : > { %v2830_v45 = vpop.permute.xlu0 %2829 }
 0x400   : > { %v18263_v41 = vsel %vm19777_vm9, %v2830_v45, %v2832_v37  ;;  %v2822_v46 = vpop.permute.xlu1 %2821  ;;  %v2840_v47 = vmax.f32 %v2820_v40, %v2838_v42  ;;  %v15147_v37 = vld [vmem:[%s19849_s8 + $0x20] sm:$0xff]  ;;  %v15148_v42 = vld [vmem:[%s19849_s8 + $0x28] sm:$0xff]  ;;  %v15151_v45 = vld [vmem:[%s19849_s8 + $0x30] sm:$0xff]  ;;  %vm19797_vm9 = vcmask 523264  }
 0x401   : > { %19851 = vst [vmem:[#allocation26_spill] sm:$0xff] %v18263_v41  ;;  %v18266_v49 = vsel %vm19794_vm8, %v2822_v46, %v2824_v34  ;;  %v2957_v34 = vld [vmem:[%s19849_s8 + $0x8] sm:$0xff]  ;;  %vm4808_vm8 = vcmask 39936  }
 0x402   : > { %v2837_v52 = vmax.f32 %v18266_v49, %v18263_v41  ;;  %2937 = vmatprep.mubr.f32.mxu0 %v2840_v47  ;;  %v18336_v47 = vrot.slane %v18295_v63, %v18026_v48 }
 0x404   : > { %v2839_v53 = vmax.f32 %v2819_v51, %v2837_v52  ;;  %v15152_v52 = vld [vmem:[%s19849_s8 + $0x38] sm:$0xff] }
 0x406   : > { %2938 = vmatmul.mubr.f32.vlgmr.msra.gmra.mrb[2].mxu0 %v2839_v53  ;;  %v15155_v53 = vld [vmem:[%s19849_s8 + $0x40] sm:$0xff] }
 0x4d9   : > { %v15672_v56 = vpop.f32.mrb[2].mxu0 }
 0x4da   : > { %v15673_v58 = vpop.f32.mrb[3].mxu0 }
 0x4db   : > { %v18274_v60 = vadd.f32 %v15673_v58, %v15672_v56  ;;  %v18347_v58 = vrot.slane %v18295_v63, %v18041_v54 }
 0x4dd   : > { %2946 = vrot.lane.b32.xlu0 %v18274_v60, %s19799_s26  ;;  %2958 = vrot.lane.b32.xlu1 %v18274_v60, %s19792_s2 }
 0x4e1   : > { %3228 = vrot.lane.b32.xlu0 %v18274_v60, %s19807_s15  ;;  %3132 = vrot.lane.b32.xlu1 %v18274_v60, %s19790_s0 }
 0x4e5   : > { %3505 = vrot.lane.b32.xlu0 %v18274_v60, %s19788_s23  ;;  %3409 = vrot.lane.b32.xlu1 %v18274_v60, %s19805_s16 }
 0x4e9   : > { %3697 = vrot.lane.b32.xlu0 %v18274_v60, %s19784_s22  ;;  %3601 = vrot.lane.b32.xlu1 %v18274_v60, %s19786_s18 }
 0x4ed   : > { %3802 = vperm.xlu0 %17624, %v3794_v61   ;;  %3797 = vperm.xlu1 %17625, %v3793_v62   ;;  %v15156_v62 = vld [vmem:[%s19849_s8 + $0x48] sm:$0xff] }
 0x54f   : > { %v2947_v5 = vpop.permute.xlu0 %2946  ;;  %v2959_v23 = vpop.permute.xlu1 %2958 }
 0x550   : > { %v2950_v10 = vsel %vm2949_vm11, 0.0, %v2947_v5  ;;  %v2961_v12 = vsel %vm2044_vm10, 0.0, %v2959_v23  ;;  %v15159_v5 = vld [vmem:[%s19849_s8 + $0x50] sm:$0xff] }
 0x551   : > { %v2966_v19 = vmul.f32 %v18299_v2, %v2961_v12  ;;  %v2955_v11 = vmul.f32 %v18303_v3, %v2950_v10  ;;  %v18357_v10 = vrot.slane %v18295_v63, %v18062_v1 }
 0x553   : > { %16079 = vmatprep.subr.mxu1 %v2966_v19  ;;  %v3133_v21 = vpop.permute.xlu1 %3132  ;;  %v3229_v27 = vpop.permute.xlu0 %3228 }
 0x554   : > { %v3136_v24 = vsel %vm3135_vm12, 0.0, %v3133_v21  ;;  %16080 = vmatpush3.msra.mxu1 %v2966_v19  ;;  %v3231_v31 = vsel %vm1416_vm5, 0.0, %v3229_v27  ;;  %v15160_v19 = vld [vmem:[%s19849_s8 + $0x58] sm:$0xff] }
 0x555   : > { %v3141_v25 = vmul.f32 %v18309_v18, %v3136_v24  ;;  %16082 = vmatmul.mubr.msk.f32.vlgmr.msra.gmra.mrb[2].mxu1 %vm2044_vm10, %v15142_v20  ;;  %16084 = vmatprep.subr.mxu1 %v2955_v11  ;;  %v3236_v40 = vmul.f32 %v18321_v30, %v3231_v31  ;;  %v15163_v20 = vld [vmem:[%s19849_s8 + $0x60] sm:$0xff]  ;;  %v15164_v24 = vld [vmem:[%s19849_s8 + $0x68] sm:$0xff]  ;;  %v15168_v31 = vld [vmem:[%s19849_s8 + $0x78] sm:$0xff] }
 0x556   : > { %16085 = vmatpush3.msra.mxu1 %v2955_v11  ;;  %16086 = vmatprep.mubr.msk.f32.mxu1 %vm2044_vm10, %v2956_v22  ;;  %v18366_v22 = vld [vmem:[%s19847_s3 + $0x8] ss:$0 sm:$0xff] }
 0x557   : > { %16089 = vmatprep.subr.mxu1 %v3141_v25  ;;  %v3410_v46 = vpop.permute.xlu1 %3409  ;;  %v3506_v56 = vpop.permute.xlu0 %3505 }
 0x558   : > { %v3413_v51 = vsel %vm3412_vm13, %v3410_v46, 0.0  ;;  %v3509_v61 = vsel %vm3508_vm14, %v3506_v56, 0.0 }
 0x559   : > { %v3418_v55 = vmul.f32 %v18336_v47, %v3413_v51  ;;  %v3514_v23 = vmul.f32 %v18347_v58, %v3509_v61 }
 0x55b   : > { %v3698_v21 = vpop.permute.xlu0 %3697 }
 0x55c   : > { %v3701_v63 = vsel %vm19803_vm2, %v3698_v21, 0.0 }
 0x55d   : > { %16087 = vmatmul.mubr.msk.f32.vlgmr.msra.gmra.mrb[2].mxu1 %vm2044_vm10, %v2957_v34  ;;  %v3706_v27 = vmul.f32 %v18366_v22, %v3701_v63  ;;  %v15172_v34 = vld [vmem:[%s19849_s8 + $0x80] sm:$0xff] }
 0x55e   : > { %16090 = vmatpush3.msra.mxu1 %v3141_v25  ;;  %16091 = vmatprep.mubr.msk.f32.mxu1 %vm2044_vm10, %v15147_v37  ;;  %v15167_v25 = vld [vmem:[%s19849_s8 + $0x70] sm:$0xff]  ;;  %v15173_v37 = vld [vmem:[%s19849_s8 + $0x88] sm:$0xff]  ;;  %s19866_s8 = smov 127  }
 0x55f   : > { %16094 = vmatprep.subr.mxu1 %v3236_v40 }
 0x565   : > { %16092 = vmatmul.mubr.msk.f32.vlgmr.msra.gmra.mrb[2].mxu1 %vm2044_vm10, %v15148_v42 }
 0x566   : > { %16095 = vmatpush3.msra.mxu1 %v3236_v40  ;;  %16096 = vmatprep.mubr.msk.f32.mxu1 %vm2044_vm10, %v15151_v45 }
 0x567   : > { %16099 = vmatprep.subr.mxu1 %v18274_v60 }
 0x56c   : > { %v3803_v42 = vpop.permute.xlu0 %3802 }
 0x56d   : > { %16097 = vmatmul.mubr.msk.f32.vlgmr.msra.gmra.mrb[2].mxu1 %vm2044_vm10, %v15152_v52  ;;  %v15176_v52 = vld [vmem:[%s17756_s19 + $0x10] sm:$0xff] }
 0x56e   : > { %16100 = vmatpush3.msra.mxu1 %v18274_v60  ;;  %16101 = vmatprep.mubr.msk.f32.mxu1 %vm2044_vm10, %v15155_v53  ;;  %v3602_v60 = vpop.permute.xlu1 %3601 }
 0x56f   : > { %16104 = vmatprep.subr.mxu1 %v3418_v55  ;;  %v3605_v12 = vsel %vm3604_vm15, %v3602_v60, 0.0  ;;  %16128 = vmatprep.mubr.msk.f32.mxu0 %vm1130_vm0, %v15176_v52 }
 0x570   : > { %v3610_v11 = vmul.f32 %v18357_v10, %v3605_v12 }
 0x572   : > { %v3798_v40 = vpop.permute.xlu1 %3797 }
 0x575   : > { %16102 = vmatmul.mubr.msk.f32.vlgmr.msra.gmra.mrb[2].mxu1 %vm2044_vm10, %v15156_v62  ;;  %v4661_v62 = vld [vmem:[%s17761_s24 + $0x8] sm:$0xff] }
 0x576   : > { %16105 = vmatpush3.msra.mxu1 %v3418_v55  ;;  %16106 = vmatprep.mubr.msk.f32.mxu1 %vm2044_vm10, %v15159_v5  ;;  %v4660_v5 = vld [vmem:[%s17761_s24] sm:$0xff] }
 0x577   : > { %16109 = vmatprep.subr.mxu1 %v3514_v23 }
 0x57d   : > { %16107 = vmatmul.mubr.msk.f32.vlgmr.msra.gmra.mrb[2].mxu1 %vm2044_vm10, %v15160_v19 }
 0x57e   : > { %16110 = vmatpush3.msra.mxu1 %v3514_v23  ;;  %16111 = vmatprep.mubr.msk.f32.mxu1 %vm2044_vm10, %v15163_v20 }
 0x57f   : > { %16114 = vmatprep.subr.mxu1 %v3610_v11 }
 0x585   : > { %16112 = vmatmul.mubr.msk.f32.vlgmr.msra.gmra.mrb[2].mxu1 %vm2044_vm10, %v15164_v24 }
 0x586   : > { %16115 = vmatpush3.msra.mxu1 %v3610_v11  ;;  %16116 = vmatprep.mubr.msk.f32.mxu1 %vm2044_vm10, %v15167_v25 }
 0x587   : > { %16119 = vmatprep.subr.mxu1 %v3706_v27 }
 0x58d   : > { %16117 = vmatmul.mubr.msk.f32.vlgmr.msra.gmra.mrb[2].mxu1 %vm2044_vm10, %v15168_v31 }
 0x58e   : > { %16120 = vmatpush3.msra.mxu1 %v3706_v27  ;;  %16121 = vmatprep.mubr.msk.f32.mxu1 %vm2044_vm10, %v15172_v34 }
 0x595   : > { %16122 = vmatmul.mubr.msk.f32.vlgmr.msra.gmra.mrb[2].mxu1 %vm2044_vm10, %v15173_v37 }
 0x668   : > { %v16123_v45 = vpop.f32.mrb[2].mxu1 }
 0x669   : > { %v3806_v46 = vadd.f32 %v16123_v45, %v3803_v42  ;;  %v3782_v51 = vpop.f32.mrb[3].mxu1 }
 0x66a   : > { %v3805_v53 = vadd.f32 %v3798_v40, %v3782_v51  ;;  %v15177_v40 = vld [vmem:[%s17756_s19 + $0x18] sm:$0xff]  ;;  %v3821_v51 = vld [vmem:[%s17756_s19] sm:$0xff] }
 0x66b   : > { %v3808_v55 = vmax.f32 %v3806_v46, 0.0 }
 0x66c   : > { %v3807_v56 = vmax.f32 %v3805_v53, 0.0 }
 0x66d   : > { %3825 = vrot.lane.b32.xlu0 %v3808_v55, %s19792_s2 }
 0x66e   : > { %3823 = vrot.lane.b32.xlu1 %v3807_v56, %s19792_s2  ;;  %v18384_v61 = vpack.c.bf16 %v3808_v55, %v3807_v56  ;;  %s17695_s2 = smov 123  }
 0x671   : > { %3813 = vrot.lane.b32.xlu0 %v3808_v55, %s19799_s26 }
 0x672   : > { %3811 = vrot.lane.b32.xlu1 %v3807_v56, %s19799_s26  ;;  %s19854_s26 = sld [smem:[#allocation9_spill]] }
 0x675   : > { %4000 = vrot.lane.b32.xlu0 %v3808_v55, %s19790_s0 }
 0x676   : > { %3998 = vrot.lane.b32.xlu1 %v3807_v56, %s19790_s0  ;;  %s19853_s0 = sld [smem:[#allocation6_spill]] }
 0x678   : > { %v15281_v0 = vld [vmem:[%s19854_s26 + $0x20] sm:$0xff] }
 0x679   : > { %4096 = vrot.lane.b32.xlu0 %v3808_v55, %s19807_s15 }
 0x67a   : > { %4094 = vrot.lane.b32.xlu1 %v3807_v56, %s19807_s15 }
 0x67d   : > { %4278 = vrot.lane.b32.xlu0 %v3808_v55, %s19805_s16 }
 0x67e   : > { %4276 = vrot.lane.b32.xlu1 %v3807_v56, %s19805_s16 }
 0x681   : > { %4374 = vrot.lane.b32.xlu0 %v3808_v55, %s19788_s23 }
 0x682   : > { %4372 = vrot.lane.b32.xlu1 %v3807_v56, %s19788_s23  ;;  %s17694_s23 = smov 4  }
 0x685   : > { %4470 = vrot.lane.b32.xlu0 %v3808_v55, %s19786_s18 }
 0x686   : > { %4468 = vrot.lane.b32.xlu1 %v3807_v56, %s19786_s18 }
 0x689   : > { %4566 = vrot.lane.b32.xlu0 %v3808_v55, %s19784_s22 }
 0x68a   : > { %4564 = vrot.lane.b32.xlu1 %v3807_v56, %s19784_s22 }
 0x68d   : > { %4669 = vperm.xlu0 %17624, %v4661_v62  }
 0x68e   : > { %4664 = vperm.xlu1 %17625, %v4660_v5  }
 0x6df   : > { %v3826_v23 = vpop.permute.xlu0 %3825 }
 0x6e0   : > { %v3830_v60 = vsel %vm2044_vm10, 0.0, %v3826_v23  ;;  %v3824_v12 = vpop.permute.xlu1 %3823 }
 0x6e1   : > { %v3832_v19 = vmul.f32 %v3830_v60, %v18299_v2  ;;  %v3829_v20 = vsel %vm2044_vm10, 0.0, %v3824_v12 }
 0x6e2   : > { %v3831_v11 = vmul.f32 %v3829_v20, %v18299_v2  ;;  %v3822_v20 = vld [vmem:[%s17756_s19 + $0x8] sm:$0xff] }
 0x6e3   : > { %v3814_v21 = vpop.permute.xlu0 %3813 }
 0x6e4   : > { %v3818_v63 = vsel %vm2949_vm11, 0.0, %v3814_v21  ;;  %v3812_v24 = vpop.permute.xlu1 %3811  ;;  %v16833_v25 = vpack.c.bf16 %v3832_v19, %v3831_v11  ;;  %v15182_v21 = vld [vmem:[%s17756_s19 + $0x20] sm:$0xff] }
 0x6e5   : > { %v3820_v27 = vmul.f32 %v3818_v63, %v18303_v3  ;;  %v3817_v31 = vsel %vm2949_vm11, 0.0, %v3812_v24  ;;  %v15183_v63 = vld [vmem:[%s17756_s19 + $0x28] sm:$0xff] }
 0x6e6   : > { %v3819_v34 = vmul.f32 %v3817_v31, %v18303_v3  ;;  %16834 = vmatprep.subr.bf16.mxu0 %v16833_v25 }
 0x6e7   : > { %v4001_v37 = vpop.permute.xlu0 %4000  ;;  %16836 = vmatpush3.bf16.msra.mxu0 %v16833_v25 }
 0x6e8   : > { %v4005_v42 = vsel %vm3135_vm12, 0.0, %v4001_v37  ;;  %v3999_v45 = vpop.permute.xlu1 %3998  ;;  %v16837_v46 = vpack.c.bf16 %v3820_v27, %v3819_v34  ;;  %v15186_v27 = vld [vmem:[%s17756_s19 + $0x30] sm:$0xff] }
 0x6e9   : > { %v4007_v52 = vmul.f32 %v4005_v42, %v18309_v18  ;;  %v4004_v53 = vsel %vm3135_vm12, 0.0, %v3999_v45  ;;  %v15187_v42 = vld [vmem:[%s17756_s19 + $0x38] sm:$0xff] }
 0x6ea   : > { %v4006_v55 = vmul.f32 %v4004_v53, %v18309_v18  ;;  %16129 = vmatmul.mubr.msk.f32.vlgmr.msra.gmra.mrb[4].mxu0 %vm1130_vm0, %v15177_v40  ;;  %16838 = vmatprep.subr.bf16.mxu0 %v16837_v46 }
 0x6eb   : > { %v4097_v56 = vpop.permute.xlu0 %4096  ;;  %16840 = vmatpush3.bf16.msra.mxu0 %v16837_v46  ;;  %16135 = vmatprep.mubr.msk.f32.mxu0 %vm1130_vm0, %v3821_v51  ;;  %v15190_v51 = vld [vmem:[%s17756_s19 + $0x40] sm:$0xff] }
 0x6ec   : > { %v4101_v62 = vsel %vm1416_vm5, 0.0, %v4097_v56  ;;  %v4095_v5 = vpop.permute.xlu1 %4094  ;;  %v16841_v23 = vpack.c.bf16 %v4007_v52, %v4006_v55 }
 0x6ed   : > { %v4103_v60 = vmul.f32 %v4101_v62, %v18321_v30  ;;  %v4100_v12 = vsel %vm1416_vm5, 0.0, %v4095_v5  ;;  %v15191_v5 = vld [vmem:[%s17756_s19 + $0x48] sm:$0xff] }
 0x6ee   : > { %v4102_v19 = vmul.f32 %v4100_v12, %v18321_v30  ;;  %16842 = vmatprep.subr.bf16.mxu0 %v16841_v23  ;;  %v15194_v12 = vld [vmem:[%s17756_s19 + $0x50] sm:$0xff] }
 0x6ef   : > { %v4279_v24 = vpop.permute.xlu0 %4278 }
 0x6f0   : > { %v16845_v11 = vpack.c.bf16 %v4103_v60, %v4102_v19  ;;  %v4277_v25 = vpop.permute.xlu1 %4276  ;;  %v4283_v31 = vsel %vm3412_vm13, %v4279_v24, 0.0 }
 0x6f1   : > { %v4282_v34 = vsel %vm3412_vm13, %v4277_v25, 0.0  ;;  %v4285_v37 = vmul.f32 %v4283_v31, %v18336_v47 }
 0x6f2   : > { %16136 = vmatmul.mubr.msk.f32.vlgmr.msra.gmra.mrb[4].mxu0 %vm1130_vm0, %v3822_v20  ;;  %v4284_v40 = vmul.f32 %v4282_v34, %v18336_v47 }
 0x6f3   : > { %16844 = vmatpush3.bf16.msra.mxu0 %v16841_v23  ;;  %16142 = vmatprep.mubr.msk.f32.mxu0 %vm1130_vm0, %v15182_v21  ;;  %v4375_v45 = vpop.permute.xlu0 %4374 }
 0x6f4   : > { %16846 = vmatprep.subr.bf16.mxu0 %v16845_v11  ;;  %v4373_v46 = vpop.permute.xlu1 %4372  ;;  %v16853_v52 = vpack.c.bf16 %v4285_v37, %v4284_v40  ;;  %v4379_v53 = vsel %vm3508_vm14, %v4375_v45, 0.0  ;;  %v15199_v45 = vld [vmem:[%s17756_s19 + $0x68] sm:$0xff] }
 0x6f5   : > { %v4378_v55 = vsel %vm3508_vm14, %v4373_v46, 0.0  ;;  %v4381_v56 = vmul.f32 %v4379_v53, %v18347_v58  ;;  %v15202_v46 = vld [vmem:[%s17756_s19 + $0x70] sm:$0xff]  ;;  %v15206_v53 = vld [vmem:[%s17756_s19 + $0x80] sm:$0xff] }
 0x6f6   : > { %v4380_v62 = vmul.f32 %v4378_v55, %v18347_v58  ;;  %v15207_v55 = vld [vmem:[%s17756_s19 + $0x88] sm:$0xff] }
 0x6f7   : > { %v4471_v23 = vpop.permute.xlu0 %4470 }
 0x6f8   : > { %v4469_v60 = vpop.permute.xlu1 %4468  ;;  %v16857_v19 = vpack.c.bf16 %v4381_v56, %v4380_v62  ;;  %v4475_v20 = vsel %vm3604_vm15, %v4471_v23, 0.0  ;;  %v4708_v56 = vld [vmem:[%s17766_s30] sm:$0xff]  ;;  %v4709_v62 = vld [vmem:[%s17766_s30 + $0x8] sm:$0xff]  ;;  %v4710_v23 = vld [vmem:[%s17766_s30 + $0x10] sm:$0xff] }
 0x6fa   : > { %16143 = vmatmul.mubr.msk.f32.vlgmr.msra.gmra.mrb[4].mxu0 %vm1130_vm0, %v15183_v63  ;;  %v15195_v63 = vld [vmem:[%s17756_s19 + $0x58] sm:$0xff] }
 0x6fb   : > { %16848 = vmatpush3.bf16.msra.mxu0 %v16845_v11  ;;  %16149 = vmatprep.mubr.msk.f32.mxu0 %vm1130_vm0, %v15186_v27  ;;  %v4477_v11 = vmul.f32 %v4475_v20, %v18357_v10  ;;  %v4567_v24 = vpop.permute.xlu0 %4566  ;;  %v15198_v27 = vld [vmem:[%s17756_s19 + $0x60] sm:$0xff]  ;;  %v4713_v20 = vld [vmem:[%s17766_s30 + $0x28] sm:$0xff] }
 0x6fc   : > { %16850 = vmatprep.subr.bf16.mxu0 %v18384_v61  ;;  %v4565_v25 = vpop.permute.xlu1 %4564  ;;  %v4571_v34 = vsel %vm19803_vm2, %v4567_v24, 0.0  ;;  %v4715_v24 = vld [vmem:[%s17766_s30 + $0x38] sm:$0xff] }
 0x6fd   : > { %v4570_v37 = vsel %vm19803_vm2, %v4565_v25, 0.0  ;;  %v4573_v40 = vmul.f32 %v18366_v22, %v4571_v34 }
 0x702   : > { %16150 = vmatmul.mubr.msk.f32.vlgmr.msra.gmra.mrb[4].mxu0 %vm1130_vm0, %v15187_v42  ;;  %v4572_v42 = vmul.f32 %v18366_v22, %v4570_v37 }
 0x703   : > { %16852 = vmatpush3.bf16.msra.mxu0 %v18384_v61  ;;  %16156 = vmatprep.mubr.msk.f32.mxu0 %vm1130_vm0, %v15190_v51  ;;  %v4474_v61 = vsel %vm3604_vm15, %v4469_v60, 0.0  ;;  %v4711_v60 = vld [vmem:[%s17766_s30 + $0x18] sm:$0xff] }
 0x704   : > { %16854 = vmatprep.subr.bf16.mxu0 %v16853_v52  ;;  %v4476_v21 = vmul.f32 %v4474_v61, %v18357_v10  ;;  %v16865_v51 = vpack.c.bf16 %v4573_v40, %v4572_v42 }
 0x706   : > { %v16861_v31 = vpack.c.bf16 %v4477_v11, %v4476_v21 }
 0x70a   : > { %16157 = vmatmul.mubr.msk.f32.vlgmr.msra.gmra.mrb[4].mxu0 %vm1130_vm0, %v15191_v5  ;;  %v16869_v5 = vpack.c.bf16 %v4709_v62, %v4708_v56 }
 0x70b   : > { %16856 = vmatpush3.bf16.msra.mxu0 %v16853_v52  ;;  %16163 = vmatprep.mubr.msk.f32.mxu0 %vm1130_vm0, %v15194_v12  ;;  %v15203_v52 = vld [vmem:[%s17756_s19 + $0x78] sm:$0xff]  ;;  %v16873_v12 = vpack.c.bf16 %v4711_v60, %v4710_v23 }
 0x70c   : > { %16858 = vmatprep.subr.bf16.mxu0 %v16857_v19  ;;  %16870 = vmatprep.subr.bf16.mxu1 %v16869_v5  ;;  %v4670_v11 = vpop.permute.xlu0 %4669 }
 0x70d   : > { %16872 = vmatpush3.bf16.msra.mxu1 %v16869_v5  ;;  %v4665_v25 = vpop.permute.xlu1 %4664 }
 0x70e   : > { %16874 = vmatprep.subr.bf16.mxu1 %v16873_v12 }
 0x711   : > { %16876 = vmatpush3.bf16.msra.mxu1 %v16873_v12 }
 0x712   : > { %16164 = vmatmul.mubr.msk.f32.vlgmr.msra.gmra.mrb[4].mxu0 %vm1130_vm0, %v15195_v63  ;;  %v4714_v63 = vld [vmem:[%s17766_s30 + $0x30] sm:$0xff] }
 0x713   : > { %16860 = vmatpush3.bf16.msra.mxu0 %v16857_v19  ;;  %16170 = vmatprep.mubr.msk.f32.mxu0 %vm1130_vm0, %v15198_v27  ;;  %v4712_v19 = vld [vmem:[%s17766_s30 + $0x20] sm:$0xff]  ;;  %v16881_v34 = vpack.c.bf16 %v4715_v24, %v4714_v63 }
 0x714   : > { %16862 = vmatprep.subr.bf16.mxu0 %v16861_v31  ;;  %v16877_v61 = vpack.c.bf16 %v4713_v20, %v4712_v19 }
 0x716   : > { %16878 = vmatprep.subr.bf16.mxu1 %v16877_v61 }
 0x717   : > { %16880 = vmatpush3.bf16.msra.mxu1 %v16877_v61 }
 0x718   : > { %16882 = vmatprep.subr.bf16.mxu1 %v16881_v34 }
 0x71a   : > { %16171 = vmatmul.mubr.msk.f32.vlgmr.msra.gmra.mrb[4].mxu0 %vm1130_vm0, %v15199_v45 }
 0x71b   : > { %16864 = vmatpush3.bf16.msra.mxu0 %v16861_v31  ;;  %16177 = vmatprep.mubr.msk.f32.mxu0 %vm1130_vm0, %v15202_v46 }
 0x71c   : > { %16866 = vmatprep.subr.bf16.mxu0 %v16865_v51  ;;  %16884 = vmatpush3.bf16.msra.mxu1 %v16881_v34 }
 0x722   : > { %16178 = vmatmul.mubr.msk.f32.vlgmr.msra.gmra.mrb[4].mxu0 %vm1130_vm0, %v15203_v52 }
 0x723   : > { %16868 = vmatpush3.bf16.msra.mxu0 %v16865_v51  ;;  %16184 = vmatprep.mubr.msk.f32.mxu0 %vm1130_vm0, %v15206_v53 }
 0x72a   : > { %16185 = vmatmul.mubr.msk.f32.vlgmr.msra.gmra.mrb[4].mxu0 %vm1130_vm0, %v15207_v55 }
 0x7fd   : > { %v16186_v21 = vpop.f32.mrb[4].mxu0 }
 0x7fe   : > { %v4673_v27 = vadd.f32 %v16186_v21, %v4670_v11  ;;  %v4649_v31 = vpop.f32.mrb[5].mxu0 }
 0x7ff   : > { %v4672_v37 = vadd.f32 %v4665_v25, %v4649_v31 }
 0x800   : > { %v18478_v40 = vmax.f32 %v4673_v27, 0.0 }
 0x801   : > { %v18480_v42 = vmax.f32 %v4672_v37, 0.0 }
 0x802   : > { %4680 = vrot.lane.b32.xlu0 %v18478_v40, %s19805_s16 }
 0x803   : > { %4678 = vrot.lane.b32.xlu1 %v18480_v42, %s19805_s16 }
 0x806   : > { %4688 = vrot.lane.b32.xlu0 %v18480_v42, %s19786_s18 }
 0x807   : > { %4696 = vrot.lane.b32.xlu1 %v18480_v42, %s19784_s22 }
 0x80a   : > { %4698 = vrot.lane.b32.xlu0 %v18478_v40, %s19784_s22  ;;  %s17692_s22 = smov 125  }
 0x80b   : > { %4690 = vrot.lane.b32.xlu1 %v18478_v40, %s19786_s18  ;;  %s17693_s18 = smov 124  }
 0x874   : > { %v4681_v45 = vpop.permute.xlu0 %4680 }
 0x875   : > { %v4685_v46 = vsel %vm3412_vm13, %v4681_v45, 0.0  ;;  %v4679_v51 = vpop.permute.xlu1 %4678 }
 0x876   : > { %v9247_v52 = vmul.f32 %v4685_v46, %v18336_v47  ;;  %v4684_v53 = vsel %vm3412_vm13, %v4679_v51, 0.0  ;;  %v4687_v27 = vmax.f32 %v18478_v40, %v4685_v46 }
 0x877   : > { %v9246_v55 = vmul.f32 %v4684_v53, %v18336_v47  ;;  %v4686_v12 = vmax.f32 %v18480_v42, %v4684_v53  ;;  %v4817_v53 = vld [vmem:[%s19848_s12] sm:$0xff] }
 0x878   : > { %v4689_v56 = vpop.permute.xlu0 %4688 }
 0x879   : > { %v4694_v62 = vsel %vm3604_vm15, %v4689_v56, 0.0  ;;  %v4697_v5 = vpop.permute.xlu1 %4696  ;;  %v18499_v23 = vpack.c.bf16 %v9247_v52, %v9246_v55  ;;  %v5865_v56 = vld [vmem:[%s19852_s10 + $0x8] sm:$0xff] }
 0x87a   : > { %v4702_v60 = vsel %vm19803_vm2, %v4697_v5, 0.0  ;;  %v9622_v31 = vmul.f32 %v4694_v62, %v18357_v10  ;;  %v5867_v5 = vld [vmem:[%s19852_s10 + $0x18] sm:$0xff] }
 0x87b   : > { %v4704_v19 = vmax.f32 %v4694_v62, %v4702_v60  ;;  %v9806_v63 = vmul.f32 %v18366_v22, %v4702_v60  ;;  %v5864_v62 = vld [vmem:[%s19852_s10] sm:$0xff]  ;;  %v5866_v60 = vld [vmem:[%s19852_s10 + $0x10] sm:$0xff]  ;;  %s19867_s10 = smov 121  }
 0x87c   : > { %v4699_v20 = vpop.permute.xlu0 %4698 }
 0x87d   : > { %v4706_v61 = vmax.f32 %v4686_v12, %v4704_v19  ;;  %v4703_v11 = vsel %vm19803_vm2, %v4699_v20, 0.0  ;;  %v4691_v21 = vpop.permute.xlu1 %4690  ;;  %v15212_v12 = vld [vmem:[%s19848_s12 + $0x20] sm:$0xff]  ;;  %vm5949_vm2 = vcmask 261120  }
 0x87e   : > { %v9807_v24 = vmul.f32 %v18366_v22, %v4703_v11  ;;  %v4695_v25 = vsel %vm3604_vm15, %v4691_v21, 0.0  ;;  %16210 = vmatprep.mubr.msk.f32.mxu0 %vm1130_vm0, %v15212_v12  ;;  %v18543_v19 = vld [vmem:[%s19853_s0] sm:$0xff]  ;;  %v4819_v12 = vld [vmem:[%s19848_s12 + $0x10] sm:$0xff] }
 0x87f   : > { %v4705_v34 = vmax.f32 %v4695_v25, %v4703_v11  ;;  %v9623_v37 = vmul.f32 %v4695_v25, %v18357_v10  ;;  %16203 = vmatprep.mubr.msk.f32.mxu1 %vm19797_vm9, %v4706_v61  ;;  %v18547_v20 = vrot.slane %v18543_v19, %v17946_v7  ;;  %v18554_v25 = vrot.slane %v18543_v19, %v17966_v15 }
 0x880   : > { %v18511_v45 = vpack.c.bf16 %v9807_v24, %v9806_v63 }
 0x881   : > { %v4707_v51 = vmax.f32 %v4687_v27, %v4705_v34  ;;  %v18513_v52 = vpack.c.bf16 %v9623_v37, %v9622_v31 }
 0x883   : > { %16204 = vmatmul.mubr.msk.f32.vlgmr.msra.gmra.mrb[4].mxu1 %vm19797_vm9, %v4707_v51  ;;  %vm5628_vm9 = vcmask 97280  }
 0x884   : > { %16220 = vmatprep.mubr.msk.f32.mxu1 %vm1130_vm0, %v4817_v53 }
 0x956   : > { %v16205_v22 = vpop.f32.mrb[4].mxu1 }
 0x957   : > { %4804 = vrot.lane.b32.xlu0 %v16205_v22, %s17690_s11  ;;  %v4789_v46 = vpop.f32.mrb[5].mxu1 }
 0x958   : > { %4802 = vrot.lane.b32.xlu1 %v4789_v46, %s17690_s11  ;;  %v18520_v55 = vpack.c.bf16 %v16205_v22, %v4789_v46 }
 0x95b   : > { %5036 = vrot.lane.b32.xlu0 %v16205_v22, %s17691_s7 }
 0x95c   : > { %5034 = vrot.lane.b32.xlu1 %v4789_v46, %s17691_s7 }
 0x95f   : > { %5157 = vrot.lane.b32.xlu0 %v16205_v22, %s19807_s15 }
 0x960   : > { %5155 = vrot.lane.b32.xlu1 %v4789_v46, %s19807_s15 }
 0x963   : > { %5383 = vrot.lane.b32.xlu0 %v16205_v22, %s19805_s16 }
 0x964   : > { %5381 = vrot.lane.b32.xlu1 %v4789_v46, %s19805_s16 }
 0x967   : > { %5503 = vrot.lane.b32.xlu0 %v16205_v22, %s17692_s22 }
 0x968   : > { %5501 = vrot.lane.b32.xlu1 %v4789_v46, %s17692_s22 }
 0x96b   : > { %5624 = vrot.lane.b32.xlu0 %v16205_v22, %s17693_s18 }
 0x96c   : > { %5622 = vrot.lane.b32.xlu1 %v4789_v46, %s17693_s18 }
 0x96f   : > { %4823 = vrot.lane.b32.xlu0 %v16205_v22, %s17694_s23 }
 0x970   : > { %4821 = vrot.lane.b32.xlu1 %v4789_v46, %s17694_s23 }
 0x973   : > { %5745 = vrot.lane.b32.xlu0 %v16205_v22, %s17695_s2  ;;  %v18562_v22 = vrot.slane %v18543_v19, %v17991_v32 }
 0x974   : > { %5743 = vrot.lane.b32.xlu1 %v4789_v46, %s17695_s2 }
 0x977   : > { %5875 = vperm.xlu0 %17624, %v5865_v56   ;;  %v4818_v56 = vld [vmem:[%s19848_s12 + $0x8] sm:$0xff] }
 0x978   : > { %5870 = vperm.xlu1 %17625, %v5864_v62  }
 0x97b   : > { %5885 = vperm.xlu0 %17624, %v5867_v5  }
 0x97c   : > { %5880 = vperm.xlu1 %17625, %v5866_v60  }
 0x9c9   : > { %v4805_v61 = vpop.permute.xlu0 %4804 }
 0x9ca   : > { %v4810_v11 = vsel %vm4808_vm8, 0.0, %v4805_v61  ;;  %v4803_v21 = vpop.permute.xlu1 %4802 }
 0x9cb   : > { %v4816_v63 = vmul.f32 %v18547_v20, %v4810_v11  ;;  %v4809_v24 = vsel %vm4808_vm8, 0.0, %v4803_v21 }
 0x9cc   : > { %v4815_v27 = vmul.f32 %v18547_v20, %v4809_v24 }
 0x9cd   : > { %v5037_v31 = vpop.permute.xlu0 %5036 }
 0x9ce   : > { %v5042_v7 = vsel %vm5040_vm7, 0.0, %v5037_v31  ;;  %v5035_v34 = vpop.permute.xlu1 %5034  ;;  %v16889_v37 = vpack.c.bf16 %v4816_v63, %v4815_v27  ;;  %v4820_v63 = vld [vmem:[%s19848_s12 + $0x18] sm:$0xff]  ;;  %v15224_v31 = vld [vmem:[%s19848_s12 + $0x40] sm:$0xff] }
 0x9cf   : > { %v5048_v51 = vmul.f32 %v18554_v25, %v5042_v7  ;;  %v5041_v53 = vsel %vm5040_vm7, 0.0, %v5035_v34  ;;  %v15225_v34 = vld [vmem:[%s19848_s12 + $0x48] sm:$0xff] }
 0x9d0   : > { %v5047_v46 = vmul.f32 %v18554_v25, %v5041_v53  ;;  %16890 = vmatprep.subr.bf16.mxu1 %v16889_v37  ;;  %v18581_v53 = vrot.slane %v18543_v19, %v18026_v48  ;;  %v18592_v48 = vrot.slane %v18543_v19, %v17952_v9 }
 0x9d1   : > { %v5158_v15 = vpop.permute.xlu0 %5157  ;;  %16892 = vmatpush3.bf16.msra.mxu1 %v16889_v37 }
 0x9d2   : > { %v5162_v62 = vsel %vm1416_vm5, 0.0, %v5158_v15  ;;  %v5156_v5 = vpop.permute.xlu1 %5155  ;;  %v16893_v60 = vpack.c.bf16 %v5048_v51, %v5047_v46  ;;  %v15226_v51 = vld [vmem:[%s19848_s12 + $0x50] sm:$0xff] }
 0x9d3   : > { %v5168_v61 = vmul.f32 %v18562_v22, %v5162_v62  ;;  %v5161_v11 = vsel %vm1416_vm5, 0.0, %v5156_v5  ;;  %v15227_v62 = vld [vmem:[%s19848_s12 + $0x58] sm:$0xff] }
 0x9d4   : > { %v5167_v32 = vmul.f32 %v18562_v22, %v5161_v11  ;;  %16221 = vmatmul.mubr.msk.f32.vlgmr.msra.gmra.mrb[6].mxu1 %vm1130_vm0, %v4818_v56  ;;  %16894 = vmatprep.subr.bf16.mxu1 %v16893_v60 }
 0x9d5   : > { %v5384_v21 = vpop.permute.xlu0 %5383  ;;  %16896 = vmatpush3.bf16.msra.mxu1 %v16893_v60  ;;  %16223 = vmatprep.mubr.msk.f32.mxu1 %vm1130_vm0, %v4819_v12  ;;  %v15232_v60 = vld [vmem:[%s19848_s12 + $0x60] sm:$0xff] }
 0x9d6   : > { %v5382_v24 = vpop.permute.xlu1 %5381  ;;  %v16897_v27 = vpack.c.bf16 %v5168_v61, %v5167_v32  ;;  %v5388_v46 = vsel %vm1313_vm3, %v5384_v21, 0.0  ;;  %v15233_v32 = vld [vmem:[%s19848_s12 + $0x68] sm:$0xff] }
 0x9d7   : > { %v5387_v15 = vsel %vm1313_vm3, %v5382_v24, 0.0  ;;  %v5394_v12 = vmul.f32 %v18581_v53, %v5388_v46  ;;  %v15234_v24 = vld [vmem:[%s19848_s12 + $0x70] sm:$0xff] }
 0x9d8   : > { %16224 = vmatmul.mubr.msk.f32.gmra.mrb[8].mxu1 %vm1130_vm0, %v4820_v63  ;;  %16898 = vmatprep.subr.bf16.mxu1 %v16897_v27  ;;  %v5393_v61 = vmul.f32 %v18581_v53, %v5387_v15 }
 0x9d9   : > { %v5504_v7 = vpop.permute.xlu0 %5503  ;;  %16230 = vmatprep.mubr.msk.f32.mxu1 %vm1130_vm0, %v15224_v31  ;;  %v18605_v31 = vrot.slane %v18543_v19, %v18041_v54 }
 0x9da   : > { %v5502_v37 = vpop.permute.xlu1 %5501  ;;  %v5509_v46 = vsel %vm5507_vm6, %v5504_v7, 0.0  ;;  %v15213_v7 = vld [vmem:[%s19848_s12 + $0x28] sm:$0xff] }
 0x9db   : > { %v5508_v15 = vsel %vm5507_vm6, %v5502_v37, 0.0  ;;  %v15242_v37 = vld [vmem:[%s19848_s12 + $0x90] sm:$0xff] }
 0x9dc   : > { %16231 = vmatmul.mubr.msk.f32.vlgmr.msra.gmra.mrb[6].mxu1 %vm1130_vm0, %v15225_v34 }
 0x9dd   : > { %16900 = vmatpush3.bf16.msra.mxu1 %v16897_v27  ;;  %v5625_v56 = vpop.permute.xlu0 %5624  ;;  %16233 = vmatprep.mubr.msk.f32.mxu1 %vm1130_vm0, %v15226_v51  ;;  %v16905_v51 = vpack.c.bf16 %v5394_v12, %v5393_v61  ;;  %v15214_v12 = vld [vmem:[%s19848_s12 + $0x30] sm:$0xff]  ;;  %v18625_v61 = vrot.slane %v18543_v19, %v18062_v1  ;;  %v15248_v1 = vld [vmem:[%s19848_s12 + $0xa0] sm:$0xff] }
 0x9de   : > { %16902 = vmatprep.subr.bf16.mxu1 %v18520_v55  ;;  %v5623_v5 = vpop.permute.xlu1 %5622 }
 0x9e0   : > { %16234 = vmatmul.mubr.msk.f32.gmra.mrb[8].mxu1 %vm1130_vm0, %v15227_v62  ;;  %v15235_v62 = vld [vmem:[%s19848_s12 + $0x78] sm:$0xff] }
 0x9e1   : > { %v4824_v11 = vpop.permute.xlu0 %4823  ;;  %16240 = vmatprep.mubr.msk.f32.mxu1 %vm1130_vm0, %v15232_v60  ;;  %v15240_v60 = vld [vmem:[%s19848_s12 + $0x80] sm:$0xff] }
 0x9e2   : > { %v4828_v21 = vsel %vm1147_vm4, 0.0, %v4824_v11  ;;  %v4822_v63 = vpop.permute.xlu1 %4821  ;;  %v5515_v11 = vmul.f32 %v18605_v31, %v5509_v46  ;;  %v15250_v46 = vld [vmem:[%s19848_s12 + $0xb0] sm:$0xff] }
 0x9e3   : > { %v4834_v9 = vmul.f32 %v18592_v48, %v4828_v21  ;;  %v4827_v27 = vsel %vm1147_vm4, 0.0, %v4822_v63  ;;  %v5630_v63 = vsel %vm5628_vm9, %v5625_v56, 0.0  ;;  %v15249_v56 = vld [vmem:[%s19848_s12 + $0xa8] sm:$0xff] }
 0x9e4   : > { %v4833_v34 = vmul.f32 %v18592_v48, %v4827_v27  ;;  %16241 = vmatmul.mubr.msk.f32.vlgmr.msra.gmra.mrb[6].mxu1 %vm1130_vm0, %v15233_v32  ;;  %v5514_v32 = vmul.f32 %v18605_v31, %v5508_v15  ;;  %v15215_v27 = vld [vmem:[%s19848_s12 + $0x38] sm:$0xff]  ;;  %v5636_v19 = vmul.f32 %v18625_v61, %v5630_v63 }
 0x9e5   : > { %16904 = vmatpush3.bf16.msra.mxu1 %v18520_v55  ;;  %16243 = vmatprep.mubr.msk.f32.mxu1 %vm1130_vm0, %v15234_v24  ;;  %v15241_v55 = vld [vmem:[%s19848_s12 + $0x88] sm:$0xff]  ;;  %v5629_v24 = vsel %vm5628_vm9, %v5623_v5, 0.0  ;;  %v5746_v5 = vpop.permute.xlu0 %5745  ;;  %v15259_v63 = vld [vmem:[%s19848_s12 + $0xd8] sm:$0xff] }
 0x9e6   : > { %16906 = vmatprep.subr.bf16.mxu1 %v16905_v51  ;;  %v16885_v54 = vpack.c.bf16 %v4834_v9, %v4833_v34  ;;  %v16909_v21 = vpack.c.bf16 %v5515_v11, %v5514_v32  ;;  %v15243_v9 = vld [vmem:[%s19848_s12 + $0x98] sm:$0xff]  ;;  %v5635_v34 = vmul.f32 %v18625_v61, %v5629_v24  ;;  %v15256_v32 = vld [vmem:[%s19848_s12 + $0xc0] sm:$0xff] }
 0x9e7   : > { %v15251_v11 = vld [vmem:[%s19848_s12 + $0xb8] sm:$0xff]  ;;  %v15264_v24 = vld [vmem:[%s19848_s12 + $0xe0] sm:$0xff] }
 0x9e8   : > { %16886 = vmatprep.subr.bf16.mxu0 %v16885_v54  ;;  %16244 = vmatmul.mubr.msk.f32.gmra.mrb[8].mxu1 %vm1130_vm0, %v15235_v62  ;;  %v16913_v15 = vpack.c.bf16 %v5636_v19, %v5635_v34  ;;  %v18645_v62 = vld [vmem:[%s19853_s0 + $0x8] ss:$0 sm:$0xff]  ;;  %v15273_v19 = vld [vmem:[%s19848_s12 + $0x100] sm:$0xff]  ;;  %s19863_s0 = smov 7  }
 0x9e9   : > { %16888 = vmatpush3.bf16.msra.mxu0 %v16885_v54  ;;  %16250 = vmatprep.mubr.msk.f32.mxu1 %vm1130_vm0, %v15240_v60  ;;  %v5751_v54 = vsel %vm5749_vm1, %v5746_v5, 0.0  ;;  %v15274_v34 = vld [vmem:[%s19848_s12 + $0x108] sm:$0xff]  ;;  %v15276_v5 = vld [vmem:[%s19848_s12 + $0x118] sm:$0xff] }
 0x9ec   : > { %16251 = vmatmul.mubr.msk.f32.vlgmr.msra.gmra.mrb[6].mxu1 %vm1130_vm0, %v15241_v55  ;;  %16211 = vmatmul.mubr.msk.f32.vlgmr.msra.gmra.mrb[6].mxu0 %vm1130_vm0, %v15213_v7  ;;  %v5757_v55 = vmul.f32 %v18645_v62, %v5751_v54 }
 0x9ed   : > { %16908 = vmatpush3.bf16.msra.mxu1 %v16905_v51  ;;  %16253 = vmatprep.mubr.msk.f32.mxu1 %vm1130_vm0, %v15242_v37  ;;  %v5744_v51 = vpop.permute.xlu1 %5743  ;;  %v15257_v37 = vld [vmem:[%s19848_s12 + $0xc8] sm:$0xff] }
 0x9ee   : > { %16910 = vmatprep.subr.bf16.mxu1 %v16909_v21  ;;  %16213 = vmatprep.mubr.msk.f32.mxu0 %vm1130_vm0, %v15214_v12  ;;  %v5750_v60 = vsel %vm5749_vm1, %v5744_v51, 0.0  ;;  %v15258_v12 = vld [vmem:[%s19848_s12 + $0xd0] sm:$0xff] }
 0x9ef   : > { %v5756_v7 = vmul.f32 %v18645_v62, %v5750_v60 }
 0x9f0   : > { %16254 = vmatmul.mubr.msk.f32.gmra.mrb[8].mxu1 %vm1130_vm0, %v15243_v9  ;;  %16214 = vmatmul.mubr.msk.f32.gmra.mrb[8].mxu0 %vm1130_vm0, %v15215_v27  ;;  %v15265_v9 = vld [vmem:[%s19848_s12 + $0xe8] sm:$0xff]  ;;  %v15266_v27 = vld [vmem:[%s19848_s12 + $0xf0] sm:$0xff] }
 0x9f1   : > { %16260 = vmatprep.mubr.msk.f32.mxu1 %vm1130_vm0, %v15248_v1  ;;  %v15267_v1 = vld [vmem:[%s19848_s12 + $0xf8] sm:$0xff]  ;;  %16304 = vmatprep.mubr.msk.f32.mxu0 %vm5949_vm2, %v15281_v0 }
 0x9f4   : > { %16261 = vmatmul.mubr.msk.f32.vlgmr.msra.gmra.mrb[6].mxu1 %vm1130_vm0, %v15249_v56  ;;  %v15275_v56 = vld [vmem:[%s19848_s12 + $0x110] sm:$0xff]  ;;  %s19869_s12 = smov 119  }
 0x9f5   : > { %16912 = vmatpush3.bf16.msra.mxu1 %v16909_v21  ;;  %16263 = vmatprep.mubr.msk.f32.mxu1 %vm1130_vm0, %v15250_v46  ;;  %v16917_v21 = vpack.c.bf16 %v5757_v55, %v5756_v7 }
 0x9f6   : > { %16914 = vmatprep.subr.bf16.mxu1 %v16913_v15  ;;  %v5876_v60 = vpop.permute.xlu0 %5875 }
 0x9f8   : > { %16264 = vmatmul.mubr.msk.f32.gmra.mrb[8].mxu1 %vm1130_vm0, %v15251_v11 }
 0x9f9   : > { %16270 = vmatprep.mubr.msk.f32.mxu1 %vm1130_vm0, %v15256_v32  ;;  %v5871_v32 = vpop.permute.xlu1 %5870 }
 0x9fc   : > { %16271 = vmatmul.mubr.msk.f32.vlgmr.msra.gmra.mrb[6].mxu1 %vm1130_vm0, %v15257_v37 }
 0x9fd   : > { %16916 = vmatpush3.bf16.msra.mxu1 %v16913_v15  ;;  %16273 = vmatprep.mubr.msk.f32.mxu1 %vm1130_vm0, %v15258_v12 }
 0x9fe   : > { %16918 = vmatprep.subr.bf16.mxu1 %v16917_v21 }
 0xa00   : > { %16274 = vmatmul.mubr.msk.f32.gmra.mrb[8].mxu1 %vm1130_vm0, %v15259_v63 }
 0xa01   : > { %16280 = vmatprep.mubr.msk.f32.mxu1 %vm1130_vm0, %v15264_v24 }
 0xa04   : > { %16281 = vmatmul.mubr.msk.f32.vlgmr.msra.gmra.mrb[6].mxu1 %vm1130_vm0, %v15265_v9 }
 0xa05   : > { %16920 = vmatpush3.bf16.msra.mxu1 %v16917_v21  ;;  %16283 = vmatprep.mubr.msk.f32.mxu1 %vm1130_vm0, %v15266_v27 }
 0xa08   : > { %16284 = vmatmul.mubr.msk.f32.gmra.mrb[8].mxu1 %vm1130_vm0, %v15267_v1  ;;  %v5886_v1 = vpop.permute.xlu0 %5885 }
 0xa09   : > { %16290 = vmatprep.mubr.msk.f32.mxu1 %vm1130_vm0, %v15273_v19 }
 0xa0c   : > { %16291 = vmatmul.mubr.msk.f32.vlgmr.msra.gmra.mrb[6].mxu1 %vm1130_vm0, %v15274_v34 }
 0xa0d   : > { %16293 = vmatprep.mubr.msk.f32.mxu1 %vm1130_vm0, %v15275_v56  ;;  %v5881_v56 = vpop.permute.xlu1 %5880 }
 0xa10   : > { %16294 = vmatmul.mubr.msk.f32.gmra.mrb[8].mxu1 %vm1130_vm0, %v15276_v5 }
 0xabf   : > { %v16212_v51 = vpop.f32.mrb[6].mxu0 }
 0xac0   : > { %v4918_v46 = vpop.f32.mrb[7].mxu0 }
 0xac3   : > { %v16215_v15 = vpop.f32.mrb[8].mxu0 }
 0xac4   : > { %v4928_v54 = vpop.f32.mrb[9].mxu0 }
 0xadf   : > { %v16292_v11 = vpop.f32.mrb[6].mxu1 }
 0xae0   : > { %v17280_v55 = vadd.f32 %v16292_v11, %v16212_v51  ;;  %v5841_v7 = vpop.f32.mrb[7].mxu1 }
 0xae1   : > { %v17281_v37 = vadd.f32 %v5841_v7, %v4918_v46 }
 0xae2   : > { %v5889_v12 = vadd.f32 %v17280_v55, %v5876_v60 }
 0xae3   : > { %v5888_v21 = vadd.f32 %v17281_v37, %v5871_v32  ;;  %v16295_v63 = vpop.f32.mrb[8].mxu1 }
 0xae4   : > { %v5893_v24 = vmax.f32 %v5889_v12, 0.0  ;;  %v17282_v9 = vadd.f32 %v16295_v63, %v16215_v15  ;;  %v5851_v27 = vpop.f32.mrb[9].mxu1 }
 0xae5   : > { %v5892_v19 = vmax.f32 %v5888_v21, 0.0  ;;  %v17283_v34 = vadd.f32 %v5851_v27, %v4928_v54 }
 0xae6   : > { %v5891_v5 = vadd.f32 %v17282_v9, %v5886_v1  ;;  %5926 = vrot.lane.b32.xlu0 %v5893_v24, %s17694_s23 }
 0xae7   : > { %v5890_v41 = vadd.f32 %v17283_v34, %v5881_v56  ;;  %5924 = vrot.lane.b32.xlu1 %v5892_v19, %s17694_s23  ;;  %v18682_v51 = vpack.c.bf16 %v5893_v24, %v5892_v19 }
 0xae8   : > { %v5895_v46 = vmax.f32 %v5891_v5, 0.0 }
 0xae9   : > { %v5894_v60 = vmax.f32 %v5890_v41, 0.0 }
 0xaea   : > { %5930 = vrot.lane.b32.xlu0 %v5895_v46, %s17694_s23 }
 0xaeb   : > { %5928 = vrot.lane.b32.xlu1 %v5894_v60, %s17694_s23  ;;  %v18686_v15 = vpack.c.bf16 %v5895_v46, %v5894_v60  ;;  %s19858_s23 = smov 9  }
 0xaee   : > { %5902 = vrot.lane.b32.xlu0 %v5893_v24, %s17690_s11 }
 0xaef   : > { %5900 = vrot.lane.b32.xlu1 %v5892_v19, %s17690_s11 }
 0xaf2   : > { %5906 = vrot.lane.b32.xlu0 %v5895_v46, %s17690_s11 }
 0xaf3   : > { %5904 = vrot.lane.b32.xlu1 %v5894_v60, %s17690_s11  ;;  %s19855_s11 = sld [smem:[#allocation10_spill]] }
 0xaf6   : > { %6146 = vrot.lane.b32.xlu0 %v5893_v24, %s17691_s7 }
 0xaf7   : > { %6144 = vrot.lane.b32.xlu1 %v5892_v19, %s17691_s7 }
 0xaf9   : > { %v7007_v0 = vld [vmem:[%s19855_s11 + $0x8] sm:$0xff]  ;;  %v7006_v41 = vld [vmem:[%s19855_s11] sm:$0xff]  ;;  %v7009_v54 = vld [vmem:[%s19855_s11 + $0x18] sm:$0xff] }
 0xafa   : > { %6150 = vrot.lane.b32.xlu0 %v5895_v46, %s17691_s7  ;;  %v7008_v11 = vld [vmem:[%s19855_s11 + $0x10] sm:$0xff]  ;;  %s19868_s11 = smov 120  }
 0xafb   : > { %6148 = vrot.lane.b32.xlu1 %v5894_v60, %s17691_s7  ;;  %s19856_s7 = sld [smem:[#allocation11_spill]] }
 0xafe   : > { %6272 = vrot.lane.b32.xlu0 %v5893_v24, %s19807_s15 }
 0xaff   : > { %6270 = vrot.lane.b32.xlu1 %v5892_v19, %s19807_s15 }
 0xb02   : > { %6276 = vrot.lane.b32.xlu0 %v5895_v46, %s19807_s15 }
 0xb03   : > { %6274 = vrot.lane.b32.xlu1 %v5894_v60, %s19807_s15  ;;  %s19862_s15 = smov 8  }
 0xb06   : > { %6504 = vrot.lane.b32.xlu0 %v5893_v24, %s19805_s16 }
 0xb07   : > { %6502 = vrot.lane.b32.xlu1 %v5892_v19, %s19805_s16 }
 0xb0a   : > { %6508 = vrot.lane.b32.xlu0 %v5895_v46, %s19805_s16 }
 0xb0b   : > { %6506 = vrot.lane.b32.xlu1 %v5894_v60, %s19805_s16 }
 0xb0e   : > { %6630 = vrot.lane.b32.xlu0 %v5893_v24, %s17692_s22 }
 0xb0f   : > { %6628 = vrot.lane.b32.xlu1 %v5892_v19, %s17692_s22 }
 0xb12   : > { %6634 = vrot.lane.b32.xlu0 %v5895_v46, %s17692_s22 }
 0xb13   : > { %6632 = vrot.lane.b32.xlu1 %v5894_v60, %s17692_s22  ;;  %s19857_s22 = sld [smem:[#allocation12_spill]] }
 0xb16   : > { %6756 = vrot.lane.b32.xlu0 %v5893_v24, %s17693_s18 }
 0xb17   : > { %6754 = vrot.lane.b32.xlu1 %v5892_v19, %s17693_s18 }
 0xb1a   : > { %6760 = vrot.lane.b32.xlu0 %v5895_v46, %s17693_s18 }
 0xb1b   : > { %6758 = vrot.lane.b32.xlu1 %v5894_v60, %s17693_s18 }
 0xb1e   : > { %6882 = vrot.lane.b32.xlu0 %v5893_v24, %s17695_s2 }
 0xb1f   : > { %6880 = vrot.lane.b32.xlu1 %v5892_v19, %s17695_s2 }
 0xb22   : > { %6886 = vrot.lane.b32.xlu0 %v5895_v46, %s17695_s2 }
 0xb23   : > { %6884 = vrot.lane.b32.xlu1 %v5894_v60, %s17695_s2 }
 0xb26   : > { %7017 = vperm.xlu0 %17624, %v7007_v0  }
 0xb27   : > { %7012 = vperm.xlu1 %17625, %v7006_v41  }
 0xb2a   : > { %7027 = vperm.xlu0 %17624, %v7009_v54  }
 0xb2b   : > { %7022 = vperm.xlu1 %17625, %v7008_v11  }
 0xb58   : > { %v5927_v32 = vpop.permute.xlu0 %5926 }
 0xb59   : > { %v5937_v55 = vsel %vm1147_vm4, 0.0, %v5927_v32  ;;  %v5925_v7 = vpop.permute.xlu1 %5924  ;;  %v15282_v32 = vld [vmem:[%s19854_s26 + $0x28] sm:$0xff] }
 0xb5a   : > { %v5941_v37 = vmul.f32 %v5937_v55, %v18592_v48  ;;  %v5936_v12 = vsel %vm1147_vm4, 0.0, %v5925_v7 }
 0xb5b   : > { %v5940_v21 = vmul.f32 %v5936_v12, %v18592_v48 }
 0xb5c   : > { %v5931_v63 = vpop.permute.xlu0 %5930 }
 0xb5d   : > { %v5939_v24 = vsel %vm1147_vm4, 0.0, %v5931_v63  ;;  %v5929_v9 = vpop.permute.xlu1 %5928  ;;  %v16921_v27 = vpack.c.bf16 %v5941_v37, %v5940_v21  ;;  %v15283_v37 = vld [vmem:[%s19854_s26 + $0x30] sm:$0xff] }
 0xb5e   : > { %v5943_v1 = vmul.f32 %v5939_v24, %v18592_v48  ;;  %v5938_v19 = vsel %vm1147_vm4, 0.0, %v5929_v9  ;;  %v15284_v9 = vld [vmem:[%s19854_s26 + $0x38] sm:$0xff] }
 0xb5f   : > { %v5942_v34 = vmul.f32 %v5938_v19, %v18592_v48  ;;  %16922 = vmatprep.subr.bf16.mxu0 %v16921_v27 }
 0xb60   : > { %16924 = vmatpush3.bf16.msra.mxu0 %v16921_v27  ;;  %v5903_v56 = vpop.permute.xlu0 %5902 }
 0xb61   : > { %v5913_v5 = vsel %vm4808_vm8, 0.0, %v5903_v56  ;;  %v5901_v46 = vpop.permute.xlu1 %5900  ;;  %v16925_v60 = vpack.c.bf16 %v5943_v1, %v5942_v34  ;;  %v5920_v34 = vld [vmem:[%s19854_s26] sm:$0xff] }
 0xb62   : > { %v5917_v0 = vmul.f32 %v5913_v5, %v18547_v20  ;;  %v5912_v41 = vsel %vm4808_vm8, 0.0, %v5901_v46 }
 0xb63   : > { %v5916_v54 = vmul.f32 %v5912_v41, %v18547_v20  ;;  %16926 = vmatprep.subr.bf16.mxu0 %v16925_v60 }
 0xb64   : > { %v5907_v11 = vpop.permute.xlu0 %5906  ;;  %16928 = vmatpush3.bf16.msra.mxu0 %v16925_v60  ;;  %v5921_v60 = vld [vmem:[%s19854_s26 + $0x8] sm:$0xff] }
 0xb65   : > { %v5915_v48 = vsel %vm4808_vm8, 0.0, %v5907_v11  ;;  %v5905_v55 = vpop.permute.xlu1 %5904  ;;  %v16929_v7 = vpack.c.bf16 %v5917_v0, %v5916_v54  ;;  %v5922_v11 = vld [vmem:[%s19854_s26 + $0x10] sm:$0xff] }
 0xb66   : > { %v5919_v12 = vmul.f32 %v5915_v48, %v18547_v20  ;;  %v5914_v21 = vsel %vm4808_vm8, 0.0, %v5905_v55  ;;  %vm17697_vm8 = vmmov 0  }
 0xb67   : > { %v5918_v63 = vmul.f32 %v5914_v21, %v18547_v20  ;;  %16305 = vmatmul.mubr.msk.f32.vlgmr.msra.gmra.mrb[10].mxu0 %vm5949_vm2, %v15282_v32  ;;  %16930 = vmatprep.subr.bf16.mxu0 %v16929_v7 }
 0xb68   : > { %v6147_v24 = vpop.permute.xlu0 %6146  ;;  %16932 = vmatpush3.bf16.msra.mxu0 %v16929_v7  ;;  %16307 = vmatprep.mubr.msk.f32.mxu0 %vm5949_vm2, %v15283_v37  ;;  %v5923_v37 = vld [vmem:[%s19854_s26 + $0x18] sm:$0xff] }
 0xb69   : > { %v6157_v27 = vsel %vm5040_vm7, 0.0, %v6147_v24  ;;  %v6145_v1 = vpop.permute.xlu1 %6144  ;;  %v16933_v19 = vpack.c.bf16 %v5919_v12, %v5918_v63  ;;  %v15293_v24 = vld [vmem:[%s19854_s26 + $0x40] sm:$0xff] }
 0xb6a   : > { %v6161_v56 = vmul.f32 %v6157_v27, %v18554_v25  ;;  %v6156_v5 = vsel %vm5040_vm7, 0.0, %v6145_v1 }
 0xb6b   : > { %v6160_v20 = vmul.f32 %v6156_v5, %v18554_v25  ;;  %16308 = vmatmul.mubr.msk.f32.gmra.mrb[12].mxu0 %vm5949_vm2, %v15284_v9  ;;  %16934 = vmatprep.subr.bf16.mxu0 %v16933_v19 }
 0xb6c   : > { %v6151_v46 = vpop.permute.xlu0 %6150  ;;  %16936 = vmatpush3.bf16.msra.mxu0 %v16933_v19  ;;  %16318 = vmatprep.mubr.msk.f32.mxu0 %vm5949_vm2, %v5920_v34  ;;  %v15294_v19 = vld [vmem:[%s19854_s26 + $0x48] sm:$0xff] }
 0xb6d   : > { %v6159_v0 = vsel %vm5040_vm7, 0.0, %v6151_v46  ;;  %v6149_v41 = vpop.permute.xlu1 %6148  ;;  %v16937_v54 = vpack.c.bf16 %v6161_v56, %v6160_v20  ;;  %v15295_v20 = vld [vmem:[%s19854_s26 + $0x50] sm:$0xff] }
 0xb6e   : > { %v6163_v32 = vmul.f32 %v6159_v0, %v18554_v25  ;;  %v6158_v48 = vsel %vm5040_vm7, 0.0, %v6149_v41 }
 0xb6f   : > { %v6162_v55 = vmul.f32 %v6158_v48, %v18554_v25  ;;  %16319 = vmatmul.mubr.msk.f32.vlgmr.msra.gmra.mrb[10].mxu0 %vm5949_vm2, %v5921_v60  ;;  %16938 = vmatprep.subr.bf16.mxu0 %v16937_v54  ;;  %v15301_v48 = vld [vmem:[%s19854_s26 + $0x60] sm:$0xff] }
 0xb70   : > { %v6273_v7 = vpop.permute.xlu0 %6272  ;;  %16940 = vmatpush3.bf16.msra.mxu0 %v16937_v54  ;;  %16321 = vmatprep.mubr.msk.f32.mxu0 %vm5949_vm2, %v5922_v11  ;;  %v15296_v54 = vld [vmem:[%s19854_s26 + $0x58] sm:$0xff] }
 0xb71   : > { %v6283_v12 = vsel %vm1416_vm5, 0.0, %v6273_v7  ;;  %v6271_v21 = vpop.permute.xlu1 %6270  ;;  %v16941_v63 = vpack.c.bf16 %v6163_v32, %v6162_v55 }
 0xb72   : > { %v6287_v9 = vmul.f32 %v6283_v12, %v18562_v22  ;;  %v6282_v27 = vsel %vm1416_vm5, 0.0, %v6271_v21  ;;  %v15303_v21 = vld [vmem:[%s19854_s26 + $0x70] sm:$0xff] }
 0xb73   : > { %v6286_v25 = vmul.f32 %v6282_v27, %v18562_v22  ;;  %16322 = vmatmul.mubr.msk.f32.gmra.mrb[12].mxu0 %vm5949_vm2, %v5923_v37  ;;  %16942 = vmatprep.subr.bf16.mxu0 %v16941_v63  ;;  %v15302_v37 = vld [vmem:[%s19854_s26 + $0x68] sm:$0xff] }
 0xb74   : > { %v6277_v1 = vpop.permute.xlu0 %6276  ;;  %16944 = vmatpush3.bf16.msra.mxu0 %v16941_v63  ;;  %16332 = vmatprep.mubr.msk.f32.mxu0 %vm5949_vm2, %v15293_v24 }
 0xb75   : > { %v6285_v34 = vsel %vm1416_vm5, 0.0, %v6277_v1  ;;  %v6275_v56 = vpop.permute.xlu1 %6274  ;;  %v16945_v5 = vpack.c.bf16 %v6287_v9, %v6286_v25  ;;  %v15304_v1 = vld [vmem:[%s19854_s26 + $0x78] sm:$0xff] }
 0xb76   : > { %v6289_v46 = vmul.f32 %v6285_v34, %v18562_v22  ;;  %v6284_v60 = vsel %vm1416_vm5, 0.0, %v6275_v56  ;;  %v15309_v34 = vld [vmem:[%s19854_s26 + $0x80] sm:$0xff] }
 0xb77   : > { %v6288_v0 = vmul.f32 %v6284_v60, %v18562_v22  ;;  %16333 = vmatmul.mubr.msk.f32.vlgmr.msra.gmra.mrb[10].mxu0 %vm5949_vm2, %v15294_v19  ;;  %16946 = vmatprep.subr.bf16.mxu0 %v16945_v5 }
 0xb78   : > { %v6505_v41 = vpop.permute.xlu0 %6504  ;;  %16948 = vmatpush3.bf16.msra.mxu0 %v16945_v5  ;;  %16335 = vmatprep.mubr.msk.f32.mxu0 %vm5949_vm2, %v15295_v20 }
 0xb79   : > { %v6503_v11 = vpop.permute.xlu1 %6502  ;;  %v16949_v32 = vpack.c.bf16 %v6289_v46, %v6288_v0  ;;  %v6515_v55 = vsel %vm1313_vm3, %v6505_v41, 0.0  ;;  %v15310_v0 = vld [vmem:[%s19854_s26 + $0x88] sm:$0xff] }
 0xb7a   : > { %v6514_v22 = vsel %vm1313_vm3, %v6503_v11, 0.0  ;;  %v6519_v63 = vmul.f32 %v6515_v55, %v18581_v53 }
 0xb7b   : > { %16336 = vmatmul.mubr.msk.f32.gmra.mrb[12].mxu0 %vm5949_vm2, %v15296_v54  ;;  %16950 = vmatprep.subr.bf16.mxu0 %v16949_v32  ;;  %v6518_v24 = vmul.f32 %v6514_v22, %v18581_v53  ;;  %v15311_v54 = vld [vmem:[%s19854_s26 + $0x90] sm:$0xff] }
 0xb7c   : > { %v6509_v7 = vpop.permute.xlu0 %6508  ;;  %16952 = vmatpush3.bf16.msra.mxu0 %v16949_v32  ;;  %16346 = vmatprep.mubr.msk.f32.mxu0 %vm5949_vm2, %v15301_v48 }
 0xb7d   : > { %16954 = vmatprep.subr.bf16.mxu0 %v18682_v51  ;;  %v6507_v12 = vpop.permute.xlu1 %6506  ;;  %v6517_v9 = vsel %vm1313_vm3, %v6509_v7, 0.0  ;;  %v16961_v20 = vpack.c.bf16 %v6519_v63, %v6518_v24 }
 0xb7e   : > { %v6516_v27 = vsel %vm1313_vm3, %v6507_v12, 0.0  ;;  %v6521_v56 = vmul.f32 %v6517_v9, %v18581_v53  ;;  %v15317_v12 = vld [vmem:[%s19854_s26 + $0xa0] sm:$0xff] }
 0xb7f   : > { %16347 = vmatmul.mubr.msk.f32.vlgmr.msra.gmra.mrb[10].mxu0 %vm5949_vm2, %v15302_v37  ;;  %v6520_v5 = vmul.f32 %v6516_v27, %v18581_v53 }
 0xb80   : > { %v6631_v25 = vpop.permute.xlu0 %6630  ;;  %16956 = vmatpush3.bf16.msra.mxu0 %v18682_v51  ;;  %16349 = vmatprep.mubr.msk.f32.mxu0 %vm5949_vm2, %v15303_v21 }
 0xb81   : > { %v6629_v19 = vpop.permute.xlu1 %6628  ;;  %16958 = vmatprep.subr.bf16.mxu0 %v18686_v15  ;;  %v6641_v46 = vsel %vm5507_vm6, %v6631_v25, 0.0  ;;  %v16965_v48 = vpack.c.bf16 %v6521_v56, %v6520_v5 }
 0xb82   : > { %v6640_v60 = vsel %vm5507_vm6, %v6629_v19, 0.0  ;;  %v6645_v11 = vmul.f32 %v6641_v46, %v18605_v31 }
 0xb83   : > { %16350 = vmatmul.mubr.msk.f32.gmra.mrb[12].mxu0 %vm5949_vm2, %v15304_v1  ;;  %v6644_v32 = vmul.f32 %v6640_v60, %v18605_v31  ;;  %v15318_v1 = vld [vmem:[%s19854_s26 + $0xa8] sm:$0xff] }
 0xb84   : > { %v6635_v51 = vpop.permute.xlu0 %6634  ;;  %16960 = vmatpush3.bf16.msra.mxu0 %v18686_v15  ;;  %16360 = vmatprep.mubr.msk.f32.mxu0 %vm5949_vm2, %v15309_v34  ;;  %v15312_v15 = vld [vmem:[%s19854_s26 + $0x98] sm:$0xff]  ;;  %v15319_v34 = vld [vmem:[%s19854_s26 + $0xb0] sm:$0xff] }
 0xb85   : > { %v6633_v41 = vpop.permute.xlu1 %6632  ;;  %16962 = vmatprep.subr.bf16.mxu0 %v16961_v20  ;;  %v6643_v55 = vsel %vm5507_vm6, %v6635_v51, 0.0  ;;  %v16969_v24 = vpack.c.bf16 %v6645_v11, %v6644_v32  ;;  %v15320_v51 = vld [vmem:[%s19854_s26 + $0xb8] sm:$0xff] }
 0xb86   : > { %v6642_v22 = vsel %vm5507_vm6, %v6633_v41, 0.0  ;;  %v6647_v21 = vmul.f32 %v6643_v55, %v18605_v31  ;;  %v15325_v41 = vld [vmem:[%s19854_s26 + $0xc0] sm:$0xff] }
 0xb87   : > { %16361 = vmatmul.mubr.msk.f32.vlgmr.msra.gmra.mrb[10].mxu0 %vm5949_vm2, %v15310_v0  ;;  %v6646_v63 = vmul.f32 %v6642_v22, %v18605_v31  ;;  %v15326_v22 = vld [vmem:[%s19854_s26 + $0xc8] sm:$0xff] }
 0xb88   : > { %v6757_v7 = vpop.permute.xlu0 %6756  ;;  %16964 = vmatpush3.bf16.msra.mxu0 %v16961_v20  ;;  %16363 = vmatprep.mubr.msk.f32.mxu0 %vm5949_vm2, %v15311_v54 }
 0xb89   : > { %v6755_v37 = vpop.permute.xlu1 %6754  ;;  %16966 = vmatprep.subr.bf16.mxu0 %v16965_v48  ;;  %v6767_v9 = vsel %vm5628_vm9, %v6757_v7, 0.0  ;;  %v16973_v5 = vpack.c.bf16 %v6647_v21, %v6646_v63 }
 0xb8a   : > { %v6766_v27 = vsel %vm5628_vm9, %v6755_v37, 0.0  ;;  %v6771_v56 = vmul.f32 %v6767_v9, %v18625_v61  ;;  %v15327_v37 = vld [vmem:[%s19854_s26 + $0xd0] sm:$0xff] }
 0xb8b   : > { %16364 = vmatmul.mubr.msk.f32.gmra.mrb[12].mxu0 %vm5949_vm2, %v15312_v15  ;;  %v6770_v31 = vmul.f32 %v6766_v27, %v18625_v61  ;;  %v15328_v27 = vld [vmem:[%s19854_s26 + $0xd8] sm:$0xff] }
 0xb8c   : > { %v6761_v25 = vpop.permute.xlu0 %6760  ;;  %16968 = vmatpush3.bf16.msra.mxu0 %v16965_v48  ;;  %16374 = vmatprep.mubr.msk.f32.mxu0 %vm5949_vm2, %v15317_v12 }
 0xb8d   : > { %v6759_v19 = vpop.permute.xlu1 %6758  ;;  %16970 = vmatprep.subr.bf16.mxu0 %v16969_v24  ;;  %v6769_v20 = vsel %vm5628_vm9, %v6761_v25, 0.0  ;;  %v16977_v32 = vpack.c.bf16 %v6771_v56, %v6770_v31  ;;  %v15333_v25 = vld [vmem:[%s19854_s26 + $0xe0] sm:$0xff]  ;;  %v15334_v56 = vld [vmem:[%s19854_s26 + $0xe8] sm:$0xff]  ;;  %v15335_v31 = vld [vmem:[%s19854_s26 + $0xf0] sm:$0xff] }
 0xb8e   : > { %v6768_v46 = vsel %vm5628_vm9, %v6759_v19, 0.0  ;;  %v6773_v54 = vmul.f32 %v6769_v20, %v18625_v61  ;;  %v15336_v20 = vld [vmem:[%s19854_s26 + $0xf8] sm:$0xff] }
 0xb8f   : > { %16375 = vmatmul.mubr.msk.f32.vlgmr.msra.gmra.mrb[10].mxu0 %vm5949_vm2, %v15318_v1  ;;  %v6772_v11 = vmul.f32 %v6768_v46, %v18625_v61  ;;  %v15341_v46 = vld [vmem:[%s19854_s26 + $0x100] sm:$0xff] }
 0xb90   : > { %v6883_v60 = vpop.permute.xlu0 %6882  ;;  %16972 = vmatpush3.bf16.msra.mxu0 %v16969_v24  ;;  %16377 = vmatprep.mubr.msk.f32.mxu0 %vm5949_vm2, %v15319_v34 }
 0xb91   : > { %v6881_v0 = vpop.permute.xlu1 %6880  ;;  %16974 = vmatprep.subr.bf16.mxu0 %v16973_v5  ;;  %v6893_v48 = vsel %vm5749_vm1, %v6883_v60, 0.0  ;;  %v16981_v63 = vpack.c.bf16 %v6773_v54, %v6772_v11  ;;  %v15342_v60 = vld [vmem:[%s19854_s26 + $0x108] sm:$0xff] }
 0xb92   : > { %v6892_v55 = vsel %vm5749_vm1, %v6881_v0, 0.0  ;;  %v6897_v12 = vmul.f32 %v18645_v62, %v6893_v48  ;;  %v15344_v0 = vld [vmem:[%s19854_s26 + $0x118] sm:$0xff] }
 0xb93   : > { %16378 = vmatmul.mubr.msk.f32.gmra.mrb[12].mxu0 %vm5949_vm2, %v15320_v51  ;;  %v6896_v21 = vmul.f32 %v18645_v62, %v6892_v55  ;;  %v15343_v51 = vld [vmem:[%s19854_s26 + $0x110] sm:$0xff] }
 0xb94   : > { %16976 = vmatpush3.bf16.msra.mxu0 %v16973_v5  ;;  %16388 = vmatprep.mubr.msk.f32.mxu0 %vm5949_vm2, %v15325_v41  ;;  %v6887_v7 = vpop.permute.xlu0 %6886  ;;  %v15349_v41 = vld [vmem:[%s19856_s7 + $0x40] sm:$0xff] }
 0xb95   : > { %v6885_v15 = vpop.permute.xlu1 %6884  ;;  %16978 = vmatprep.subr.bf16.mxu0 %v16977_v32  ;;  %v6895_v24 = vsel %vm5749_vm1, %v6887_v7, 0.0  ;;  %v16985_v34 = vpack.c.bf16 %v6897_v12, %v6896_v21  ;;  %16430 = vmatprep.mubr.msk.f32.mxu1 %vm5949_vm2, %v15349_v41 }
 0xb96   : > { %v6894_v9 = vsel %vm5749_vm1, %v6885_v15, 0.0  ;;  %v6899_v1 = vmul.f32 %v18645_v62, %v6895_v24 }
 0xb97   : > { %16389 = vmatmul.mubr.msk.f32.vlgmr.msra.gmra.mrb[10].mxu0 %vm5949_vm2, %v15326_v22  ;;  %v6898_v19 = vmul.f32 %v18645_v62, %v6894_v9 }
 0xb98   : > { %16980 = vmatpush3.bf16.msra.mxu0 %v16977_v32  ;;  %16391 = vmatprep.mubr.msk.f32.mxu0 %vm5949_vm2, %v15327_v37 }
 0xb99   : > { %16982 = vmatprep.subr.bf16.mxu0 %v16981_v63  ;;  %v16989_v5 = vpack.c.bf16 %v6899_v1, %v6898_v19 }
 0xb9b   : > { %16392 = vmatmul.mubr.msk.f32.gmra.mrb[12].mxu0 %vm5949_vm2, %v15328_v27 }
 0xb9c   : > { %16984 = vmatpush3.bf16.msra.mxu0 %v16981_v63  ;;  %16402 = vmatprep.mubr.msk.f32.mxu0 %vm5949_vm2, %v15333_v25 }
 0xb9d   : > { %16986 = vmatprep.subr.bf16.mxu0 %v16985_v34 }
 0xb9f   : > { %16403 = vmatmul.mubr.msk.f32.vlgmr.msra.gmra.mrb[10].mxu0 %vm5949_vm2, %v15334_v56  ;;  %v15355_v56 = vld [vmem:[%s19856_s7 + $0x30] sm:$0xff] }
 0xba0   : > { %16988 = vmatpush3.bf16.msra.mxu0 %v16985_v34  ;;  %16405 = vmatprep.mubr.msk.f32.mxu0 %vm5949_vm2, %v15335_v31  ;;  %v15350_v34 = vld [vmem:[%s19856_s7 + $0x48] sm:$0xff]  ;;  %v15363_v31 = vld [vmem:[%s19856_s7 + $0x10] sm:$0xff] }
 0xba1   : > { %16990 = vmatprep.subr.bf16.mxu0 %v16989_v5 }
 0xba3   : > { %16406 = vmatmul.mubr.msk.f32.gmra.mrb[12].mxu0 %vm5949_vm2, %v15336_v20  ;;  %v8200_v20 = vld [vmem:[%s19857_s22] sm:$0xff] }
 0xba4   : > { %16992 = vmatpush3.bf16.msra.mxu0 %v16989_v5  ;;  %16416 = vmatprep.mubr.msk.f32.mxu0 %vm5949_vm2, %v15341_v46  ;;  %v8201_v5 = vld [vmem:[%s19857_s22 + $0x8] sm:$0xff] }
 0xba5   : > { %v7018_v54 = vpop.permute.xlu0 %7017 }
 0xba6   : > { %v7013_v11 = vpop.permute.xlu1 %7012 }
 0xba7   : > { %16417 = vmatmul.mubr.msk.f32.vlgmr.msra.gmra.mrb[10].mxu0 %vm5949_vm2, %v15342_v60 }
 0xba8   : > { %16419 = vmatprep.mubr.msk.f32.mxu0 %vm5949_vm2, %v15343_v51 }
 0xba9   : > { %v7028_v15 = vpop.permute.xlu0 %7027 }
 0xbaa   : > { %v7023_v21 = vpop.permute.xlu1 %7022 }
 0xbab   : > { %16420 = vmatmul.mubr.msk.f32.gmra.mrb[12].mxu0 %vm5949_vm2, %v15344_v0 }
 0xbac   : > { %16463 = vmatprep.mubr.msk.f32.mxu0 %vm5949_vm2, %v15363_v31 }
 0xc7a   : > { %v16418_v32 = vpop.f32.mrb[10].mxu0 }
 0xc7b   : > { %v7031_v48 = vadd.f32 %v16418_v32, %v7018_v54  ;;  %v6983_v55 = vpop.f32.mrb[11].mxu0 }
 0xc7c   : > { %v7030_v22 = vadd.f32 %v7013_v11, %v6983_v55 }
 0xc7d   : > { %v7035_v7 = vmax.f32 %v7031_v48, 0.0 }
 0xc7e   : > { %v7034_v37 = vmax.f32 %v7030_v22, 0.0  ;;  %v16421_v12 = vpop.f32.mrb[12].mxu0 }
 0xc7f   : > { %v7033_v63 = vadd.f32 %v16421_v12, %v7028_v15  ;;  %7044 = vrot.lane.b32.xlu0 %v7035_v7, %s19805_s16  ;;  %v6993_v24 = vpop.f32.mrb[13].mxu0 }
 0xc80   : > { %v18861_v9 = vpack.c.bf16 %v7035_v7, %v7034_v37  ;;  %v7032_v27 = vadd.f32 %v7023_v21, %v6993_v24  ;;  %7042 = vrot.lane.b32.xlu1 %v7034_v37, %s19805_s16 }
 0xc81   : > { %v7037_v25 = vmax.f32 %v7033_v63, 0.0 }
 0xc82   : > { %v7036_v1 = vmax.f32 %v7032_v27, 0.0  ;;  %16994 = vmatprep.subr.bf16.mxu1 %v18861_v9 }
 0xc83   : > { %16996 = vmatpush3.bf16.msra.mxu1 %v18861_v9  ;;  %7048 = vrot.lane.b32.xlu0 %v7037_v25, %s19805_s16 }
 0xc84   : > { %v18867_v19 = vpack.c.bf16 %v7037_v25, %v7036_v1  ;;  %7046 = vrot.lane.b32.xlu1 %v7036_v1, %s19805_s16  ;;  %s19861_s16 = sld [smem:[#allocation14_spill]] }
 0xc86   : > { %16998 = vmatprep.subr.bf16.mxu1 %v18867_v19 }
 0xc87   : > { %7064 = vrot.lane.b32.xlu0 %v7035_v7, %s17693_s18  ;;  %17000 = vmatpush3.bf16.msra.mxu1 %v18867_v19 }
 0xc88   : > { %7062 = vrot.lane.b32.xlu1 %v7034_v37, %s17693_s18 }
 0xc8a   : > { %16431 = vmatmul.mubr.msk.f32.vlgmr.msra.gmra.mrb[10].mxu1 %vm5949_vm2, %v15350_v34  ;;  %v15356_v34 = vld [vmem:[%s19856_s7 + $0x38] sm:$0xff] }
 0xc8b   : > { %7068 = vrot.lane.b32.xlu0 %v7037_v25, %s17693_s18  ;;  %16441 = vmatprep.mubr.msk.f32.mxu1 %vm5949_vm2, %v15355_v56 }
 0xc8c   : > { %7066 = vrot.lane.b32.xlu1 %v7036_v1, %s17693_s18  ;;  %s19859_s18 = sld [smem:[#allocation13_spill]] }
 0xc8f   : > { %7084 = vrot.lane.b32.xlu0 %v7035_v7, %s17695_s2 }
 0xc90   : > { %7082 = vrot.lane.b32.xlu1 %v7034_v37, %s17695_s2 }
 0xc93   : > { %7088 = vrot.lane.b32.xlu0 %v7037_v25, %s17695_s2 }
 0xc94   : > { %7086 = vrot.lane.b32.xlu1 %v7036_v1, %s17695_s2  ;;  %s19860_s2 = sld [smem:[#allocation15_spill]] }
 0xc97   : > { %8209 = vperm.xlu0 %17624, %v8201_v5  }
 0xc98   : > { %8204 = vperm.xlu1 %17625, %v8200_v20  }
 0xc9b   : > { %8230 = vrot.lane.b32.xlu0 %v18478_v40, %s19858_s23 }
 0xc9c   : > { %8228 = vrot.lane.b32.xlu1 %v18480_v42, %s19858_s23 }
 0xcf1   : > { %v7045_v46 = vpop.permute.xlu0 %7044 }
 0xcf2   : > { %v7055_v60 = vsel %vm1313_vm3, %v7045_v46, 0.0  ;;  %v7043_v51 = vpop.permute.xlu1 %7042  ;;  %v15353_v46 = vld [vmem:[%s19856_s7 + $0x50] sm:$0xff] }
 0xcf3   : > { %v7059_v0 = vmul.f32 %v7055_v60, %v18581_v53  ;;  %v7054_v41 = vsel %vm1313_vm3, %v7043_v51, 0.0 }
 0xcf4   : > { %v7058_v54 = vmul.f32 %v7054_v41, %v18581_v53  ;;  %v15383_v41 = vld [vmem:[%s19859_s18 + $0x10] sm:$0xff] }
 0xcf5   : > { %v7049_v11 = vpop.permute.xlu0 %7048 }
 0xcf6   : > { %v17001_v32 = vpack.c.bf16 %v7059_v0, %v7058_v54  ;;  %v7057_v48 = vsel %vm1313_vm3, %v7049_v11, 0.0  ;;  %v7047_v55 = vpop.permute.xlu1 %7046  ;;  %v15364_v0 = vld [vmem:[%s19856_s7 + $0x18] sm:$0xff]  ;;  %v15371_v11 = vld [vmem:[%s19856_s7 + $0x60] sm:$0xff] }
 0xcf7   : > { %v7061_v22 = vmul.f32 %v7057_v48, %v18581_v53  ;;  %v7056_v7 = vsel %vm1313_vm3, %v7047_v55, 0.0  ;;  %v15384_v54 = vld [vmem:[%s19859_s18 + $0x18] sm:$0xff]  ;;  %v15361_v48 = vld [vmem:[%s19856_s7 + $0x70] sm:$0xff] }
 0xcf8   : > { %v7060_v15 = vmul.f32 %v7056_v7, %v18581_v53  ;;  %17002 = vmatprep.subr.bf16.mxu1 %v17001_v32  ;;  %v17065_v55 = vpack.c.bf16 %v15384_v54, %v15383_v41  ;;  %v15362_v7 = vld [vmem:[%s19856_s7 + $0x78] sm:$0xff]  ;;  %v15389_v54 = vld [vmem:[%s19859_s18 + $0x20] sm:$0xff] }
 0xcf9   : > { %v7065_v37 = vpop.permute.xlu0 %7064  ;;  %17004 = vmatpush3.bf16.msra.mxu1 %v17001_v32 }
 0xcfa   : > { %v17005_v12 = vpack.c.bf16 %v7061_v22, %v7060_v15  ;;  %v7075_v21 = vsel %vm5628_vm9, %v7065_v37, 0.0  ;;  %v7063_v63 = vpop.permute.xlu1 %7062  ;;  %v15372_v22 = vld [vmem:[%s19856_s7 + $0x68] sm:$0xff]  ;;  %v15369_v15 = vld [vmem:[%s19856_s7 + $0x80] sm:$0xff] }
 0xcfb   : > { %v7079_v24 = vmul.f32 %v7075_v21, %v18625_v61  ;;  %v7074_v27 = vsel %vm5628_vm9, %v7063_v63, 0.0  ;;  %v15370_v63 = vld [vmem:[%s19856_s7 + $0x88] sm:$0xff] }
 0xcfc   : > { %v7078_v25 = vmul.f32 %v7074_v27, %v18625_v61  ;;  %17006 = vmatprep.subr.bf16.mxu1 %v17005_v12 }
 0xcfd   : > { %v7069_v1 = vpop.permute.xlu0 %7068  ;;  %17008 = vmatpush3.bf16.msra.mxu1 %v17005_v12 }
 0xcfe   : > { %v18905_v56 = vpack.c.bf16 %v7079_v24, %v7078_v25  ;;  %v7077_v53 = vsel %vm5628_vm9, %v7069_v1, 0.0  ;;  %v7067_v31 = vpop.permute.xlu1 %7066  ;;  %17010 = vmatprep.subr.bf16.mxu1 %v18861_v9  ;;  %v15377_v25 = vld [vmem:[%s19856_s7 + $0x20] sm:$0xff] }
 0xcff   : > { %v7081_v5 = vmul.f32 %v7077_v53, %v18625_v61  ;;  %v7076_v20 = vsel %vm5628_vm9, %v7067_v31, 0.0 }
 0xd00   : > { %v7080_v60 = vmul.f32 %v7076_v20, %v18625_v61  ;;  %16442 = vmatmul.mubr.msk.f32.vlgmr.msra.gmra.mrb[12].mxu1 %vm5949_vm2, %v15356_v34  ;;  %17018 = vmatprep.subr.bf16.mxu0 %v18905_v56  ;;  %v15354_v61 = vld [vmem:[%s19856_s7 + $0x58] sm:$0xff]  ;;  %v15378_v20 = vld [vmem:[%s19856_s7 + $0x28] sm:$0xff] }
 0xd01   : > { %17012 = vmatpush3.bf16.msra.mxu1 %v18861_v9  ;;  %17020 = vmatpush3.bf16.msra.mxu0 %v18905_v56 }
 0xd02   : > { %v17021_v51 = vpack.c.bf16 %v7081_v5, %v7080_v60  ;;  %17014 = vmatprep.subr.bf16.mxu1 %v18867_v19  ;;  %16452 = vmatprep.mubr.msk.f32.mxu1 %vm5949_vm2, %v15353_v46  ;;  %v7083_v37 = vpop.permute.xlu1 %7082  ;;  %v7776_v46 = vld [vmem:[%s19856_s7] sm:$0xff]  ;;  %v7777_v60 = vld [vmem:[%s19856_s7 + $0x8] sm:$0xff]  ;;  %s19865_s7 = smov 1  }
 0xd03   : > { %v7094_v21 = vsel %vm5749_vm1, %v7083_v37, 0.0  ;;  %v15394_v37 = vld [vmem:[%s19859_s18 + $0x38] sm:$0xff] }
 0xd04   : > { %17022 = vmatprep.subr.bf16.mxu0 %v17021_v51  ;;  %v7098_v1 = vmul.f32 %v18645_v62, %v7094_v21 }
 0xd05   : > { %17016 = vmatpush3.bf16.msra.mxu1 %v18867_v19  ;;  %17024 = vmatpush3.bf16.msra.mxu0 %v17021_v51 }
 0xd06   : > { %17026 = vmatprep.subr.bf16.mxu0 %v18861_v9  ;;  %17034 = vmatprep.subr.bf16.mxu1 %v17001_v32  ;;  %v7087_v27 = vpop.permute.xlu1 %7086 }
 0xd07   : > { %v7096_v53 = vsel %vm5749_vm1, %v7087_v27, 0.0 }
 0xd08   : > { %16453 = vmatmul.mubr.msk.f32.vlgmr.msra.gmra.mrb[12].mxu1 %vm5949_vm2, %v15354_v61  ;;  %16464 = vmatmul.mubr.msk.f32.vlgmr.msra.gmra.mrb[14].mxu0 %vm5949_vm2, %v15364_v0  ;;  %v7100_v31 = vmul.f32 %v18645_v62, %v7096_v53  ;;  %v7861_v0 = vld [vmem:[%s19859_s18] sm:$0xff] }
 0xd09   : > { %17028 = vmatpush3.bf16.msra.mxu0 %v18861_v9  ;;  %17036 = vmatpush3.bf16.msra.mxu1 %v17001_v32  ;;  %v7085_v32 = vpop.permute.xlu0 %7084 }
 0xd0a   : > { %17030 = vmatprep.subr.bf16.mxu0 %v18867_v19  ;;  %17038 = vmatprep.subr.bf16.mxu1 %v17005_v12 }
 0xd0b   : > { %16485 = vmatprep.mubr.msk.f32.mxu1 %vm5949_vm2, %v15371_v11  ;;  %16474 = vmatprep.mubr.msk.f32.mxu0 %vm5949_vm2, %v15361_v48  ;;  %v15390_v11 = vld [vmem:[%s19859_s18 + $0x28] sm:$0xff] }
 0xd0d   : > { %17032 = vmatpush3.bf16.msra.mxu0 %v18867_v19  ;;  %17040 = vmatpush3.bf16.msra.mxu1 %v17005_v12  ;;  %v7095_v12 = vsel %vm5749_vm1, %v7085_v32, 0.0  ;;  %v7089_v24 = vpop.permute.xlu0 %7088  ;;  %v15393_v32 = vld [vmem:[%s19859_s18 + $0x30] sm:$0xff] }
 0xd0e   : > { %17042 = vmatprep.subr.bf16.mxu1 %v18861_v9  ;;  %17066 = vmatprep.subr.bf16.mxu0 %v17065_v55  ;;  %v7097_v34 = vsel %vm5749_vm1, %v7089_v24, 0.0  ;;  %v17077_v27 = vpack.c.bf16 %v15394_v37, %v15393_v32  ;;  %vm19870_vm1 = vcmask 449536  }
 0xd0f   : > { %vm19871_vm4 = vmmov %vm19870_vm1 }
 0xd10   : > { %16486 = vmatmul.mubr.msk.f32.vlgmr.msra.gmra.mrb[14].mxu1 %vm5949_vm2, %v15372_v22  ;;  %16475 = vmatmul.mubr.msk.f32.vlgmr.msra.gmra.mrb[14].mxu0 %vm5949_vm2, %v15362_v7  ;;  %v17073_v22 = vpack.c.bf16 %v15390_v11, %v15389_v54  ;;  %vm19875_vm6 = vmmov %vm19870_vm1 }
 0xd11   : > { %17044 = vmatpush3.bf16.msra.mxu1 %v18861_v9  ;;  %16496 = vmatprep.mubr.msk.f32.mxu1 %vm5949_vm2, %v15369_v15  ;;  %v7099_v9 = vmul.f32 %v18645_v62, %v7095_v12  ;;  %vm19876_vm7 = vmmov %vm19870_vm1 }
 0xd12   : > { %17046 = vmatprep.subr.bf16.mxu1 %v18867_v19  ;;  %17068 = vmatpush3.bf16.msra.mxu0 %v17065_v55  ;;  %vm19881_vm9 = vmmov %vm19870_vm1 }
 0xd13   : > { %v17057_v5 = vpack.c.bf16 %v7099_v9, %v7098_v1 }
 0xd15   : > { %17048 = vmatpush3.bf16.msra.mxu1 %v18867_v19  ;;  %v7101_v19 = vmul.f32 %v18645_v62, %v7097_v34 }
 0xd16   : > { %17050 = vmatprep.subr.bf16.mxu1 %v18905_v56  ;;  %v8210_v7 = vpop.permute.xlu0 %8209 }
 0xd17   : > { %v8205_v15 = vpop.permute.xlu1 %8204 }
 0xd18   : > { %16497 = vmatmul.mubr.msk.f32.vlgmr.msra.gmra.mrb[14].mxu1 %vm5949_vm2, %v15370_v63 }
 0xd19   : > { %17052 = vmatpush3.bf16.msra.mxu1 %v18905_v56  ;;  %16507 = vmatprep.mubr.msk.f32.mxu1 %vm5949_vm2, %v15377_v25  ;;  %v17061_v56 = vpack.c.bf16 %v7101_v19, %v7100_v31 }
 0xd1a   : > { %17054 = vmatprep.subr.bf16.mxu1 %v17021_v51  ;;  %v8231_v12 = vpop.permute.xlu0 %8230 }
 0xd1b   : > { %v8229_v63 = vpop.permute.xlu1 %8228  ;;  %v8235_v25 = vsel %vm2949_vm11, 0.0, %v8231_v12 }
 0xd1c   : > { %v8234_v9 = vsel %vm2949_vm11, 0.0, %v8229_v63  ;;  %v8237_v1 = vmul.f32 %v8235_v25, %v18303_v3  ;;  %v8227_v25 = vld [vmem:[%s19861_s16 + $0x8] sm:$0xff] }
 0xd1d   : > { %17056 = vmatpush3.bf16.msra.mxu1 %v17021_v51  ;;  %v7862_v51 = vld [vmem:[%s19859_s18 + $0x8] sm:$0xff]  ;;  %v8236_v34 = vmul.f32 %v8234_v9, %v18303_v3 }
 0xd1e   : > { %17058 = vmatprep.subr.bf16.mxu1 %v17057_v5  ;;  %v17069_v41 = vpack.c.bf16 %v7862_v51, %v7861_v0  ;;  %v9895_v51 = vld [vmem:[%s19864_s5 + $0x8] sm:$0xff] }
 0xd1f   : > { %v17081_v53 = vpack.c.bf16 %v8237_v1, %v8236_v34 }
 0xd20   : > { %16508 = vmatmul.mubr.msk.f32.vlgmr.msra.gmra.mrb[14].mxu1 %vm5949_vm2, %v15378_v20  ;;  %17070 = vmatprep.subr.bf16.mxu0 %v17069_v41  ;;  %v8239_v20 = vld [vmem:[%s19860_s2 + $0x8] sm:$0xff] }
 0xd21   : > { %17060 = vmatpush3.bf16.msra.mxu1 %v17057_v5  ;;  %16518 = vmatprep.mubr.msk.f32.mxu1 %vm5949_vm2, %v7776_v46  ;;  %v8238_v5 = vld [vmem:[%s19860_s2] sm:$0xff] }
 0xd22   : > { %17062 = vmatprep.subr.bf16.mxu1 %v17061_v56  ;;  %v8226_v46 = vld [vmem:[%s19861_s16] sm:$0xff] }
 0xd25   : > { %17064 = vmatpush3.bf16.msra.mxu1 %v17061_v56 }
 0xd28   : > { %16519 = vmatmul.mubr.msk.f32.vlgmr.msra.gmra.mrb[14].mxu1 %vm5949_vm2, %v7777_v60 }
 0xd5d   : > { %v16432_v62 = vpop.f32.mrb[10].mxu1 }
 0xd5e   : > { %v7177_v61 = vpop.f32.mrb[11].mxu1 }
 0xddb   : > { %v16454_v48 = vpop.f32.mrb[12].mxu1 }
 0xddc   : > { %v7345_v55 = vpop.f32.mrb[13].mxu1 }
 0xddd   : > { %16525 = vmatprep.mubr.msk.f32.mxu0 %vm1130_vm0, %v7345_v55 }
 0xdde   : > { %16526 = vmatmul.mubr.msk.f32.vlgmr.msra.gmra.mrb[16].mxu0 %vm1130_vm0, %v16454_v48 }
 0xddf   : > { %16532 = vmatprep.mubr.msk.f32.mxu0 %vm1130_vm0, %v7177_v61  ;;  %17072 = vmatpush3.bf16.msra.mxu0 %v17069_v41  ;;  %v9894_v41 = vld [vmem:[%s19864_s5] sm:$0xff]  ;;  %s19895_s5 = smov 112  }
 0xde0   : > { %17074 = vmatprep.subr.bf16.mxu0 %v17073_v22 }
 0xde3   : > { %v16476_v21 = vpop.f32.mrb[14].mxu0 }
 0xde4   : > { %v7513_v24 = vpop.f32.mrb[15].mxu0 }
 0xde6   : > { %16533 = vmatmul.mubr.msk.f32.vlgmr.msra.gmra.mrb[16].mxu0 %vm1130_vm0, %v16432_v62 }
 0xde7   : > { %17076 = vmatpush3.bf16.msra.mxu0 %v17073_v22  ;;  %16539 = vmatprep.mubr.msk.f32.mxu0 %vm1130_vm0, %v7513_v24 }
 0xde8   : > { %17078 = vmatprep.subr.bf16.mxu0 %v17077_v27 }
 0xdee   : > { %16540 = vmatmul.mubr.msk.f32.vlgmr.msra.gmra.mrb[16].mxu0 %vm1130_vm0, %v16476_v21 }
 0xdef   : > { %17080 = vmatpush3.bf16.msra.mxu0 %v17077_v27 }
 0xdf0   : > { %17082 = vmatprep.subr.bf16.mxu0 %v17081_v53 }
 0xdfb   : > { %v16520_v19 = vpop.f32.mrb[14].mxu1 }
 0xdfc   : > { %v7850_v31 = vpop.f32.mrb[15].mxu1 }
 0xdfd   : > { %16546 = vmatprep.mubr.msk.f32.mxu0 %vm1130_vm0, %v7850_v31 }
 0xdfe   : > { %16547 = vmatmul.mubr.msk.f32.vlgmr.msra.gmra.mrb[16].mxu0 %vm1130_vm0, %v16520_v19 }
 0xdff   : > { %17084 = vmatpush3.bf16.msra.mxu0 %v17081_v53  ;;  %16553 = vmatprep.mubr.msk.f32.mxu0 %vm1130_vm0, %v8238_v5  ;;  %v15401_v53 = vld [vmem:[%s19861_s16 + $0x10] sm:$0xff] }
 0xe02   : > { %16554 = vmatmul.mubr.msk.f32.vlgmr.msra.gmra.mrb[18].mxu0 %vm1130_vm0, %v8239_v20 }
 0xe03   : > { %16560 = vmatprep.mubr.msk.f32.mxu0 %vm1130_vm0, %v8226_v46 }
 0xed1   : > { %v16548_v56 = vpop.f32.mrb[16].mxu0 }
 0xed2   : > { %v8213_v60 = vadd.f32 %v16548_v56, %v8210_v7  ;;  %v8189_v62 = vpop.f32.mrb[17].mxu0 }
 0xed3   : > { %v8212_v61 = vadd.f32 %v8205_v15, %v8189_v62 }
 0xed4   : > { %8218 = vrot.lane.b32.xlu0 %v8213_v60, %s19858_s23 }
 0xed5   : > { %8216 = vrot.lane.b32.xlu1 %v8212_v61, %s19858_s23  ;;  %v18990_v0 = vpack.c.bf16 %v8213_v60, %v8212_v61 }
 0xed8   : > { %8404 = vrot.lane.b32.xlu0 %v8213_v60, %s19862_s15 }
 0xed9   : > { %8402 = vrot.lane.b32.xlu1 %v8212_v61, %s19862_s15 }
 0xedc   : > { %8500 = vrot.lane.b32.xlu0 %v18478_v40, %s19862_s15 }
 0xedd   : > { %8498 = vrot.lane.b32.xlu1 %v18480_v42, %s19862_s15 }
 0xee0   : > { %8596 = vrot.lane.b32.xlu0 %v8213_v60, %s19863_s0 }
 0xee1   : > { %8594 = vrot.lane.b32.xlu1 %v8212_v61, %s19863_s0 }
 0xee4   : > { %8692 = vrot.lane.b32.xlu0 %v18478_v40, %s19863_s0 }
 0xee5   : > { %8690 = vrot.lane.b32.xlu1 %v18480_v42, %s19863_s0 }
 0xee8   : > { %8788 = vrot.lane.b32.xlu0 %v8213_v60, %s19865_s7 }
 0xee9   : > { %8786 = vrot.lane.b32.xlu1 %v8212_v61, %s19865_s7 }
 0xeec   : > { %8884 = vrot.lane.b32.xlu0 %v18478_v40, %s19865_s7 }
 0xeed   : > { %8882 = vrot.lane.b32.xlu1 %v18480_v42, %s19865_s7 }
 0xef0   : > { %9152 = vrot.lane.b32.xlu0 %v8213_v60, %s19866_s8 }
 0xef1   : > { %9150 = vrot.lane.b32.xlu1 %v8212_v61, %s19866_s8 }
 0xef4   : > { %9336 = vrot.lane.b32.xlu0 %v8213_v60, %s19867_s10 }
 0xef5   : > { %9334 = vrot.lane.b32.xlu1 %v8212_v61, %s19867_s10 }
 0xef8   : > { %9432 = vrot.lane.b32.xlu0 %v18478_v40, %s19867_s10 }
 0xef9   : > { %9430 = vrot.lane.b32.xlu1 %v18480_v42, %s19867_s10 }
 0xefc   : > { %9528 = vrot.lane.b32.xlu0 %v8213_v60, %s19868_s11 }
 0xefd   : > { %9526 = vrot.lane.b32.xlu1 %v8212_v61, %s19868_s11 }
 0xf00   : > { %9712 = vrot.lane.b32.xlu0 %v8213_v60, %s19869_s12 }
 0xf01   : > { %9710 = vrot.lane.b32.xlu1 %v8212_v61, %s19869_s12 }
 0xf04   : > { %9903 = vperm.xlu0 %17624, %v9895_v51  }
 0xf05   : > { %9898 = vperm.xlu1 %17625, %v9894_v41   ;;  %v15402_v41 = vld [vmem:[%s19861_s16 + $0x18] sm:$0xff] }
 0xf46   : > { %v8219_v54 = vpop.permute.xlu0 %8218 }
 0xf47   : > { %v8223_v11 = vsel %vm2949_vm11, 0.0, %v8219_v54  ;;  %v8217_v48 = vpop.permute.xlu1 %8216 }
 0xf48   : > { %v8225_v55 = vmul.f32 %v8223_v11, %v18303_v3  ;;  %v8222_v22 = vsel %vm2949_vm11, 0.0, %v8217_v48 }
 0xf49   : > { %v8224_v7 = vmul.f32 %v8222_v22, %v18303_v3 }
 0xf4a   : > { %v8405_v15 = vpop.permute.xlu0 %8404 }
 0xf4b   : > { %v8409_v32 = vsel %vm2044_vm10, 0.0, %v8405_v15  ;;  %v8403_v37 = vpop.permute.xlu1 %8402  ;;  %v17085_v12 = vpack.c.bf16 %v8225_v55, %v8224_v7  ;;  %v15405_v55 = vld [vmem:[%s19860_s2 + $0x10] sm:$0xff] }
 0xf4c   : > { %v8411_v21 = vmul.f32 %v8409_v32, %v18299_v2  ;;  %v8408_v63 = vsel %vm2044_vm10, 0.0, %v8403_v37  ;;  %v15406_v37 = vld [vmem:[%s19860_s2 + $0x18] sm:$0xff] }
 0xf4d   : > { %v8410_v24 = vmul.f32 %v8408_v63, %v18299_v2  ;;  %17086 = vmatprep.subr.bf16.mxu0 %v17085_v12  ;;  %v15409_v63 = vld [vmem:[%s19861_s16 + $0x20] sm:$0xff] }
 0xf4e   : > { %v8501_v27 = vpop.permute.xlu0 %8500  ;;  %17088 = vmatpush3.bf16.msra.mxu0 %v17085_v12 }
 0xf4f   : > { %v8505_v9 = vsel %vm2044_vm10, 0.0, %v8501_v27  ;;  %v8499_v1 = vpop.permute.xlu1 %8498  ;;  %v17089_v34 = vpack.c.bf16 %v8411_v21, %v8410_v24 }
 0xf50   : > { %v8507_v19 = vmul.f32 %v8505_v9, %v18299_v2  ;;  %v8504_v31 = vsel %vm2044_vm10, 0.0, %v8499_v1 }
 0xf51   : > { %v8506_v5 = vmul.f32 %v8504_v31, %v18299_v2  ;;  %16561 = vmatmul.mubr.msk.f32.vlgmr.msra.gmra.mrb[18].mxu0 %vm1130_vm0, %v8227_v25  ;;  %17090 = vmatprep.subr.bf16.mxu0 %v17089_v34  ;;  %v15413_v31 = vld [vmem:[%s19860_s2 + $0x20] sm:$0xff] }
 0xf52   : > { %v8597_v20 = vpop.permute.xlu0 %8596  ;;  %17092 = vmatpush3.bf16.msra.mxu0 %v17089_v34  ;;  %16567 = vmatprep.mubr.msk.f32.mxu0 %vm1130_vm0, %v15401_v53  ;;  %v15410_v34 = vld [vmem:[%s19861_s16 + $0x28] sm:$0xff] }
 0xf53   : > { %v8601_v46 = vsel %vm3135_vm12, 0.0, %v8597_v20  ;;  %v8595_v56 = vpop.permute.xlu1 %8594  ;;  %v17093_v60 = vpack.c.bf16 %v8507_v19, %v8506_v5 }
 0xf54   : > { %v8603_v62 = vmul.f32 %v8601_v46, %v18309_v18  ;;  %v8600_v61 = vsel %vm3135_vm12, 0.0, %v8595_v56 }
 0xf55   : > { %v8602_v51 = vmul.f32 %v8600_v61, %v18309_v18  ;;  %17094 = vmatprep.subr.bf16.mxu0 %v17093_v60  ;;  %v15417_v61 = vld [vmem:[%s19861_s16 + $0x30] sm:$0xff] }
 0xf56   : > { %v8693_v54 = vpop.permute.xlu0 %8692 }
 0xf57   : > { %v8691_v11 = vpop.permute.xlu1 %8690  ;;  %v17097_v48 = vpack.c.bf16 %v8603_v62, %v8602_v51  ;;  %v8697_v22 = vsel %vm3135_vm12, 0.0, %v8693_v54  ;;  %v15414_v62 = vld [vmem:[%s19860_s2 + $0x28] sm:$0xff]  ;;  %v15421_v54 = vld [vmem:[%s19860_s2 + $0x30] sm:$0xff] }
 0xf58   : > { %v8696_v7 = vsel %vm3135_vm12, 0.0, %v8691_v11  ;;  %v8699_v15 = vmul.f32 %v8697_v22, %v18309_v18  ;;  %v15422_v11 = vld [vmem:[%s19860_s2 + $0x38] sm:$0xff]  ;;  %v15425_v22 = vld [vmem:[%s19861_s16 + $0x40] sm:$0xff] }
 0xf59   : > { %16568 = vmatmul.mubr.msk.f32.vlgmr.msra.gmra.mrb[18].mxu0 %vm1130_vm0, %v15402_v41  ;;  %v8698_v32 = vmul.f32 %v8696_v7, %v18309_v18  ;;  %v15418_v41 = vld [vmem:[%s19861_s16 + $0x38] sm:$0xff]  ;;  %v17117_v7 = vpack.c.bf16 %v18478_v40, %v18480_v42  ;;  %v15430_v40 = vld [vmem:[%s19860_s2 + $0x48] sm:$0xff] }
 0xf5a   : > { %17096 = vmatpush3.bf16.msra.mxu0 %v17093_v60  ;;  %16574 = vmatprep.mubr.msk.f32.mxu0 %vm1130_vm0, %v15405_v55  ;;  %v8789_v12 = vpop.permute.xlu0 %8788 }
 0xf5b   : > { %17098 = vmatprep.subr.bf16.mxu0 %v17097_v48  ;;  %v8787_v21 = vpop.permute.xlu1 %8786  ;;  %v17101_v24 = vpack.c.bf16 %v8699_v15, %v8698_v32  ;;  %v8793_v27 = vsel %vm1416_vm5, 0.0, %v8789_v12 }
 0xf5c   : > { %v8792_v25 = vsel %vm1416_vm5, 0.0, %v8787_v21  ;;  %v8795_v9 = vmul.f32 %v8793_v27, %v18321_v30  ;;  %v15426_v21 = vld [vmem:[%s19861_s16 + $0x48] sm:$0xff]  ;;  %v15433_v27 = vld [vmem:[%s19861_s16 + $0x50] sm:$0xff] }
 0xf5d   : > { %v8794_v1 = vmul.f32 %v8792_v25, %v18321_v30 }
 0xf5e   : > { %v8885_v53 = vpop.permute.xlu0 %8884 }
 0xf5f   : > { %v8883_v19 = vpop.permute.xlu1 %8882  ;;  %v17105_v5 = vpack.c.bf16 %v8795_v9, %v8794_v1  ;;  %v8889_v20 = vsel %vm1416_vm5, 0.0, %v8885_v53  ;;  %v15434_v53 = vld [vmem:[%s19861_s16 + $0x58] sm:$0xff] }
 0xf60   : > { %v8888_v46 = vsel %vm1416_vm5, 0.0, %v8883_v19  ;;  %v8891_v56 = vmul.f32 %v8889_v20, %v18321_v30 }
 0xf61   : > { %16575 = vmatmul.mubr.msk.f32.vlgmr.msra.gmra.mrb[18].mxu0 %vm1130_vm0, %v15406_v37  ;;  %v8890_v60 = vmul.f32 %v8888_v46, %v18321_v30 }
 0xf62   : > { %17100 = vmatpush3.bf16.msra.mxu0 %v17097_v48  ;;  %16581 = vmatprep.mubr.msk.f32.mxu0 %vm1130_vm0, %v15409_v63  ;;  %v9153_v48 = vpop.permute.xlu0 %9152  ;;  %v15429_v63 = vld [vmem:[%s19860_s2 + $0x40] sm:$0xff] }
 0xf63   : > { %17102 = vmatprep.subr.bf16.mxu0 %v17101_v24  ;;  %v17109_v51 = vpack.c.bf16 %v8891_v56, %v8890_v60  ;;  %v9151_v55 = vpop.permute.xlu1 %9150  ;;  %v9157_v15 = vsel %vm3412_vm13, %v9153_v48, 0.0 }
 0xf64   : > { %v9156_v32 = vsel %vm3412_vm13, %v9151_v55, 0.0  ;;  %v9159_v37 = vmul.f32 %v9157_v15, %v18336_v47  ;;  %v15445_v15 = vld [vmem:[%s19860_s2 + $0x60] sm:$0xff] }
 0xf65   : > { %v9158_v12 = vmul.f32 %v9156_v32, %v18336_v47 }
 0xf66   : > { %v9337_v42 = vpop.permute.xlu0 %9336 }
 0xf67   : > { %v9341_v25 = vsel %vm3508_vm14, %v9337_v42, 0.0  ;;  %v19130_v42 = vld [vmem:[%s19847_s3 + $0x8] ss:$0 sm:$0xff]  ;;  %s19872_s3 = sld [smem:[#allocation17_spill]] }
 0xf68   : > { %v9343_v1 = vmul.f32 %v9341_v25, %v18347_v58  ;;  %v15450_v25 = vld [vmem:[%s19861_s16 + $0x78] sm:$0xff] }
 0xf69   : > { %16582 = vmatmul.mubr.msk.f32.vlgmr.msra.gmra.mrb[18].mxu0 %vm1130_vm0, %v15410_v34 }
 0xf6a   : > { %17104 = vmatpush3.bf16.msra.mxu0 %v17101_v24  ;;  %16588 = vmatprep.mubr.msk.f32.mxu0 %vm1130_vm0, %v15413_v31  ;;  %v17121_v24 = vpack.c.bf16 %v9159_v37, %v9158_v12  ;;  %v9433_v19 = vpop.permute.xlu0 %9432  ;;  %v15446_v37 = vld [vmem:[%s19860_s2 + $0x68] sm:$0xff] }
 0xf6b   : > { %17106 = vmatprep.subr.bf16.mxu0 %v17105_v5  ;;  %v9437_v46 = vsel %vm3508_vm14, %v9433_v19, 0.0  ;;  %v15458_v19 = vld [vmem:[%s19861_s16 + $0x88] sm:$0xff] }
 0xf6c   : > { %v9439_v60 = vmul.f32 %v9437_v46, %v18347_v58 }
 0xf71   : > { %16589 = vmatmul.mubr.msk.f32.vlgmr.msra.gmra.mrb[18].mxu0 %vm1130_vm0, %v15414_v62 }
 0xf72   : > { %17108 = vmatpush3.bf16.msra.mxu0 %v17105_v5  ;;  %16595 = vmatprep.mubr.msk.f32.mxu0 %vm1130_vm0, %v15417_v61  ;;  %v15437_v5 = vld [vmem:[%s19860_s2 + $0x50] sm:$0xff]  ;;  %v15438_v61 = vld [vmem:[%s19860_s2 + $0x58] sm:$0xff] }
 0xf73   : > { %17110 = vmatprep.subr.bf16.mxu0 %v17109_v51 }
 0xf79   : > { %16596 = vmatmul.mubr.msk.f32.vlgmr.msra.gmra.mrb[18].mxu0 %vm1130_vm0, %v15418_v41 }
 0xf7a   : > { %17112 = vmatpush3.bf16.msra.mxu0 %v17109_v51  ;;  %16602 = vmatprep.mubr.msk.f32.mxu0 %vm1130_vm0, %v15421_v54  ;;  %v9529_v51 = vpop.permute.xlu0 %9528  ;;  %v15441_v54 = vld [vmem:[%s19861_s16 + $0x60] sm:$0xff] }
 0xf7b   : > { %17114 = vmatprep.subr.bf16.mxu0 %v18990_v0  ;;  %v9533_v48 = vsel %vm3604_vm15, %v9529_v51, 0.0 }
 0xf7c   : > { %v9535_v55 = vmul.f32 %v9533_v48, %v18357_v10 }
 0xf7e   : > { %v9713_v12 = vpop.permute.xlu0 %9712 }
 0xf81   : > { %16603 = vmatmul.mubr.msk.f32.vlgmr.msra.gmra.mrb[18].mxu0 %vm1130_vm0, %v15422_v11 }
 0xf82   : > { %17116 = vmatpush3.bf16.msra.mxu0 %v18990_v0  ;;  %16609 = vmatprep.mubr.msk.f32.mxu0 %vm1130_vm0, %v15425_v22  ;;  %v9335_v0 = vpop.permute.xlu1 %9334 }
 0xf83   : > { %17118 = vmatprep.subr.bf16.mxu0 %v17117_v7  ;;  %v9340_v9 = vsel %vm3508_vm14, %v9335_v0, 0.0 }
 0xf84   : > { %v9342_v34 = vmul.f32 %v9340_v9, %v18347_v58  ;;  %v15453_v9 = vld [vmem:[%s19860_s2 + $0x70] sm:$0xff] }
 0xf86   : > { %v9431_v31 = vpop.permute.xlu1 %9430  ;;  %v17129_v20 = vpack.c.bf16 %v9343_v1, %v9342_v34  ;;  %v15454_v34 = vld [vmem:[%s19860_s2 + $0x78] sm:$0xff] }
 0xf87   : > { %v9436_v56 = vsel %vm3508_vm14, %v9431_v31, 0.0  ;;  %v15461_v31 = vld [vmem:[%s19860_s2 + $0x80] sm:$0xff] }
 0xf88   : > { %v9438_v62 = vmul.f32 %v9436_v56, %v18347_v58 }
 0xf89   : > { %16610 = vmatmul.mubr.msk.f32.vlgmr.msra.gmra.mrb[18].mxu0 %vm1130_vm0, %v15426_v21 }
 0xf8a   : > { %17120 = vmatpush3.bf16.msra.mxu0 %v17117_v7  ;;  %16616 = vmatprep.mubr.msk.f32.mxu0 %vm1130_vm0, %v15429_v63  ;;  %v9527_v41 = vpop.permute.xlu1 %9526  ;;  %v17133_v11 = vpack.c.bf16 %v9439_v60, %v9438_v62  ;;  %v15442_v7 = vld [vmem:[%s19861_s16 + $0x68] sm:$0xff]  ;;  %v15449_v63 = vld [vmem:[%s19861_s16 + $0x70] sm:$0xff] }
 0xf8b   : > { %17122 = vmatprep.subr.bf16.mxu0 %v17121_v24 }
 0xf8e   : > { %v9711_v21 = vpop.permute.xlu1 %9710 }
 0xf91   : > { %16617 = vmatmul.mubr.msk.f32.vlgmr.msra.gmra.mrb[18].mxu0 %vm1130_vm0, %v15430_v40  ;;  %v9716_v40 = vsel %vm19871_vm4, %v9711_v21, 0.0 }
 0xf92   : > { %17124 = vmatpush3.bf16.msra.mxu0 %v17121_v24  ;;  %16623 = vmatprep.mubr.msk.f32.mxu0 %vm1130_vm0, %v15433_v27  ;;  %v9717_v24 = vsel %vm19870_vm1, %v9713_v12, 0.0  ;;  %v9718_v27 = vmul.f32 %v19130_v42, %v9716_v40  ;;  %v9899_v56 = vpop.permute.xlu1 %9898 }
 0xf93   : > { %17126 = vmatprep.subr.bf16.mxu0 %v18499_v23  ;;  %v9719_v0 = vmul.f32 %v19130_v42, %v9717_v24 }
 0xf95   : > { %v17145_v1 = vpack.c.bf16 %v9719_v0, %v9718_v27 }
 0xf99   : > { %16624 = vmatmul.mubr.msk.f32.vlgmr.msra.gmra.mrb[18].mxu0 %vm1130_vm0, %v15434_v53  ;;  %v15457_v53 = vld [vmem:[%s19861_s16 + $0x80] sm:$0xff] }
 0xf9a   : > { %17128 = vmatpush3.bf16.msra.mxu0 %v18499_v23  ;;  %16630 = vmatprep.mubr.msk.f32.mxu0 %vm1130_vm0, %v15437_v5  ;;  %v9532_v23 = vsel %vm3604_vm15, %v9527_v41, 0.0  ;;  %v19873_v5 = vmov 0.0  }
 0xf9b   : > { %17130 = vmatprep.subr.bf16.mxu0 %v17129_v20  ;;  %v9534_v22 = vmul.f32 %v9532_v23, %v18357_v10 }
 0xf9d   : > { %v17137_v32 = vpack.c.bf16 %v9535_v55, %v9534_v22 }
 0xfa1   : > { %16631 = vmatmul.mubr.msk.f32.vlgmr.msra.gmra.mrb[18].mxu0 %vm1130_vm0, %v15438_v61  ;;  %v15465_v61 = vld [vmem:[%s19872_s3 + $0x10] sm:$0xff] }
 0xfa2   : > { %17132 = vmatpush3.bf16.msra.mxu0 %v17129_v20  ;;  %16637 = vmatprep.mubr.msk.f32.mxu0 %vm1130_vm0, %v15441_v54  ;;  %v9904_v20 = vpop.permute.xlu0 %9903 }
 0xfa3   : > { %17134 = vmatprep.subr.bf16.mxu0 %v17133_v11  ;;  %16679 = vmatprep.mubr.msk.f32.mxu1 %vm1130_vm0, %v15465_v61 }
 0xfa9   : > { %16638 = vmatmul.mubr.msk.f32.vlgmr.msra.gmra.mrb[18].mxu0 %vm1130_vm0, %v15442_v7 }
 0xfaa   : > { %17136 = vmatpush3.bf16.msra.mxu0 %v17133_v11  ;;  %16644 = vmatprep.mubr.msk.f32.mxu0 %vm1130_vm0, %v15445_v15 }
 0xfab   : > { %17138 = vmatprep.subr.bf16.mxu0 %v17137_v32 }
 0xfb1   : > { %16645 = vmatmul.mubr.msk.f32.vlgmr.msra.gmra.mrb[18].mxu0 %vm1130_vm0, %v15446_v37 }
 0xfb2   : > { %17140 = vmatpush3.bf16.msra.mxu0 %v17137_v32  ;;  %16651 = vmatprep.mubr.msk.f32.mxu0 %vm1130_vm0, %v15449_v63 }
 0xfb3   : > { %17142 = vmatprep.subr.bf16.mxu0 %v18513_v52 }
 0xfb9   : > { %16652 = vmatmul.mubr.msk.f32.vlgmr.msra.gmra.mrb[18].mxu0 %vm1130_vm0, %v15450_v25  ;;  %v15466_v25 = vld [vmem:[%s19872_s3 + $0x18] sm:$0xff] }
 0xfba   : > { %17144 = vmatpush3.bf16.msra.mxu0 %v18513_v52  ;;  %16658 = vmatprep.mubr.msk.f32.mxu0 %vm1130_vm0, %v15453_v9  ;;  %v15462_v52 = vld [vmem:[%s19860_s2 + $0x88] sm:$0xff]  ;;  %s19874_s2 = sld [smem:[#allocation18_spill]] }
 0xfbb   : > { %17146 = vmatprep.subr.bf16.mxu0 %v17145_v1 }
 0xfc0   : > { %v10762_v11 = vld [vmem:[%s19874_s2 + $0x8] sm:$0xff]  ;;  %v10761_v48 = vld [vmem:[%s19874_s2] sm:$0xff]  ;;  %s19893_s2 = smov 113  }
 0xfc1   : > { %16659 = vmatmul.mubr.msk.f32.vlgmr.msra.gmra.mrb[18].mxu0 %vm1130_vm0, %v15454_v34 }
 0xfc2   : > { %17148 = vmatpush3.bf16.msra.mxu0 %v17145_v1  ;;  %16665 = vmatprep.mubr.msk.f32.mxu0 %vm1130_vm0, %v15457_v53 }
 0xfc3   : > { %17150 = vmatprep.subr.bf16.mxu0 %v18511_v45 }
 0xfc9   : > { %16666 = vmatmul.mubr.msk.f32.vlgmr.msra.gmra.mrb[18].mxu0 %vm1130_vm0, %v15458_v19 }
 0xfca   : > { %17152 = vmatpush3.bf16.msra.mxu0 %v18511_v45  ;;  %16672 = vmatprep.mubr.msk.f32.mxu0 %vm1130_vm0, %v15461_v31 }
 0xfd1   : > { %16673 = vmatmul.mubr.msk.f32.vlgmr.msra.gmra.mrb[18].mxu0 %vm1130_vm0, %v15462_v52 }
 0xfd2   : > { %11585 = vmatprep.mubr.f32.mxu0 %v19873_v5 }
0x10a4   : > { %v16674_v46 = vpop.f32.mrb[18].mxu0 }
0x10a5   : > { %v9907_v60 = vadd.f32 %v16674_v46, %v9904_v20  ;;  %v9883_v62 = vpop.f32.mrb[19].mxu0 }
0x10a6   : > { %v9906_v51 = vadd.f32 %v9899_v56, %v9883_v62 }
0x10a7   : > { %v9909_v41 = vmax.f32 %v9907_v60, 0.0 }
0x10a8   : > { %v9908_v54 = vmax.f32 %v9906_v51, 0.0  ;;  %v15471_v51 = vld [vmem:[%s19872_s3 + $0x20] sm:$0xff] }
0x10a9   : > { %9926 = vrot.lane.b32.xlu0 %v9909_v41, %s19862_s15 }
0x10aa   : > { %9924 = vrot.lane.b32.xlu1 %v9908_v54, %s19862_s15  ;;  %v19156_v45 = vpack.c.bf16 %v9909_v41, %v9908_v54  ;;  %s19879_s15 = sld [smem:[#allocation21_spill]] }
0x10ad   : > { %9914 = vrot.lane.b32.xlu0 %v9909_v41, %s19858_s23 }
0x10ae   : > { %9912 = vrot.lane.b32.xlu1 %v9908_v54, %s19858_s23  ;;  %s19880_s23 = smov 17  }
0x10b1   : > { %10101 = vrot.lane.b32.xlu0 %v9909_v41, %s19863_s0 }
0x10b2   : > { %10099 = vrot.lane.b32.xlu1 %v9908_v54, %s19863_s0  ;;  %s19877_s0 = sld [smem:[#allocation19_spill]] }
0x10b5   : > { %10197 = vrot.lane.b32.xlu0 %v9909_v41, %s19865_s7 }
0x10b6   : > { %10195 = vrot.lane.b32.xlu1 %v9908_v54, %s19865_s7 }
0x10b9   : > { %10379 = vrot.lane.b32.xlu0 %v9909_v41, %s19866_s8 }
0x10ba   : > { %10377 = vrot.lane.b32.xlu1 %v9908_v54, %s19866_s8 }
0x10bd   : > { %10475 = vrot.lane.b32.xlu0 %v9909_v41, %s19867_s10 }
0x10be   : > { %10473 = vrot.lane.b32.xlu1 %v9908_v54, %s19867_s10  ;;  %s19878_s10 = sld [smem:[#allocation20_spill]] }
0x10c1   : > { %10571 = vrot.lane.b32.xlu0 %v9909_v41, %s19868_s11 }
0x10c2   : > { %10569 = vrot.lane.b32.xlu1 %v9908_v54, %s19868_s11 }
0x10c5   : > { %10667 = vrot.lane.b32.xlu0 %v9909_v41, %s19869_s12  ;;  %v15472_v41 = vld [vmem:[%s19872_s3 + $0x28] sm:$0xff] }
0x10c6   : > { %10665 = vrot.lane.b32.xlu1 %v9908_v54, %s19869_s12 }
0x10c9   : > { %10770 = vperm.xlu0 %17624, %v10762_v11  }
0x10ca   : > { %10765 = vperm.xlu1 %17625, %v10761_v48   ;;  %v15475_v48 = vld [vmem:[%s19872_s3 + $0x30] sm:$0xff] }
0x111b   : > { %v9927_v23 = vpop.permute.xlu0 %9926 }
0x111c   : > { %v9931_v55 = vsel %vm2044_vm10, 0.0, %v9927_v23  ;;  %v9925_v22 = vpop.permute.xlu1 %9924 }
0x111d   : > { %v9933_v7 = vmul.f32 %v9931_v55, %v18299_v2  ;;  %v9930_v15 = vsel %vm2044_vm10, 0.0, %v9925_v22 }
0x111e   : > { %v9932_v32 = vmul.f32 %v9930_v15, %v18299_v2  ;;  %v9922_v2 = vld [vmem:[%s19872_s3] sm:$0xff] }
0x111f   : > { %v9915_v37 = vpop.permute.xlu0 %9914 }
0x1120   : > { %v17153_v12 = vpack.c.bf16 %v9933_v7, %v9932_v32  ;;  %v9919_v21 = vsel %vm2949_vm11, 0.0, %v9915_v37  ;;  %v9913_v63 = vpop.permute.xlu1 %9912  ;;  %v15476_v7 = vld [vmem:[%s19872_s3 + $0x38] sm:$0xff]  ;;  %v15479_v37 = vld [vmem:[%s19872_s3 + $0x40] sm:$0xff] }
0x1121   : > { %v9921_v24 = vmul.f32 %v9919_v21, %v18303_v3  ;;  %v9918_v40 = vsel %vm2949_vm11, 0.0, %v9913_v63  ;;  %vm19882_vm11 = vmmov %vm19870_vm1 }
0x1122   : > { %v9920_v0 = vmul.f32 %v9918_v40, %v18303_v3  ;;  %17154 = vmatprep.subr.bf16.mxu1 %v17153_v12 }
0x1123   : > { %v10102_v27 = vpop.permute.xlu0 %10101  ;;  %17156 = vmatpush3.bf16.msra.mxu1 %v17153_v12 }
0x1124   : > { %v17157_v9 = vpack.c.bf16 %v9921_v24, %v9920_v0  ;;  %v10106_v1 = vsel %vm3135_vm12, 0.0, %v10102_v27  ;;  %v10100_v34 = vpop.permute.xlu1 %10099  ;;  %v15480_v0 = vld [vmem:[%s19872_s3 + $0x48] sm:$0xff] }
0x1125   : > { %v10108_v53 = vmul.f32 %v10106_v1, %v18309_v18  ;;  %v10105_v19 = vsel %vm3135_vm12, 0.0, %v10100_v34  ;;  %vm19883_vm12 = vcmask 138240  }
0x1126   : > { %v10107_v31 = vmul.f32 %v10105_v19, %v18309_v18  ;;  %16680 = vmatmul.mubr.msk.f32.vlgmr.msra.gmra.mrb[16].mxu1 %vm1130_vm0, %v15466_v25  ;;  %17158 = vmatprep.subr.bf16.mxu1 %v17157_v9  ;;  %v9923_v18 = vld [vmem:[%s19872_s3 + $0x8] sm:$0xff]  ;;  %vm19897_vm4 = vmmov %vm19883_vm12 }
0x1127   : > { %v10198_v3 = vpop.permute.xlu0 %10197  ;;  %17160 = vmatpush3.bf16.msra.mxu1 %v17157_v9  ;;  %16686 = vmatprep.mubr.msk.f32.mxu1 %vm1130_vm0, %v9922_v2  ;;  %v15483_v9 = vld [vmem:[%s19872_s3 + $0x50] sm:$0xff] }
0x1128   : > { %v17161_v52 = vpack.c.bf16 %v10108_v53, %v10107_v31  ;;  %v10202_v20 = vsel %vm1416_vm5, 0.0, %v10198_v3  ;;  %v10196_v46 = vpop.permute.xlu1 %10195  ;;  %v15484_v53 = vld [vmem:[%s19872_s3 + $0x58] sm:$0xff]  ;;  %v15487_v3 = vld [vmem:[%s19872_s3 + $0x60] sm:$0xff] }
0x1129   : > { %v10204_v56 = vmul.f32 %v10202_v20, %v18321_v30  ;;  %v10201_v60 = vsel %vm1416_vm5, 0.0, %v10196_v46 }
0x112a   : > { %v10203_v62 = vmul.f32 %v10201_v60, %v18321_v30  ;;  %17162 = vmatprep.subr.bf16.mxu1 %v17161_v52 }
0x112b   : > { %v10380_v54 = vpop.permute.xlu0 %10379 }
0x112c   : > { %v17165_v61 = vpack.c.bf16 %v10204_v56, %v10203_v62  ;;  %v10378_v11 = vpop.permute.xlu1 %10377  ;;  %v10384_v30 = vsel %vm3412_vm13, %v10380_v54, 0.0  ;;  %v15488_v62 = vld [vmem:[%s19872_s3 + $0x68] sm:$0xff] }
0x112d   : > { %v10383_v23 = vsel %vm3412_vm13, %v10378_v11, 0.0  ;;  %v10386_v55 = vmul.f32 %v10384_v30, %v18336_v47  ;;  %v15496_v54 = vld [vmem:[%s19872_s3 + $0x88] sm:$0xff]  ;;  %v17696_v11 = vmov 0.0|0.0  }
0x112e   : > { %16687 = vmatmul.mubr.msk.f32.vlgmr.msra.gmra.mrb[16].mxu1 %vm1130_vm0, %v9923_v18  ;;  %v10385_v22 = vmul.f32 %v10383_v23, %v18336_v47  ;;  %v15491_v18 = vld [vmem:[%s19872_s3 + $0x70] sm:$0xff] }
0x112f   : > { %17164 = vmatpush3.bf16.msra.mxu1 %v17161_v52  ;;  %16693 = vmatprep.mubr.msk.f32.mxu1 %vm1130_vm0, %v15471_v51  ;;  %v10476_v15 = vpop.permute.xlu0 %10475  ;;  %v15492_v51 = vld [vmem:[%s19872_s3 + $0x78] sm:$0xff] }
0x1130   : > { %17166 = vmatprep.subr.bf16.mxu1 %v17165_v61  ;;  %v10474_v32 = vpop.permute.xlu1 %10473  ;;  %v17173_v12 = vpack.c.bf16 %v10386_v55, %v10385_v22  ;;  %v10480_v21 = vsel %vm3508_vm14, %v10476_v15, 0.0 }
0x1131   : > { %v10479_v63 = vsel %vm3508_vm14, %v10474_v32, 0.0  ;;  %v10482_v24 = vmul.f32 %v10480_v21, %v18347_v58  ;;  %v11852_v21 = vld [vmem:[%s19878_s10] sm:$0xff]  ;;  %vm19885_vm14 = vcmask 523264   ;;  %s19891_s10 = smov 15  }
0x1132   : > { %v10481_v40 = vmul.f32 %v10479_v63, %v18347_v58  ;;  %v15517_v63 = vld [vmem:[%s19879_s15 + $0x88] sm:$0xff]  ;;  %vm19887_vm2 = vmmov %vm19885_vm14 }
0x1133   : > { %v10572_v27 = vpop.permute.xlu0 %10571  ;;  %vm19889_vm1 = vmmov %vm19887_vm2 }
0x1134   : > { %v10570_v25 = vpop.permute.xlu1 %10569  ;;  %v17177_v1 = vpack.c.bf16 %v10482_v24, %v10481_v40  ;;  %v10576_v34 = vsel %vm3604_vm15, %v10572_v27, 0.0  ;;  %v15519_v24 = vld [vmem:[%s19879_s15 + $0x98] sm:$0xff]  ;;  %v15516_v40 = vld [vmem:[%s19879_s15 + $0x80] sm:$0xff]  ;;  %v15518_v27 = vld [vmem:[%s19879_s15 + $0x90] sm:$0xff] }
0x1135   : > { %v10578_v2 = vmul.f32 %v10576_v34, %v18357_v10  ;;  %v15520_v34 = vld [vmem:[%s19879_s15 + $0xa0] sm:$0xff] }
0x1136   : > { %16694 = vmatmul.mubr.msk.f32.vlgmr.msra.gmra.mrb[16].mxu1 %vm1130_vm0, %v15472_v41  ;;  %v15495_v41 = vld [vmem:[%s19872_s3 + $0x80] sm:$0xff]  ;;  %s19894_s3 = sld [smem:[#allocation22_spill]] }
0x1137   : > { %17168 = vmatpush3.bf16.msra.mxu1 %v17165_v61  ;;  %16700 = vmatprep.mubr.msk.f32.mxu1 %vm1130_vm0, %v15475_v48  ;;  %v10668_v19 = vpop.permute.xlu0 %10667 }
0x1138   : > { %17170 = vmatprep.subr.bf16.mxu1 %v19156_v45  ;;  %v10666_v31 = vpop.permute.xlu1 %10665  ;;  %v10672_v20 = vsel %vm19875_vm6, %v10668_v19, 0.0  ;;  %vm19898_vm6 = vmmov %vm19897_vm4 }
0x1139   : > { %v10671_v46 = vsel %vm19876_vm7, %v10666_v31, 0.0  ;;  %v10674_v56 = vmul.f32 %v19130_v42, %v10672_v20  ;;  %v15529_v20 = vld [vmem:[%s19879_s15 + $0xe8] sm:$0xff]  ;;  %vm19899_vm7 = vcmask 1039360  }
0x113a   : > { %v10673_v60 = vmul.f32 %v19130_v42, %v10671_v46  ;;  %v15531_v46 = vld [vmem:[%s19879_s15 + $0xf8] sm:$0xff] }
0x113c   : > { %v17185_v61 = vpack.c.bf16 %v10674_v56, %v10673_v60  ;;  %v17228_v60 = vpack.c.bf16 %v15531_v46, %v15529_v20  ;;  %v11486_v46 = vld [vmem:[%s19879_s15 + $0x8] sm:$0xff] }
0x113e   : > { %16701 = vmatmul.mubr.msk.f32.vlgmr.msra.gmra.mrb[16].mxu1 %vm1130_vm0, %v15476_v7 }
0x113f   : > { %17172 = vmatpush3.bf16.msra.mxu1 %v19156_v45  ;;  %16707 = vmatprep.mubr.msk.f32.mxu1 %vm1130_vm0, %v15479_v37  ;;  %v10575_v45 = vsel %vm3604_vm15, %v10570_v25, 0.0  ;;  %v17218_v25 = vpack.c.bf16 %v15518_v27, %v15516_v40  ;;  %v15506_v40 = vld [vmem:[%s19877_s0 + $0x8] sm:$0xff] }
0x1140   : > { %17174 = vmatprep.subr.bf16.mxu1 %v17173_v12  ;;  %v10577_v58 = vmul.f32 %v10575_v45, %v18357_v10 }
0x1142   : > { %v17181_v52 = vpack.c.bf16 %v10578_v2, %v10577_v58  ;;  %v15522_v2 = vld [vmem:[%s19879_s15 + $0xb0] sm:$0xff]  ;;  %v15525_v58 = vld [vmem:[%s19879_s15 + $0xc8] sm:$0xff] }
0x1143   : > { %v17222_v19 = vpack.c.bf16 %v15522_v2, %v15520_v34 }
0x1146   : > { %16708 = vmatmul.mubr.msk.f32.vlgmr.msra.gmra.mrb[16].mxu1 %vm1130_vm0, %v15480_v0  ;;  %v17216_v0 = vpack.c.bf16 %v15519_v24, %v15517_v63  ;;  %v15501_v63 = vld [vmem:[%s19877_s0 + $0x28] sm:$0xff] }
0x1147   : > { %17176 = vmatpush3.bf16.msra.mxu1 %v17173_v12  ;;  %16714 = vmatprep.mubr.msk.f32.mxu1 %vm1130_vm0, %v15483_v9  ;;  %v15499_v12 = vld [vmem:[%s19877_s0 + $0x20] sm:$0xff]  ;;  %v15521_v9 = vld [vmem:[%s19879_s15 + $0xa8] sm:$0xff] }
0x1148   : > { %17178 = vmatprep.subr.bf16.mxu1 %v17177_v1  ;;  %v10771_v48 = vpop.permute.xlu0 %10770  ;;  %17217 = vmatprep.subr.bf16.mxu0 %v17216_v0  ;;  %v15510_v0 = vld [vmem:[%s19877_s0 + $0x30] sm:$0xff] }
0x1149   : > { %v10766_v23 = vpop.permute.xlu1 %10765  ;;  %17219 = vmatpush1.bf16.msra.mxu0 %v17218_v25 }
0x114e   : > { %16715 = vmatmul.mubr.msk.f32.vlgmr.msra.gmra.mrb[16].mxu1 %vm1130_vm0, %v15484_v53  ;;  %v15527_v53 = vld [vmem:[%s19879_s15 + $0xd8] sm:$0xff] }
0x114f   : > { %17180 = vmatpush3.bf16.msra.mxu1 %v17177_v1  ;;  %16721 = vmatprep.mubr.msk.f32.mxu1 %vm1130_vm0, %v15487_v3  ;;  %v15523_v1 = vld [vmem:[%s19879_s15 + $0xb8] sm:$0xff]  ;;  %v17224_v31 = vpack.c.bf16 %v15527_v53, %v15525_v58  ;;  %v15524_v3 = vld [vmem:[%s19879_s15 + $0xc0] sm:$0xff] }
0x1150   : > { %17182 = vmatprep.subr.bf16.mxu1 %v17181_v52  ;;  %v17220_v45 = vpack.c.bf16 %v15523_v1, %v15521_v9  ;;  %v15509_v1 = vld [vmem:[%s19877_s0 + $0x40] sm:$0xff] }
0x1152   : > { %17221 = vmatprep.subr.bf16.mxu0 %v17220_v45 }
0x1153   : > { %17223 = vmatpush1.bf16.msra.mxu0 %v17222_v19 }
0x1154   : > { %17225 = vmatprep.subr.bf16.mxu0 %v17224_v31  ;;  %v15513_v31 = vld [vmem:[%s19877_s0 + $0x10] sm:$0xff] }
0x1156   : > { %16722 = vmatmul.mubr.msk.f32.vlgmr.msra.gmra.mrb[16].mxu1 %vm1130_vm0, %v15488_v62  ;;  %v15528_v62 = vld [vmem:[%s19879_s15 + $0xe0] sm:$0xff] }
0x1157   : > { %17184 = vmatpush3.bf16.msra.mxu1 %v17181_v52  ;;  %16728 = vmatprep.mubr.msk.f32.mxu1 %vm1130_vm0, %v15491_v18  ;;  %v15526_v52 = vld [vmem:[%s19879_s15 + $0xd0] sm:$0xff] }
0x1158   : > { %17186 = vmatprep.subr.bf16.mxu1 %v17185_v61  ;;  %v17226_v56 = vpack.c.bf16 %v15526_v52, %v15524_v3  ;;  %v15530_v18 = vld [vmem:[%s19879_s15 + $0xf0] sm:$0xff] }
0x115a   : > { %17227 = vmatpush1.bf16.msra.mxu0 %v17226_v56  ;;  %v11488_v56 = vld [vmem:[%s19879_s15 + $0x18] sm:$0xff] }
0x115b   : > { %17229 = vmatprep.subr.bf16.mxu0 %v17228_v60  ;;  %v17232_v60 = vpack.c.bf16 %v11488_v56, %v11486_v46  ;;  %v15543_v46 = vld [vmem:[%s19879_s15 + $0x148] sm:$0xff]  ;;  %v15545_v56 = vld [vmem:[%s19879_s15 + $0x158] sm:$0xff] }
0x115e   : > { %16729 = vmatmul.mubr.msk.f32.vlgmr.msra.gmra.mrb[16].mxu1 %vm1130_vm0, %v15492_v51 }
0x115f   : > { %17188 = vmatpush3.bf16.msra.mxu1 %v17185_v61  ;;  %16735 = vmatprep.mubr.msk.f32.mxu1 %vm1130_vm0, %v15495_v41  ;;  %v17230_v61 = vpack.c.bf16 %v15530_v18, %v15528_v62 }
0x1160   : > { %17189 = vmatprep.subr.bf16.mxu1 %v17696_v11 }
0x1161   : > { %17231 = vmatpush1.bf16.msra.mxu0 %v17230_v61  ;;  %v11485_v61 = vld [vmem:[%s19879_s15] sm:$0xff] }
0x1162   : > { %17233 = vmatprep.subr.bf16.mxu0 %v17232_v60 }
0x1166   : > { %16736 = vmatmul.mubr.msk.f32.vlgmr.msra.gmra.mrb[16].mxu1 %vm1130_vm0, %v15496_v54 }
0x1167   : > { %16742 = vmatprep.mubr.msk.f32.mxu1 %vm17697_vm8, %v19873_v5 }
0x1239   : > { %v16737_v30 = vpop.f32.mrb[16].mxu1 }
0x123a   : > { %v10774_v55 = vadd.f32 %v16737_v30, %v10771_v48  ;;  %v10750_v22 = vpop.f32.mrb[17].mxu1 }
0x123b   : > { %v10773_v7 = vadd.f32 %v10766_v23, %v10750_v22 }
0x123c   : > { %v10776_v15 = vmax.f32 %v10774_v55, 0.0 }
0x123d   : > { %v10775_v32 = vmax.f32 %v10773_v7, 0.0 }
0x123e   : > { %10781 = vrot.lane.b32.xlu0 %v10776_v15, %s19866_s8 }
0x123f   : > { %10779 = vrot.lane.b32.xlu1 %v10775_v32, %s19866_s8  ;;  %v19247_v37 = vpack.c.bf16 %v10776_v15, %v10775_v32 }
0x1241   : > { %17191 = vmatpush3.bf16.msra.mxu1 %v19247_v37 }
0x1242   : > { %10791 = vrot.lane.b32.xlu0 %v10776_v15, %s19868_s11  ;;  %17192 = vmatprep.subr.bf16.mxu1 %v17696_v11 }
0x1243   : > { %10789 = vrot.lane.b32.xlu1 %v10775_v32, %s19868_s11  ;;  %s19890_s11 = smov 16  }
0x1244   : > { %16743 = vmatmul.mubr.msk.f32.vlgmr.msra.gmra.mrb[18].mxu1 %vm1130_vm0, %v15499_v12 }
0x1245   : > { %16749 = vmatprep.mubr.msk.f32.mxu1 %vm17697_vm8, %v19873_v5 }
0x1246   : > { %10801 = vrot.lane.b32.xlu0 %v10776_v15, %s19869_s12  ;;  %v15502_v15 = vld [vmem:[%s19877_s0 + $0x18] sm:$0xff] }
0x1247   : > { %10799 = vrot.lane.b32.xlu1 %v10775_v32, %s19869_s12  ;;  %s19888_s12 = sld [smem:[#allocation23_spill]] }
0x124a   : > { %11873 = vrot.lane.b32.xlu0 %v18230_v28, %s19880_s23 }
0x124b   : > { %11855 = vperm.xlu1 %17625, %v11852_v21  }
0x124f   : > { %11875 = vrot.lane.b32.xlu1 %v18232_v29, %s19880_s23 }
0x12b0   : > { %v10782_v51 = vpop.permute.xlu0 %10781 }
0x12b1   : > { %v10786_v41 = vsel %vm3412_vm13, %v10782_v51, 0.0  ;;  %v10780_v54 = vpop.permute.xlu1 %10779  ;;  %v11487_v51 = vld [vmem:[%s19879_s15 + $0x10] sm:$0xff] }
0x12b2   : > { %v10788_v48 = vmul.f32 %v10786_v41, %v18336_v47  ;;  %v10785_v30 = vsel %vm3412_vm13, %v10780_v54, 0.0  ;;  %vm19884_vm13 = vmmov %vm19883_vm12  ;;  %v11490_v41 = vld [vmem:[%s19879_s15 + $0x28] sm:$0xff]  ;;  %v11492_v54 = vld [vmem:[%s19879_s15 + $0x38] sm:$0xff] }
0x12b3   : > { %v10787_v23 = vmul.f32 %v10785_v30, %v18336_v47  ;;  %v17236_v30 = vpack.c.bf16 %v11492_v54, %v11490_v41  ;;  %v15547_v41 = vld [vmem:[%s19879_s15 + $0x168] sm:$0xff]  ;;  %v15549_v54 = vld [vmem:[%s19879_s15 + $0x178] sm:$0xff] }
0x12b4   : > { %v10792_v22 = vpop.permute.xlu0 %10791 }
0x12b5   : > { %v17193_v55 = vpack.c.bf16 %v10788_v48, %v10787_v23  ;;  %v10790_v7 = vpop.permute.xlu1 %10789  ;;  %v10796_v32 = vsel %vm3604_vm15, %v10792_v22, 0.0  ;;  %v17234_v48 = vpack.c.bf16 %v11487_v51, %v11485_v61  ;;  %v11489_v23 = vld [vmem:[%s19879_s15 + $0x20] sm:$0xff]  ;;  %v15544_v51 = vld [vmem:[%s19879_s15 + $0x150] sm:$0xff] }
0x12b6   : > { %v10795_v12 = vsel %vm3604_vm15, %v10790_v7, 0.0  ;;  %v10798_v47 = vmul.f32 %v10796_v32, %v18357_v10  ;;  %v11494_v7 = vld [vmem:[%s19879_s15 + $0x48] sm:$0xff]  ;;  %vm19886_vm15 = vmmov %vm19885_vm14  ;;  %v15542_v61 = vld [vmem:[%s19879_s15 + $0x140] sm:$0xff] }
0x12b7   : > { %17194 = vmatpush3.bf16.msra.mxu1 %v17193_v55  ;;  %v10797_v21 = vmul.f32 %v10795_v12, %v18357_v10  ;;  %v15505_v10 = vld [vmem:[%s19877_s0 + $0x38] sm:$0xff] }
0x12b8   : > { %17195 = vmatprep.subr.bf16.mxu1 %v17696_v11  ;;  %v10802_v9 = vpop.permute.xlu0 %10801 }
0x12b9   : > { %v17199_v24 = vpack.c.bf16 %v10798_v47, %v10797_v21  ;;  %v10800_v27 = vpop.permute.xlu1 %10799  ;;  %v10806_v34 = vsel %vm19881_vm9, %v10802_v9, 0.0  ;;  %v11493_v21 = vld [vmem:[%s19879_s15 + $0x40] sm:$0xff]  ;;  %v11499_v9 = vld [vmem:[%s19879_s15 + $0x70] sm:$0xff]  ;;  %vm19901_vm9 = vcmask 924672  }
0x12ba   : > { %16750 = vmatmul.mubr.msk.f32.vlgmr.msra.gmra.mrb[20].mxu1 %vm1130_vm0, %v15502_v15  ;;  %v10805_v45 = vsel %vm19882_vm11, %v10800_v27, 0.0  ;;  %v10808_v2 = vmul.f32 %v19130_v42, %v10806_v34  ;;  %v11496_v15 = vld [vmem:[%s19879_s15 + $0x58] sm:$0xff]  ;;  %v11497_v27 = vld [vmem:[%s19879_s15 + $0x60] sm:$0xff]  ;;  %vm19902_vm11 = vmmov %vm19901_vm9 }
0x12bb   : > { %17197 = vmatpush3.bf16.msra.mxu1 %v19247_v37  ;;  %16756 = vmatprep.mubr.msk.f32.mxu1 %vm17697_vm8, %v19873_v5  ;;  %v10807_v58 = vmul.f32 %v19130_v42, %v10805_v45  ;;  %v17240_v47 = vpack.c.bf16 %v11496_v15, %v11494_v7  ;;  %v15537_v34 = vld [vmem:[%s19879_s15 + $0x118] sm:$0xff]  ;;  %v17246_v45 = vpack.c.bf16 %v11499_v9, %v11497_v27 }
0x12bc   : > { %17198 = vmatprep.subr.bf16.mxu1 %v17696_v11  ;;  %v11874_v53 = vpop.permute.xlu0 %11873  ;;  %v15562_v27 = vld [vmem:[%s19879_s15 + $0x1d8] sm:$0xff] }
0x12bd   : > { %v17214_v3 = vpack.c.bf16 %v10808_v2, %v10807_v58  ;;  %v11880_v42 = vsel %vm19884_vm13, 0.0, %v11874_v53  ;;  %v15534_v2 = vld [vmem:[%s19879_s15 + $0x100] sm:$0xff]  ;;  %v15536_v58 = vld [vmem:[%s19879_s15 + $0x110] sm:$0xff]  ;;  %vm19904_vm13 = vmmov %vm19901_vm9 }
0x12be   : > { %v11881_v20 = vmul.f32 %v11880_v42, %v17970_v16 }
0x12c2   : > { %16757 = vmatmul.mubr.msk.f32.vlgmr.msra.gmra.mrb[20].mxu1 %vm1130_vm0, %v15501_v63  ;;  %v11495_v63 = vld [vmem:[%s19879_s15 + $0x50] sm:$0xff] }
0x12c3   : > { %17200 = vmatpush3.bf16.msra.mxu1 %v17199_v24  ;;  %16763 = vmatprep.mubr.msk.f32.mxu1 %vm17697_vm8, %v19873_v5 }
0x12c4   : > { %17201 = vmatprep.subr.bf16.mxu1 %v17696_v11 }
0x12c6   : > { %16764 = vmatmul.mubr.msk.f32.vlgmr.msra.gmra.mrb[22].mxu1 %vm1130_vm0, %v15506_v40  ;;  %v11500_v40 = vld [vmem:[%s19879_s15 + $0x78] sm:$0xff] }
0x12c7   : > { %17203 = vmatpush3.bf16.msra.mxu1 %v19247_v37  ;;  %16770 = vmatprep.mubr.msk.f32.mxu1 %vm17697_vm8, %v19873_v5 }
0x12c8   : > { %17204 = vmatprep.subr.bf16.mxu1 %v17696_v11 }
0x12ca   : > { %v19317_v25 = vpop.permute.xlu1 %11855 }
0x12ce   : > { %16771 = vmatmul.mubr.msk.f32.vlgmr.msra.gmra.mrb[22].mxu1 %vm1130_vm0, %v15505_v10  ;;  %v17242_v10 = vpack.c.bf16 %v11495_v63, %v11493_v21  ;;  %v15558_v21 = vld [vmem:[%s19879_s15 + $0x1b8] sm:$0xff] }
0x12cf   : > { %17206 = vmatpush3.bf16.msra.mxu1 %v17193_v55  ;;  %16777 = vmatprep.mubr.msk.f32.mxu1 %vm17697_vm8, %v19873_v5  ;;  %v11491_v55 = vld [vmem:[%s19879_s15 + $0x30] sm:$0xff] }
0x12d0   : > { %17207 = vmatprep.subr.bf16.mxu1 %v17696_v11  ;;  %v17238_v12 = vpack.c.bf16 %v11491_v55, %v11489_v23  ;;  %v15548_v23 = vld [vmem:[%s19879_s15 + $0x170] sm:$0xff]  ;;  %v15552_v55 = vld [vmem:[%s19879_s15 + $0x188] sm:$0xff] }
0x12d2   : > { %16778 = vmatmul.mubr.msk.f32.vlgmr.msra.gmra.mrb[24].mxu1 %vm1130_vm0, %v15510_v0 }
0x12d3   : > { %17209 = vmatpush3.bf16.msra.mxu1 %v19247_v37  ;;  %16784 = vmatprep.mubr.msk.f32.mxu1 %vm17697_vm8, %v19873_v5  ;;  %v11876_v37 = vpop.permute.xlu1 %11875 }
0x12d4   : > { %17210 = vmatprep.subr.bf16.mxu1 %v17696_v11  ;;  %v11877_v19 = vsel %vm19883_vm12, %v11874_v53, %v11876_v37  ;;  %vm19903_vm12 = vmmov %vm19901_vm9 }
0x12d5   : > { %v11882_v52 = vmul.f32 %v11877_v19, %v17959_v13  ;;  %v15539_v19 = vld [vmem:[%s19879_s15 + $0x128] sm:$0xff] }
0x12da   : > { %16785 = vmatmul.mubr.msk.f32.vlgmr.msra.gmra.mrb[24].mxu1 %vm1130_vm0, %v15509_v1  ;;  %v15535_v1 = vld [vmem:[%s19879_s15 + $0x108] sm:$0xff] }
0x12db   : > { %17212 = vmatpush3.bf16.msra.mxu1 %v17199_v24  ;;  %16791 = vmatprep.mubr.msk.f32.mxu1 %vm17697_vm8, %v19873_v5  ;;  %v11498_v24 = vld [vmem:[%s19879_s15 + $0x68] sm:$0xff]  ;;  %v17248_v37 = vpack.c.bf16 %v15537_v34, %v15535_v1  ;;  %v15559_v34 = vld [vmem:[%s19879_s15 + $0x1c0] sm:$0xff] }
0x12dc   : > { %17213 = vmatprep.subr.bf16.mxu1 %v17696_v11  ;;  %v11410_v11 = vld [vmem:[%s19877_s0] sm:$0xff]  ;;  %v17244_v0 = vpack.c.bf16 %v11500_v40, %v11498_v24  ;;  %s19892_s0 = sld [smem:[#allocation24_spill]] }
0x12dd   : > { %v15555_v40 = vld [vmem:[%s19879_s15 + $0x1a0] sm:$0xff] }
0x12e2   : > { %16792 = vmatmul.mubr.msk.f32.vlgmr.msra.gmra.mrb[24].mxu1 %vm1130_vm0, %v15513_v31  ;;  %v15541_v31 = vld [vmem:[%s19879_s15 + $0x138] sm:$0xff] }
0x12e3   : > { %17215 = vmatpush3.bf16.msra.mxu1 %v17214_v3  ;;  %16798 = vmatprep.mubr.msk.f32.mxu1 %vm17697_vm8, %v19873_v5  ;;  %v17252_v42 = vpack.c.bf16 %v15541_v31, %v15539_v19  ;;  %v15563_v31 = vld [vmem:[%s19879_s15 + $0x1e0] sm:$0xff]  ;;  %vm19900_vm8 = vmmov %vm19899_vm7 }
0x12e4   : > { %11887 = vmatprep.subr.mxu1 %v11882_v52  ;;  %v17250_v52 = vpack.c.bf16 %v15536_v58, %v15534_v2  ;;  %v15566_v2 = vld [vmem:[%s19879_s15 + $0x1f8] sm:$0xff] }
0x12ea   : > { %16799 = vmatmul.mubr.msk.f32.vlgmr.msra.gmra.mrb[24].mxu1 %vm1130_vm0, %v11410_v11  ;;  %v15538_v11 = vld [vmem:[%s19879_s15 + $0x120] sm:$0xff] }
0x12eb   : > { %11888 = vmatpush1.msra.mxu1 %v11881_v20  ;;  %11951 = vmatprep.mubr.f32.mxu1 %v19873_v5  ;;  %v15540_v20 = vld [vmem:[%s19879_s15 + $0x130] sm:$0xff] }
0x12ec   : > { %v17254_v60 = vpack.c.bf16 %v15540_v20, %v15538_v11  ;;  %v11883_v11 = vld [vmem:[%s19888_s12] sm:$0xff] }
0x12ee   : > { %15568 = vmatmul.mubr.msk.f32.vlgmr.msra.gmra.mrb[26].mxu1 %vm2044_vm10, %v11883_v11 }
0x12ef   : > { %12025 = vmatprep.mubr.f32.mxu1 %v19873_v5 }
0x1317   : > { %v10880_v62 = vpop.f32.mrb[18].mxu1 }
0x1318   : > { %v16744_v18 = vpop.f32.mrb[19].mxu1 }
0x1319   : > { %v17256_v18 = vpack.c.bf16 %v15545_v56, %v15543_v46 }
0x1395   : > { %v11030_v22 = vpop.f32.mrb[20].mxu1 }
0x1396   : > { %v16758_v32 = vpop.f32.mrb[21].mxu1  ;;  %15532 = vmatmul.mubr.msk.f32.vlgmr.msra.gmra.mrb[20].mxu0 %vm19885_vm14, %v11030_v22  ;;  %v15554_v22 = vld [vmem:[%s19879_s15 + $0x198] sm:$0xff]  ;;  %vm19905_vm14 = vcmask 916480  }
0x1397   : > { %17235 = vmatpush1.bf16.msra.mxu0 %v17234_v48  ;;  %11659 = vmatprep.mubr.f32.mxu0 %v19873_v5  ;;  %v17258_v48 = vpack.c.bf16 %v15544_v51, %v15542_v61  ;;  %v17264_v15 = vpack.c.bf16 %v15554_v22, %v15552_v55  ;;  %v15551_v32 = vld [vmem:[%s19879_s15 + $0x180] sm:$0xff] }
0x1398   : > { %17237 = vmatprep.subr.bf16.mxu0 %v17236_v30  ;;  %v15546_v30 = vld [vmem:[%s19879_s15 + $0x160] sm:$0xff] }
0x1399   : > { %v17262_v7 = vpack.c.bf16 %v15548_v23, %v15546_v30  ;;  %v11872_v30 = vld [vmem:[%s19894_s3] sm:$0xff] }
0x139b   : > { %17239 = vmatpush1.bf16.msra.mxu0 %v17238_v12  ;;  %v15553_v12 = vld [vmem:[%s19879_s15 + $0x190] sm:$0xff] }
0x139c   : > { %17241 = vmatprep.subr.bf16.mxu0 %v17240_v47  ;;  %v15556_v47 = vld [vmem:[%s19879_s15 + $0x1a8] sm:$0xff]  ;;  %v17266_v63 = vpack.c.bf16 %v15553_v12, %v15551_v32 }
0x139d   : > { %v17268_v24 = vpack.c.bf16 %v15558_v21, %v15556_v47 }
0x139f   : > { %17243 = vmatpush1.bf16.msra.mxu0 %v17242_v10  ;;  %v15557_v10 = vld [vmem:[%s19879_s15 + $0x1b0] sm:$0xff] }
0x13a0   : > { %17245 = vmatprep.subr.bf16.mxu0 %v17244_v0  ;;  %v15560_v0 = vld [vmem:[%s19879_s15 + $0x1c8] sm:$0xff]  ;;  %v17270_v9 = vpack.c.bf16 %v15557_v10, %v15555_v40 }
0x13a1   : > { %v11180_v53 = vpop.f32.mrb[22].mxu1  ;;  %v17272_v1 = vpack.c.bf16 %v15562_v27, %v15560_v0  ;;  %v15570_v40 = vld [vmem:[%s19894_s3 + $0x8] sm:$0xff] }
0x13a2   : > { %v16772_v3 = vpop.f32.mrb[23].mxu1 }
0x13a3   : > { %17247 = vmatpush1.bf16.msra.mxu0 %v17246_v45  ;;  %v15561_v45 = vld [vmem:[%s19879_s15 + $0x1d0] sm:$0xff] }
0x13a4   : > { %17249 = vmatprep.subr.bf16.mxu0 %v17248_v37  ;;  %v15564_v37 = vld [vmem:[%s19879_s15 + $0x1e8] sm:$0xff]  ;;  %v17274_v58 = vpack.c.bf16 %v15561_v45, %v15559_v34  ;;  %v15565_v3 = vld [vmem:[%s19879_s15 + $0x1f0] sm:$0xff] }
0x13a5   : > { %v17276_v19 = vpack.c.bf16 %v15566_v2, %v15564_v37  ;;  %v15572_v2 = vld [vmem:[%s19888_s12 + $0x8] sm:$0xff] }
0x13a6   : > { %15533 = vmatmul.mubr.msk.f32.vlgmr.msra.gmra.mrb[20].mxu0 %vm19886_vm15, %v10880_v62  ;;  %v17260_v62 = vpack.c.bf16 %v15549_v54, %v15547_v41  ;;  %vm19906_vm15 = vmmov %vm19905_vm14 }
0x13a7   : > { %17251 = vmatpush1.bf16.msra.mxu0 %v17250_v52  ;;  %11750 = vmatprep.mubr.f32.mxu0 %v19873_v5 }
0x13a8   : > { %17253 = vmatprep.subr.bf16.mxu0 %v17252_v42 }
0x13ab   : > { %17255 = vmatpush1.bf16.msra.mxu0 %v17254_v60 }
0x13ac   : > { %17257 = vmatprep.subr.bf16.mxu0 %v17256_v18 }
0x13af   : > { %17259 = vmatpush1.bf16.msra.mxu0 %v17258_v48 }
0x13b0   : > { %17261 = vmatprep.subr.bf16.mxu0 %v17260_v62 }
0x13b3   : > { %17263 = vmatpush1.bf16.msra.mxu0 %v17262_v7 }
0x13b4   : > { %17265 = vmatprep.subr.bf16.mxu0 %v17264_v15 }
0x13b6   : > { %15550 = vmatmul.mubr.msk.f32.vlgmr.msra.gmra.mrb[20].mxu0 %vm19887_vm2, %v11180_v53  ;;  %v17278_v53 = vpack.c.bf16 %v15565_v3, %v15563_v31  ;;  %vm19907_vm2 = vcmask 908288  }
0x13b7   : > { %17267 = vmatpush1.bf16.msra.mxu0 %v17266_v63  ;;  %11843 = vmatprep.mubr.f32.mxu0 %v19873_v5 }
0x13b8   : > { %17269 = vmatprep.subr.bf16.mxu0 %v17268_v24 }
0x13bb   : > { %17271 = vmatpush1.bf16.msra.mxu0 %v17270_v9 }
0x13bc   : > { %17273 = vmatprep.subr.bf16.mxu0 %v17272_v1 }
0x13bd   : > { %v11480_v52 = vpop.f32.mrb[24].mxu1 }
0x13be   : > { %v16800_v42 = vpop.f32.mrb[25].mxu1 }
0x13bf   : > { %17275 = vmatpush1.bf16.msra.mxu0 %v17274_v58 }
0x13c0   : > { %17277 = vmatprep.subr.bf16.mxu0 %v17276_v19 }
0x13c3   : > { %17279 = vmatpush1.bf16.msra.mxu0 %v17278_v53  ;;  %v15574_v53 = vld [vmem:[%s19894_s3 + $0x10] sm:$0xff] }
0x13c6   : > { %15567 = vmatmul.mubr.msk.f32.vlgmr.msra.gmra.mrb[20].mxu0 %vm19889_vm1, %v11480_v52  ;;  %vm19908_vm1 = vmmov %vm19907_vm2 }
0x13c7   : > { %13498 = vmatprep.mubr.f32.mxu0 %v19873_v5 }
0x1499   : > { %v11845_v20 = vpop.f32.mrb[20].mxu0 }
0x149a   : > { %v19399_v46 = vadd.f32 %v19317_v25, %v11845_v20  ;;  %v11847_v56 = vpop.f32.mrb[21].mxu0 }
0x149b   : > { %v19402_v60 = vadd.f32 %v19317_v25, %v11847_v56  ;;  %v13396_v25 = vld [vmem:[%s19892_s0] sm:$0xff]  ;;  %s19910_s0 = sld [smem:[#allocation25_spill]] }
0x149c   : > { %11862 = vrot.lane.b32.xlu0 %v19399_v46, %s19880_s23 }
0x149d   : > { %11864 = vrot.lane.b32.xlu1 %v19402_v60, %s19880_s23 }
0x14a0   : > { %12032 = vrot.lane.b32.xlu0 %v19399_v46, %s19890_s11 }
0x14a1   : > { %12034 = vrot.lane.b32.xlu1 %v19402_v60, %s19890_s11 }
0x14a4   : > { %12120 = vrot.lane.b32.xlu0 %v18230_v28, %s19890_s11 }
0x14a5   : > { %12122 = vrot.lane.b32.xlu1 %v18232_v29, %s19890_s11 }
0x14a8   : > { %12208 = vrot.lane.b32.xlu0 %v19399_v46, %s19891_s10 }
0x14a9   : > { %12210 = vrot.lane.b32.xlu1 %v19402_v60, %s19891_s10 }
0x14ac   : > { %12296 = vrot.lane.b32.xlu0 %v18230_v28, %s19891_s10 }
0x14ad   : > { %12298 = vrot.lane.b32.xlu1 %v18232_v29, %s19891_s10 }
0x14b0   : > { %12384 = vrot.lane.b32.xlu0 %v19399_v46, %s19865_s7 }
0x14b1   : > { %12386 = vrot.lane.b32.xlu1 %v19402_v60, %s19865_s7 }
0x14b4   : > { %12472 = vrot.lane.b32.xlu0 %v18230_v28, %s19865_s7 }
0x14b5   : > { %12474 = vrot.lane.b32.xlu1 %v18232_v29, %s19865_s7 }
0x14b8   : > { %12718 = vrot.lane.b32.xlu0 %v19402_v60, %s19866_s8 }
0x14b9   : > { %12716 = vrot.lane.b32.xlu1 %v19399_v46, %s19866_s8 }
0x14bc   : > { %12886 = vrot.lane.b32.xlu0 %v19402_v60, %s19893_s2 }
0x14bd   : > { %12884 = vrot.lane.b32.xlu1 %v19399_v46, %s19893_s2 }
0x14c0   : > { %12974 = vrot.lane.b32.xlu0 %v18232_v29, %s19893_s2 }
0x14c1   : > { %12972 = vrot.lane.b32.xlu1 %v18230_v28, %s19893_s2 }
0x14c4   : > { %13062 = vrot.lane.b32.xlu0 %v19402_v60, %s19895_s5 }
0x14c5   : > { %13060 = vrot.lane.b32.xlu1 %v19399_v46, %s19895_s5 }
0x14c8   : > { %13230 = vrot.lane.b32.xlu0 %v19402_v60, %s19896_s13 }
0x14c9   : > { %13228 = vrot.lane.b32.xlu1 %v19399_v46, %s19896_s13 }
0x14cc   : > { %13399 = vperm.xlu0 %17624, %v13396_v25  }
0x150e   : > { %v11863_v18 = vpop.permute.xlu0 %11862 }
0x150f   : > { %v11869_v61 = vsel %vm19897_vm4, 0.0, %v11863_v18  ;;  %v11865_v51 = vpop.permute.xlu1 %11864 }
0x1510   : > { %v11866_v41 = vsel %vm19898_vm6, %v11863_v18, %v11865_v51  ;;  %v11870_v48 = vmul.f32 %v11869_v61, %v17970_v16  ;;  %v15576_v51 = vld [vmem:[%s19888_s12 + $0x10] sm:$0xff]  ;;  %vm19911_vm6 = vmmov %vm19897_vm4 }
0x1511   : > { %v11871_v54 = vmul.f32 %v11866_v41, %v17959_v13 }
0x1512   : > { %v12033_v62 = vpop.permute.xlu0 %12032 }
0x1513   : > { %v12039_v23 = vsel %vm1130_vm0, 0.0, %v12033_v62  ;;  %11961 = vmatprep.subr.mxu1 %v11871_v54  ;;  %v12035_v55 = vpop.permute.xlu1 %12034 }
0x1514   : > { %v12036_v22 = vsel %vm1130_vm0, %v12033_v62, %v12035_v55  ;;  %11962 = vmatpush1.msra.mxu1 %v11870_v48  ;;  %v12040_v15 = vmul.f32 %v12039_v23, %v17974_v17  ;;  %v15578_v62 = vld [vmem:[%s19894_s3 + $0x18] sm:$0xff] }
0x1515   : > { %v12041_v7 = vmul.f32 %v12036_v22, %v17963_v14  ;;  %15569 = vmatmul.mubr.msk.f32.vlgmr.msra.gmra.mrb[26].mxu1 %vm2044_vm10, %v11872_v30  ;;  %v15580_v23 = vld [vmem:[%s19888_s12 + $0x18] sm:$0xff] }
0x1516   : > { %v12121_v32 = vpop.permute.xlu0 %12120  ;;  %12111 = vmatprep.mubr.f32.mxu1 %v19873_v5 }
0x1517   : > { %12047 = vmatprep.subr.mxu1 %v12041_v7  ;;  %v12123_v12 = vpop.permute.xlu1 %12122  ;;  %v12127_v21 = vsel %vm1130_vm0, 0.0, %v12121_v32  ;;  %v15582_v7 = vld [vmem:[%s19894_s3 + $0x20] sm:$0xff] }
0x1518   : > { %v12124_v47 = vsel %vm1130_vm0, %v12121_v32, %v12123_v12  ;;  %12048 = vmatpush1.msra.mxu1 %v12040_v15  ;;  %v12128_v0 = vmul.f32 %v12127_v21, %v17974_v17  ;;  %v15584_v32 = vld [vmem:[%s19888_s12 + $0x20] sm:$0xff]  ;;  %v15586_v21 = vld [vmem:[%s19894_s3 + $0x28] sm:$0xff] }
0x1519   : > { %v12129_v63 = vmul.f32 %v12124_v47, %v17963_v14 }
0x151a   : > { %v12209_v24 = vpop.permute.xlu0 %12208 }
0x151b   : > { %12135 = vmatprep.subr.mxu1 %v12129_v63  ;;  %v12211_v10 = vpop.permute.xlu1 %12210  ;;  %v12215_v45 = vsel %vm1313_vm3, 0.0, %v12209_v24  ;;  %v12804_v63 = vmul.f32 %v18260_v43, %v18049_v57 }
0x151c   : > { %v12212_v27 = vsel %vm1313_vm3, %v12209_v24, %v12211_v10  ;;  %v12216_v58 = vmul.f32 %v12215_v45, %v18002_v35 }
0x151d   : > { %v12217_v9 = vmul.f32 %v12212_v27, %v17984_v26  ;;  %15571 = vmatmul.mubr.msk.f32.vlgmr.msra.gmra.mrb[26].mxu1 %vm2044_vm10, %v15570_v40  ;;  %v15588_v27 = vld [vmem:[%s19888_s12 + $0x28] sm:$0xff] }
0x151e   : > { %12136 = vmatpush1.msra.mxu1 %v12128_v0  ;;  %12199 = vmatprep.mubr.f32.mxu1 %v19873_v5  ;;  %v12297_v1 = vpop.permute.xlu0 %12296 }
0x151f   : > { %12223 = vmatprep.subr.mxu1 %v12217_v9  ;;  %v12299_v34 = vpop.permute.xlu1 %12298  ;;  %v12303_v52 = vsel %vm1313_vm3, 0.0, %v12297_v1 }
0x1520   : > { %v12300_v37 = vsel %vm1313_vm3, %v12297_v1, %v12299_v34  ;;  %v12304_v11 = vmul.f32 %v12303_v52, %v18002_v35  ;;  %v15592_v52 = vld [vmem:[%s19888_s12 + $0x30] sm:$0xff] }
0x1521   : > { %v12305_v19 = vmul.f32 %v12300_v37, %v17984_v26 }
0x1522   : > { %v12385_v31 = vpop.permute.xlu0 %12384 }
0x1523   : > { %v12387_v3 = vpop.permute.xlu1 %12386  ;;  %v12391_v18 = vsel %vm1416_vm5, 0.0, %v12385_v31 }
0x1524   : > { %v12388_v42 = vsel %vm1416_vm5, %v12385_v31, %v12387_v3  ;;  %v12392_v41 = vmul.f32 %v12391_v18, %v18019_v44  ;;  %v19551_v18 = vld [vmem:[%s17711_s9 + $0x18] ss:$0 sm:$0xff] }
0x1525   : > { %15573 = vmatmul.mubr.msk.f32.vlgmr.msra.gmra.mrb[26].mxu1 %vm2044_vm10, %v15572_v2  ;;  %v12393_v20 = vmul.f32 %v12388_v42, %v18008_v38  ;;  %v15590_v2 = vld [vmem:[%s19894_s3 + $0x30] sm:$0xff] }
0x1526   : > { %12224 = vmatpush1.msra.mxu1 %v12216_v58  ;;  %12287 = vmatprep.mubr.f32.mxu1 %v19873_v5  ;;  %v12473_v56 = vpop.permute.xlu0 %12472 }
0x1527   : > { %12311 = vmatprep.subr.mxu1 %v12305_v19  ;;  %v12475_v25 = vpop.permute.xlu1 %12474  ;;  %v12479_v48 = vsel %vm1416_vm5, 0.0, %v12473_v56 }
0x1528   : > { %v12476_v61 = vsel %vm1416_vm5, %v12473_v56, %v12475_v25  ;;  %v12480_v30 = vmul.f32 %v12479_v48, %v18019_v44  ;;  %v15594_v56 = vld [vmem:[%s19894_s3 + $0x38] sm:$0xff]  ;;  %v13148_v25 = vmul.f32 %v18266_v49, %v18086_v8  ;;  %v13317_v48 = vmul.f32 %v19551_v18, %v18253_v39 }
0x1529   : > { %v12481_v54 = vmul.f32 %v12476_v61, %v18008_v38 }
0x152a   : > { %v12719_v55 = vpop.permute.xlu0 %12718 }
0x152b   : > { %v12723_v22 = vsel %vm19899_vm7, %v12719_v55, 0.0 }
0x152c   : > { %v12725_v15 = vmul.f32 %v12723_v22, %v18035_v50 }
0x152d   : > { %15575 = vmatmul.mubr.msk.f32.vlgmr.msra.gmra.mrb[26].mxu1 %vm2044_vm10, %v15574_v53  ;;  %v13149_v53 = vmul.f32 %v18250_v36, %v18075_v6 }
0x152e   : > { %12312 = vmatpush1.msra.mxu1 %v12304_v11  ;;  %12375 = vmatprep.mubr.f32.mxu1 %v19873_v5  ;;  %v12887_v47 = vpop.permute.xlu0 %12886 }
0x152f   : > { %12399 = vmatprep.subr.mxu1 %v12393_v20 }
0x1535   : > { %15577 = vmatmul.mubr.msk.f32.vlgmr.msra.gmra.mrb[26].mxu1 %vm2044_vm10, %v15576_v51 }
0x1536   : > { %12400 = vmatpush1.msra.mxu1 %v12392_v41  ;;  %12463 = vmatprep.mubr.f32.mxu1 %v19873_v5  ;;  %v15596_v41 = vld [vmem:[%s19888_s12 + $0x38] sm:$0xff] }
0x1537   : > { %12487 = vmatprep.subr.mxu1 %v12481_v54  ;;  %v19559_v54 = vld [vmem:[%s17711_s9 + $0x10] ss:$0 sm:$0xff] }
0x153d   : > { %15579 = vmatmul.mubr.msk.f32.vlgmr.msra.gmra.mrb[26].mxu1 %vm2044_vm10, %v15578_v62  ;;  %v15598_v62 = vld [vmem:[%s19894_s3 + $0x40] sm:$0xff] }
0x153e   : > { %12488 = vmatpush1.msra.mxu1 %v12480_v30  ;;  %12551 = vmatprep.mubr.f32.mxu1 %v19873_v5  ;;  %v19909_v30 = vld [vmem:[#allocation26_spill] sm:$0xff] }
0x153f   : > { %12565 = vmatprep.subr.mxu1 %v19402_v60  ;;  %v12717_v60 = vpop.permute.xlu1 %12716 }
0x1543   : > { %v12885_v40 = vpop.permute.xlu1 %12884 }
0x1544   : > { %v12888_v10 = vsel %vm19902_vm11, %v12885_v40, %v12887_v47  ;;  %vm19913_vm11 = vmmov %vm19901_vm9 }
0x1545   : > { %15581 = vmatmul.mubr.msk.f32.vlgmr.msra.gmra.mrb[26].mxu1 %vm2044_vm10, %v15580_v23  ;;  %v12892_v9 = vmul.f32 %v12888_v10, %v18069_v4  ;;  %v13316_v23 = vmul.f32 %v19559_v54, %v19909_v30 }
0x1546   : > { %12566 = vmatpush1.msra.mxu1 %v19399_v46  ;;  %12629 = vmatprep.mubr.f32.mxu1 %v19873_v5  ;;  %v12720_v46 = vsel %vm19900_vm8, %v12717_v60, %v12719_v55  ;;  %v15600_v55 = vld [vmem:[%s19888_s12 + $0x40] sm:$0xff]  ;;  %vm19912_vm8 = vmmov %vm19899_vm7 }
0x1547   : > { %12643 = vmatprep.subr.mxu1 %v18232_v29  ;;  %v12724_v12 = vmul.f32 %v12720_v46, %v18049_v57  ;;  %v12805_v29 = vmul.f32 %v18247_v33, %v18035_v50  ;;  %v12975_v33 = vpop.permute.xlu0 %12974  ;;  %v12973_v1 = vpop.permute.xlu1 %12972 }
0x1548   : > { %v12979_v0 = vsel %vm19903_vm12, %v12975_v33, 0.0  ;;  %v12976_v45 = vsel %vm19904_vm13, %v12973_v1, %v12975_v33  ;;  %v15602_v33 = vld [vmem:[%s19910_s0 + $0x8] sm:$0xff]  ;;  %vm19914_vm12 = vmmov %vm19905_vm14 }
0x1549   : > { %v12981_v43 = vmul.f32 %v12979_v0, %v18055_v59  ;;  %v12980_v58 = vmul.f32 %v12976_v45, %v18069_v4  ;;  %vm19915_vm13 = vmmov %vm19914_vm12 }
0x154b   : > { %v13063_v34 = vpop.permute.xlu0 %13062  ;;  %v13061_v31 = vpop.permute.xlu1 %13060 }
0x154c   : > { %v13067_v37 = vsel %vm19905_vm14, %v13063_v34, 0.0  ;;  %v13064_v3 = vsel %vm19906_vm15, %v13061_v31, %v13063_v34  ;;  %vm19916_vm14 = vmmov %vm19908_vm1 }
0x154d   : > { %15583 = vmatmul.mubr.msk.f32.vlgmr.msra.gmra.mrb[26].mxu1 %vm2044_vm10, %v15582_v7  ;;  %v13069_v19 = vmul.f32 %v13067_v37, %v18075_v6  ;;  %v13068_v42 = vmul.f32 %v13064_v3, %v18086_v8  ;;  %vm19917_vm15 = vmmov %vm19908_vm1 }
0x154e   : > { %12644 = vmatpush1.msra.mxu1 %v18230_v28  ;;  %12707 = vmatprep.mubr.f32.mxu1 %v19873_v5  ;;  %v12891_v28 = vsel %vm19901_vm9, %v12887_v47, 0.0 }
0x154f   : > { %12731 = vmatprep.subr.mxu1 %v12725_v15  ;;  %v12893_v24 = vmul.f32 %v12891_v28, %v18055_v59  ;;  %v13231_v11 = vpop.permute.xlu0 %13230  ;;  %v13229_v36 = vpop.permute.xlu1 %13228 }
0x1550   : > { %v13235_v20 = vsel %vm19907_vm2, %v13231_v11, 0.0  ;;  %v13232_v51 = vsel %vm19908_vm1, %v13229_v36, %v13231_v11  ;;  %v15605_v11 = vld [vmem:[%s19910_s0 + $0x10] sm:$0xff]  ;;  %vm19918_vm2 = vmmov %vm19897_vm4 }
0x1551   : > { %v13237_v61 = vmul.f32 %v19551_v18, %v13235_v20  ;;  %v13236_v49 = vmul.f32 %v19559_v54, %v13232_v51  ;;  %vm19919_vm1 = vmmov %vm19918_vm2 }
0x1553   : > { %v13400_v22 = vpop.permute.xlu0 %13399 }
0x1555   : > { %15585 = vmatmul.mubr.msk.f32.vlgmr.msra.gmra.mrb[26].mxu1 %vm2044_vm10, %v15584_v32 }
0x1556   : > { %12732 = vmatpush1.msra.mxu1 %v12724_v12  ;;  %12795 = vmatprep.mubr.f32.mxu1 %v19873_v5  ;;  %v14185_v12 = vld [vmem:[%s17871_s4] sm:$0xff] }
0x1557   : > { %12811 = vmatprep.subr.mxu1 %v12805_v29 }
0x155d   : > { %15587 = vmatmul.mubr.msk.f32.vlgmr.msra.gmra.mrb[26].mxu1 %vm2044_vm10, %v15586_v21 }
0x155e   : > { %12812 = vmatpush1.msra.mxu1 %v12804_v63  ;;  %12875 = vmatprep.mubr.f32.mxu1 %v19873_v5 }
0x155f   : > { %12899 = vmatprep.subr.mxu1 %v12893_v24 }
0x1565   : > { %15589 = vmatmul.mubr.msk.f32.vlgmr.msra.gmra.mrb[26].mxu1 %vm2044_vm10, %v15588_v27 }
0x1566   : > { %12900 = vmatpush1.msra.mxu1 %v12892_v9  ;;  %12963 = vmatprep.mubr.f32.mxu1 %v19873_v5 }
0x1567   : > { %12987 = vmatprep.subr.mxu1 %v12981_v43 }
0x156d   : > { %15591 = vmatmul.mubr.msk.f32.vlgmr.msra.gmra.mrb[26].mxu1 %vm2044_vm10, %v15590_v2 }
0x156e   : > { %12988 = vmatpush1.msra.mxu1 %v12980_v58  ;;  %13051 = vmatprep.mubr.f32.mxu1 %v19873_v5 }
0x156f   : > { %13075 = vmatprep.subr.mxu1 %v13069_v19  ;;  %v13418_v19 = vld [vmem:[%s19910_s0] sm:$0xff] }
0x1575   : > { %15593 = vmatmul.mubr.msk.f32.vlgmr.msra.gmra.mrb[26].mxu1 %vm2044_vm10, %v15592_v52 }
0x1576   : > { %13076 = vmatpush1.msra.mxu1 %v13068_v42  ;;  %13139 = vmatprep.mubr.f32.mxu1 %v19873_v5 }
0x1577   : > { %13155 = vmatprep.subr.mxu1 %v13149_v53 }
0x157d   : > { %15595 = vmatmul.mubr.msk.f32.vlgmr.msra.gmra.mrb[26].mxu1 %vm2044_vm10, %v15594_v56 }
0x157e   : > { %13156 = vmatpush1.msra.mxu1 %v13148_v25  ;;  %13219 = vmatprep.mubr.f32.mxu1 %v19873_v5 }
0x157f   : > { %13243 = vmatprep.subr.mxu1 %v13237_v61  ;;  %v15607_v61 = vld [vmem:[%s19910_s0 + $0x18] sm:$0xff] }
0x1585   : > { %15597 = vmatmul.mubr.msk.f32.vlgmr.msra.gmra.mrb[26].mxu1 %vm2044_vm10, %v15596_v41 }
0x1586   : > { %13244 = vmatpush1.msra.mxu1 %v13236_v49  ;;  %13307 = vmatprep.mubr.f32.mxu1 %v19873_v5 }
0x1587   : > { %13323 = vmatprep.subr.mxu1 %v13317_v48 }
0x158d   : > { %15599 = vmatmul.mubr.msk.f32.vlgmr.msra.gmra.mrb[26].mxu1 %vm2044_vm10, %v15598_v62  ;;  %v15609_v62 = vld [vmem:[%s19910_s0 + $0x20] sm:$0xff] }
0x158e   : > { %13324 = vmatpush1.msra.mxu1 %v13316_v23  ;;  %13387 = vmatprep.mubr.f32.mxu1 %v19873_v5 }
0x1595   : > { %15601 = vmatmul.mubr.msk.f32.vlgmr.msra.gmra.mrb[26].mxu1 %vm2044_vm10, %v15600_v55 }
0x1596   : > { %14287 = vmatprep.mubr.f32.mxu1 %v19873_v5 }
0x1668   : > { %v13389_v39 = vpop.f32.mrb[26].mxu1 }
0x1669   : > { %v13402_v7 = vadd.f32 %v13400_v22, %v13389_v39  ;;  %v13391_v15 = vpop.f32.mrb[27].mxu1 }
0x166a   : > { %v13403_v60 = vadd.f32 %v13400_v22, %v13391_v15  ;;  %v15611_v15 = vld [vmem:[%s19910_s0 + $0x28] sm:$0xff] }
0x166b   : > { %v19574_v46 = vmax.f32 %v13402_v7, 0.0 }
0x166c   : > { %v13405_v32 = vmax.f32 %v13403_v60, 0.0 }
0x166d   : > { %13419 = vrot.lane.b32.xlu1 %v19574_v46, %s19890_s11 }
0x166e   : > { %13421 = vrot.lane.b32.xlu0 %v13405_v32, %s19890_s11 }
0x1671   : > { %13408 = vrot.lane.b32.xlu1 %v19574_v46, %s19880_s23 }
0x1672   : > { %13410 = vrot.lane.b32.xlu0 %v13405_v32, %s19880_s23 }
0x1675   : > { %13579 = vrot.lane.b32.xlu1 %v19574_v46, %s19891_s10 }
0x1676   : > { %13581 = vrot.lane.b32.xlu0 %v13405_v32, %s19891_s10 }
0x1679   : > { %13667 = vrot.lane.b32.xlu1 %v19574_v46, %s19865_s7 }
0x167a   : > { %13669 = vrot.lane.b32.xlu0 %v13405_v32, %s19865_s7 }
0x167d   : > { %13835 = vrot.lane.b32.xlu1 %v13405_v32, %s19866_s8 }
0x167e   : > { %13833 = vrot.lane.b32.xlu0 %v19574_v46, %s19866_s8 }
0x1681   : > { %13923 = vrot.lane.b32.xlu1 %v13405_v32, %s19893_s2 }
0x1682   : > { %13921 = vrot.lane.b32.xlu0 %v19574_v46, %s19893_s2 }
0x1685   : > { %14011 = vrot.lane.b32.xlu1 %v13405_v32, %s19895_s5 }
0x1686   : > { %14009 = vrot.lane.b32.xlu0 %v19574_v46, %s19895_s5 }
0x1689   : > { %14099 = vrot.lane.b32.xlu1 %v13405_v32, %s19896_s13 }
0x168a   : > { %14097 = vrot.lane.b32.xlu0 %v19574_v46, %s19896_s13 }
0x168d   : > { %14188 = vperm.xlu1 %17625, %v14185_v12  }
0x16df   : > { %v13420_v29 = vpop.permute.xlu1 %13419 }
0x16e0   : > { %v13426_v47 = vsel %vm1130_vm0, 0.0, %v13420_v29  ;;  %v13422_v28 = vpop.permute.xlu0 %13421 }
0x16e1   : > { %v13423_v21 = vsel %vm1130_vm0, %v13420_v29, %v13422_v28  ;;  %v13427_v24 = vmul.f32 %v13426_v47, %v17974_v17  ;;  %v15613_v28 = vld [vmem:[%s19910_s0 + $0x30] sm:$0xff] }
0x16e2   : > { %v13428_v63 = vmul.f32 %v13423_v21, %v17963_v14 }
0x16e3   : > { %v13409_v40 = vpop.permute.xlu1 %13408 }
0x16e4   : > { %v13415_v10 = vsel %vm19897_vm4, 0.0, %v13409_v40  ;;  %13434 = vmatprep.subr.mxu0 %v13428_v63  ;;  %v13411_v0 = vpop.permute.xlu0 %13410 }
0x16e5   : > { %v13412_v27 = vsel %vm19911_vm6, %v13409_v40, %v13411_v0  ;;  %13435 = vmatpush1.msra.mxu0 %v13427_v24  ;;  %v13416_v43 = vmul.f32 %v13415_v10, %v17970_v16  ;;  %v15617_v0 = vld [vmem:[%s19910_s0 + $0x40] sm:$0xff]  ;;  %vm19924_vm6 = vmmov %vm19914_vm12 }
0x16e6   : > { %v13417_v9 = vmul.f32 %v13412_v27, %v17959_v13  ;;  %15603 = vmatmul.mubr.msk.f32.vlgmr.msra.gmra.mrb[22].mxu0 %vm2044_vm10, %v15602_v33  ;;  %v15615_v33 = vld [vmem:[%s19910_s0 + $0x38] sm:$0xff] }
0x16e7   : > { %v13580_v1 = vpop.permute.xlu1 %13579  ;;  %13572 = vmatprep.mubr.f32.mxu0 %v19873_v5 }
0x16e8   : > { %13508 = vmatprep.subr.mxu0 %v13417_v9  ;;  %v13582_v34 = vpop.permute.xlu0 %13581  ;;  %v13586_v37 = vsel %vm1313_vm3, 0.0, %v13580_v1 }
0x16e9   : > { %v13583_v45 = vsel %vm1313_vm3, %v13580_v1, %v13582_v34  ;;  %13509 = vmatpush1.msra.mxu0 %v13416_v43  ;;  %v13587_v3 = vmul.f32 %v13586_v37, %v18002_v35 }
0x16ea   : > { %v13588_v2 = vmul.f32 %v13583_v45, %v17984_v26 }
0x16eb   : > { %v13668_v58 = vpop.permute.xlu1 %13667 }
0x16ec   : > { %13594 = vmatprep.subr.mxu0 %v13588_v2  ;;  %v13670_v31 = vpop.permute.xlu0 %13669  ;;  %v13674_v53 = vsel %vm1416_vm5, 0.0, %v13668_v58  ;;  %v14974_v2 = vld [vmem:[%s17881_s20] sm:$0x7] }
0x16ed   : > { %v13671_v52 = vsel %vm1416_vm5, %v13668_v58, %v13670_v31  ;;  %v13675_v20 = vmul.f32 %v13674_v53, %v18019_v44 }
0x16ee   : > { %v13676_v42 = vmul.f32 %v13671_v52, %v18008_v38  ;;  %15604 = vmatmul.mubr.msk.f32.vlgmr.msra.gmra.mrb[22].mxu0 %vm2044_vm10, %v13418_v19 }
0x16ef   : > { %13595 = vmatpush1.msra.mxu0 %v13587_v3  ;;  %13658 = vmatprep.mubr.f32.mxu0 %v19873_v5  ;;  %v13836_v56 = vpop.permute.xlu1 %13835 }
0x16f0   : > { %13682 = vmatprep.subr.mxu0 %v13676_v42  ;;  %v13840_v25 = vsel %vm19899_vm7, %v13836_v56, 0.0  ;;  %v13834_v51 = vpop.permute.xlu0 %13833 }
0x16f1   : > { %v13842_v36 = vmul.f32 %v13840_v25, %v18035_v50  ;;  %v13837_v49 = vsel %vm19912_vm8, %v13834_v51, %v13836_v56  ;;  %vm19926_vm8 = vmmov %vm19916_vm14 }
0x16f2   : > { %v13841_v30 = vmul.f32 %v13837_v49, %v18049_v57 }
0x16f3   : > { %v13924_v41 = vpop.permute.xlu1 %13923 }
0x16f4   : > { %v13928_v48 = vsel %vm19901_vm9, %v13924_v41, 0.0  ;;  %v13922_v55 = vpop.permute.xlu0 %13921 }
0x16f5   : > { %v13930_v23 = vmul.f32 %v13928_v48, %v18055_v59  ;;  %v13925_v39 = vsel %vm19913_vm11, %v13922_v55, %v13924_v41 }
0x16f6   : > { %15606 = vmatmul.mubr.msk.f32.vlgmr.msra.gmra.mrb[22].mxu0 %vm2044_vm10, %v15605_v11  ;;  %v13929_v60 = vmul.f32 %v13925_v39, %v18069_v4  ;;  %v15619_v11 = vld [vmem:[%s17876_s6 + $0x4] sm:$0x7]  ;;  %v15624_v39 = vld [vmem:[%s17876_s6 + $0xc] sm:$0x7] }
0x16f7   : > { %13683 = vmatpush1.msra.mxu0 %v13675_v20  ;;  %13746 = vmatprep.mubr.f32.mxu0 %v19873_v5  ;;  %v14012_v22 = vpop.permute.xlu1 %14011 }
0x16f8   : > { %13760 = vmatprep.subr.mxu0 %v13405_v32  ;;  %v14016_v7 = vsel %vm19914_vm12, %v14012_v22, 0.0  ;;  %v14010_v32 = vpop.permute.xlu0 %14009 }
0x16f9   : > { %v14013_v29 = vsel %vm19915_vm13, %v14010_v32, %v14012_v22  ;;  %v15626_v32 = vld [vmem:[%s17876_s6 + $0x10] sm:$0x7] }
0x16fa   : > { %v14017_v21 = vmul.f32 %v14013_v29, %v18086_v8 }
0x16fb   : > { %v14100_v12 = vpop.permute.xlu1 %14099 }
0x16fc   : > { %v14104_v47 = vsel %vm19916_vm14, %v14100_v12, 0.0  ;;  %v14098_v24 = vpop.permute.xlu0 %14097 }
0x16fd   : > { %v14106_v63 = vmul.f32 %v19551_v18, %v14104_v47  ;;  %v14101_v40 = vsel %vm19917_vm15, %v14098_v24, %v14100_v12 }
0x16fe   : > { %15608 = vmatmul.mubr.msk.f32.vlgmr.msra.gmra.mrb[22].mxu0 %vm2044_vm10, %v15607_v61  ;;  %v14105_v10 = vmul.f32 %v19559_v54, %v14101_v40 }
0x16ff   : > { %13761 = vmatpush1.msra.mxu0 %v19574_v46  ;;  %13824 = vmatprep.mubr.f32.mxu0 %v19873_v5  ;;  %v14018_v46 = vmul.f32 %v14016_v7, %v18075_v6 }
0x1700   : > { %13848 = vmatprep.subr.mxu0 %v13842_v36 }
0x1706   : > { %15610 = vmatmul.mubr.msk.f32.vlgmr.msra.gmra.mrb[22].mxu0 %vm2044_vm10, %v15609_v62  ;;  %v14207_v62 = vld [vmem:[%s17876_s6] sm:$0x7] }
0x1707   : > { %13849 = vmatpush1.msra.mxu0 %v13841_v30  ;;  %13912 = vmatprep.mubr.f32.mxu0 %v19873_v5 }
0x1708   : > { %13936 = vmatprep.subr.mxu0 %v13930_v23 }
0x170c   : > { %v14189_v27 = vpop.permute.xlu1 %14188 }
0x170e   : > { %15612 = vmatmul.mubr.msk.f32.vlgmr.msra.gmra.mrb[22].mxu0 %vm2044_vm10, %v15611_v15 }
0x170f   : > { %13937 = vmatpush1.msra.mxu0 %v13929_v60  ;;  %14000 = vmatprep.mubr.f32.mxu0 %v19873_v5 }
0x1710   : > { %14024 = vmatprep.subr.mxu0 %v14018_v46 }
0x1716   : > { %15614 = vmatmul.mubr.msk.f32.vlgmr.msra.gmra.mrb[22].mxu0 %vm2044_vm10, %v15613_v28 }
0x1717   : > { %14025 = vmatpush1.msra.mxu0 %v14017_v21  ;;  %14088 = vmatprep.mubr.f32.mxu0 %v19873_v5 }
0x1718   : > { %14112 = vmatprep.subr.mxu0 %v14106_v63  ;;  %v15628_v63 = vld [vmem:[%s17876_s6 + $0x14] sm:$0x7] }
0x171e   : > { %15616 = vmatmul.mubr.msk.f32.vlgmr.msra.gmra.mrb[22].mxu0 %vm2044_vm10, %v15615_v33 }
0x171f   : > { %14113 = vmatpush1.msra.mxu0 %v14105_v10  ;;  %14176 = vmatprep.mubr.f32.mxu0 %v19873_v5 }
0x1726   : > { %15618 = vmatmul.mubr.msk.f32.vlgmr.msra.gmra.mrb[22].mxu0 %vm2044_vm10, %v15617_v0  ;;  %v15630_v0 = vld [vmem:[%s17876_s6 + $0x18] sm:$0x7] }
0x17f9   : > { %v14178_v9 = vpop.f32.mrb[22].mxu0 }
0x17fa   : > { %v14191_v43 = vadd.f32 %v14189_v27, %v14178_v9  ;;  %v14180_v1 = vpop.f32.mrb[23].mxu0 }
0x17fb   : > { %v14192_v34 = vadd.f32 %v14189_v27, %v14180_v1 }
0x17fc   : > { %v19660_v45 = vmax.f32 %v14191_v43, 0.0  ;;  %v15632_v43 = vld [vmem:[%s17876_s6 + $0x1c] sm:$0x7] }
0x17fd   : > { %v14194_v37 = vmax.f32 %v14192_v34, 0.0 }
0x17fe   : > { %14208 = vrot.lane.b32.xlu0 %v19660_v45, %s19890_s11 }
0x17ff   : > { %14210 = vrot.lane.b32.xlu1 %v14194_v37, %s19890_s11 }
0x1802   : > { %14197 = vrot.lane.b32.xlu0 %v19660_v45, %s19880_s23 }
0x1803   : > { %14199 = vrot.lane.b32.xlu1 %v14194_v37, %s19880_s23 }
0x1806   : > { %14368 = vrot.lane.b32.xlu0 %v19660_v45, %s19891_s10 }
0x1807   : > { %14370 = vrot.lane.b32.xlu1 %v14194_v37, %s19891_s10 }
0x180a   : > { %14456 = vrot.lane.b32.xlu0 %v19660_v45, %s19865_s7 }
0x180b   : > { %14458 = vrot.lane.b32.xlu1 %v14194_v37, %s19865_s7 }
0x180e   : > { %14624 = vrot.lane.b32.xlu0 %v14194_v37, %s19866_s8 }
0x180f   : > { %14622 = vrot.lane.b32.xlu1 %v19660_v45, %s19866_s8 }
0x1812   : > { %14712 = vrot.lane.b32.xlu0 %v14194_v37, %s19893_s2 }
0x1813   : > { %14710 = vrot.lane.b32.xlu1 %v19660_v45, %s19893_s2 }
0x1816   : > { %14800 = vrot.lane.b32.xlu0 %v14194_v37, %s19895_s5 }
0x1817   : > { %14798 = vrot.lane.b32.xlu1 %v19660_v45, %s19895_s5  ;;  %s19928_s5 = sshll.u32 %s19930_s1, 3 }
0x181a   : > { %14888 = vrot.lane.b32.xlu0 %v14194_v37, %s19896_s13 }
0x181b   : > { %14886 = vrot.lane.b32.xlu1 %v19660_v45, %s19896_s13  ;;  %s1098_s13 = scalar_lea.vmem %s17886_s27, %s19928_s5 }
0x181e   : > { %14977 = vperm.xlu0 %17624, %v14974_v2  }
0x1870   : > { %v14209_v58 = vpop.permute.xlu0 %14208 }
0x1871   : > { %v14215_v19 = vsel %vm1130_vm0, 0.0, %v14209_v58  ;;  %v14211_v31 = vpop.permute.xlu1 %14210 }
0x1872   : > { %v14212_v3 = vsel %vm1130_vm0, %v14209_v58, %v14211_v31  ;;  %v14216_v42 = vmul.f32 %v14215_v19, %v17974_v17  ;;  %vm19920_vm0 = vmmov %vm19899_vm7 }
0x1873   : > { %v14217_v52 = vmul.f32 %v14212_v3, %v17963_v14  ;;  %vm19925_vm7 = vmmov %vm19924_vm6 }
0x1874   : > { %v14198_v53 = vpop.permute.xlu0 %14197 }
0x1875   : > { %v14204_v20 = vsel %vm19918_vm2, 0.0, %v14198_v53  ;;  %14223 = vmatprep.subr.mxu1 %v14217_v52  ;;  %v14200_v56 = vpop.permute.xlu1 %14199 }
0x1876   : > { %v14201_v25 = vsel %vm19919_vm1, %v14198_v53, %v14200_v56  ;;  %14224 = vmatpush1.msra.mxu1 %v14216_v42  ;;  %v14205_v36 = vmul.f32 %v14204_v20, %v17970_v16 }
0x1877   : > { %v14206_v61 = vmul.f32 %v14201_v25, %v17959_v13  ;;  %15620 = vmatmul.mubr.msk.f32.vlgmr.msra.gmra.mrb[28].mxu1 %vm2044_vm10, %v15619_v11 }
0x1878   : > { %v14369_v51 = vpop.permute.xlu0 %14368  ;;  %14361 = vmatprep.mubr.f32.mxu1 %v19873_v5 }
0x1879   : > { %14297 = vmatprep.subr.mxu1 %v14206_v61  ;;  %v14371_v14 = vpop.permute.xlu1 %14370  ;;  %v14375_v41 = vsel %vm1313_vm3, 0.0, %v14369_v51 }
0x187a   : > { %v14372_v17 = vsel %vm1313_vm3, %v14369_v51, %v14371_v14  ;;  %14298 = vmatpush1.msra.mxu1 %v14205_v36  ;;  %v14376_v30 = vmul.f32 %v14375_v41, %v18002_v35  ;;  %vm19921_vm3 = vmmov %vm19920_vm0 }
0x187b   : > { %v14377_v49 = vmul.f32 %v14372_v17, %v17984_v26  ;;  %v15622_v26 = vld [vmem:[%s17876_s6 + $0x8] sm:$0x7] }
0x187c   : > { %v14457_v48 = vpop.permute.xlu0 %14456 }
0x187d   : > { %14383 = vmatprep.subr.mxu1 %v14377_v49  ;;  %v14459_v13 = vpop.permute.xlu1 %14458  ;;  %v14463_v55 = vsel %vm1416_vm5, 0.0, %v14457_v48 }
0x187e   : > { %v14460_v16 = vsel %vm1416_vm5, %v14457_v48, %v14459_v13  ;;  %v14464_v22 = vmul.f32 %v14463_v55, %v18019_v44  ;;  %vm19922_vm5 = vmmov %vm19901_vm9 }
0x187f   : > { %v14465_v23 = vmul.f32 %v14460_v16, %v18008_v38  ;;  %15621 = vmatmul.mubr.msk.f32.vlgmr.msra.gmra.mrb[28].mxu1 %vm2044_vm10, %v14207_v62  ;;  %vm19923_vm4 = vmmov %vm19922_vm5 }
0x1880   : > { %14384 = vmatpush1.msra.mxu1 %v14376_v30  ;;  %14447 = vmatprep.mubr.f32.mxu1 %v19873_v5  ;;  %v14625_v35 = vpop.permute.xlu0 %14624  ;;  %vm19927_vm9 = vmmov %vm19926_vm8 }
0x1881   : > { %14471 = vmatprep.subr.mxu1 %v14465_v23  ;;  %v14629_v38 = vsel %vm19920_vm0, %v14625_v35, 0.0  ;;  %v14623_v15 = vpop.permute.xlu1 %14622 }
0x1882   : > { %v14631_v7 = vmul.f32 %v14629_v38, %v18035_v50  ;;  %v14626_v60 = vsel %vm19921_vm3, %v14623_v15, %v14625_v35 }
0x1883   : > { %v14630_v12 = vmul.f32 %v14626_v60, %v18049_v57 }
0x1884   : > { %v14713_v44 = vpop.permute.xlu0 %14712 }
0x1885   : > { %v14717_v46 = vsel %vm19922_vm5, %v14713_v44, 0.0  ;;  %v14711_v50 = vpop.permute.xlu1 %14710 }
0x1886   : > { %v14719_v29 = vmul.f32 %v14717_v46, %v18055_v59  ;;  %v14714_v28 = vsel %vm19923_vm4, %v14711_v50, %v14713_v44 }
0x1887   : > { %15623 = vmatmul.mubr.msk.f32.vlgmr.msra.gmra.mrb[28].mxu1 %vm2044_vm10, %v15622_v26  ;;  %v14718_v24 = vmul.f32 %v14714_v28, %v18069_v4 }
0x1888   : > { %14472 = vmatpush1.msra.mxu1 %v14464_v22  ;;  %14535 = vmatprep.mubr.f32.mxu1 %v19873_v5  ;;  %v14801_v47 = vpop.permute.xlu0 %14800 }
0x1889   : > { %14549 = vmatprep.subr.mxu1 %v14194_v37  ;;  %v14805_v21 = vsel %vm19924_vm6, %v14801_v47, 0.0  ;;  %v14799_v59 = vpop.permute.xlu1 %14798 }
0x188a   : > { %v14807_v57 = vmul.f32 %v14805_v21, %v18075_v6  ;;  %v14802_v33 = vsel %vm19925_vm7, %v14799_v59, %v14801_v47 }
0x188b   : > { %v14806_v27 = vmul.f32 %v14802_v33, %v18086_v8  ;;  %v15634_v8 = vld [vmem:[%s17876_s6 + $0x20] sm:$0x7] }
0x188c   : > { %v14889_v40 = vpop.permute.xlu0 %14888 }
0x188d   : > { %v14893_v10 = vsel %vm19926_vm8, %v14889_v40, 0.0  ;;  %v14887_v6 = vpop.permute.xlu1 %14886 }
0x188e   : > { %v14895_v4 = vmul.f32 %v19551_v18, %v14893_v10  ;;  %v14890_v9 = vsel %vm19927_vm9, %v14887_v6, %v14889_v40 }
0x188f   : > { %15625 = vmatmul.mubr.msk.f32.vlgmr.msra.gmra.mrb[28].mxu1 %vm2044_vm10, %v15624_v39  ;;  %v14894_v1 = vmul.f32 %v19559_v54, %v14890_v9 }
0x1890   : > { %14550 = vmatpush1.msra.mxu1 %v19660_v45  ;;  %14613 = vmatprep.mubr.f32.mxu1 %v19873_v5 }
0x1891   : > { %14637 = vmatprep.subr.mxu1 %v14631_v7 }
0x1897   : > { %15627 = vmatmul.mubr.msk.f32.vlgmr.msra.gmra.mrb[28].mxu1 %vm2044_vm10, %v15626_v32 }
0x1898   : > { %14638 = vmatpush1.msra.mxu1 %v14630_v12  ;;  %14701 = vmatprep.mubr.f32.mxu1 %v19873_v5 }
0x1899   : > { %14725 = vmatprep.subr.mxu1 %v14719_v29 }
0x189d   : > { %v14978_v18 = vpop.permute.xlu0 %14977 }
0x189f   : > { %15629 = vmatmul.mubr.msk.f32.vlgmr.msra.gmra.mrb[28].mxu1 %vm2044_vm10, %v15628_v63 }
0x18a0   : > { %14726 = vmatpush1.msra.mxu1 %v14718_v24  ;;  %14789 = vmatprep.mubr.f32.mxu1 %v19873_v5 }
0x18a1   : > { %14813 = vmatprep.subr.mxu1 %v14807_v57 }
0x18a7   : > { %15631 = vmatmul.mubr.msk.f32.vlgmr.msra.gmra.mrb[28].mxu1 %vm2044_vm10, %v15630_v0 }
0x18a8   : > { %14814 = vmatpush1.msra.mxu1 %v14806_v27  ;;  %14877 = vmatprep.mubr.f32.mxu1 %v19873_v5 }
0x18a9   : > { %14901 = vmatprep.subr.mxu1 %v14895_v4 }
0x18af   : > { %15633 = vmatmul.mubr.msk.f32.vlgmr.msra.gmra.mrb[28].mxu1 %vm2044_vm10, %v15632_v43 }
0x18b0   : > { %14902 = vmatpush1.msra.mxu1 %v14894_v1  ;;  %14965 = vmatprep.mubr.f32.mxu1 %v19873_v5 }
0x18b7   : > { %15635 = vmatmul.mubr.msk.f32.vlgmr.msra.gmra.mrb[28].mxu1 %vm2044_vm10, %v15634_v8 }
0x198a   : > { %v14967_v34 = vpop.f32.mrb[28].mxu1 }
0x198b   : > { %v14980_v45 = vadd.f32 %v14978_v18, %v14967_v34  ;;  %v14969_v37 = vpop.f32.mrb[29].mxu1 }
0x198c   : > { %v14981_v2 = vadd.f32 %v14978_v18, %v14969_v37 }
0x198e   : > { %v14984_v58 = vcombine.low %v14980_v45, %v14981_v2 }
0x1990   : > { %14986 = vst [vmem:[%s1098_s13] sm:$0x77] %v14984_v58 }
0x1991 PF: > { %s83_s28 = sadd.s32 1, %s17636_s28  }
0x1992   : > { %p80_p4 = scmp.ge.s32.totalorder %s83_s28, 4  }
0x1994   :  { %82 = sbr.rel (!%p80_p4) target bundleno = 71 (0x47), region = 356 }

</bundles_post_ra>
